<compile_context>
chip_gen: v7x
topology: tpu7x:2x2x1
jax: 0.10.0
libtpu: 0.0.40
codegen_flags: <defaults>
</compile_context>

<pallas_src>
import functools

import jax
import jax.numpy as jnp
from jax.experimental import pallas as pl
from jax.experimental.pallas import tpu as pltpu


def _round_up(n, m):
    return ((n + m - 1) // m) * m


def _tpu_cores_per_chip():
    """2 TensorCores per chip on v7x, 1 on v5e/v6e (best-effort sniff)."""
    try:
        kind = jax.devices()[0].device_kind.lower()
    except Exception:
        return 1
    return 2 if ("v7" in kind or "7x" in kind) else 1


def _dyn_kernel(x_ref, w1_ref, b1_ref, w2_ref, b2_ref, wh_ref, bh_ref,
                out_ref, *, offset_coef, out_dim):
    """One batch tile: (Bt, D) -> fused heads (Bt, NPAD)."""
    mxu_dt = w1_ref.dtype  # bf16 operands, f32 MXU accumulation

    def leaky_relu(v):  # LeakyReLU(0.1): max(v, 0.1*v) -- 2 VALU ops/elem
        return jnp.maximum(v, 0.1 * v)

    h = jnp.dot(x_ref[...], w1_ref[...],
                preferred_element_type=jnp.float32) + b1_ref[...]
    h = leaky_relu(h)
    h = jnp.dot(h.astype(mxu_dt), w2_ref[...],
                preferred_element_type=jnp.float32) + b2_ref[...]
    h = leaky_relu(h)
    # Fused heads: one (Bt, H) @ (H, NPAD) MXU push covering gains|offset|pad.
    y = jnp.dot(h.astype(mxu_dt), wh_ref[...],
                preferred_element_type=jnp.float32) + bh_ref[...]
    # Lane-dense select instead of two 8-lane sub-slices / masked stores:
    # lanes [0, O) -> gains, lanes [O, 2*O) -> offset, rest -> padding (zeros).
    lane = jax.lax.broadcasted_iota(jnp.int32, y.shape, dimension=1)
    out_ref[...] = jnp.where(lane < out_dim,
                             2.0 * jax.nn.sigmoid(y),
                             offset_coef * jnp.tanh(y))


def _choose_bt(B, block_b, num_cores):
    """Batch tile: 16-aligned (bf16 sublane pack), 256-aligned once tiled."""
    block_b = _round_up(max(int(block_b), 16), 16)
    if block_b >= 256:
        block_b = _round_up(block_b, 256)
    # On v7x make sure the batch grid has >= num_cores steps when B allows it,
    # so CORE_PARALLEL actually feeds the second TensorCore.
    if num_cores > 1 and B > 256:
        per_core = _round_up((B + num_cores - 1) // num_cores, 256)
        block_b = min(block_b, per_core)
    return min(_round_up(B, 16), block_b)


@functools.partial(
    jax.jit,
    static_argnames=("offset_coef", "out_dim", "block_b",
                     "single_buffer_weights", "core_parallel"))
def _forward_impl(x, kp, offset_coef, out_dim, block_b,
                  single_buffer_weights, core_parallel):
    B, D = x.shape
    NPAD = kp["wh"].shape[1]
    num_cores = 2 if core_parallel else 1

    Bt = _choose_bt(B, block_b, num_cores)
    Bp = _round_up(B, Bt)
    xp = x.astype(kp["w1"].dtype)            # bf16: halves the streamed bytes
    if Bp != B:
        xp = jnp.pad(xp, ((0, Bp - B), (0, 0)))

    kernel = functools.partial(_dyn_kernel,
                               offset_coef=float(offset_coef), out_dim=out_dim)

    const_idx = lambda i: (0, 0)  # resident weights: same full block each step
    if single_buffer_weights:
        # Block index never changes -> double buffering is pure VMEM waste.
        w_spec = lambda a: pl.BlockSpec(a.shape, const_idx,
                                        pipeline_mode=pl.Buffered(1))
    else:
        w_spec = lambda a: pl.BlockSpec(a.shape, const_idx)

    fused = pl.pallas_call(
        kernel,
        out_shape=jax.ShapeDtypeStruct((Bp, NPAD), jnp.float32),
        grid_spec=pltpu.PrefetchScalarGridSpec(
            num_scalar_prefetch=0,
            grid=(Bp // Bt,),
            in_specs=[
                pl.BlockSpec((Bt, D), lambda i: (i, 0)),   # streaming x tile
                w_spec(kp["w1"]), w_spec(kp["b1"]),
                w_spec(kp["w2"]), w_spec(kp["b2"]),
                w_spec(kp["wh"]), w_spec(kp["bh"]),
            ],
            out_specs=pl.BlockSpec((Bt, NPAD), lambda i: (i, 0)),
        ),
        compiler_params=pltpu.CompilerParams(
            dimension_semantics=(
                (pltpu.CORE_PARALLEL,) if core_parallel else ("parallel",))),
    )(xp, kp["w1"], kp["b1"], kp["w2"], kp["b2"], kp["wh"], kp["bh"])

    fused = fused[:B]
    return fused[:, :out_dim], fused[:, out_dim:2 * out_dim]


def dynamic_network_forward(x, kp, offset_coef, out_dim, block_b=1024):
    """x: (B, input_dim) f32; kp: prepared params; returns (gains, offset)."""
    core_parallel = _tpu_cores_per_chip() > 1
    try:
        return _forward_impl(x, kp, float(offset_coef), int(out_dim),
                             int(block_b), True, core_parallel)
    except Exception:
        # Fallback for jax versions without single-buffer pipeline_mode support.
        return _forward_impl(x, kp, float(offset_coef), int(out_dim),
                             int(block_b), False, core_parallel)


def init_params(key, D, H, O):
    """PyTorch-default-ish init. Weights stored as (in, out) == torch weight.T."""
    ks = jax.random.split(key, 8)

    def unif(k, shape, fan_in):
        b = 1.0 / jnp.sqrt(fan_in)
        return jax.random.uniform(k, shape, jnp.float32, -b, b)

    return dict(
        w1=unif(ks[0], (D, H), D), b1=unif(ks[1], (H,), D),
        w2=unif(ks[2], (H, H), H), b2=unif(ks[3], (H,), H),
        wg=unif(ks[4], (H, O), H), bg=unif(ks[5], (O,), H),
        wo=unif(ks[6], (H, O), H), bo=unif(ks[7], (O,), H),
    )


def prepare_params(p, mxu_dtype=jnp.bfloat16):
    """Host-side prep: bf16 MXU weights; gains/offset heads fused and
    zero-padded to a lane-dense (H, NPAD>=128) block for unmasked stores."""
    H, O = p["wg"].shape
    NPAD = _round_up(2 * O, 128)
    wh = jnp.zeros((H, NPAD), jnp.float32)
    wh = wh.at[:, :O].set(p["wg"]).at[:, O:2 * O].set(p["wo"])
    bh = jnp.zeros((NPAD,), jnp.float32)
    bh = bh.at[:O].set(p["bg"]).at[O:2 * O].set(p["bo"])
    return dict(
        w1=p["w1"].astype(mxu_dtype),
        b1=p["b1"].reshape(1, -1).astype(jnp.float32),
        w2=p["w2"].astype(mxu_dtype),
        b2=p["b2"].reshape(1, -1).astype(jnp.float32),
        wh=wh.astype(mxu_dtype),
        bh=bh.reshape(1, -1).astype(jnp.float32),
    )


def _reference(x, kp, offset_coef, out_dim):
    """Pure-JAX reference with identical bf16-operand / f32-accumulate numerics."""
    dt = kp["w1"].dtype
    h = jnp.dot(x.astype(dt), kp["w1"], preferred_element_type=jnp.float32) + kp["b1"]
    h = jnp.where(h >= 0.0, h, 0.1 * h)
    h = jnp.dot(h.astype(dt), kp["w2"], preferred_element_type=jnp.float32) + kp["b2"]
    h = jnp.where(h >= 0.0, h, 0.1 * h)
    y = jnp.dot(h.astype(dt), kp["wh"], preferred_element_type=jnp.float32) + kp["bh"]
    return (2.0 * jax.nn.sigmoid(y[:, :out_dim]),
            offset_coef * jnp.tanh(y[:, out_dim:2 * out_dim]))


if __name__ == "__main__":
    # Small shapes consistent with the module (hidden=1024 is hard-coded there).
    B, D, H, O = 8, 16, 1024, 8
    OFFSET_COEF = 0.5

    key = jax.random.PRNGKey(0)
    kx, kparam = jax.random.split(key)
    x = jax.random.normal(kx, (B, D), jnp.float32)
    raw = init_params(kparam, D, H, O)
    prm = prepare_params(raw)

    gains, offset = dynamic_network_forward(x, prm, OFFSET_COEF, O)
    gains, offset = jax.block_until_ready((gains, offset))

    rg, ro = _reference(x, prm, OFFSET_COEF, O)
    assert gains.shape == (B, O) and offset.shape == (B, O)
    assert jnp.allclose(gains, rg, rtol=1e-3, atol=2e-3)
    assert jnp.allclose(offset, ro, rtol=1e-3, atol=2e-3)
    print("KERNEL_OK")
</pallas_src>

<mosaic_0001>
module attributes {stable_mosaic.version = 11 : i64} {
  func.func @_dyn_kernel(%arg0: i32, %arg1: memref<16x16xbf16, #tpu.memory_space<vmem>>, %arg2: memref<16x1024xbf16, #tpu.memory_space<vmem>>, %arg3: memref<1x1024xf32, #tpu.memory_space<vmem>>, %arg4: memref<1024x1024xbf16, #tpu.memory_space<vmem>>, %arg5: memref<1x1024xf32, #tpu.memory_space<vmem>>, %arg6: memref<1024x128xbf16, #tpu.memory_space<vmem>>, %arg7: memref<1x128xf32, #tpu.memory_space<vmem>>, %arg8: memref<16x128xf32, #tpu.memory_space<vmem>>) attributes {dimension_semantics = [#tpu.dimension_semantics<parallel>], iteration_bounds = array<i64: 1>, scalar_prefetch = 0 : i64, scratch_operands = 0 : i64, tpu.core_type = #tpu.core_type<tc>, window_params = [{transform_indices = @transform_0, window_bounds = array<i64: 16, 16>}, {pipeline_mode = #tpu.pipeline_mode<synchronous>, transform_indices = @transform_1, window_bounds = array<i64: 16, 1024>}, {pipeline_mode = #tpu.pipeline_mode<synchronous>, transform_indices = @transform_2, window_bounds = array<i64: 1, 1024>}, {pipeline_mode = #tpu.pipeline_mode<synchronous>, transform_indices = @transform_3, window_bounds = array<i64: 1024, 1024>}, {pipeline_mode = #tpu.pipeline_mode<synchronous>, transform_indices = @transform_4, window_bounds = array<i64: 1, 1024>}, {pipeline_mode = #tpu.pipeline_mode<synchronous>, transform_indices = @transform_5, window_bounds = array<i64: 1024, 128>}, {pipeline_mode = #tpu.pipeline_mode<synchronous>, transform_indices = @transform_6, window_bounds = array<i64: 1, 128>}, {transform_indices = @transform_7, window_bounds = array<i64: 16, 128>}]} {
    %c0 = arith.constant 0 : index
    %c0_0 = arith.constant 0 : index
    %0 = vector.load %arg1[%c0, %c0_0] : memref<16x16xbf16, #tpu.memory_space<vmem>>, vector<16x16xbf16>
    %c0_1 = arith.constant 0 : index
    %c0_2 = arith.constant 0 : index
    %1 = vector.load %arg2[%c0_1, %c0_2] : memref<16x1024xbf16, #tpu.memory_space<vmem>>, vector<16x1024xbf16>
    %cst = arith.constant dense<0.000000e+00> : vector<16x1024xf32>
    %2 = tpu.matmul %0, %1, %cst {dimension_numbers = #tpu.dot_dimension_numbers<[1], [0], [0], [1], [0, 0, 1, 1], [], []>} : vector<16x16xbf16>, vector<16x1024xbf16>, vector<16x1024xf32> -> vector<16x1024xf32>
    %c0_3 = arith.constant 0 : index
    %c0_4 = arith.constant 0 : index
    %3 = vector.load %arg3[%c0_3, %c0_4] : memref<1x1024xf32, #tpu.memory_space<vmem>>, vector<1x1024xf32>
    %4 = vector.broadcast %3 : vector<1x1024xf32> to vector<16x1024xf32>
    %5 = arith.addf %2, %4 : vector<16x1024xf32>
    %cst_5 = arith.constant 1.000000e-01 : f32
    %6 = vector.broadcast %cst_5 : f32 to vector<16x1024xf32>
    %7 = arith.mulf %6, %5 : vector<16x1024xf32>
    %8 = arith.maximumf %5, %7 : vector<16x1024xf32>
    %9 = arith.truncf %8 : vector<16x1024xf32> to vector<16x1024xbf16>
    %c0_6 = arith.constant 0 : index
    %c0_7 = arith.constant 0 : index
    %10 = vector.load %arg4[%c0_6, %c0_7] : memref<1024x1024xbf16, #tpu.memory_space<vmem>>, vector<1024x1024xbf16>
    %cst_8 = arith.constant dense<0.000000e+00> : vector<16x1024xf32>
    %11 = tpu.matmul %9, %10, %cst_8 {dimension_numbers = #tpu.dot_dimension_numbers<[1], [0], [0], [1], [0, 0, 1, 1], [], []>} : vector<16x1024xbf16>, vector<1024x1024xbf16>, vector<16x1024xf32> -> vector<16x1024xf32>
    %c0_9 = arith.constant 0 : index
    %c0_10 = arith.constant 0 : index
    %12 = vector.load %arg5[%c0_9, %c0_10] : memref<1x1024xf32, #tpu.memory_space<vmem>>, vector<1x1024xf32>
    %13 = vector.broadcast %12 : vector<1x1024xf32> to vector<16x1024xf32>
    %14 = arith.addf %11, %13 : vector<16x1024xf32>
    %cst_11 = arith.constant 1.000000e-01 : f32
    %15 = vector.broadcast %cst_11 : f32 to vector<16x1024xf32>
    %16 = arith.mulf %15, %14 : vector<16x1024xf32>
    %17 = arith.maximumf %14, %16 : vector<16x1024xf32>
    %18 = arith.truncf %17 : vector<16x1024xf32> to vector<16x1024xbf16>
    %c0_12 = arith.constant 0 : index
    %c0_13 = arith.constant 0 : index
    %19 = vector.load %arg6[%c0_12, %c0_13] : memref<1024x128xbf16, #tpu.memory_space<vmem>>, vector<1024x128xbf16>
    %cst_14 = arith.constant dense<0.000000e+00> : vector<16x128xf32>
    %20 = tpu.matmul %18, %19, %cst_14 {dimension_numbers = #tpu.dot_dimension_numbers<[1], [0], [0], [1], [0, 0, 1, 1], [], []>} : vector<16x1024xbf16>, vector<1024x128xbf16>, vector<16x128xf32> -> vector<16x128xf32>
    %c0_15 = arith.constant 0 : index
    %c0_16 = arith.constant 0 : index
    %21 = vector.load %arg7[%c0_15, %c0_16] : memref<1x128xf32, #tpu.memory_space<vmem>>, vector<1x128xf32>
    %22 = vector.broadcast %21 : vector<1x128xf32> to vector<16x128xf32>
    %23 = arith.addf %20, %22 : vector<16x128xf32>
    %24 = tpu.iota {dimensions = array<i32: 1>} : vector<16x128xi32>
    %c8_i32 = arith.constant 8 : i32
    %25 = vector.broadcast %c8_i32 : i32 to vector<16x128xi32>
    %26 = arith.cmpi slt, %24, %25 : vector<16x128xi32>
    %27 = arith.negf %23 : vector<16x128xf32>
    %28 = math.exp %27 : vector<16x128xf32>
    %cst_17 = arith.constant 1.000000e+00 : f32
    %29 = vector.broadcast %cst_17 : f32 to vector<16x128xf32>
    %30 = arith.addf %29, %28 : vector<16x128xf32>
    %31 = arith.divf %29, %30 : vector<16x128xf32>
    %cst_18 = arith.constant 2.000000e+00 : f32
    %32 = vector.broadcast %cst_18 : f32 to vector<16x128xf32>
    %33 = arith.mulf %32, %31 : vector<16x128xf32>
    %34 = math.tanh %23 : vector<16x128xf32>
    %cst_19 = arith.constant 5.000000e-01 : f32
    %35 = vector.broadcast %cst_19 : f32 to vector<16x128xf32>
    %36 = arith.mulf %35, %34 : vector<16x128xf32>
    %37 = arith.select %26, %33, %36 : vector<16x128xi1>, vector<16x128xf32>
    %c0_20 = arith.constant 0 : index
    %c0_21 = arith.constant 0 : index
    %38 = vector.load %arg8[%c0_20, %c0_21] : memref<16x128xf32, #tpu.memory_space<vmem>>, vector<16x128xf32>
    tpu.vector_store %arg8[%c0_20, %c0_21], %37 {strides = array<i32>} : memref<16x128xf32, #tpu.memory_space<vmem>>, vector<16x128xf32>,
    return
  }
  func.func @transform_0(%arg0: i32) -> (i32, i32) {
    %c0_i32 = arith.constant 0 : i32
    %c0_i32_0 = arith.constant 0 : i32
    return %arg0, %c0_i32 : i32, i32
  }
  func.func @transform_1(%arg0: i32) -> (i32, i32) {
    %c0_i32 = arith.constant 0 : i32
    %c0_i32_0 = arith.constant 0 : i32
    %c0_i32_1 = arith.constant 0 : i32
    return %c0_i32, %c0_i32_0 : i32, i32
  }
  func.func @transform_2(%arg0: i32) -> (i32, i32) {
    %c0_i32 = arith.constant 0 : i32
    %c0_i32_0 = arith.constant 0 : i32
    %c0_i32_1 = arith.constant 0 : i32
    return %c0_i32, %c0_i32_0 : i32, i32
  }
  func.func @transform_3(%arg0: i32) -> (i32, i32) {
    %c0_i32 = arith.constant 0 : i32
    %c0_i32_0 = arith.constant 0 : i32
    %c0_i32_1 = arith.constant 0 : i32
    return %c0_i32, %c0_i32_0 : i32, i32
  }
  func.func @transform_4(%arg0: i32) -> (i32, i32) {
    %c0_i32 = arith.constant 0 : i32
    %c0_i32_0 = arith.constant 0 : i32
    %c0_i32_1 = arith.constant 0 : i32
    return %c0_i32, %c0_i32_0 : i32, i32
  }
  func.func @transform_5(%arg0: i32) -> (i32, i32) {
    %c0_i32 = arith.constant 0 : i32
    %c0_i32_0 = arith.constant 0 : i32
    %c0_i32_1 = arith.constant 0 : i32
    return %c0_i32, %c0_i32_0 : i32, i32
  }
  func.func @transform_6(%arg0: i32) -> (i32, i32) {
    %c0_i32 = arith.constant 0 : i32
    %c0_i32_0 = arith.constant 0 : i32
    %c0_i32_1 = arith.constant 0 : i32
    return %c0_i32, %c0_i32_0 : i32, i32
  }
  func.func @transform_7(%arg0: i32) -> (i32, i32) {
    %c0_i32 = arith.constant 0 : i32
    %c0_i32_0 = arith.constant 0 : i32
    return %arg0, %c0_i32 : i32, i32
  }
}

module attributes {stable_mosaic.version = 11 : i64} {
  func.func @_dyn_kernel(%arg0: i32, %arg1: memref<16x16xbf16, #tpu.memory_space<vmem>>, %arg2: memref<16x1024xbf16, #tpu.memory_space<vmem>>, %arg3: memref<1x1024xf32, #tpu.memory_space<vmem>>, %arg4: memref<1024x1024xbf16, #tpu.memory_space<vmem>>, %arg5: memref<1x1024xf32, #tpu.memory_space<vmem>>, %arg6: memref<1024x128xbf16, #tpu.memory_space<vmem>>, %arg7: memref<1x128xf32, #tpu.memory_space<vmem>>, %arg8: memref<16x128xf32, #tpu.memory_space<vmem>>) attributes {dimension_semantics = [#tpu.dimension_semantics<parallel>], iteration_bounds = array<i64: 1>, scalar_prefetch = 0 : i64, scratch_operands = 0 : i64, tpu.core_type = #tpu.core_type<tc>, window_params = [{transform_indices = @transform_0, window_bounds = array<i64: 16, 16>}, {pipeline_mode = #tpu.pipeline_mode<synchronous>, transform_indices = @transform_1, window_bounds = array<i64: 16, 1024>}, {pipeline_mode = #tpu.pipeline_mode<synchronous>, transform_indices = @transform_2, window_bounds = array<i64: 1, 1024>}, {pipeline_mode = #tpu.pipeline_mode<synchronous>, transform_indices = @transform_3, window_bounds = array<i64: 1024, 1024>}, {pipeline_mode = #tpu.pipeline_mode<synchronous>, transform_indices = @transform_4, window_bounds = array<i64: 1, 1024>}, {pipeline_mode = #tpu.pipeline_mode<synchronous>, transform_indices = @transform_5, window_bounds = array<i64: 1024, 128>}, {pipeline_mode = #tpu.pipeline_mode<synchronous>, transform_indices = @transform_6, window_bounds = array<i64: 1, 128>}, {transform_indices = @transform_7, window_bounds = array<i64: 16, 128>}]} {
    %c0 = arith.constant 0 : index
    %c0_0 = arith.constant 0 : index
    %0 = vector.load %arg1[%c0, %c0_0] : memref<16x16xbf16, #tpu.memory_space<vmem>>, vector<16x16xbf16>
    %c0_1 = arith.constant 0 : index
    %c0_2 = arith.constant 0 : index
    %1 = vector.load %arg2[%c0_1, %c0_2] : memref<16x1024xbf16, #tpu.memory_space<vmem>>, vector<16x1024xbf16>
    %cst = arith.constant dense<0.000000e+00> : vector<16x1024xf32>
    %2 = tpu.matmul %0, %1, %cst {dimension_numbers = #tpu.dot_dimension_numbers<[1], [0], [0], [1], [0, 0, 1, 1], [], []>} : vector<16x16xbf16>, vector<16x1024xbf16>, vector<16x1024xf32> -> vector<16x1024xf32>
    %c0_3 = arith.constant 0 : index
    %c0_4 = arith.constant 0 : index
    %3 = vector.load %arg3[%c0_3, %c0_4] : memref<1x1024xf32, #tpu.memory_space<vmem>>, vector<1x1024xf32>
    %4 = vector.broadcast %3 : vector<1x1024xf32> to vector<16x1024xf32>
    %5 = arith.addf %2, %4 : vector<16x1024xf32>
    %cst_5 = arith.constant 1.000000e-01 : f32
    %6 = vector.broadcast %cst_5 : f32 to vector<16x1024xf32>
    %7 = arith.mulf %6, %5 : vector<16x1024xf32>
    %8 = arith.maximumf %5, %7 : vector<16x1024xf32>
    %9 = arith.truncf %8 : vector<16x1024xf32> to vector<16x1024xbf16>
    %c0_6 = arith.constant 0 : index
    %c0_7 = arith.constant 0 : index
    %10 = vector.load %arg4[%c0_6, %c0_7] : memref<1024x1024xbf16, #tpu.memory_space<vmem>>, vector<1024x1024xbf16>
    %cst_8 = arith.constant dense<0.000000e+00> : vector<16x1024xf32>
    %11 = tpu.matmul %9, %10, %cst_8 {dimension_numbers = #tpu.dot_dimension_numbers<[1], [0], [0], [1], [0, 0, 1, 1], [], []>} : vector<16x1024xbf16>, vector<1024x1024xbf16>, vector<16x1024xf32> -> vector<16x1024xf32>
    %c0_9 = arith.constant 0 : index
    %c0_10 = arith.constant 0 : index
    %12 = vector.load %arg5[%c0_9, %c0_10] : memref<1x1024xf32, #tpu.memory_space<vmem>>, vector<1x1024xf32>
    %13 = vector.broadcast %12 : vector<1x1024xf32> to vector<16x1024xf32>
    %14 = arith.addf %11, %13 : vector<16x1024xf32>
    %cst_11 = arith.constant 1.000000e-01 : f32
    %15 = vector.broadcast %cst_11 : f32 to vector<16x1024xf32>
    %16 = arith.mulf %15, %14 : vector<16x1024xf32>
    %17 = arith.maximumf %14, %16 : vector<16x1024xf32>
    %18 = arith.truncf %17 : vector<16x1024xf32> to vector<16x1024xbf16>
    %c0_12 = arith.constant 0 : index
    %c0_13 = arith.constant 0 : index
    %19 = vector.load %arg6[%c0_12, %c0_13] : memref<1024x128xbf16, #tpu.memory_space<vmem>>, vector<1024x128xbf16>
    %cst_14 = arith.constant dense<0.000000e+00> : vector<16x128xf32>
    %20 = tpu.matmul %18, %19, %cst_14 {dimension_numbers = #tpu.dot_dimension_numbers<[1], [0], [0], [1], [0, 0, 1, 1], [], []>} : vector<16x1024xbf16>, vector<1024x128xbf16>, vector<16x128xf32> -> vector<16x128xf32>
    %c0_15 = arith.constant 0 : index
    %c0_16 = arith.constant 0 : index
    %21 = vector.load %arg7[%c0_15, %c0_16] : memref<1x128xf32, #tpu.memory_space<vmem>>, vector<1x128xf32>
    %22 = vector.broadcast %21 : vector<1x128xf32> to vector<16x128xf32>
    %23 = arith.addf %20, %22 : vector<16x128xf32>
    %24 = tpu.iota {dimensions = array<i32: 1>} : vector<16x128xi32>
    %c8_i32 = arith.constant 8 : i32
    %25 = vector.broadcast %c8_i32 : i32 to vector<16x128xi32>
    %26 = arith.cmpi slt, %24, %25 : vector<16x128xi32>
    %27 = arith.negf %23 : vector<16x128xf32>
    %28 = math.exp %27 : vector<16x128xf32>
    %cst_17 = arith.constant 1.000000e+00 : f32
    %29 = vector.broadcast %cst_17 : f32 to vector<16x128xf32>
    %30 = arith.addf %29, %28 : vector<16x128xf32>
    %31 = arith.divf %29, %30 : vector<16x128xf32>
    %cst_18 = arith.constant 2.000000e+00 : f32
    %32 = vector.broadcast %cst_18 : f32 to vector<16x128xf32>
    %33 = arith.mulf %32, %31 : vector<16x128xf32>
    %34 = math.tanh %23 : vector<16x128xf32>
    %cst_19 = arith.constant 5.000000e-01 : f32
    %35 = vector.broadcast %cst_19 : f32 to vector<16x128xf32>
    %36 = arith.mulf %35, %34 : vector<16x128xf32>
    %37 = arith.select %26, %33, %36 : vector<16x128xi1>, vector<16x128xf32>
    %c0_20 = arith.constant 0 : index
    %c0_21 = arith.constant 0 : index
    %38 = vector.load %arg8[%c0_20, %c0_21] : memref<16x128xf32, #tpu.memory_space<vmem>>, vector<16x128xf32>
    tpu.vector_store %arg8[%c0_20, %c0_21], %37 {strides = array<i32>} : memref<16x128xf32, #tpu.memory_space<vmem>>, vector<16x128xf32>,
    return
  }
  func.func @transform_0(%arg0: i32) -> (i32, i32) {
    %c0_i32 = arith.constant 0 : i32
    %c0_i32_0 = arith.constant 0 : i32
    return %arg0, %c0_i32 : i32, i32
  }
  func.func @transform_1(%arg0: i32) -> (i32, i32) {
    %c0_i32 = arith.constant 0 : i32
    %c0_i32_0 = arith.constant 0 : i32
    %c0_i32_1 = arith.constant 0 : i32
    return %c0_i32, %c0_i32_0 : i32, i32
  }
  func.func @transform_2(%arg0: i32) -> (i32, i32) {
    %c0_i32 = arith.constant 0 : i32
    %c0_i32_0 = arith.constant 0 : i32
    %c0_i32_1 = arith.constant 0 : i32
    return %c0_i32, %c0_i32_0 : i32, i32
  }
  func.func @transform_3(%arg0: i32) -> (i32, i32) {
    %c0_i32 = arith.constant 0 : i32
    %c0_i32_0 = arith.constant 0 : i32
    %c0_i32_1 = arith.constant 0 : i32
    return %c0_i32, %c0_i32_0 : i32, i32
  }
  func.func @transform_4(%arg0: i32) -> (i32, i32) {
    %c0_i32 = arith.constant 0 : i32
    %c0_i32_0 = arith.constant 0 : i32
    %c0_i32_1 = arith.constant 0 : i32
    return %c0_i32, %c0_i32_0 : i32, i32
  }
  func.func @transform_5(%arg0: i32) -> (i32, i32) {
    %c0_i32 = arith.constant 0 : i32
    %c0_i32_0 = arith.constant 0 : i32
    %c0_i32_1 = arith.constant 0 : i32
    return %c0_i32, %c0_i32_0 : i32, i32
  }
  func.func @transform_6(%arg0: i32) -> (i32, i32) {
    %c0_i32 = arith.constant 0 : i32
    %c0_i32_0 = arith.constant 0 : i32
    %c0_i32_1 = arith.constant 0 : i32
    return %c0_i32, %c0_i32_0 : i32, i32
  }
  func.func @transform_7(%arg0: i32) -> (i32, i32) {
    %c0_i32 = arith.constant 0 : i32
    %c0_i32_0 = arith.constant 0 : i32
    return %arg0, %c0_i32 : i32, i32
  }
}

</mosaic_0001>

<bundles_post_ra>
// kernel: _forward_impl.1
= control target key start
LH: loop header
LB: loop body
LE: loop exit
PB: predicated region body
PF: predicated region fallthrough
CT: control target
= control target key end

     0   :  { %12 = vsyncpa [#allocation3], 0  ;;  %s6248_s0 = inlined_call_operand.vmem [shape: bf16[16,16], index: 0, kind: input, shape index: {}]   ;;  %s6249_s1 = inlined_call_operand.hbm [shape: bf16[16,1024], index: 1, kind: input, shape index: {}]   ;;  %s6250_s2 = inlined_call_operand.hbm [shape: f32[1,1024], index: 2, kind: input, shape index: {}]   ;;  %s6251_s3 = inlined_call_operand.hbm [shape: bf16[1024,1024], index: 3, kind: input, shape index: {}]   ;;  %s6252_s4 = inlined_call_operand.hbm [shape: f32[1,1024], index: 4, kind: input, shape index: {}]   ;;  %s6253_s5 = inlined_call_operand.hbm [shape: bf16[1024,128], index: 5, kind: input, shape index: {}]   ;;  %s6254_s6 = inlined_call_operand.hbm [shape: f32[1,128], index: 6, kind: input, shape index: {}]   ;;  %s6255_s7 = inlined_call_operand.vmem [shape: f32[16,128], index: 7, kind: output, shape index: {}]  }
   0x1   :  { %13 = vsyncpa [#allocation5], 0 }
   0x2   :  { %14 = vsyncpa [#allocation8], 0 }
   0x3   :  { %15 = vsyncpa [#allocation11], 0  ;;  %s5946_s24 = smov [#allocation4]   ;;  %s5947_s26 = smov [#allocation7]  }
   0x4   :  { %s36_s25 = sshll.u32 %s5946_s24, 4  ;;  %s58_s27 = sshll.u32 %s5947_s26, 4  ;;  %s37_s25 = int_to_ptr.vmem [resolvable:$true] %s36_s25  ;;  %s59_s27 = int_to_ptr.vmem [resolvable:$true] %s58_s27 }
   0x5   :  { %s5806_s30 = scalar_lea.hbm %s6250_s2, 128 }
   0x6   :  { %p5807_p0 = scmp.ne.s32.totalorder %s6250_s2, %s5806_s30  ;;  %p5810_p1 = scmp.lt.u32.totalorder %s5806_s30, %s6250_s2 }
   0x8   :  { %p5812_p2 = pnand %p5810_p1, %p5807_p0 }
   0xa   :  { %5815 = shalt.err (!%p5812_p2)
}
   0xb   :  { %s5816_s12 = scalar_lea.vmem %s37_s25, 128  ;;  %p5821_p4 = scmp.lt.s32.totalorder %s37_s25, %s37_s25 }
   0xc   :  { %p5817_p3 = scmp.ne.s32.totalorder %s37_s25, %s5816_s12  ;;  %p5822_p5 = scmp.lt.s32.totalorder %s5816_s12, %s5816_s12 }
   0xe   :  { %p5823_p6 = por %p5822_p5, %p5821_p4 }
  0x10   :  { %p5824_p7 = pnand %p5823_p6, %p5817_p3 }
  0x12   :  { %5827 = shalt.err (!%p5824_p7)
}
  0x13   :  { %39 = dma.hbm_to_vmem [thread:$0]  %s6250_s2, 128, %s37_s25, [#allocation5]  }
  0x14   :  { %s5828_s17 = scalar_lea.hbm %s6252_s4, 128 }
  0x15   :  { %p5829_p8 = scmp.ne.s32.totalorder %s6252_s4, %s5828_s17  ;;  %p5832_p9 = scmp.lt.u32.totalorder %s5828_s17, %s6252_s4 }
  0x17   :  { %p5834_p10 = pnand %p5832_p9, %p5829_p8 }
  0x19   :  { %5837 = shalt.err (!%p5834_p10)
}
  0x1a   :  { %s5838_s22 = scalar_lea.vmem %s59_s27, 128  ;;  %p5843_p12 = scmp.lt.s32.totalorder %s59_s27, %s59_s27 }
  0x1b   :  { %p5839_p11 = scmp.ne.s32.totalorder %s59_s27, %s5838_s22  ;;  %p5844_p13 = scmp.lt.s32.totalorder %s5838_s22, %s5838_s22 }
  0x1d   :  { %p5845_p0 = por %p5844_p13, %p5843_p12 }
  0x1f   :  { %p5846_p1 = pnand %p5845_p0, %p5839_p11 }
  0x21   :  { %5849 = shalt.err (!%p5846_p1)
}
  0x22   :  { %61 = dma.hbm_to_vmem [thread:$0]  %s6252_s4, 128, %s59_s27, [#allocation8]  }
  0x23   :  { %s5948_s24 = smov [#allocation2]   ;;  %s5850_s29 = scalar_lea.hbm %s6249_s1, 1024 }
  0x24   :  { %s23_s25 = sshll.u32 %s5948_s24, 4  ;;  %p5851_p2 = scmp.ne.s32.totalorder %s6249_s1, %s5850_s29  ;;  %s24_s25 = int_to_ptr.vmem [resolvable:$true] %s23_s25 }
  0x25   :  { %p5854_p3 = scmp.lt.u32.totalorder %s5850_s29, %s6249_s1 }
  0x27   :  { %p5856_p4 = pnand %p5854_p3, %p5851_p2 }
  0x29   :  { %5859 = shalt.err (!%p5856_p4)
}
  0x2a   :  { %s5860_s11 = scalar_lea.vmem %s24_s25, 1024  ;;  %p5865_p6 = scmp.lt.s32.totalorder %s24_s25, %s24_s25 }
  0x2b   :  { %p5861_p5 = scmp.ne.s32.totalorder %s24_s25, %s5860_s11  ;;  %p5866_p7 = scmp.lt.s32.totalorder %s5860_s11, %s5860_s11 }
  0x2d   :  { %p5867_p8 = por %p5866_p7, %p5865_p6 }
  0x2f   :  { %p5868_p9 = pnand %p5867_p8, %p5861_p5 }
  0x31   :  { %5871 = shalt.err (!%p5868_p9)
}
  0x32   :  { %s5949_s4 = smov 512   ;;  %s5950_s27 = smov 32  }
  0x33   :  { %29 = dma.hbm_to_vmem [thread:$0]  %s6249_s1, 1024, %s24_s25, [#allocation3], %s5949_s4, %s5949_s4, %s5950_s27  }
  0x34   :  { %s5951_s14 = smov [#allocation6]   ;;  %s5952_s16 = smov [#allocation9]  }
  0x35   :  { %s45_s15 = sshll.u32 %s5951_s14, 4  ;;  %s67_s17 = sshll.u32 %s5952_s16, 4  ;;  %s46_s15 = int_to_ptr.vmem [resolvable:$true] %s45_s15  ;;  %s68_s17 = int_to_ptr.vmem [resolvable:$true] %s67_s17 }
  0x36   :  { %s5872_s20 = scalar_lea.hbm %s6251_s3, 65536 }
  0x37   :  { %p5873_p10 = scmp.ne.s32.totalorder %s6251_s3, %s5872_s20  ;;  %p5876_p11 = scmp.lt.u32.totalorder %s5872_s20, %s6251_s3 }
  0x39   :  { %p5878_p12 = pnand %p5876_p11, %p5873_p10 }
  0x3b   :  { %5881 = shalt.err (!%p5878_p12)
}
  0x3c   :  { %s5882_s1 = scalar_lea.vmem %s46_s15, 65536  ;;  %p5887_p0 = scmp.lt.s32.totalorder %s46_s15, %s46_s15 }
  0x3d   :  { %p5883_p13 = scmp.ne.s32.totalorder %s46_s15, %s5882_s1  ;;  %p5888_p1 = scmp.lt.s32.totalorder %s5882_s1, %s5882_s1 }
  0x3f   :  { %p5889_p2 = por %p5888_p1, %p5887_p0 }
  0x41   :  { %p5890_p3 = pnand %p5889_p2, %p5883_p13 }
  0x43   :  { %5893 = shalt.err (!%p5890_p3)
}
  0x44   :  { %51 = dma.hbm_to_vmem [thread:$0]  %s6251_s3, 65536, %s46_s15, [#allocation5], %s5949_s4, %s5949_s4, %s5950_s27  }
  0x45   :  { %s5894_s29 = scalar_lea.hbm %s6253_s5, 8192 }
  0x46   :  { %p5895_p4 = scmp.ne.s32.totalorder %s6253_s5, %s5894_s29  ;;  %p5898_p5 = scmp.lt.u32.totalorder %s5894_s29, %s6253_s5 }
  0x48   :  { %p5900_p6 = pnand %p5898_p5, %p5895_p4 }
  0x4a   :  { %5903 = shalt.err (!%p5900_p6)
}
  0x4b   :  { %s5904_s11 = scalar_lea.vmem %s68_s17, 8192  ;;  %p5909_p8 = scmp.lt.s32.totalorder %s68_s17, %s68_s17 }
  0x4c   :  { %p5905_p7 = scmp.ne.s32.totalorder %s68_s17, %s5904_s11  ;;  %p5910_p9 = scmp.lt.s32.totalorder %s5904_s11, %s5904_s11 }
  0x4e   :  { %p5911_p10 = por %p5910_p9, %p5909_p8 }
  0x50   :  { %p5912_p11 = pnand %p5911_p10, %p5905_p7 }
  0x52   :  { %5915 = shalt.err (!%p5912_p11)
}
  0x53   :  { %s5953_s3 = smov 64   ;;  %s5954_s4 = smov 4  }
  0x54   :  { %73 = dma.hbm_to_vmem [thread:$0]  %s6253_s5, 8192, %s68_s17, [#allocation8], %s5953_s3, %s5953_s3, %s5954_s4  }
  0x55   :  { %s5955_s13 = smov [#allocation10]   ;;  %s5916_s18 = scalar_lea.hbm %s6254_s6, 16 }
  0x56   :  { %s80_s14 = sshll.u32 %s5955_s13, 4  ;;  %p5917_p12 = scmp.ne.s32.totalorder %s6254_s6, %s5916_s18  ;;  %s81_s14 = int_to_ptr.vmem [resolvable:$true] %s80_s14 }
  0x57   :  { %p5920_p13 = scmp.lt.u32.totalorder %s5916_s18, %s6254_s6 }
  0x59   :  { %p5922_p0 = pnand %p5920_p13, %p5917_p12 }
  0x5b   :  { %5925 = shalt.err (!%p5922_p0)
}
  0x5c   :  { %s5926_s2 = scalar_lea.vmem %s81_s14, 16  ;;  %s5930_s5 = scalar_lea.vmem %s81_s14, 32 }
  0x5d   :  { %p5927_p1 = scmp.ne.s32.totalorder %s81_s14, %s5926_s2  ;;  %p5931_p2 = scmp.lt.s32.totalorder %s81_s14, %s81_s14 }
  0x5e   :  { %p5932_p3 = scmp.lt.s32.totalorder %s5930_s5, %s5926_s2 }
  0x60   :  { %p5933_p4 = por %p5932_p3, %p5931_p2 }
  0x62   :  { %p5934_p5 = pnand %p5933_p4, %p5927_p1 }
  0x64   :  { %5937 = shalt.err (!%p5934_p5)
}
  0x65   :  { %83 = dma.hbm_to_vmem [thread:$0]  %s6254_s6, 16, %s81_s14, [#allocation11]  }
  0x66   :  { %5938 = dma.done.wait [#allocation3], 1024  }
  0x67   :  { %5939 = vsyncadd [#allocation3], 4294966272 }
  0x68   :  { %5940 = dma.done.wait [#allocation5], 65664  }
  0x69   :  { %5941 = vsyncadd [#allocation5], 4294901632 }
  0x6a   :  { %5942 = dma.done.wait [#allocation8], 8320  }
  0x6b   :  { %5943 = vsyncadd [#allocation8], 4294958976 }
  0x6c   :  { %5944 = dma.done.wait [#allocation11], 16  }
  0x6d   :  { %5945 = vsyncadd [#allocation11], 4294967280  ;;  %v5956_v0 = vmov 0   ;;  %v105_v1 = vld [vmem:[#allocation2] sm:$0xff]  ;;  %v5729_v5 = vld [vmem:[%s6248_s0] sm:$0xff]   ;;  %vm200_vm0 = vcmask 130048  }
  0x6e   :  { %236 = vmatprep.mubr.bf16.mxu0 %v5956_v0  ;;  %279 = vmatprep.mubr.bf16.mxu1 %v5956_v0  ;;  %v109_v2 = vld [vmem:[#allocation2 + $0x20] sm:$0xff]  ;;  %v106_v6 = vld [vmem:[#allocation2 + $0x8] sm:$0xff]  ;;  %v107_v8 = vld [vmem:[#allocation2 + $0x10] sm:$0xff] }
  0x6f   :  { %v4976_v3 = vcombine.high %v105_v1, %v109_v2  ;;  %v4975_v4 = vcombine.low %v105_v1, %v109_v2  ;;  %v110_v7 = vld [vmem:[#allocation2 + $0x28] sm:$0xff]  ;;  %v111_v9 = vld [vmem:[#allocation2 + $0x30] sm:$0xff]  ;;  %v108_v13 = vld [vmem:[#allocation2 + $0x18] sm:$0xff] }
  0x70   :  { %v4978_v10 = vcombine.high %v106_v6, %v110_v7  ;;  %v4977_v11 = vcombine.low %v106_v6, %v110_v7  ;;  %v4980_v12 = vcombine.high %v107_v8, %v111_v9  ;;  %v112_v14 = vld [vmem:[#allocation2 + $0x38] sm:$0xff]  ;;  %v416_v15 = vld [vmem:[#allocation6] sm:$0xff]  ;;  %v4979_v16 = vcombine.low %v107_v8, %v111_v9  ;;  %v417_v19 = vld [vmem:[#allocation6 + $0x8] sm:$0xff] }
  0x71   :  { %204 = vmatprep.subr.bf16.mxu0 %v4976_v3  ;;  %v4982_v17 = vcombine.high %v108_v13, %v112_v14  ;;  %v420_v18 = vld [vmem:[#allocation6 + $0x20] sm:$0xff]  ;;  %v421_v20 = vld [vmem:[#allocation6 + $0x28] sm:$0xff]  ;;  %v4981_v22 = vcombine.low %v108_v13, %v112_v14 }
  0x72   :  { %205 = vmatpush1.bf16.msra.mxu0 %v4975_v4  ;;  %247 = vmatprep.subr.bf16.mxu1 %v4978_v10  ;;  %v4988_v21 = vcombine.high %v416_v15, %v420_v18  ;;  %v4990_v23 = vcombine.high %v417_v19, %v421_v20  ;;  %v424_v24 = vld [vmem:[#allocation6 + $0x40] sm:$0xff]  ;;  %v4987_v26 = vcombine.low %v416_v15, %v420_v18  ;;  %v425_v27 = vld [vmem:[#allocation6 + $0x48] sm:$0xff] }
  0x73   :  { %290 = vmatprep.subr.bf16.mxu0 %v4980_v12  ;;  %248 = vmatpush1.bf16.msra.mxu1 %v4977_v11  ;;  %v428_v25 = vld [vmem:[#allocation6 + $0x60] sm:$0xff]  ;;  %v429_v28 = vld [vmem:[#allocation6 + $0x68] sm:$0xff]  ;;  %v4989_v30 = vcombine.low %v417_v19, %v421_v20 }
  0x74   :  { %333 = vmatprep.subr.bf16.mxu1 %v4982_v17  ;;  %v4996_v29 = vcombine.high %v424_v24, %v428_v25  ;;  %v432_v31 = vld [vmem:[#allocation6 + $0x80] sm:$0xff]  ;;  %v4998_v33 = vcombine.high %v425_v27, %v429_v28  ;;  %v4995_v34 = vcombine.low %v424_v24, %v428_v25  ;;  %v433_v35 = vld [vmem:[#allocation6 + $0x88] sm:$0xff]  ;;  %v4997_v38 = vcombine.low %v425_v27, %v429_v28 }
  0x75   :  { %4983 = vmatmul.mubr.msk.bf16.vlgmr.msra.gmra.mrb[0].mxu0 %vm200_vm0, %v5729_v5  ;;  %v436_v32 = vld [vmem:[#allocation6 + $0xa0] sm:$0xff]  ;;  %v437_v36 = vld [vmem:[#allocation6 + $0xa8] sm:$0xff] }
  0x76   :  { %291 = vmatpush1.bf16.msra.mxu0 %v4979_v16  ;;  %322 = vmatprep.mubr.bf16.mxu0 %v5956_v0  ;;  %v5004_v37 = vcombine.high %v432_v31, %v436_v32  ;;  %v440_v39 = vld [vmem:[#allocation6 + $0xc0] sm:$0xff]  ;;  %v5006_v41 = vcombine.high %v433_v35, %v437_v36  ;;  %v5003_v42 = vcombine.low %v432_v31, %v436_v32  ;;  %v441_v43 = vld [vmem:[#allocation6 + $0xc8] sm:$0xff] }
  0x77   :  { %4984 = vmatmul.mubr.msk.bf16.vlgmr.msra.gmra.mrb[0].mxu1 %vm200_vm0, %v5729_v5  ;;  %3530 = vmatprep.subr.bf16.mxu0 %v4988_v21  ;;  %v444_v40 = vld [vmem:[#allocation6 + $0xe0] sm:$0xff]  ;;  %v445_v44 = vld [vmem:[#allocation6 + $0xe8] sm:$0xff]  ;;  %v5005_v48 = vcombine.low %v433_v35, %v437_v36 }
  0x78   :  { %334 = vmatpush1.bf16.msra.mxu1 %v4981_v22  ;;  %365 = vmatprep.mubr.bf16.mxu1 %v5956_v0  ;;  %v448_v45 = vld [vmem:[#allocation6 + $0x100] sm:$0xff]  ;;  %v5012_v46 = vcombine.high %v440_v39, %v444_v40  ;;  %v449_v49 = vld [vmem:[#allocation6 + $0x108] sm:$0xff]  ;;  %v5014_v51 = vcombine.high %v441_v43, %v445_v44  ;;  %v5011_v52 = vcombine.low %v440_v39, %v444_v40 }
  0x79   :  { %3702 = vmatprep.subr.bf16.mxu1 %v4990_v23  ;;  %v452_v47 = vld [vmem:[#allocation6 + $0x120] sm:$0xff]  ;;  %v453_v50 = vld [vmem:[#allocation6 + $0x128] sm:$0xff]  ;;  %v5013_v56 = vcombine.low %v441_v43, %v445_v44 }
  0x7a   :  { %v456_v53 = vld [vmem:[#allocation6 + $0x140] sm:$0xff]  ;;  %v5020_v55 = vcombine.high %v448_v45, %v452_v47  ;;  %v457_v57 = vld [vmem:[#allocation6 + $0x148] sm:$0xff]  ;;  %v5022_v59 = vcombine.high %v449_v49, %v453_v50  ;;  %v5019_v60 = vcombine.low %v448_v45, %v452_v47  ;;  %v5021_v0 = vcombine.low %v449_v49, %v453_v50 }
  0x7b   :  { %v460_v54 = vld [vmem:[#allocation6 + $0x160] sm:$0xff]  ;;  %v461_v58 = vld [vmem:[#allocation6 + $0x168] sm:$0xff] }
  0x7c   :  { %v464_v61 = vld [vmem:[#allocation6 + $0x180] sm:$0xff]  ;;  %v5028_v63 = vcombine.high %v456_v53, %v460_v54  ;;  %v465_v1 = vld [vmem:[#allocation6 + $0x188] sm:$0xff]  ;;  %v5030_v3 = vcombine.high %v457_v57, %v461_v58  ;;  %v5027_v4 = vcombine.low %v456_v53, %v460_v54  ;;  %v5029_v8 = vcombine.low %v457_v57, %v461_v58 }
  0x7d   :  { %4985 = vmatmul.mubr.msk.bf16.vlgmr.msra.gmra.mrb[4].mxu0 %vm200_vm0, %v5729_v5  ;;  %v468_v62 = vld [vmem:[#allocation6 + $0x1a0] sm:$0xff]  ;;  %v469_v2 = vld [vmem:[#allocation6 + $0x1a8] sm:$0xff] }
  0x7e   :  { %3531 = vmatpush1.bf16.msra.mxu0 %v4987_v26  ;;  %v476_v6 = vld [vmem:[#allocation6 + $0x1e0] sm:$0xff]  ;;  %v5036_v7 = vcombine.high %v464_v61, %v468_v62  ;;  %v473_v9 = vld [vmem:[#allocation6 + $0x1c8] sm:$0xff]  ;;  %v5038_v11 = vcombine.high %v465_v1, %v469_v2  ;;  %v5035_v12 = vcombine.low %v464_v61, %v468_v62  ;;  %v5037_v16 = vcombine.low %v465_v1, %v469_v2 }
  0x7f   :  { %4986 = vmatmul.mubr.msk.bf16.vlgmr.msra.gmra.mrb[4].mxu1 %vm200_vm0, %v5729_v5  ;;  %3532 = vmatprep.subr.bf16.mxu0 %v4996_v29  ;;  %v472_v5 = vld [vmem:[#allocation6 + $0x1c0] sm:$0xff]  ;;  %v477_v10 = vld [vmem:[#allocation6 + $0x1e8] sm:$0xff] }
  0x80   :  { %3703 = vmatpush1.bf16.msra.mxu1 %v4989_v30  ;;  %v480_v13 = vld [vmem:[#allocation6 + $0x200] sm:$0xff]  ;;  %v5044_v15 = vcombine.high %v472_v5, %v476_v6  ;;  %v481_v17 = vld [vmem:[#allocation6 + $0x208] sm:$0xff]  ;;  %v5046_v19 = vcombine.high %v473_v9, %v477_v10  ;;  %v5043_v20 = vcombine.low %v472_v5, %v476_v6  ;;  %v5045_v24 = vcombine.low %v473_v9, %v477_v10 }
  0x81   :  { %3704 = vmatprep.subr.bf16.mxu1 %v4998_v33  ;;  %v484_v14 = vld [vmem:[#allocation6 + $0x220] sm:$0xff]  ;;  %v485_v18 = vld [vmem:[#allocation6 + $0x228] sm:$0xff] }
  0x82   :  { %3533 = vmatpush1.bf16.msra.mxu0 %v4995_v34  ;;  %v488_v21 = vld [vmem:[#allocation6 + $0x240] sm:$0xff]  ;;  %v5052_v23 = vcombine.high %v480_v13, %v484_v14  ;;  %v489_v25 = vld [vmem:[#allocation6 + $0x248] sm:$0xff]  ;;  %v5054_v27 = vcombine.high %v481_v17, %v485_v18  ;;  %v5051_v28 = vcombine.low %v480_v13, %v484_v14  ;;  %v5053_v32 = vcombine.low %v481_v17, %v485_v18 }
  0x83   :  { %3534 = vmatprep.subr.bf16.mxu0 %v5004_v37  ;;  %v492_v22 = vld [vmem:[#allocation6 + $0x260] sm:$0xff]  ;;  %v493_v26 = vld [vmem:[#allocation6 + $0x268] sm:$0xff] }
  0x84   :  { %3705 = vmatpush1.bf16.msra.mxu1 %v4997_v38  ;;  %v496_v29 = vld [vmem:[#allocation6 + $0x280] sm:$0xff]  ;;  %v5060_v31 = vcombine.high %v488_v21, %v492_v22  ;;  %v497_v33 = vld [vmem:[#allocation6 + $0x288] sm:$0xff]  ;;  %v5062_v35 = vcombine.high %v489_v25, %v493_v26  ;;  %v5059_v36 = vcombine.low %v488_v21, %v492_v22  ;;  %v5061_v40 = vcombine.low %v489_v25, %v493_v26 }
  0x85   :  { %3706 = vmatprep.subr.bf16.mxu1 %v5006_v41  ;;  %v500_v30 = vld [vmem:[#allocation6 + $0x2a0] sm:$0xff]  ;;  %v501_v34 = vld [vmem:[#allocation6 + $0x2a8] sm:$0xff]  ;;  %v115_v26 = vlaneseq }
  0x86   :  { %3535 = vmatpush1.bf16.msra.mxu0 %v5003_v42  ;;  %v504_v37 = vld [vmem:[#allocation6 + $0x2c0] sm:$0xff]  ;;  %v5068_v39 = vcombine.high %v496_v29, %v500_v30  ;;  %v505_v41 = vld [vmem:[#allocation6 + $0x2c8] sm:$0xff]  ;;  %v5070_v43 = vcombine.high %v497_v33, %v501_v34  ;;  %v5067_v44 = vcombine.low %v496_v29, %v500_v30  ;;  %v6096_v29 = vld [vmem:[#allocation4] sm:$0xff] }
  0x87   :  { %3536 = vmatprep.subr.bf16.mxu0 %v5012_v46  ;;  %v508_v38 = vld [vmem:[#allocation6 + $0x2e0] sm:$0xff]  ;;  %v509_v42 = vld [vmem:[#allocation6 + $0x2e8] sm:$0xff] }
  0x88   :  { %3707 = vmatpush1.bf16.msra.mxu1 %v5005_v48  ;;  %v512_v45 = vld [vmem:[#allocation6 + $0x300] sm:$0xff]  ;;  %v5076_v47 = vcombine.high %v504_v37, %v508_v38  ;;  %v5069_v48 = vcombine.low %v497_v33, %v501_v34  ;;  %v513_v49 = vld [vmem:[#allocation6 + $0x308] sm:$0xff]  ;;  %v5077_v54 = vcombine.low %v505_v41, %v509_v42 }
  0x89   :  { %3708 = vmatprep.subr.bf16.mxu1 %v5014_v51  ;;  %v516_v46 = vld [vmem:[#allocation6 + $0x320] sm:$0xff]  ;;  %v517_v50 = vld [vmem:[#allocation6 + $0x328] sm:$0xff]  ;;  %v5078_v51 = vcombine.high %v505_v41, %v509_v42 }
  0x8a   :  { %3537 = vmatpush1.bf16.msra.mxu0 %v5011_v52  ;;  %v5075_v52 = vcombine.low %v504_v37, %v508_v38  ;;  %v5084_v53 = vcombine.high %v512_v45, %v516_v46  ;;  %v5085_v57 = vcombine.low %v513_v49, %v517_v50  ;;  %v520_v58 = vld [vmem:[#allocation6 + $0x340] sm:$0xff]  ;;  %v525_v62 = vld [vmem:[#allocation6 + $0x368] sm:$0xff] }
  0x8b   :  { %3538 = vmatprep.subr.bf16.mxu0 %v5020_v55  ;;  %v5086_v55 = vcombine.high %v513_v49, %v517_v50  ;;  %v528_v2 = vld [vmem:[#allocation6 + $0x380] sm:$0xff]  ;;  %v533_v6 = vld [vmem:[#allocation6 + $0x3a8] sm:$0xff] }
  0x8c   :  { %3709 = vmatpush1.bf16.msra.mxu1 %v5013_v56  ;;  %v5083_v56 = vcombine.low %v512_v45, %v516_v46  ;;  %v536_v10 = vld [vmem:[#allocation6 + $0x3c0] sm:$0xff]  ;;  %v541_v14 = vld [vmem:[#allocation6 + $0x3e8] sm:$0xff] }
  0x8d   :  { %3710 = vmatprep.subr.bf16.mxu1 %v5022_v59  ;;  %v524_v59 = vld [vmem:[#allocation6 + $0x360] sm:$0xff]  ;;  %v6084_v22 = vld [vmem:[#allocation6 + $0x428] sm:$0xff] }
  0x8e   :  { %3539 = vmatpush1.bf16.msra.mxu0 %v5019_v60  ;;  %v521_v60 = vld [vmem:[#allocation6 + $0x348] sm:$0xff]  ;;  %v5092_v61 = vcombine.high %v520_v58, %v524_v59  ;;  %v6076_v18 = vld [vmem:[#allocation6 + $0x400] sm:$0xff] }
  0x8f   :  { %3540 = vmatprep.subr.bf16.mxu0 %v5028_v63  ;;  %v5091_v63 = vcombine.low %v520_v58, %v524_v59  ;;  %v5094_v1 = vcombine.high %v521_v60, %v525_v62 }
  0x90   :  { %3711 = vmatpush1.bf16.msra.mxu1 %v5021_v0  ;;  %v5093_v0 = vcombine.low %v521_v60, %v525_v62 }
  0x91   :  { %3712 = vmatprep.subr.bf16.mxu1 %v5030_v3  ;;  %v532_v3 = vld [vmem:[#allocation6 + $0x3a0] sm:$0xff] }
  0x92   :  { %3541 = vmatpush1.bf16.msra.mxu0 %v5027_v4  ;;  %v529_v4 = vld [vmem:[#allocation6 + $0x388] sm:$0xff]  ;;  %v5100_v5 = vcombine.high %v528_v2, %v532_v3 }
  0x93   :  { %3542 = vmatprep.subr.bf16.mxu0 %v5036_v7  ;;  %v5099_v7 = vcombine.low %v528_v2, %v532_v3  ;;  %v5102_v9 = vcombine.high %v529_v4, %v533_v6  ;;  %v556_v2 = vld [vmem:[#allocation6 + $0x460] sm:$0xff] }
  0x94   :  { %3713 = vmatpush1.bf16.msra.mxu1 %v5029_v8  ;;  %v5101_v8 = vcombine.low %v529_v4, %v533_v6 }
  0x95   :  { %3714 = vmatprep.subr.bf16.mxu1 %v5038_v11  ;;  %v540_v11 = vld [vmem:[#allocation6 + $0x3e0] sm:$0xff] }
  0x96   :  { %3543 = vmatpush1.bf16.msra.mxu0 %v5035_v12  ;;  %v537_v12 = vld [vmem:[#allocation6 + $0x3c8] sm:$0xff]  ;;  %v5108_v13 = vcombine.high %v536_v10, %v540_v11 }
  0x97   :  { %3544 = vmatprep.subr.bf16.mxu0 %v5044_v15  ;;  %v5107_v15 = vcombine.low %v536_v10, %v540_v11  ;;  %v5110_v17 = vcombine.high %v537_v12, %v541_v14 }
  0x98   :  { %3715 = vmatpush1.bf16.msra.mxu1 %v5037_v16  ;;  %v5109_v16 = vcombine.low %v537_v12, %v541_v14 }
  0x99   :  { %3716 = vmatprep.subr.bf16.mxu1 %v5046_v19  ;;  %v6078_v19 = vld [vmem:[#allocation6 + $0x420] sm:$0xff] }
  0x9a   :  { %3545 = vmatpush1.bf16.msra.mxu0 %v5043_v20  ;;  %v6080_v20 = vld [vmem:[#allocation6 + $0x408] sm:$0xff]  ;;  %v5116_v21 = vcombine.high %v6076_v18, %v6078_v19 }
  0x9b   :  { %3546 = vmatprep.subr.bf16.mxu0 %v5052_v23  ;;  %v5115_v23 = vcombine.low %v6076_v18, %v6078_v19  ;;  %v5118_v25 = vcombine.high %v6080_v20, %v6084_v22 }
  0x9c   :  { %3717 = vmatpush1.bf16.msra.mxu1 %v5045_v24  ;;  %v5117_v24 = vcombine.low %v6080_v20, %v6084_v22 }
  0x9d   :  { %3718 = vmatprep.subr.bf16.mxu1 %v5054_v27  ;;  %v6093_v27 = vshrl.u32 %v115_v26, 7 }
  0x9e   :  { %3547 = vmatpush1.bf16.msra.mxu0 %v5051_v28 }
  0x9f   :  { %3548 = vmatprep.subr.bf16.mxu0 %v5060_v31  ;;  %v117_v28 = vsub.s32 0, %v6093_v27  ;;  %v121_v30 = vsub.s32 1, %v6093_v27  ;;  %v125_v31 = vsub.s32 2, %v6093_v27 }
  0xa0   :  { %3719 = vmatpush1.bf16.msra.mxu1 %v5053_v32  ;;  %v129_v32 = vsub.s32 3, %v6093_v27 }
  0xa1   :  { %3720 = vmatprep.subr.bf16.mxu1 %v5062_v35  ;;  %v118_v33 = vrot.slane %v6096_v29, %v117_v28  ;;  %v122_v34 = vrot.slane %v6096_v29, %v121_v30  ;;  %v126_v35 = vrot.slane %v6096_v29, %v125_v31 }
  0xa2   :  { %3549 = vmatpush1.bf16.msra.mxu0 %v5059_v36  ;;  %v130_v37 = vrot.slane %v6096_v29, %v129_v32 }
  0xa3   :  { %3550 = vmatprep.subr.bf16.mxu0 %v5068_v39 }
  0xa4   :  { %3721 = vmatpush1.bf16.msra.mxu1 %v5061_v40  ;;  %v133_v40 = vsub.s32 4, %v6093_v27 }
  0xa5   :  { %3722 = vmatprep.subr.bf16.mxu1 %v5070_v43 }
  0xa6   :  { %3551 = vmatpush1.bf16.msra.mxu0 %v5067_v44  ;;  %v137_v44 = vsub.s32 5, %v6093_v27  ;;  %v134_v58 = vrot.slane %v6096_v29, %v133_v40 }
  0xa7   :  { %3552 = vmatprep.subr.bf16.mxu0 %v5076_v47 }
  0xa8   :  { %3723 = vmatpush1.bf16.msra.mxu1 %v5069_v48  ;;  %v138_v62 = vrot.slane %v6096_v29, %v137_v44 }
  0xa9   :  { %3724 = vmatprep.subr.bf16.mxu1 %v5078_v51 }
  0xaa   :  { %3553 = vmatpush1.bf16.msra.mxu0 %v5075_v52 }
  0xab   :  { %3554 = vmatprep.subr.bf16.mxu0 %v5084_v53 }
  0xac   :  { %3725 = vmatpush1.bf16.msra.mxu1 %v5077_v54 }
  0xad   :  { %3726 = vmatprep.subr.bf16.mxu1 %v5086_v55 }
  0xae   :  { %3555 = vmatpush1.bf16.msra.mxu0 %v5083_v56 }
  0xaf   :  { %3556 = vmatprep.subr.bf16.mxu0 %v5092_v61 }
  0xb0   :  { %3727 = vmatpush1.bf16.msra.mxu1 %v5085_v57 }
  0xb1   :  { %3728 = vmatprep.subr.bf16.mxu1 %v5094_v1  ;;  %v552_v1 = vld [vmem:[#allocation6 + $0x440] sm:$0xff] }
  0xb2   :  { %3557 = vmatpush1.bf16.msra.mxu0 %v5091_v63 }
  0xb3   :  { %3558 = vmatprep.subr.bf16.mxu0 %v5100_v5 }
  0xb4   :  { %3729 = vmatpush1.bf16.msra.mxu1 %v5093_v0 }
  0xb5   :  { %3730 = vmatprep.subr.bf16.mxu1 %v5102_v9 }
  0xb6   :  { %3559 = vmatpush1.bf16.msra.mxu0 %v5099_v7  ;;  %v553_v7 = vld [vmem:[#allocation6 + $0x448] sm:$0xff] }
  0xb7   :  { %3560 = vmatprep.subr.bf16.mxu0 %v5108_v13 }
  0xb8   :  { %3731 = vmatpush1.bf16.msra.mxu1 %v5101_v8  ;;  %v557_v8 = vld [vmem:[#allocation6 + $0x468] sm:$0xff] }
  0xb9   :  { %3732 = vmatprep.subr.bf16.mxu1 %v5110_v17  ;;  %v5124_v17 = vcombine.high %v552_v1, %v556_v2 }
  0xba   :  { %3561 = vmatpush1.bf16.msra.mxu0 %v5107_v15 }
  0xbb   :  { %3573 = vmatprep.subr.bf16.mxu0 %v5116_v21 }
  0xbc   :  { %3733 = vmatpush1.bf16.msra.mxu1 %v5109_v16 }
  0xbd   :  { %3745 = vmatprep.subr.bf16.mxu1 %v5118_v25 }
 0x148   :  { %v238_v36 = vpop.f32.mrb[0].mxu0 }
 0x149   :  { %v239_v38 = vadd.f32 %v238_v36, %v118_v33  ;;  %v240_v39 = vpop.f32.mrb[1].mxu0 }
 0x14a   :  { %v241_v41 = vadd.f32 %v240_v39, %v122_v34  ;;  %v242_v42 = vpop.f32.mrb[2].mxu0  ;;  %v281_v43 = vpop.f32.mrb[0].mxu1 }
 0x14b   :  { %v376_v45 = vmul.f32 0.1, %v239_v38  ;;  %v243_v46 = vadd.f32 %v242_v42, %v118_v33  ;;  %v244_v47 = vpop.f32.mrb[3].mxu0  ;;  %v282_v48 = vadd.f32 %v281_v43, %v126_v35  ;;  %v283_v49 = vpop.f32.mrb[1].mxu1  ;;  %v561_v42 = vld [vmem:[#allocation6 + $0x488] sm:$0xff] }
 0x14c   :  { %v377_v50 = vmul.f32 0.1, %v241_v41  ;;  %v245_v51 = vadd.f32 %v244_v47, %v122_v34  ;;  %v284_v52 = vadd.f32 %v283_v49, %v130_v37  ;;  %v285_v53 = vpop.f32.mrb[2].mxu1  ;;  %v5126_v34 = vcombine.high %v553_v7, %v557_v8  ;;  %v565_v43 = vld [vmem:[#allocation6 + $0x4a8] sm:$0xff] }
 0x14d   :  { %v384_v54 = vmul.f32 0.1, %v243_v46  ;;  %v378_v55 = vmul.f32 0.1, %v282_v48  ;;  %v286_v56 = vadd.f32 %v285_v53, %v126_v35  ;;  %v287_v57 = vpop.f32.mrb[3].mxu1  ;;  %v392_v63 = vmax.f32 %v239_v38, %v376_v45  ;;  %v560_v35 = vld [vmem:[#allocation6 + $0x480] sm:$0xff] }
 0x14e   :  { %v385_v59 = vmul.f32 0.1, %v245_v51  ;;  %v379_v60 = vmul.f32 0.1, %v284_v52  ;;  %v288_v61 = vadd.f32 %v287_v57, %v130_v37  ;;  %v393_v5 = vmax.f32 %v241_v41, %v377_v50  ;;  %v564_v41 = vld [vmem:[#allocation6 + $0x4a0] sm:$0xff] }
 0x14f   :  { %v400_v0 = vmax.f32 %v243_v46, %v384_v54  ;;  %v394_v3 = vmax.f32 %v282_v48, %v378_v55  ;;  %v386_v4 = vmul.f32 0.1, %v286_v56  ;;  %v5123_v50 = vcombine.low %v552_v1, %v556_v2  ;;  %v581_v1 = vld [vmem:[#allocation6 + $0x528] sm:$0xff] }
 0x150   :  { %v401_v6 = vmax.f32 %v245_v51, %v385_v59  ;;  %v395_v9 = vmax.f32 %v284_v52, %v379_v60  ;;  %v387_v10 = vmul.f32 0.1, %v288_v61  ;;  %v324_v11 = vpop.f32.mrb[4].mxu0  ;;  %v5125_v51 = vcombine.low %v553_v7, %v557_v8  ;;  %v569_v59 = vld [vmem:[#allocation6 + $0x4c8] sm:$0xff]  ;;  %v588_v7 = vld [vmem:[#allocation6 + $0x560] sm:$0xff] }
 0x151   :  { %v6121_v12 = vpack.c.bf16 %v400_v0, %v392_v63  ;;  %v402_v13 = vmax.f32 %v286_v56, %v386_v4  ;;  %v325_v14 = vadd.f32 %v324_v11, %v134_v58  ;;  %v326_v15 = vpop.f32.mrb[5].mxu0  ;;  %v5132_v54 = vcombine.high %v560_v35, %v564_v41  ;;  %v568_v56 = vld [vmem:[#allocation6 + $0x4c0] sm:$0xff]  ;;  %v573_v60 = vld [vmem:[#allocation6 + $0x4e8] sm:$0xff] }
 0x152   :  { %v6123_v16 = vpack.c.bf16 %v401_v6, %v393_v5  ;;  %v403_v21 = vmax.f32 %v288_v61, %v387_v10  ;;  %v327_v25 = vadd.f32 %v326_v15, %v138_v62  ;;  %v328_v33 = vpop.f32.mrb[6].mxu0  ;;  %v5134_v55 = vcombine.high %v561_v42, %v565_v43  ;;  %v580_v63 = vld [vmem:[#allocation6 + $0x520] sm:$0xff]  ;;  %v577_v0 = vld [vmem:[#allocation6 + $0x508] sm:$0xff] }
 0x153   :  { %v6125_v36 = vpack.c.bf16 %v402_v13, %v394_v3  ;;  %v380_v37 = vmul.f32 0.1, %v325_v14  ;;  %v329_v38 = vadd.f32 %v328_v33, %v134_v58  ;;  %v330_v39 = vpop.f32.mrb[7].mxu0  ;;  %v572_v58 = vld [vmem:[#allocation6 + $0x4e0] sm:$0xff]  ;;  %v5131_v20 = vcombine.low %v560_v35, %v564_v41  ;;  %v585_v8 = vld [vmem:[#allocation6 + $0x548] sm:$0xff] }
 0x154   :  { %3562 = vmatprep.mubr.bf16.mxu0 %v6123_v16  ;;  %3734 = vmatprep.mubr.bf16.mxu1 %v6123_v16  ;;  %v6129_v45 = vpack.c.bf16 %v403_v21, %v395_v9  ;;  %v381_v46 = vmul.f32 0.1, %v327_v25  ;;  %v331_v47 = vadd.f32 %v330_v39, %v138_v62  ;;  %v5133_v22 = vcombine.low %v561_v42, %v565_v43  ;;  %v576_v62 = vld [vmem:[#allocation6 + $0x500] sm:$0xff]  ;;  %v589_v9 = vld [vmem:[#allocation6 + $0x568] sm:$0xff]  ;;  %v367_v21 = vpop.f32.mrb[4].mxu1 }
 0x155   :  { %3563 = vmatmul.mubr.bf16.vlgmr.msra.gmra.mrb[8].mxu0 %v6121_v12  ;;  %3735 = vmatmul.mubr.bf16.vlgmr.msra.gmra.mrb[8].mxu1 %v6121_v12  ;;  %v396_v48 = vmax.f32 %v325_v14, %v380_v37  ;;  %v388_v49 = vmul.f32 0.1, %v329_v38  ;;  %v5142_v61 = vcombine.high %v569_v59, %v573_v60  ;;  %v5139_v2 = vcombine.low %v568_v56, %v572_v58  ;;  %v584_v6 = vld [vmem:[#allocation6 + $0x540] sm:$0xff]  ;;  %v593_v33 = vld [vmem:[#allocation6 + $0x588] sm:$0xff]  ;;  %v369_v41 = vpop.f32.mrb[5].mxu1 }
 0x156   :  { %3574 = vmatpush1.bf16.msra.mxu0 %v5115_v23  ;;  %3746 = vmatpush1.bf16.msra.mxu1 %v5117_v24  ;;  %v397_v52 = vmax.f32 %v327_v25, %v381_v46  ;;  %v389_v53 = vmul.f32 0.1, %v331_v47  ;;  %v5140_v24 = vcombine.high %v568_v56, %v572_v58  ;;  %v5141_v3 = vcombine.low %v569_v59, %v573_v60  ;;  %v592_v15 = vld [vmem:[#allocation6 + $0x580] sm:$0xff] }
 0x157   :  { %3575 = vmatprep.subr.bf16.mxu0 %v5124_v17  ;;  %3747 = vmatprep.subr.bf16.mxu1 %v5126_v34  ;;  %v404_v57 = vmax.f32 %v329_v38, %v388_v49  ;;  %v5148_v4 = vcombine.high %v576_v62, %v580_v63  ;;  %v5150_v5 = vcombine.high %v577_v0, %v581_v1  ;;  %v141_v17 = vsub.s32 6, %v6093_v27  ;;  %v596_v25 = vld [vmem:[#allocation6 + $0x5a0] sm:$0xff]  ;;  %v597_v34 = vld [vmem:[#allocation6 + $0x5a8] sm:$0xff] }
 0x158   :  { %3605 = vmatprep.mubr.bf16.mxu0 %v6129_v45  ;;  %3777 = vmatprep.mubr.bf16.mxu1 %v6129_v45  ;;  %v405_v18 = vmax.f32 %v331_v47, %v389_v53  ;;  %v5147_v10 = vcombine.low %v576_v62, %v580_v63  ;;  %v5149_v11 = vcombine.low %v577_v0, %v581_v1  ;;  %v145_v39 = vsub.s32 7, %v6093_v27  ;;  %v600_v46 = vld [vmem:[#allocation6 + $0x5c0] sm:$0xff]  ;;  %v609_v62 = vld [vmem:[#allocation6 + $0x608] sm:$0xff] }
 0x159   :  { %v6141_v19 = vpack.c.bf16 %v404_v57, %v396_v48  ;;  %v5156_v13 = vcombine.high %v584_v6, %v588_v7  ;;  %v5158_v14 = vcombine.high %v585_v8, %v589_v9  ;;  %v142_v35 = vrot.slane %v6096_v29, %v141_v17  ;;  %v371_v48 = vpop.f32.mrb[6].mxu1  ;;  %v604_v49 = vld [vmem:[#allocation6 + $0x5e0] sm:$0xff]  ;;  %v613_v63 = vld [vmem:[#allocation6 + $0x628] sm:$0xff] }
 0x15a   :  { %3576 = vmatpush1.bf16.msra.mxu0 %v5123_v50  ;;  %3748 = vmatpush1.bf16.msra.mxu1 %v5125_v51  ;;  %v6143_v23 = vpack.c.bf16 %v405_v18, %v397_v52  ;;  %v5155_v37 = vcombine.low %v584_v6, %v588_v7  ;;  %v5157_v38 = vcombine.low %v585_v8, %v589_v9  ;;  %v601_v50 = vld [vmem:[#allocation6 + $0x5c8] sm:$0xff]  ;;  %v616_v9 = vld [vmem:[#allocation6 + $0x640] sm:$0xff] }
 0x15b   :  { %3577 = vmatprep.subr.bf16.mxu0 %v5132_v54  ;;  %3749 = vmatprep.subr.bf16.mxu1 %v5134_v55  ;;  %v5164_v42 = vcombine.high %v592_v15, %v596_v25  ;;  %v5166_v43 = vcombine.high %v593_v33, %v597_v34  ;;  %v368_v47 = vadd.f32 %v367_v21, %v142_v35  ;;  %v605_v51 = vld [vmem:[#allocation6 + $0x5e8] sm:$0xff]  ;;  %v373_v54 = vpop.f32.mrb[7].mxu1 }
 0x15c   :  { %v146_v52 = vrot.slane %v6096_v29, %v145_v39  ;;  %v372_v53 = vadd.f32 %v371_v48, %v142_v35  ;;  %v5163_v55 = vcombine.low %v592_v15, %v596_v25  ;;  %v5165_v57 = vcombine.low %v593_v33, %v597_v34  ;;  %v624_v34 = vld [vmem:[#allocation6 + $0x680] sm:$0xff] }
 0x15d   :  { %v382_v56 = vmul.f32 0.1, %v368_v47  ;;  %v5172_v18 = vcombine.high %v600_v46, %v604_v49  ;;  %v5182_v8 = vcombine.high %v609_v62, %v613_v63  ;;  %v5181_v21 = vcombine.low %v609_v62, %v613_v63  ;;  %v628_v35 = vld [vmem:[#allocation6 + $0x6a0] sm:$0xff]  ;;  %v653_v62 = vld [vmem:[#allocation6 + $0x768] sm:$0xff] }
 0x15e   :  { %3578 = vmatpush1.bf16.msra.mxu0 %v5131_v20  ;;  %3750 = vmatpush1.bf16.msra.mxu1 %v5133_v22  ;;  %v370_v58 = vadd.f32 %v369_v41, %v146_v52  ;;  %v390_v59 = vmul.f32 0.1, %v372_v53  ;;  %v374_v60 = vadd.f32 %v373_v54, %v146_v52  ;;  %v5174_v20 = vcombine.high %v601_v50, %v605_v51  ;;  %v608_v22 = vld [vmem:[#allocation6 + $0x600] sm:$0xff] }
 0x15f   :  { %3579 = vmatprep.subr.bf16.mxu0 %v5140_v24  ;;  %3751 = vmatprep.subr.bf16.mxu1 %v5142_v61  ;;  %v612_v24 = vld [vmem:[#allocation6 + $0x620] sm:$0xff]  ;;  %v398_v61 = vmax.f32 %v368_v47, %v382_v56 }
 0x160   :  { %v383_v29 = vmul.f32 0.1, %v370_v58  ;;  %v406_v0 = vmax.f32 %v372_v53, %v390_v59  ;;  %v391_v1 = vmul.f32 0.1, %v374_v60  ;;  %v5180_v7 = vcombine.high %v608_v22, %v612_v24  ;;  %v632_v47 = vld [vmem:[#allocation6 + $0x6c0] sm:$0xff] }
 0x161   :  { %v5179_v15 = vcombine.low %v608_v22, %v612_v24  ;;  %v636_v48 = vld [vmem:[#allocation6 + $0x6e0] sm:$0xff] }
 0x162   :  { %3580 = vmatpush1.bf16.msra.mxu0 %v5139_v2  ;;  %3752 = vmatpush1.bf16.msra.mxu1 %v5141_v3  ;;  %v5171_v2 = vcombine.low %v600_v46, %v604_v49  ;;  %v5173_v3 = vcombine.low %v601_v50, %v605_v51  ;;  %v407_v6 = vmax.f32 %v374_v60, %v391_v1  ;;  %v633_v49 = vld [vmem:[#allocation6 + $0x6c8] sm:$0xff]  ;;  %v644_v56 = vld [vmem:[#allocation6 + $0x720] sm:$0xff] }
 0x163   :  { %3581 = vmatprep.subr.bf16.mxu0 %v5148_v4  ;;  %3753 = vmatprep.subr.bf16.mxu1 %v5150_v5  ;;  %v399_v4 = vmax.f32 %v370_v58, %v383_v29  ;;  %v6153_v5 = vpack.c.bf16 %v406_v0, %v398_v61  ;;  %v637_v50 = vld [vmem:[#allocation6 + $0x6e8] sm:$0xff]  ;;  %v5195_v51 = vcombine.low %v624_v34, %v628_v35  ;;  %v648_v22 = vld [vmem:[#allocation6 + $0x740] sm:$0xff] }
 0x164   :  { %v5204_v53 = vcombine.high %v632_v47, %v636_v48  ;;  %v5206_v54 = vcombine.high %v633_v49, %v637_v50  ;;  %v645_v58 = vld [vmem:[#allocation6 + $0x728] sm:$0xff]  ;;  %v5203_v59 = vcombine.low %v632_v47, %v636_v48  ;;  %v5205_v60 = vcombine.low %v633_v49, %v637_v50  ;;  %v652_v24 = vld [vmem:[#allocation6 + $0x760] sm:$0xff] }
 0x165   :  { %v649_v61 = vld [vmem:[#allocation6 + $0x748] sm:$0xff]  ;;  %v5220_v0 = vcombine.high %v648_v22, %v652_v24  ;;  %v680_v49 = vld [vmem:[#allocation6 + $0x840] sm:$0xff] }
 0x166   :  { %3582 = vmatpush1.bf16.msra.mxu0 %v5147_v10  ;;  %3754 = vmatpush1.bf16.msra.mxu1 %v5149_v11  ;;  %v620_v10 = vld [vmem:[#allocation6 + $0x660] sm:$0xff]  ;;  %v617_v11 = vld [vmem:[#allocation6 + $0x648] sm:$0xff]  ;;  %v5222_v1 = vcombine.high %v649_v61, %v653_v62 }
 0x167   :  { %3583 = vmatprep.subr.bf16.mxu0 %v5156_v13  ;;  %3755 = vmatprep.subr.bf16.mxu1 %v5158_v14  ;;  %v621_v13 = vld [vmem:[#allocation6 + $0x668] sm:$0xff]  ;;  %v6155_v14 = vpack.c.bf16 %v407_v6, %v399_v4  ;;  %v5188_v25 = vcombine.high %v616_v9, %v620_v10  ;;  %v5187_v41 = vcombine.low %v616_v9, %v620_v10  ;;  %v684_v50 = vld [vmem:[#allocation6 + $0x860] sm:$0xff] }
 0x168   :  { %v5190_v33 = vcombine.high %v617_v11, %v621_v13  ;;  %v657_v4 = vld [vmem:[#allocation6 + $0x788] sm:$0xff] }
 0x169   :  { %v661_v6 = vld [vmem:[#allocation6 + $0x7a8] sm:$0xff] }
 0x16a   :  { %3584 = vmatpush1.bf16.msra.mxu0 %v5155_v37  ;;  %3756 = vmatpush1.bf16.msra.mxu1 %v5157_v38  ;;  %v625_v37 = vld [vmem:[#allocation6 + $0x688] sm:$0xff]  ;;  %v5230_v10 = vcombine.high %v657_v4, %v661_v6 }
 0x16b   :  { %3585 = vmatprep.subr.bf16.mxu0 %v5164_v42  ;;  %3757 = vmatprep.subr.bf16.mxu1 %v5166_v43  ;;  %v629_v38 = vld [vmem:[#allocation6 + $0x6a8] sm:$0xff]  ;;  %v5189_v42 = vcombine.low %v617_v11, %v621_v13  ;;  %v5196_v43 = vcombine.high %v624_v34, %v628_v35  ;;  %v664_v11 = vld [vmem:[#allocation6 + $0x7c0] sm:$0xff] }
 0x16c   :  { %v5198_v46 = vcombine.high %v625_v37, %v629_v38  ;;  %v5197_v52 = vcombine.low %v625_v37, %v629_v38  ;;  %v668_v13 = vld [vmem:[#allocation6 + $0x7e0] sm:$0xff] }
 0x16d   :  { %v5236_v34 = vcombine.high %v664_v11, %v668_v13  ;;  %v672_v37 = vld [vmem:[#allocation6 + $0x800] sm:$0xff] }
 0x16e   :  { %3586 = vmatpush1.bf16.msra.mxu0 %v5163_v55  ;;  %3758 = vmatpush1.bf16.msra.mxu1 %v5165_v57  ;;  %v640_v55 = vld [vmem:[#allocation6 + $0x700] sm:$0xff]  ;;  %v641_v57 = vld [vmem:[#allocation6 + $0x708] sm:$0xff] }
 0x16f   :  { %3587 = vmatprep.subr.bf16.mxu0 %v5172_v18  ;;  %3759 = vmatprep.subr.bf16.mxu1 %v5174_v20  ;;  %v5212_v18 = vcombine.high %v640_v55, %v644_v56  ;;  %v5214_v20 = vcombine.high %v641_v57, %v645_v58  ;;  %v5211_v63 = vcombine.low %v640_v55, %v644_v56  ;;  %v676_v38 = vld [vmem:[#allocation6 + $0x820] sm:$0xff] }
 0x170   :  { %v5213_v29 = vcombine.low %v641_v57, %v645_v58  ;;  %v5244_v47 = vcombine.high %v672_v37, %v676_v38  ;;  %v5252_v55 = vcombine.high %v680_v49, %v684_v50  ;;  %v688_v57 = vld [vmem:[#allocation6 + $0x880] sm:$0xff] }
 0x171   :  { %v692_v58 = vld [vmem:[#allocation6 + $0x8a0] sm:$0xff] }
 0x172   :  { %3588 = vmatpush1.bf16.msra.mxu0 %v5171_v2  ;;  %3760 = vmatpush1.bf16.msra.mxu1 %v5173_v3  ;;  %v656_v2 = vld [vmem:[#allocation6 + $0x780] sm:$0xff] }
 0x173   :  { %3589 = vmatprep.subr.bf16.mxu0 %v5180_v7  ;;  %3761 = vmatprep.subr.bf16.mxu1 %v5182_v8  ;;  %v660_v3 = vld [vmem:[#allocation6 + $0x7a0] sm:$0xff]  ;;  %v5219_v7 = vcombine.low %v648_v22, %v652_v24  ;;  %v5221_v8 = vcombine.low %v649_v61, %v653_v62  ;;  %v5260_v22 = vcombine.high %v688_v57, %v692_v58 }
 0x174   :  { %v5228_v9 = vcombine.high %v656_v2, %v660_v3  ;;  %v696_v61 = vld [vmem:[#allocation6 + $0x8c0] sm:$0xff] }
 0x175   :  { %v700_v62 = vld [vmem:[#allocation6 + $0x8e0] sm:$0xff] }
 0x176   :  { %3590 = vmatpush1.bf16.msra.mxu0 %v5179_v15  ;;  %3762 = vmatpush1.bf16.msra.mxu1 %v5181_v21  ;;  %v665_v15 = vld [vmem:[#allocation6 + $0x7c8] sm:$0xff] }
 0x177   :  { %3591 = vmatprep.subr.bf16.mxu0 %v5188_v25  ;;  %3763 = vmatprep.subr.bf16.mxu1 %v5190_v33  ;;  %v669_v21 = vld [vmem:[#allocation6 + $0x7e8] sm:$0xff]  ;;  %v5227_v25 = vcombine.low %v656_v2, %v660_v3  ;;  %v5229_v33 = vcombine.low %v657_v4, %v661_v6  ;;  %v5268_v2 = vcombine.high %v696_v61, %v700_v62  ;;  %v704_v4 = vld [vmem:[#allocation6 + $0x900] sm:$0xff] }
 0x178   :  { %v5238_v35 = vcombine.high %v665_v15, %v669_v21  ;;  %v708_v6 = vld [vmem:[#allocation6 + $0x920] sm:$0xff] }
 0x17a   :  { %3592 = vmatpush1.bf16.msra.mxu0 %v5187_v41  ;;  %3764 = vmatpush1.bf16.msra.mxu1 %v5189_v42  ;;  %v673_v41 = vld [vmem:[#allocation6 + $0x808] sm:$0xff] }
 0x17b   :  { %3593 = vmatprep.subr.bf16.mxu0 %v5196_v43  ;;  %3765 = vmatprep.subr.bf16.mxu1 %v5198_v46  ;;  %v677_v42 = vld [vmem:[#allocation6 + $0x828] sm:$0xff]  ;;  %v5235_v43 = vcombine.low %v664_v11, %v668_v13  ;;  %v5237_v46 = vcombine.low %v665_v15, %v669_v21  ;;  %v5276_v11 = vcombine.high %v704_v4, %v708_v6  ;;  %v712_v15 = vld [vmem:[#allocation6 + $0x940] sm:$0xff] }
 0x17c   :  { %v5246_v48 = vcombine.high %v673_v41, %v677_v42  ;;  %v716_v21 = vld [vmem:[#allocation6 + $0x960] sm:$0xff] }
 0x17e   :  { %3594 = vmatpush1.bf16.msra.mxu0 %v5195_v51  ;;  %3766 = vmatpush1.bf16.msra.mxu1 %v5197_v52  ;;  %v681_v51 = vld [vmem:[#allocation6 + $0x848] sm:$0xff] }
 0x17f   :  { %3595 = vmatprep.subr.bf16.mxu0 %v5204_v53  ;;  %3767 = vmatprep.subr.bf16.mxu1 %v5206_v54  ;;  %v685_v52 = vld [vmem:[#allocation6 + $0x868] sm:$0xff]  ;;  %v5243_v53 = vcombine.low %v672_v37, %v676_v38  ;;  %v5245_v54 = vcombine.low %v673_v41, %v677_v42  ;;  %v5284_v37 = vcombine.high %v712_v15, %v716_v21  ;;  %v720_v41 = vld [vmem:[#allocation6 + $0x980] sm:$0xff] }
 0x180   :  { %v5254_v56 = vcombine.high %v681_v51, %v685_v52  ;;  %v724_v42 = vld [vmem:[#allocation6 + $0x9a0] sm:$0xff] }
 0x182   :  { %3596 = vmatpush1.bf16.msra.mxu0 %v5203_v59  ;;  %3768 = vmatpush1.bf16.msra.mxu1 %v5205_v60  ;;  %v689_v59 = vld [vmem:[#allocation6 + $0x888] sm:$0xff] }
 0x183   :  { %3597 = vmatprep.subr.bf16.mxu0 %v5212_v18  ;;  %3769 = vmatprep.subr.bf16.mxu1 %v5214_v20  ;;  %v693_v60 = vld [vmem:[#allocation6 + $0x8a8] sm:$0xff]  ;;  %v5251_v18 = vcombine.low %v680_v49, %v684_v50  ;;  %v5253_v20 = vcombine.low %v681_v51, %v685_v52  ;;  %v5292_v49 = vcombine.high %v720_v41, %v724_v42  ;;  %v728_v51 = vld [vmem:[#allocation6 + $0x9c0] sm:$0xff] }
 0x184   :  { %v5262_v24 = vcombine.high %v689_v59, %v693_v60  ;;  %v732_v52 = vld [vmem:[#allocation6 + $0x9e0] sm:$0xff] }
 0x186   :  { %3598 = vmatpush1.bf16.msra.mxu0 %v5211_v63  ;;  %3770 = vmatpush1.bf16.msra.mxu1 %v5213_v29  ;;  %v697_v63 = vld [vmem:[#allocation6 + $0x8c8] sm:$0xff] }
 0x187   :  { %3599 = vmatprep.subr.bf16.mxu0 %v5220_v0  ;;  %3771 = vmatprep.subr.bf16.mxu1 %v5222_v1  ;;  %v701_v29 = vld [vmem:[#allocation6 + $0x8e8] sm:$0xff]  ;;  %v5259_v0 = vcombine.low %v688_v57, %v692_v58  ;;  %v5261_v1 = vcombine.low %v689_v59, %v693_v60  ;;  %v5300_v57 = vcombine.high %v728_v51, %v732_v52  ;;  %v736_v59 = vld [vmem:[#allocation6 + $0xa00] sm:$0xff] }
 0x188   :  { %v5270_v3 = vcombine.high %v697_v63, %v701_v29  ;;  %v740_v60 = vld [vmem:[#allocation6 + $0xa20] sm:$0xff] }
 0x18a   :  { %3600 = vmatpush1.bf16.msra.mxu0 %v5219_v7  ;;  %3772 = vmatpush1.bf16.msra.mxu1 %v5221_v8  ;;  %v705_v7 = vld [vmem:[#allocation6 + $0x908] sm:$0xff] }
 0x18b   :  { %3601 = vmatprep.subr.bf16.mxu0 %v5228_v9  ;;  %3773 = vmatprep.subr.bf16.mxu1 %v5230_v10  ;;  %v709_v8 = vld [vmem:[#allocation6 + $0x928] sm:$0xff]  ;;  %v5267_v9 = vcombine.low %v696_v61, %v700_v62  ;;  %v5269_v10 = vcombine.low %v697_v63, %v701_v29  ;;  %v5308_v61 = vcombine.high %v736_v59, %v740_v60  ;;  %v744_v63 = vld [vmem:[#allocation6 + $0xa40] sm:$0xff] }
 0x18c   :  { %v5278_v13 = vcombine.high %v705_v7, %v709_v8  ;;  %v748_v29 = vld [vmem:[#allocation6 + $0xa60] sm:$0xff] }
 0x18e   :  { %3602 = vmatpush1.bf16.msra.mxu0 %v5227_v25  ;;  %3774 = vmatpush1.bf16.msra.mxu1 %v5229_v33  ;;  %v713_v25 = vld [vmem:[#allocation6 + $0x948] sm:$0xff] }
 0x18f   :  { %3603 = vmatprep.subr.bf16.mxu0 %v5236_v34  ;;  %3775 = vmatprep.subr.bf16.mxu1 %v5238_v35  ;;  %v717_v33 = vld [vmem:[#allocation6 + $0x968] sm:$0xff]  ;;  %v5275_v34 = vcombine.low %v704_v4, %v708_v6  ;;  %v5277_v35 = vcombine.low %v705_v7, %v709_v8  ;;  %v5316_v4 = vcombine.high %v744_v63, %v748_v29  ;;  %v752_v7 = vld [vmem:[#allocation6 + $0xa80] sm:$0xff] }
 0x190   :  { %v5286_v38 = vcombine.high %v713_v25, %v717_v33  ;;  %v756_v8 = vld [vmem:[#allocation6 + $0xaa0] sm:$0xff] }
 0x192   :  { %3604 = vmatpush1.bf16.msra.mxu0 %v5235_v43  ;;  %3776 = vmatpush1.bf16.msra.mxu1 %v5237_v46  ;;  %v721_v43 = vld [vmem:[#allocation6 + $0x988] sm:$0xff] }
 0x193   :  { %3616 = vmatprep.subr.bf16.mxu0 %v5244_v47  ;;  %3788 = vmatprep.subr.bf16.mxu1 %v5246_v48  ;;  %v725_v46 = vld [vmem:[#allocation6 + $0x9a8] sm:$0xff]  ;;  %v5283_v47 = vcombine.low %v712_v15, %v716_v21  ;;  %v5285_v48 = vcombine.low %v713_v25, %v717_v33  ;;  %v5324_v15 = vcombine.high %v752_v7, %v756_v8  ;;  %v760_v25 = vld [vmem:[#allocation6 + $0xac0] sm:$0xff] }
 0x194   :  { %v5294_v50 = vcombine.high %v721_v43, %v725_v46  ;;  %v764_v33 = vld [vmem:[#allocation6 + $0xae0] sm:$0xff] }
 0x195   :  { %3606 = vmatmul.mubr.bf16.vlgmr.msra.gmra.mrb[8].mxu0 %v6125_v36  ;;  %3778 = vmatmul.mubr.bf16.vlgmr.msra.gmra.mrb[8].mxu1 %v6125_v36 }
 0x196   :  { %3617 = vmatpush1.bf16.msra.mxu0 %v5243_v53  ;;  %3789 = vmatpush1.bf16.msra.mxu1 %v5245_v54  ;;  %v729_v53 = vld [vmem:[#allocation6 + $0x9c8] sm:$0xff] }
 0x197   :  { %3618 = vmatprep.subr.bf16.mxu0 %v5252_v55  ;;  %3790 = vmatprep.subr.bf16.mxu1 %v5254_v56  ;;  %v733_v54 = vld [vmem:[#allocation6 + $0x9e8] sm:$0xff]  ;;  %v5291_v55 = vcombine.low %v720_v41, %v724_v42  ;;  %v5293_v56 = vcombine.low %v721_v43, %v725_v46  ;;  %v5332_v41 = vcombine.high %v760_v25, %v764_v33  ;;  %v768_v43 = vld [vmem:[#allocation6 + $0xb00] sm:$0xff] }
 0x198   :  { %3648 = vmatprep.mubr.bf16.mxu0 %v6143_v23  ;;  %3820 = vmatprep.mubr.bf16.mxu1 %v6143_v23  ;;  %v5302_v58 = vcombine.high %v729_v53, %v733_v54  ;;  %v772_v46 = vld [vmem:[#allocation6 + $0xb20] sm:$0xff] }
 0x19a   :  { %3619 = vmatpush1.bf16.msra.mxu0 %v5251_v18  ;;  %3791 = vmatpush1.bf16.msra.mxu1 %v5253_v20  ;;  %v737_v18 = vld [vmem:[#allocation6 + $0xa08] sm:$0xff] }
 0x19b   :  { %3620 = vmatprep.subr.bf16.mxu0 %v5260_v22  ;;  %3792 = vmatprep.subr.bf16.mxu1 %v5262_v24  ;;  %v741_v20 = vld [vmem:[#allocation6 + $0xa28] sm:$0xff]  ;;  %v5299_v22 = vcombine.low %v728_v51, %v732_v52  ;;  %v5301_v24 = vcombine.low %v729_v53, %v733_v54  ;;  %v5340_v51 = vcombine.high %v768_v43, %v772_v46  ;;  %v776_v53 = vld [vmem:[#allocation6 + $0xb40] sm:$0xff] }
 0x19c   :  { %v5310_v62 = vcombine.high %v737_v18, %v741_v20  ;;  %v780_v54 = vld [vmem:[#allocation6 + $0xb60] sm:$0xff] }
 0x19e   :  { %3621 = vmatpush1.bf16.msra.mxu0 %v5259_v0  ;;  %3793 = vmatpush1.bf16.msra.mxu1 %v5261_v1  ;;  %v745_v0 = vld [vmem:[#allocation6 + $0xa48] sm:$0xff] }
 0x19f   :  { %3622 = vmatprep.subr.bf16.mxu0 %v5268_v2  ;;  %3794 = vmatprep.subr.bf16.mxu1 %v5270_v3  ;;  %v749_v1 = vld [vmem:[#allocation6 + $0xa68] sm:$0xff]  ;;  %v5307_v2 = vcombine.low %v736_v59, %v740_v60  ;;  %v5309_v3 = vcombine.low %v737_v18, %v741_v20  ;;  %v5348_v59 = vcombine.high %v776_v53, %v780_v54  ;;  %v784_v18 = vld [vmem:[#allocation6 + $0xb80] sm:$0xff] }
 0x1a0   :  { %v5318_v6 = vcombine.high %v745_v0, %v749_v1  ;;  %v788_v20 = vld [vmem:[#allocation6 + $0xba0] sm:$0xff] }
 0x1a2   :  { %3623 = vmatpush1.bf16.msra.mxu0 %v5267_v9  ;;  %3795 = vmatpush1.bf16.msra.mxu1 %v5269_v10  ;;  %v753_v9 = vld [vmem:[#allocation6 + $0xa88] sm:$0xff] }
 0x1a3   :  { %3624 = vmatprep.subr.bf16.mxu0 %v5276_v11  ;;  %3796 = vmatprep.subr.bf16.mxu1 %v5278_v13  ;;  %v757_v10 = vld [vmem:[#allocation6 + $0xaa8] sm:$0xff]  ;;  %v5315_v11 = vcombine.low %v744_v63, %v748_v29  ;;  %v5317_v13 = vcombine.low %v745_v0, %v749_v1  ;;  %v5356_v63 = vcombine.high %v784_v18, %v788_v20  ;;  %v792_v0 = vld [vmem:[#allocation6 + $0xbc0] sm:$0xff] }
 0x1a4   :  { %v5326_v21 = vcombine.high %v753_v9, %v757_v10  ;;  %v796_v1 = vld [vmem:[#allocation6 + $0xbe0] sm:$0xff] }
 0x1a6   :  { %3625 = vmatpush1.bf16.msra.mxu0 %v5275_v34  ;;  %3797 = vmatpush1.bf16.msra.mxu1 %v5277_v35  ;;  %v761_v34 = vld [vmem:[#allocation6 + $0xac8] sm:$0xff] }
 0x1a7   :  { %3626 = vmatprep.subr.bf16.mxu0 %v5284_v37  ;;  %3798 = vmatprep.subr.bf16.mxu1 %v5286_v38  ;;  %v765_v35 = vld [vmem:[#allocation6 + $0xae8] sm:$0xff]  ;;  %v5323_v37 = vcombine.low %v752_v7, %v756_v8  ;;  %v5325_v38 = vcombine.low %v753_v9, %v757_v10  ;;  %v5364_v7 = vcombine.high %v792_v0, %v796_v1  ;;  %v800_v9 = vld [vmem:[#allocation6 + $0xc00] sm:$0xff] }
 0x1a8   :  { %v5334_v42 = vcombine.high %v761_v34, %v765_v35  ;;  %v804_v10 = vld [vmem:[#allocation6 + $0xc20] sm:$0xff] }
 0x1aa   :  { %3627 = vmatpush1.bf16.msra.mxu0 %v5283_v47  ;;  %3799 = vmatpush1.bf16.msra.mxu1 %v5285_v48  ;;  %v769_v47 = vld [vmem:[#allocation6 + $0xb08] sm:$0xff] }
 0x1ab   :  { %3628 = vmatprep.subr.bf16.mxu0 %v5292_v49  ;;  %3800 = vmatprep.subr.bf16.mxu1 %v5294_v50  ;;  %v773_v48 = vld [vmem:[#allocation6 + $0xb28] sm:$0xff]  ;;  %v5331_v49 = vcombine.low %v760_v25, %v764_v33  ;;  %v5333_v50 = vcombine.low %v761_v34, %v765_v35  ;;  %v5372_v25 = vcombine.high %v800_v9, %v804_v10  ;;  %v808_v34 = vld [vmem:[#allocation6 + $0xc40] sm:$0xff] }
 0x1ac   :  { %v5342_v52 = vcombine.high %v769_v47, %v773_v48  ;;  %v812_v35 = vld [vmem:[#allocation6 + $0xc60] sm:$0xff] }
 0x1ae   :  { %3629 = vmatpush1.bf16.msra.mxu0 %v5291_v55  ;;  %3801 = vmatpush1.bf16.msra.mxu1 %v5293_v56  ;;  %v777_v55 = vld [vmem:[#allocation6 + $0xb48] sm:$0xff] }
 0x1af   :  { %3630 = vmatprep.subr.bf16.mxu0 %v5300_v57  ;;  %3802 = vmatprep.subr.bf16.mxu1 %v5302_v58  ;;  %v781_v56 = vld [vmem:[#allocation6 + $0xb68] sm:$0xff]  ;;  %v5339_v57 = vcombine.low %v768_v43, %v772_v46  ;;  %v5341_v58 = vcombine.low %v769_v47, %v773_v48  ;;  %v5380_v43 = vcombine.high %v808_v34, %v812_v35  ;;  %v816_v47 = vld [vmem:[#allocation6 + $0xc80] sm:$0xff] }
 0x1b0   :  { %v5350_v60 = vcombine.high %v777_v55, %v781_v56  ;;  %v820_v48 = vld [vmem:[#allocation6 + $0xca0] sm:$0xff] }
 0x1b2   :  { %3631 = vmatpush1.bf16.msra.mxu0 %v5299_v22  ;;  %3803 = vmatpush1.bf16.msra.mxu1 %v5301_v24  ;;  %v785_v22 = vld [vmem:[#allocation6 + $0xb88] sm:$0xff] }
 0x1b3   :  { %3632 = vmatprep.subr.bf16.mxu0 %v5308_v61  ;;  %3804 = vmatprep.subr.bf16.mxu1 %v5310_v62  ;;  %v789_v24 = vld [vmem:[#allocation6 + $0xba8] sm:$0xff]  ;;  %v5347_v61 = vcombine.low %v776_v53, %v780_v54  ;;  %v5349_v62 = vcombine.low %v777_v55, %v781_v56  ;;  %v5388_v53 = vcombine.high %v816_v47, %v820_v48  ;;  %v824_v55 = vld [vmem:[#allocation6 + $0xcc0] sm:$0xff] }
 0x1b4   :  { %v5358_v29 = vcombine.high %v785_v22, %v789_v24  ;;  %v828_v56 = vld [vmem:[#allocation6 + $0xce0] sm:$0xff] }
 0x1b6   :  { %3633 = vmatpush1.bf16.msra.mxu0 %v5307_v2  ;;  %3805 = vmatpush1.bf16.msra.mxu1 %v5309_v3  ;;  %v793_v2 = vld [vmem:[#allocation6 + $0xbc8] sm:$0xff] }
 0x1b7   :  { %3634 = vmatprep.subr.bf16.mxu0 %v5316_v4  ;;  %3806 = vmatprep.subr.bf16.mxu1 %v5318_v6  ;;  %v797_v3 = vld [vmem:[#allocation6 + $0xbe8] sm:$0xff]  ;;  %v5355_v4 = vcombine.low %v784_v18, %v788_v20  ;;  %v5357_v6 = vcombine.low %v785_v22, %v789_v24  ;;  %v5396_v18 = vcombine.high %v824_v55, %v828_v56  ;;  %v832_v22 = vld [vmem:[#allocation6 + $0xd00] sm:$0xff] }
 0x1b8   :  { %v5366_v8 = vcombine.high %v793_v2, %v797_v3  ;;  %v836_v24 = vld [vmem:[#allocation6 + $0xd20] sm:$0xff] }
 0x1ba   :  { %3635 = vmatpush1.bf16.msra.mxu0 %v5315_v11  ;;  %3807 = vmatpush1.bf16.msra.mxu1 %v5317_v13  ;;  %v801_v11 = vld [vmem:[#allocation6 + $0xc08] sm:$0xff] }
 0x1bb   :  { %3636 = vmatprep.subr.bf16.mxu0 %v5324_v15  ;;  %3808 = vmatprep.subr.bf16.mxu1 %v5326_v21  ;;  %v805_v13 = vld [vmem:[#allocation6 + $0xc28] sm:$0xff]  ;;  %v5363_v15 = vcombine.low %v792_v0, %v796_v1  ;;  %v5365_v21 = vcombine.low %v793_v2, %v797_v3  ;;  %v5404_v0 = vcombine.high %v832_v22, %v836_v24  ;;  %v840_v2 = vld [vmem:[#allocation6 + $0xd40] sm:$0xff] }
 0x1bc   :  { %v5374_v33 = vcombine.high %v801_v11, %v805_v13  ;;  %v844_v3 = vld [vmem:[#allocation6 + $0xd60] sm:$0xff] }
 0x1be   :  { %3637 = vmatpush1.bf16.msra.mxu0 %v5323_v37  ;;  %3809 = vmatpush1.bf16.msra.mxu1 %v5325_v38  ;;  %v809_v37 = vld [vmem:[#allocation6 + $0xc48] sm:$0xff] }
 0x1bf   :  { %3638 = vmatprep.subr.bf16.mxu0 %v5332_v41  ;;  %3810 = vmatprep.subr.bf16.mxu1 %v5334_v42  ;;  %v813_v38 = vld [vmem:[#allocation6 + $0xc68] sm:$0xff]  ;;  %v5371_v41 = vcombine.low %v800_v9, %v804_v10  ;;  %v5373_v42 = vcombine.low %v801_v11, %v805_v13  ;;  %v5412_v9 = vcombine.high %v840_v2, %v844_v3  ;;  %v848_v11 = vld [vmem:[#allocation6 + $0xd80] sm:$0xff] }
 0x1c0   :  { %v5382_v46 = vcombine.high %v809_v37, %v813_v38  ;;  %v852_v13 = vld [vmem:[#allocation6 + $0xda0] sm:$0xff] }
 0x1c2   :  { %3639 = vmatpush1.bf16.msra.mxu0 %v5331_v49  ;;  %3811 = vmatpush1.bf16.msra.mxu1 %v5333_v50  ;;  %v817_v49 = vld [vmem:[#allocation6 + $0xc88] sm:$0xff] }
 0x1c3   :  { %3640 = vmatprep.subr.bf16.mxu0 %v5340_v51  ;;  %3812 = vmatprep.subr.bf16.mxu1 %v5342_v52  ;;  %v821_v50 = vld [vmem:[#allocation6 + $0xca8] sm:$0xff]  ;;  %v5379_v51 = vcombine.low %v808_v34, %v812_v35  ;;  %v5381_v52 = vcombine.low %v809_v37, %v813_v38  ;;  %v5420_v34 = vcombine.high %v848_v11, %v852_v13  ;;  %v856_v37 = vld [vmem:[#allocation6 + $0xdc0] sm:$0xff] }
 0x1c4   :  { %v5390_v54 = vcombine.high %v817_v49, %v821_v50  ;;  %v860_v38 = vld [vmem:[#allocation6 + $0xde0] sm:$0xff] }
 0x1c6   :  { %3641 = vmatpush1.bf16.msra.mxu0 %v5339_v57  ;;  %3813 = vmatpush1.bf16.msra.mxu1 %v5341_v58  ;;  %v825_v57 = vld [vmem:[#allocation6 + $0xcc8] sm:$0xff] }
 0x1c7   :  { %3642 = vmatprep.subr.bf16.mxu0 %v5348_v59  ;;  %3814 = vmatprep.subr.bf16.mxu1 %v5350_v60  ;;  %v829_v58 = vld [vmem:[#allocation6 + $0xce8] sm:$0xff]  ;;  %v5387_v59 = vcombine.low %v816_v47, %v820_v48  ;;  %v5389_v60 = vcombine.low %v817_v49, %v821_v50  ;;  %v5428_v47 = vcombine.high %v856_v37, %v860_v38  ;;  %v864_v49 = vld [vmem:[#allocation6 + $0xe00] sm:$0xff] }
 0x1c8   :  { %v5398_v20 = vcombine.high %v825_v57, %v829_v58  ;;  %v868_v50 = vld [vmem:[#allocation6 + $0xe20] sm:$0xff] }
 0x1ca   :  { %3643 = vmatpush1.bf16.msra.mxu0 %v5347_v61  ;;  %3815 = vmatpush1.bf16.msra.mxu1 %v5349_v62  ;;  %v833_v61 = vld [vmem:[#allocation6 + $0xd08] sm:$0xff] }
 0x1cb   :  { %3644 = vmatprep.subr.bf16.mxu0 %v5356_v63  ;;  %3816 = vmatprep.subr.bf16.mxu1 %v5358_v29  ;;  %v837_v62 = vld [vmem:[#allocation6 + $0xd28] sm:$0xff]  ;;  %v5395_v63 = vcombine.low %v824_v55, %v828_v56  ;;  %v5397_v29 = vcombine.low %v825_v57, %v829_v58  ;;  %v5436_v55 = vcombine.high %v864_v49, %v868_v50  ;;  %v872_v57 = vld [vmem:[#allocation6 + $0xe40] sm:$0xff] }
 0x1cc   :  { %v5406_v1 = vcombine.high %v833_v61, %v837_v62  ;;  %v876_v58 = vld [vmem:[#allocation6 + $0xe60] sm:$0xff] }
 0x1ce   :  { %3645 = vmatpush1.bf16.msra.mxu0 %v5355_v4  ;;  %3817 = vmatpush1.bf16.msra.mxu1 %v5357_v6  ;;  %v841_v4 = vld [vmem:[#allocation6 + $0xd48] sm:$0xff] }
 0x1cf   :  { %3646 = vmatprep.subr.bf16.mxu0 %v5364_v7  ;;  %3818 = vmatprep.subr.bf16.mxu1 %v5366_v8  ;;  %v845_v6 = vld [vmem:[#allocation6 + $0xd68] sm:$0xff]  ;;  %v5403_v7 = vcombine.low %v832_v22, %v836_v24  ;;  %v5405_v8 = vcombine.low %v833_v61, %v837_v62  ;;  %v5444_v22 = vcombine.high %v872_v57, %v876_v58  ;;  %v880_v61 = vld [vmem:[#allocation6 + $0xe80] sm:$0xff] }
 0x1d0   :  { %v5414_v10 = vcombine.high %v841_v4, %v845_v6  ;;  %v884_v62 = vld [vmem:[#allocation6 + $0xea0] sm:$0xff] }
 0x1d2   :  { %3647 = vmatpush1.bf16.msra.mxu0 %v5363_v15  ;;  %3819 = vmatpush1.bf16.msra.mxu1 %v5365_v21  ;;  %v849_v15 = vld [vmem:[#allocation6 + $0xd88] sm:$0xff] }
 0x1d3   :  { %3659 = vmatprep.subr.bf16.mxu0 %v5372_v25  ;;  %3831 = vmatprep.subr.bf16.mxu1 %v5374_v33  ;;  %v853_v21 = vld [vmem:[#allocation6 + $0xda8] sm:$0xff]  ;;  %v5411_v25 = vcombine.low %v840_v2, %v844_v3  ;;  %v5413_v33 = vcombine.low %v841_v4, %v845_v6  ;;  %v5452_v2 = vcombine.high %v880_v61, %v884_v62  ;;  %v888_v4 = vld [vmem:[#allocation6 + $0xec0] sm:$0xff] }
 0x1d4   :  { %v5422_v35 = vcombine.high %v849_v15, %v853_v21  ;;  %v892_v6 = vld [vmem:[#allocation6 + $0xee0] sm:$0xff] }
 0x1d5   :  { %3649 = vmatmul.mubr.bf16.vlgmr.msra.gmra.mrb[8].mxu0 %v6141_v19  ;;  %3821 = vmatmul.mubr.bf16.vlgmr.msra.gmra.mrb[8].mxu1 %v6141_v19 }
 0x1d6   :  { %3660 = vmatpush1.bf16.msra.mxu0 %v5371_v41  ;;  %3832 = vmatpush1.bf16.msra.mxu1 %v5373_v42  ;;  %v857_v41 = vld [vmem:[#allocation6 + $0xdc8] sm:$0xff] }
 0x1d7   :  { %3661 = vmatprep.subr.bf16.mxu0 %v5380_v43  ;;  %3833 = vmatprep.subr.bf16.mxu1 %v5382_v46  ;;  %v861_v42 = vld [vmem:[#allocation6 + $0xde8] sm:$0xff]  ;;  %v5419_v43 = vcombine.low %v848_v11, %v852_v13  ;;  %v5421_v46 = vcombine.low %v849_v15, %v853_v21  ;;  %v5460_v11 = vcombine.high %v888_v4, %v892_v6  ;;  %v896_v15 = vld [vmem:[#allocation6 + $0xf00] sm:$0xff] }
 0x1d8   :  { %3691 = vmatprep.mubr.bf16.mxu0 %v6155_v14  ;;  %3863 = vmatprep.mubr.bf16.mxu1 %v6155_v14  ;;  %v5430_v48 = vcombine.high %v857_v41, %v861_v42  ;;  %v900_v21 = vld [vmem:[#allocation6 + $0xf20] sm:$0xff] }
 0x1da   :  { %3662 = vmatpush1.bf16.msra.mxu0 %v5379_v51  ;;  %3834 = vmatpush1.bf16.msra.mxu1 %v5381_v52  ;;  %v865_v51 = vld [vmem:[#allocation6 + $0xe08] sm:$0xff] }
 0x1db   :  { %3663 = vmatprep.subr.bf16.mxu0 %v5388_v53  ;;  %3835 = vmatprep.subr.bf16.mxu1 %v5390_v54  ;;  %v869_v52 = vld [vmem:[#allocation6 + $0xe28] sm:$0xff]  ;;  %v5427_v53 = vcombine.low %v856_v37, %v860_v38  ;;  %v5429_v54 = vcombine.low %v857_v41, %v861_v42  ;;  %v5468_v37 = vcombine.high %v896_v15, %v900_v21  ;;  %v904_v41 = vld [vmem:[#allocation6 + $0xf40] sm:$0xff] }
 0x1dc   :  { %v5438_v56 = vcombine.high %v865_v51, %v869_v52  ;;  %v908_v42 = vld [vmem:[#allocation6 + $0xf60] sm:$0xff] }
 0x1de   :  { %3664 = vmatpush1.bf16.msra.mxu0 %v5387_v59  ;;  %3836 = vmatpush1.bf16.msra.mxu1 %v5389_v60  ;;  %v873_v59 = vld [vmem:[#allocation6 + $0xe48] sm:$0xff] }
 0x1df   :  { %3665 = vmatprep.subr.bf16.mxu0 %v5396_v18  ;;  %3837 = vmatprep.subr.bf16.mxu1 %v5398_v20  ;;  %v877_v60 = vld [vmem:[#allocation6 + $0xe68] sm:$0xff]  ;;  %v5435_v18 = vcombine.low %v864_v49, %v868_v50  ;;  %v5437_v20 = vcombine.low %v865_v51, %v869_v52  ;;  %v5476_v49 = vcombine.high %v904_v41, %v908_v42  ;;  %v912_v51 = vld [vmem:[#allocation6 + $0xf80] sm:$0xff] }
 0x1e0   :  { %v5446_v24 = vcombine.high %v873_v59, %v877_v60  ;;  %v916_v52 = vld [vmem:[#allocation6 + $0xfa0] sm:$0xff] }
 0x1e2   :  { %3666 = vmatpush1.bf16.msra.mxu0 %v5395_v63  ;;  %3838 = vmatpush1.bf16.msra.mxu1 %v5397_v29  ;;  %v881_v63 = vld [vmem:[#allocation6 + $0xe88] sm:$0xff] }
 0x1e3   :  { %3667 = vmatprep.subr.bf16.mxu0 %v5404_v0  ;;  %3839 = vmatprep.subr.bf16.mxu1 %v5406_v1  ;;  %v885_v29 = vld [vmem:[#allocation6 + $0xea8] sm:$0xff]  ;;  %v5443_v0 = vcombine.low %v872_v57, %v876_v58  ;;  %v5445_v1 = vcombine.low %v873_v59, %v877_v60  ;;  %v5484_v57 = vcombine.high %v912_v51, %v916_v52  ;;  %v920_v59 = vld [vmem:[#allocation6 + $0xfc0] sm:$0xff] }
 0x1e4   :  { %v5454_v3 = vcombine.high %v881_v63, %v885_v29  ;;  %v924_v60 = vld [vmem:[#allocation6 + $0xfe0] sm:$0xff] }
 0x1e6   :  { %3668 = vmatpush1.bf16.msra.mxu0 %v5403_v7  ;;  %3840 = vmatpush1.bf16.msra.mxu1 %v5405_v8  ;;  %v889_v7 = vld [vmem:[#allocation6 + $0xec8] sm:$0xff] }
 0x1e7   :  { %3669 = vmatprep.subr.bf16.mxu0 %v5412_v9  ;;  %3841 = vmatprep.subr.bf16.mxu1 %v5414_v10  ;;  %v893_v8 = vld [vmem:[#allocation6 + $0xee8] sm:$0xff]  ;;  %v5451_v9 = vcombine.low %v880_v61, %v884_v62  ;;  %v5453_v10 = vcombine.low %v881_v63, %v885_v29  ;;  %v5492_v61 = vcombine.high %v920_v59, %v924_v60  ;;  %v418_v63 = vld [vmem:[#allocation6 + $0x10] sm:$0xff] }
 0x1e8   :  { %v5462_v13 = vcombine.high %v889_v7, %v893_v8  ;;  %v422_v29 = vld [vmem:[#allocation6 + $0x30] sm:$0xff] }
 0x1ea   :  { %3670 = vmatpush1.bf16.msra.mxu0 %v5411_v25  ;;  %3842 = vmatpush1.bf16.msra.mxu1 %v5413_v33  ;;  %v897_v25 = vld [vmem:[#allocation6 + $0xf08] sm:$0xff] }
 0x1eb   :  { %3671 = vmatprep.subr.bf16.mxu0 %v5420_v34  ;;  %3843 = vmatprep.subr.bf16.mxu1 %v5422_v35  ;;  %v901_v33 = vld [vmem:[#allocation6 + $0xf28] sm:$0xff]  ;;  %v5459_v34 = vcombine.low %v888_v4, %v892_v6  ;;  %v5461_v35 = vcombine.low %v889_v7, %v893_v8  ;;  %v4992_v4 = vcombine.high %v418_v63, %v422_v29  ;;  %v426_v7 = vld [vmem:[#allocation6 + $0x50] sm:$0xff] }
 0x1ec   :  { %v5470_v38 = vcombine.high %v897_v25, %v901_v33  ;;  %v430_v8 = vld [vmem:[#allocation6 + $0x70] sm:$0xff] }
 0x1ee   :  { %3672 = vmatpush1.bf16.msra.mxu0 %v5419_v43  ;;  %3844 = vmatpush1.bf16.msra.mxu1 %v5421_v46  ;;  %v905_v43 = vld [vmem:[#allocation6 + $0xf48] sm:$0xff] }
 0x1ef   :  { %3673 = vmatprep.subr.bf16.mxu0 %v5428_v47  ;;  %3845 = vmatprep.subr.bf16.mxu1 %v5430_v48  ;;  %v909_v46 = vld [vmem:[#allocation6 + $0xf68] sm:$0xff]  ;;  %v5467_v47 = vcombine.low %v896_v15, %v900_v21  ;;  %v5469_v48 = vcombine.low %v897_v25, %v901_v33  ;;  %v5000_v15 = vcombine.high %v426_v7, %v430_v8  ;;  %v434_v25 = vld [vmem:[#allocation6 + $0x90] sm:$0xff] }
 0x1f0   :  { %v5478_v50 = vcombine.high %v905_v43, %v909_v46  ;;  %v438_v33 = vld [vmem:[#allocation6 + $0xb0] sm:$0xff] }
 0x1f2   :  { %3674 = vmatpush1.bf16.msra.mxu0 %v5427_v53  ;;  %3846 = vmatpush1.bf16.msra.mxu1 %v5429_v54  ;;  %v913_v53 = vld [vmem:[#allocation6 + $0xf88] sm:$0xff] }
 0x1f3   :  { %3675 = vmatprep.subr.bf16.mxu0 %v5436_v55  ;;  %3847 = vmatprep.subr.bf16.mxu1 %v5438_v56  ;;  %v917_v54 = vld [vmem:[#allocation6 + $0xfa8] sm:$0xff]  ;;  %v5475_v55 = vcombine.low %v904_v41, %v908_v42  ;;  %v5477_v56 = vcombine.low %v905_v43, %v909_v46  ;;  %v5008_v41 = vcombine.high %v434_v25, %v438_v33  ;;  %v442_v43 = vld [vmem:[#allocation6 + $0xd0] sm:$0xff] }
 0x1f4   :  { %v5486_v58 = vcombine.high %v913_v53, %v917_v54  ;;  %v446_v46 = vld [vmem:[#allocation6 + $0xf0] sm:$0xff] }
 0x1f6   :  { %3676 = vmatpush1.bf16.msra.mxu0 %v5435_v18  ;;  %3848 = vmatpush1.bf16.msra.mxu1 %v5437_v20  ;;  %v921_v18 = vld [vmem:[#allocation6 + $0xfc8] sm:$0xff] }
 0x1f7   :  { %3677 = vmatprep.subr.bf16.mxu0 %v5444_v22  ;;  %3849 = vmatprep.subr.bf16.mxu1 %v5446_v24  ;;  %v925_v20 = vld [vmem:[#allocation6 + $0xfe8] sm:$0xff]  ;;  %v5483_v22 = vcombine.low %v912_v51, %v916_v52  ;;  %v5485_v24 = vcombine.low %v913_v53, %v917_v54  ;;  %v5016_v51 = vcombine.high %v442_v43, %v446_v46  ;;  %v450_v53 = vld [vmem:[#allocation6 + $0x110] sm:$0xff] }
 0x1f8   :  { %v5494_v62 = vcombine.high %v921_v18, %v925_v20  ;;  %v454_v54 = vld [vmem:[#allocation6 + $0x130] sm:$0xff] }
 0x1fa   :  { %3678 = vmatpush1.bf16.msra.mxu0 %v5443_v0  ;;  %3850 = vmatpush1.bf16.msra.mxu1 %v5445_v1  ;;  %v419_v0 = vld [vmem:[#allocation6 + $0x18] sm:$0xff] }
 0x1fb   :  { %3679 = vmatprep.subr.bf16.mxu0 %v5452_v2  ;;  %3851 = vmatprep.subr.bf16.mxu1 %v5454_v3  ;;  %v423_v1 = vld [vmem:[#allocation6 + $0x38] sm:$0xff]  ;;  %v5491_v2 = vcombine.low %v920_v59, %v924_v60  ;;  %v5493_v3 = vcombine.low %v921_v18, %v925_v20  ;;  %v458_v60 = vld [vmem:[#allocation6 + $0x150] sm:$0xff] }
 0x1fc   :  { %v4994_v6 = vcombine.high %v419_v0, %v423_v1  ;;  %v462_v18 = vld [vmem:[#allocation6 + $0x170] sm:$0xff]  ;;  %v459_v20 = vld [vmem:[#allocation6 + $0x158] sm:$0xff] }
 0x1fe   :  { %3680 = vmatpush1.bf16.msra.mxu0 %v5451_v9  ;;  %3852 = vmatpush1.bf16.msra.mxu1 %v5453_v10  ;;  %v427_v9 = vld [vmem:[#allocation6 + $0x58] sm:$0xff] }
 0x1ff   :  { %3681 = vmatprep.subr.bf16.mxu0 %v5460_v11  ;;  %3853 = vmatprep.subr.bf16.mxu1 %v5462_v13  ;;  %v431_v10 = vld [vmem:[#allocation6 + $0x78] sm:$0xff]  ;;  %v4991_v11 = vcombine.low %v418_v63, %v422_v29  ;;  %v4993_v13 = vcombine.low %v419_v0, %v423_v1  ;;  %v466_v29 = vld [vmem:[#allocation6 + $0x190] sm:$0xff] }
 0x200   :  { %v5002_v21 = vcombine.high %v427_v9, %v431_v10  ;;  %v470_v0 = vld [vmem:[#allocation6 + $0x1b0] sm:$0xff]  ;;  %v467_v1 = vld [vmem:[#allocation6 + $0x198] sm:$0xff] }
 0x202   :  { %3682 = vmatpush1.bf16.msra.mxu0 %v5459_v34  ;;  %3854 = vmatpush1.bf16.msra.mxu1 %v5461_v35  ;;  %v435_v34 = vld [vmem:[#allocation6 + $0x98] sm:$0xff] }
 0x203   :  { %3683 = vmatprep.subr.bf16.mxu0 %v5468_v37  ;;  %3855 = vmatprep.subr.bf16.mxu1 %v5470_v38  ;;  %v439_v35 = vld [vmem:[#allocation6 + $0xb8] sm:$0xff]  ;;  %v4999_v37 = vcombine.low %v426_v7, %v430_v8  ;;  %v5001_v38 = vcombine.low %v427_v9, %v431_v10  ;;  %v474_v8 = vld [vmem:[#allocation6 + $0x1d0] sm:$0xff] }
 0x204   :  { %v5010_v42 = vcombine.high %v435_v34, %v439_v35  ;;  %v478_v9 = vld [vmem:[#allocation6 + $0x1f0] sm:$0xff]  ;;  %v475_v10 = vld [vmem:[#allocation6 + $0x1d8] sm:$0xff] }
 0x206   :  { %3684 = vmatpush1.bf16.msra.mxu0 %v5467_v47  ;;  %3856 = vmatpush1.bf16.msra.mxu1 %v5469_v48  ;;  %v443_v47 = vld [vmem:[#allocation6 + $0xd8] sm:$0xff] }
 0x207   :  { %3685 = vmatprep.subr.bf16.mxu0 %v5476_v49  ;;  %3857 = vmatprep.subr.bf16.mxu1 %v5478_v50  ;;  %v447_v48 = vld [vmem:[#allocation6 + $0xf8] sm:$0xff]  ;;  %v5007_v49 = vcombine.low %v434_v25, %v438_v33  ;;  %v5009_v50 = vcombine.low %v435_v34, %v439_v35  ;;  %v482_v33 = vld [vmem:[#allocation6 + $0x210] sm:$0xff] }
 0x208   :  { %v5018_v52 = vcombine.high %v443_v47, %v447_v48  ;;  %v486_v34 = vld [vmem:[#allocation6 + $0x230] sm:$0xff]  ;;  %v483_v35 = vld [vmem:[#allocation6 + $0x218] sm:$0xff] }
 0x20a   :  { %3686 = vmatpush1.bf16.msra.mxu0 %v5475_v55  ;;  %3858 = vmatpush1.bf16.msra.mxu1 %v5477_v56  ;;  %v455_v55 = vld [vmem:[#allocation6 + $0x138] sm:$0xff]  ;;  %v5015_v56 = vcombine.low %v442_v43, %v446_v46  ;;  %v490_v46 = vld [vmem:[#allocation6 + $0x250] sm:$0xff] }
 0x20b   :  { %3687 = vmatprep.subr.bf16.mxu0 %v5484_v57  ;;  %3859 = vmatprep.subr.bf16.mxu1 %v5486_v58  ;;  %v5017_v57 = vcombine.low %v443_v47, %v447_v48  ;;  %v5024_v58 = vcombine.high %v450_v53, %v454_v54  ;;  %v494_v47 = vld [vmem:[#allocation6 + $0x270] sm:$0xff]  ;;  %v491_v48 = vld [vmem:[#allocation6 + $0x258] sm:$0xff] }
 0x20e   :  { %3688 = vmatpush1.bf16.msra.mxu0 %v5483_v22  ;;  %3860 = vmatpush1.bf16.msra.mxu1 %v5485_v24  ;;  %v463_v22 = vld [vmem:[#allocation6 + $0x178] sm:$0xff]  ;;  %v5023_v24 = vcombine.low %v450_v53, %v454_v54  ;;  %v498_v54 = vld [vmem:[#allocation6 + $0x290] sm:$0xff] }
 0x20f   :  { %3689 = vmatprep.subr.bf16.mxu0 %v5492_v61  ;;  %3861 = vmatprep.subr.bf16.mxu1 %v5494_v62  ;;  %v5032_v62 = vcombine.high %v458_v60, %v462_v18  ;;  %v5034_v63 = vcombine.high %v459_v20, %v463_v22 }
 0x212   :  { %3690 = vmatpush1.bf16.msra.mxu0 %v5491_v2  ;;  %3862 = vmatpush1.bf16.msra.mxu1 %v5493_v3  ;;  %v471_v2 = vld [vmem:[#allocation6 + $0x1b8] sm:$0xff]  ;;  %v5031_v3 = vcombine.low %v458_v60, %v462_v18  ;;  %v506_v18 = vld [vmem:[#allocation6 + $0x2d0] sm:$0xff] }
 0x213   :  { %3874 = vmatprep.subr.bf16.mxu0 %v4992_v4  ;;  %4046 = vmatprep.subr.bf16.mxu1 %v4994_v6  ;;  %v5033_v4 = vcombine.low %v459_v20, %v463_v22  ;;  %v5040_v6 = vcombine.high %v466_v29, %v470_v0  ;;  %v5042_v7 = vcombine.high %v467_v1, %v471_v2  ;;  %v510_v20 = vld [vmem:[#allocation6 + $0x2f0] sm:$0xff]  ;;  %v507_v22 = vld [vmem:[#allocation6 + $0x2d8] sm:$0xff] }
 0x215   :  { %3692 = vmatmul.mubr.bf16.vlgmr.msra.gmra.mrb[8].mxu0 %v6153_v5  ;;  %3864 = vmatmul.mubr.bf16.vlgmr.msra.gmra.mrb[8].mxu1 %v6153_v5 }
 0x216   :  { %3875 = vmatpush1.bf16.msra.mxu0 %v4991_v11  ;;  %3906 = vmatprep.mubr.bf16.mxu0 %v6123_v16  ;;  %v479_v11 = vld [vmem:[#allocation6 + $0x1f8] sm:$0xff] }
 0x217   :  { %4047 = vmatpush1.bf16.msra.mxu1 %v4993_v13  ;;  %4078 = vmatprep.mubr.bf16.mxu1 %v6123_v16  ;;  %v451_v16 = vld [vmem:[#allocation6 + $0x118] sm:$0xff]  ;;  %v5039_v13 = vcombine.low %v466_v29, %v470_v0  ;;  %v5050_v25 = vcombine.high %v475_v10, %v479_v11  ;;  %v514_v0 = vld [vmem:[#allocation6 + $0x310] sm:$0xff] }
 0x218   :  { %3876 = vmatprep.subr.bf16.mxu0 %v5000_v15  ;;  %4048 = vmatprep.subr.bf16.mxu1 %v5002_v21  ;;  %v5026_v59 = vcombine.high %v451_v16, %v455_v55  ;;  %v5025_v61 = vcombine.low %v451_v16, %v455_v55  ;;  %v5041_v15 = vcombine.low %v467_v1, %v471_v2  ;;  %v502_v16 = vld [vmem:[#allocation6 + $0x2b0] sm:$0xff]  ;;  %v499_v55 = vld [vmem:[#allocation6 + $0x298] sm:$0xff] }
 0x219   :  { %v5048_v21 = vcombine.high %v474_v8, %v478_v9  ;;  %v518_v1 = vld [vmem:[#allocation6 + $0x330] sm:$0xff]  ;;  %v515_v2 = vld [vmem:[#allocation6 + $0x318] sm:$0xff] }
 0x21a   :  { %3877 = vmatpush1.bf16.msra.mxu0 %v4999_v37  ;;  %v487_v37 = vld [vmem:[#allocation6 + $0x238] sm:$0xff] }
 0x21b   :  { %4049 = vmatpush1.bf16.msra.mxu1 %v5001_v38  ;;  %3878 = vmatprep.subr.bf16.mxu0 %v5008_v41  ;;  %v5047_v38 = vcombine.low %v474_v8, %v478_v9  ;;  %v5049_v41 = vcombine.low %v475_v10, %v479_v11  ;;  %v5058_v43 = vcombine.high %v483_v35, %v487_v37  ;;  %v522_v9 = vld [vmem:[#allocation6 + $0x350] sm:$0xff]  ;;  %v523_v11 = vld [vmem:[#allocation6 + $0x358] sm:$0xff] }
 0x21c   :  { %4050 = vmatprep.subr.bf16.mxu1 %v5010_v42  ;;  %v5056_v42 = vcombine.high %v482_v33, %v486_v34  ;;  %v526_v10 = vld [vmem:[#allocation6 + $0x370] sm:$0xff] }
 0x21e   :  { %3879 = vmatpush1.bf16.msra.mxu0 %v5007_v49  ;;  %v495_v49 = vld [vmem:[#allocation6 + $0x278] sm:$0xff] }
 0x21f   :  { %4051 = vmatpush1.bf16.msra.mxu1 %v5009_v50  ;;  %3880 = vmatprep.subr.bf16.mxu0 %v5016_v51  ;;  %v5055_v50 = vcombine.low %v482_v33, %v486_v34  ;;  %v5057_v51 = vcombine.low %v483_v35, %v487_v37  ;;  %v5066_v53 = vcombine.high %v491_v48, %v495_v49  ;;  %v530_v34 = vld [vmem:[#allocation6 + $0x390] sm:$0xff]  ;;  %v531_v37 = vld [vmem:[#allocation6 + $0x398] sm:$0xff] }
 0x220   :  { %4052 = vmatprep.subr.bf16.mxu1 %v5018_v52  ;;  %v5064_v52 = vcombine.high %v490_v46, %v494_v47  ;;  %v534_v35 = vld [vmem:[#allocation6 + $0x3b0] sm:$0xff] }
 0x222   :  { %3881 = vmatpush1.bf16.msra.mxu0 %v5015_v56  ;;  %v503_v56 = vld [vmem:[#allocation6 + $0x2b8] sm:$0xff] }
 0x223   :  { %4053 = vmatpush1.bf16.msra.mxu1 %v5017_v57  ;;  %3882 = vmatprep.subr.bf16.mxu0 %v5024_v58  ;;  %v5063_v57 = vcombine.low %v490_v46, %v494_v47  ;;  %v5065_v58 = vcombine.low %v491_v48, %v495_v49  ;;  %v5074_v60 = vcombine.high %v499_v55, %v503_v56  ;;  %v538_v47 = vld [vmem:[#allocation6 + $0x3d0] sm:$0xff]  ;;  %v539_v49 = vld [vmem:[#allocation6 + $0x3d8] sm:$0xff] }
 0x224   :  { %4054 = vmatprep.subr.bf16.mxu1 %v5026_v59  ;;  %v5072_v59 = vcombine.high %v498_v54, %v502_v16  ;;  %v542_v48 = vld [vmem:[#allocation6 + $0x3f0] sm:$0xff] }
 0x226   :  { %3883 = vmatpush1.bf16.msra.mxu0 %v5023_v24  ;;  %v511_v24 = vld [vmem:[#allocation6 + $0x2f8] sm:$0xff] }
 0x227   :  { %4055 = vmatpush1.bf16.msra.mxu1 %v5025_v61  ;;  %3884 = vmatprep.subr.bf16.mxu0 %v5032_v62  ;;  %v5071_v61 = vcombine.low %v498_v54, %v502_v16  ;;  %v5073_v62 = vcombine.low %v499_v55, %v503_v56  ;;  %v5082_v29 = vcombine.high %v507_v22, %v511_v24  ;;  %v546_v16 = vld [vmem:[#allocation6 + $0x410] sm:$0xff]  ;;  %v547_v56 = vld [vmem:[#allocation6 + $0x418] sm:$0xff] }
 0x228   :  { %4056 = vmatprep.subr.bf16.mxu1 %v5034_v63  ;;  %v5080_v63 = vcombine.high %v506_v18, %v510_v20  ;;  %v550_v55 = vld [vmem:[#allocation6 + $0x430] sm:$0xff] }
 0x22a   :  { %3885 = vmatpush1.bf16.msra.mxu0 %v5031_v3  ;;  %v519_v3 = vld [vmem:[#allocation6 + $0x338] sm:$0xff] }
 0x22b   :  { %4057 = vmatpush1.bf16.msra.mxu1 %v5033_v4  ;;  %3886 = vmatprep.subr.bf16.mxu0 %v5040_v6  ;;  %v5079_v4 = vcombine.low %v506_v18, %v510_v20  ;;  %v5081_v6 = vcombine.low %v507_v22, %v511_v24  ;;  %v5090_v8 = vcombine.high %v515_v2, %v519_v3  ;;  %v554_v20 = vld [vmem:[#allocation6 + $0x450] sm:$0xff] }
 0x22c   :  { %4058 = vmatprep.subr.bf16.mxu1 %v5042_v7  ;;  %v5088_v7 = vcombine.high %v514_v0, %v518_v1  ;;  %v558_v22 = vld [vmem:[#allocation6 + $0x470] sm:$0xff]  ;;  %v5119_v24 = vcombine.low %v546_v16, %v550_v55 }
 0x22e   :  { %3887 = vmatpush1.bf16.msra.mxu0 %v5039_v13  ;;  %v527_v13 = vld [vmem:[#allocation6 + $0x378] sm:$0xff] }
 0x22f   :  { %4059 = vmatpush1.bf16.msra.mxu1 %v5041_v15  ;;  %3888 = vmatprep.subr.bf16.mxu0 %v5048_v21  ;;  %v5087_v15 = vcombine.low %v514_v0, %v518_v1  ;;  %v5089_v21 = vcombine.low %v515_v2, %v519_v3  ;;  %v5098_v33 = vcombine.high %v523_v11, %v527_v13  ;;  %v562_v0 = vld [vmem:[#allocation6 + $0x490] sm:$0xff]  ;;  %v563_v3 = vld [vmem:[#allocation6 + $0x498] sm:$0xff] }
 0x230   :  { %4060 = vmatprep.subr.bf16.mxu1 %v5050_v25  ;;  %v5096_v25 = vcombine.high %v522_v9, %v526_v10  ;;  %v566_v1 = vld [vmem:[#allocation6 + $0x4b0] sm:$0xff] }
 0x232   :  { %3889 = vmatpush1.bf16.msra.mxu0 %v5047_v38  ;;  %v535_v38 = vld [vmem:[#allocation6 + $0x3b8] sm:$0xff] }
 0x233   :  { %4061 = vmatpush1.bf16.msra.mxu1 %v5049_v41  ;;  %3890 = vmatprep.subr.bf16.mxu0 %v5056_v42  ;;  %v5095_v41 = vcombine.low %v522_v9, %v526_v10  ;;  %v5097_v42 = vcombine.low %v523_v11, %v527_v13  ;;  %v5106_v46 = vcombine.high %v531_v37, %v535_v38  ;;  %v570_v10 = vld [vmem:[#allocation6 + $0x4d0] sm:$0xff]  ;;  %v571_v13 = vld [vmem:[#allocation6 + $0x4d8] sm:$0xff] }
 0x234   :  { %4062 = vmatprep.subr.bf16.mxu1 %v5058_v43  ;;  %v5104_v43 = vcombine.high %v530_v34, %v534_v35  ;;  %v574_v11 = vld [vmem:[#allocation6 + $0x4f0] sm:$0xff] }
 0x236   :  { %3891 = vmatpush1.bf16.msra.mxu0 %v5055_v50  ;;  %v543_v50 = vld [vmem:[#allocation6 + $0x3f8] sm:$0xff] }
 0x237   :  { %4063 = vmatpush1.bf16.msra.mxu1 %v5057_v51  ;;  %3892 = vmatprep.subr.bf16.mxu0 %v5064_v52  ;;  %v5103_v51 = vcombine.low %v530_v34, %v534_v35  ;;  %v5105_v52 = vcombine.low %v531_v37, %v535_v38  ;;  %v5114_v54 = vcombine.high %v539_v49, %v543_v50  ;;  %v578_v34 = vld [vmem:[#allocation6 + $0x510] sm:$0xff]  ;;  %v579_v37 = vld [vmem:[#allocation6 + $0x518] sm:$0xff] }
 0x238   :  { %4064 = vmatprep.subr.bf16.mxu1 %v5066_v53  ;;  %v5112_v53 = vcombine.high %v538_v47, %v542_v48  ;;  %v582_v35 = vld [vmem:[#allocation6 + $0x530] sm:$0xff]  ;;  %v583_v38 = vld [vmem:[#allocation6 + $0x538] sm:$0xff] }
 0x23a   :  { %3893 = vmatpush1.bf16.msra.mxu0 %v5063_v57  ;;  %v551_v57 = vld [vmem:[#allocation6 + $0x438] sm:$0xff] }
 0x23b   :  { %4065 = vmatpush1.bf16.msra.mxu1 %v5065_v58  ;;  %3894 = vmatprep.subr.bf16.mxu0 %v5072_v59  ;;  %v5111_v58 = vcombine.low %v538_v47, %v542_v48  ;;  %v5113_v59 = vcombine.low %v539_v49, %v543_v50  ;;  %v5122_v18 = vcombine.high %v547_v56, %v551_v57  ;;  %v590_v47 = vld [vmem:[#allocation6 + $0x570] sm:$0xff]  ;;  %v587_v48 = vld [vmem:[#allocation6 + $0x558] sm:$0xff] }
 0x23c   :  { %4066 = vmatprep.subr.bf16.mxu1 %v5074_v60  ;;  %v5120_v60 = vcombine.high %v546_v16, %v550_v55  ;;  %v591_v49 = vld [vmem:[#allocation6 + $0x578] sm:$0xff]  ;;  %v5151_v50 = vcombine.low %v578_v34, %v582_v35  ;;  %v598_v16 = vld [vmem:[#allocation6 + $0x5b0] sm:$0xff] }
 0x23d   :  { %v595_v55 = vld [vmem:[#allocation6 + $0x598] sm:$0xff] }
 0x23e   :  { %3895 = vmatpush1.bf16.msra.mxu0 %v5071_v61  ;;  %v555_v61 = vld [vmem:[#allocation6 + $0x458] sm:$0xff] }
 0x23f   :  { %4067 = vmatpush1.bf16.msra.mxu1 %v5073_v62  ;;  %3896 = vmatprep.subr.bf16.mxu0 %v5080_v63  ;;  %v559_v62 = vld [vmem:[#allocation6 + $0x478] sm:$0xff]  ;;  %v5121_v63 = vcombine.low %v547_v56, %v551_v57 }
 0x240   :  { %4068 = vmatprep.subr.bf16.mxu1 %v5082_v29  ;;  %v5128_v29 = vcombine.high %v554_v20, %v558_v22  ;;  %v5130_v2 = vcombine.high %v555_v61, %v559_v62  ;;  %v599_v56 = vld [vmem:[#allocation6 + $0x5b8] sm:$0xff] }
 0x242   :  { %3897 = vmatpush1.bf16.msra.mxu0 %v5079_v4  ;;  %v567_v4 = vld [vmem:[#allocation6 + $0x4b8] sm:$0xff] }
 0x243   :  { %4069 = vmatpush1.bf16.msra.mxu1 %v5081_v6  ;;  %3898 = vmatprep.subr.bf16.mxu0 %v5088_v7  ;;  %v5127_v6 = vcombine.low %v554_v20, %v558_v22  ;;  %v5129_v7 = vcombine.low %v555_v61, %v559_v62  ;;  %v5138_v9 = vcombine.high %v563_v3, %v567_v4  ;;  %v606_v20 = vld [vmem:[#allocation6 + $0x5f0] sm:$0xff]  ;;  %v603_v22 = vld [vmem:[#allocation6 + $0x5d8] sm:$0xff] }
 0x244   :  { %4070 = vmatprep.subr.bf16.mxu1 %v5090_v8  ;;  %v5136_v8 = vcombine.high %v562_v0, %v566_v1  ;;  %v5169_v62 = vcombine.low %v595_v55, %v599_v56 }
 0x246   :  { %3899 = vmatpush1.bf16.msra.mxu0 %v5087_v15  ;;  %v575_v15 = vld [vmem:[#allocation6 + $0x4f8] sm:$0xff] }
 0x247   :  { %4071 = vmatpush1.bf16.msra.mxu1 %v5089_v21  ;;  %3900 = vmatprep.subr.bf16.mxu0 %v5096_v25  ;;  %v5135_v21 = vcombine.low %v562_v0, %v566_v1  ;;  %v5144_v25 = vcombine.high %v570_v10, %v574_v11  ;;  %v610_v0 = vld [vmem:[#allocation6 + $0x610] sm:$0xff] }
 0x248   :  { %4072 = vmatprep.subr.bf16.mxu1 %v5098_v33  ;;  %v5146_v33 = vcombine.high %v571_v13, %v575_v15  ;;  %v614_v1 = vld [vmem:[#allocation6 + $0x630] sm:$0xff] }
 0x24a   :  { %3901 = vmatpush1.bf16.msra.mxu0 %v5095_v41  ;;  %v5145_v41 = vcombine.low %v571_v13, %v575_v15  ;;  %v623_v13 = vld [vmem:[#allocation6 + $0x678] sm:$0xff]  ;;  %v5183_v15 = vcombine.low %v610_v0, %v614_v1 }
 0x24b   :  { %4073 = vmatpush1.bf16.msra.mxu1 %v5097_v42  ;;  %3902 = vmatprep.subr.bf16.mxu0 %v5104_v43  ;;  %v5152_v42 = vcombine.high %v578_v34, %v582_v35  ;;  %v5154_v43 = vcombine.high %v579_v37, %v583_v38  ;;  %v630_v34 = vld [vmem:[#allocation6 + $0x6b0] sm:$0xff]  ;;  %v627_v35 = vld [vmem:[#allocation6 + $0x698] sm:$0xff] }
 0x24c   :  { %4074 = vmatprep.subr.bf16.mxu1 %v5106_v46  ;;  %v586_v46 = vld [vmem:[#allocation6 + $0x550] sm:$0xff] }
 0x24d   :  { %v5159_v57 = vcombine.low %v586_v46, %v590_v47 }
 0x24e   :  { %3903 = vmatpush1.bf16.msra.mxu0 %v5103_v51  ;;  %v5153_v51 = vcombine.low %v579_v37, %v583_v38  ;;  %v631_v37 = vld [vmem:[#allocation6 + $0x6b8] sm:$0xff] }
 0x24f   :  { %4075 = vmatpush1.bf16.msra.mxu1 %v5105_v52  ;;  %3904 = vmatprep.subr.bf16.mxu0 %v5112_v53  ;;  %v5160_v52 = vcombine.high %v586_v46, %v590_v47  ;;  %v5162_v53 = vcombine.high %v587_v48, %v591_v49  ;;  %v638_v46 = vld [vmem:[#allocation6 + $0x6f0] sm:$0xff]  ;;  %v635_v47 = vld [vmem:[#allocation6 + $0x6d8] sm:$0xff] }
 0x250   :  { %4076 = vmatprep.subr.bf16.mxu1 %v5114_v54  ;;  %v594_v54 = vld [vmem:[#allocation6 + $0x590] sm:$0xff] }
 0x251   :  { %v5167_v61 = vcombine.low %v594_v54, %v598_v16 }
 0x252   :  { %3905 = vmatpush1.bf16.msra.mxu0 %v5111_v58  ;;  %v5161_v58 = vcombine.low %v587_v48, %v591_v49  ;;  %v639_v48 = vld [vmem:[#allocation6 + $0x6f8] sm:$0xff] }
 0x253   :  { %4077 = vmatpush1.bf16.msra.mxu1 %v5113_v59  ;;  %3917 = vmatprep.subr.bf16.mxu0 %v5120_v60  ;;  %v5168_v59 = vcombine.high %v594_v54, %v598_v16  ;;  %v5170_v60 = vcombine.high %v595_v55, %v599_v56  ;;  %v646_v54 = vld [vmem:[#allocation6 + $0x730] sm:$0xff]  ;;  %v643_v16 = vld [vmem:[#allocation6 + $0x718] sm:$0xff] }
 0x254   :  { %4089 = vmatprep.subr.bf16.mxu1 %v5122_v18  ;;  %v602_v18 = vld [vmem:[#allocation6 + $0x5d0] sm:$0xff]  ;;  %v647_v55 = vld [vmem:[#allocation6 + $0x738] sm:$0xff] }
 0x255   :  { %3907 = vmatmul.mubr.bf16.vlgmr.msra.gmra.mrb[12].mxu0 %v6121_v12 }
 0x256   :  { %4079 = vmatmul.mubr.bf16.vlgmr.msra.gmra.mrb[12].mxu1 %v6121_v12  ;;  %3918 = vmatpush1.bf16.msra.mxu0 %v5119_v24  ;;  %v5137_v12 = vcombine.low %v563_v3, %v567_v4  ;;  %v607_v24 = vld [vmem:[#allocation6 + $0x5f8] sm:$0xff]  ;;  %v5175_v4 = vcombine.low %v602_v18, %v606_v20 }
 0x257   :  { %3949 = vmatprep.mubr.bf16.mxu0 %v6129_v45  ;;  %4090 = vmatpush1.bf16.msra.mxu1 %v5121_v63  ;;  %v5176_v63 = vcombine.high %v602_v18, %v606_v20  ;;  %v615_v3 = vld [vmem:[#allocation6 + $0x638] sm:$0xff]  ;;  %v654_v18 = vld [vmem:[#allocation6 + $0x770] sm:$0xff] }
 0x258   :  { %4121 = vmatprep.mubr.bf16.mxu1 %v6129_v45  ;;  %3919 = vmatprep.subr.bf16.mxu0 %v5128_v29  ;;  %v5143_v45 = vcombine.low %v570_v10, %v574_v11  ;;  %v5178_v29 = vcombine.high %v603_v22, %v607_v24  ;;  %v622_v10 = vld [vmem:[#allocation6 + $0x670] sm:$0xff]  ;;  %v619_v11 = vld [vmem:[#allocation6 + $0x658] sm:$0xff] }
 0x259   :  { %4091 = vmatprep.subr.bf16.mxu1 %v5130_v2  ;;  %v611_v2 = vld [vmem:[#allocation6 + $0x618] sm:$0xff] }
 0x25a   :  { %3920 = vmatpush1.bf16.msra.mxu0 %v5127_v6  ;;  %v5177_v6 = vcombine.low %v603_v22, %v607_v24  ;;  %v651_v20 = vld [vmem:[#allocation6 + $0x758] sm:$0xff] }
 0x25b   :  { %4092 = vmatpush1.bf16.msra.mxu1 %v5129_v7  ;;  %3921 = vmatprep.subr.bf16.mxu0 %v5136_v8  ;;  %v5184_v7 = vcombine.high %v610_v0, %v614_v1  ;;  %v5186_v8 = vcombine.high %v611_v2, %v615_v3  ;;  %v655_v22 = vld [vmem:[#allocation6 + $0x778] sm:$0xff]  ;;  %v662_v0 = vld [vmem:[#allocation6 + $0x7b0] sm:$0xff] }
 0x25c   :  { %4093 = vmatprep.subr.bf16.mxu1 %v5138_v9  ;;  %v618_v9 = vld [vmem:[#allocation6 + $0x650] sm:$0xff]  ;;  %v659_v1 = vld [vmem:[#allocation6 + $0x798] sm:$0xff] }
 0x25d   :  { %v5191_v38 = vcombine.low %v618_v9, %v622_v10 }
 0x25e   :  { %3922 = vmatpush1.bf16.msra.mxu0 %v5135_v21  ;;  %v5185_v21 = vcombine.low %v611_v2, %v615_v3  ;;  %v663_v2 = vld [vmem:[#allocation6 + $0x7b8] sm:$0xff] }
 0x25f   :  { %4094 = vmatpush1.bf16.msra.mxu1 %v5137_v12  ;;  %3923 = vmatprep.subr.bf16.mxu0 %v5144_v25  ;;  %v5192_v12 = vcombine.high %v618_v9, %v622_v10  ;;  %v5194_v25 = vcombine.high %v619_v11, %v623_v13  ;;  %v670_v9 = vld [vmem:[#allocation6 + $0x7f0] sm:$0xff]  ;;  %v667_v10 = vld [vmem:[#allocation6 + $0x7d8] sm:$0xff] }
 0x260   :  { %4095 = vmatprep.subr.bf16.mxu1 %v5146_v33  ;;  %v626_v33 = vld [vmem:[#allocation6 + $0x690] sm:$0xff] }
 0x261   :  { %v5199_v49 = vcombine.low %v626_v33, %v630_v34 }
 0x262   :  { %3924 = vmatpush1.bf16.msra.mxu0 %v5143_v45  ;;  %v5193_v45 = vcombine.low %v619_v11, %v623_v13  ;;  %v671_v11 = vld [vmem:[#allocation6 + $0x7f8] sm:$0xff] }
 0x263   :  { %4096 = vmatpush1.bf16.msra.mxu1 %v5145_v41  ;;  %3925 = vmatprep.subr.bf16.mxu0 %v5152_v42  ;;  %v5200_v41 = vcombine.high %v626_v33, %v630_v34  ;;  %v5202_v42 = vcombine.high %v627_v35, %v631_v37  ;;  %v678_v33 = vld [vmem:[#allocation6 + $0x830] sm:$0xff]  ;;  %v675_v34 = vld [vmem:[#allocation6 + $0x818] sm:$0xff] }
 0x264   :  { %4097 = vmatprep.subr.bf16.mxu1 %v5154_v43  ;;  %v634_v43 = vld [vmem:[#allocation6 + $0x6d0] sm:$0xff] }
 0x265   :  { %v5207_v56 = vcombine.low %v634_v43, %v638_v46 }
 0x266   :  { %3926 = vmatpush1.bf16.msra.mxu0 %v5151_v50  ;;  %v5201_v50 = vcombine.low %v627_v35, %v631_v37  ;;  %v679_v35 = vld [vmem:[#allocation6 + $0x838] sm:$0xff] }
 0x267   :  { %4098 = vmatpush1.bf16.msra.mxu1 %v5153_v51  ;;  %3927 = vmatprep.subr.bf16.mxu0 %v5160_v52  ;;  %v5208_v51 = vcombine.high %v634_v43, %v638_v46  ;;  %v5210_v52 = vcombine.high %v635_v47, %v639_v48  ;;  %v686_v43 = vld [vmem:[#allocation6 + $0x870] sm:$0xff] }
 0x268   :  { %4099 = vmatprep.subr.bf16.mxu1 %v5162_v53  ;;  %v642_v53 = vld [vmem:[#allocation6 + $0x710] sm:$0xff] }
 0x269   :  { %v5215_v24 = vcombine.low %v642_v53, %v646_v54 }
 0x26a   :  { %3928 = vmatpush1.bf16.msra.mxu0 %v5159_v57  ;;  %v5209_v57 = vcombine.low %v635_v47, %v639_v48  ;;  %v683_v47 = vld [vmem:[#allocation6 + $0x858] sm:$0xff] }
 0x26b   :  { %4100 = vmatpush1.bf16.msra.mxu1 %v5161_v58  ;;  %3929 = vmatprep.subr.bf16.mxu0 %v5168_v59  ;;  %v5216_v58 = vcombine.high %v642_v53, %v646_v54  ;;  %v5218_v59 = vcombine.high %v643_v16, %v647_v55  ;;  %v687_v48 = vld [vmem:[#allocation6 + $0x878] sm:$0xff] }
 0x26c   :  { %4101 = vmatprep.subr.bf16.mxu1 %v5170_v60  ;;  %v650_v60 = vld [vmem:[#allocation6 + $0x750] sm:$0xff]  ;;  %v5258_v53 = vcombine.high %v683_v47, %v687_v48  ;;  %v691_v54 = vld [vmem:[#allocation6 + $0x898] sm:$0xff] }
 0x26d   :  { %v5223_v3 = vcombine.low %v650_v60, %v654_v18 }
 0x26e   :  { %3930 = vmatpush1.bf16.msra.mxu0 %v5167_v61  ;;  %v5217_v61 = vcombine.low %v643_v16, %v647_v55  ;;  %v695_v16 = vld [vmem:[#allocation6 + $0x8b8] sm:$0xff] }
 0x26f   :  { %4102 = vmatpush1.bf16.msra.mxu1 %v5169_v62  ;;  %3931 = vmatprep.subr.bf16.mxu0 %v5176_v63  ;;  %v5224_v62 = vcombine.high %v650_v60, %v654_v18  ;;  %v5226_v63 = vcombine.high %v651_v20, %v655_v22  ;;  %v702_v60 = vld [vmem:[#allocation6 + $0x8f0] sm:$0xff]  ;;  %v699_v18 = vld [vmem:[#allocation6 + $0x8d8] sm:$0xff] }
 0x270   :  { %4103 = vmatprep.subr.bf16.mxu1 %v5178_v29  ;;  %v658_v29 = vld [vmem:[#allocation6 + $0x790] sm:$0xff] }
 0x271   :  { %v5231_v13 = vcombine.low %v658_v29, %v662_v0 }
 0x272   :  { %3932 = vmatpush1.bf16.msra.mxu0 %v5175_v4  ;;  %v5225_v4 = vcombine.low %v651_v20, %v655_v22  ;;  %v703_v20 = vld [vmem:[#allocation6 + $0x8f8] sm:$0xff] }
 0x273   :  { %4104 = vmatpush1.bf16.msra.mxu1 %v5177_v6  ;;  %3933 = vmatprep.subr.bf16.mxu0 %v5184_v7  ;;  %v5232_v6 = vcombine.high %v658_v29, %v662_v0  ;;  %v5234_v7 = vcombine.high %v659_v1, %v663_v2  ;;  %v707_v29 = vld [vmem:[#allocation6 + $0x918] sm:$0xff] }
 0x274   :  { %4105 = vmatprep.subr.bf16.mxu1 %v5186_v8  ;;  %v666_v8 = vld [vmem:[#allocation6 + $0x7d0] sm:$0xff]  ;;  %v711_v0 = vld [vmem:[#allocation6 + $0x938] sm:$0xff] }
 0x275   :  { %v5239_v37 = vcombine.low %v666_v8, %v670_v9 }
 0x276   :  { %3934 = vmatpush1.bf16.msra.mxu0 %v5183_v15  ;;  %v5233_v15 = vcombine.low %v659_v1, %v663_v2  ;;  %v5273_v1 = vcombine.low %v699_v18, %v703_v20 }
 0x277   :  { %4106 = vmatpush1.bf16.msra.mxu1 %v5185_v21  ;;  %3935 = vmatprep.subr.bf16.mxu0 %v5192_v12  ;;  %v5240_v21 = vcombine.high %v666_v8, %v670_v9  ;;  %v5242_v12 = vcombine.high %v667_v10, %v671_v11  ;;  %v719_v8 = vld [vmem:[#allocation6 + $0x978] sm:$0xff] }
 0x278   :  { %4107 = vmatprep.subr.bf16.mxu1 %v5194_v25  ;;  %v674_v25 = vld [vmem:[#allocation6 + $0x810] sm:$0xff] }
 0x279   :  { %v5247_v46 = vcombine.low %v674_v25, %v678_v33 }
 0x27a   :  { %3936 = vmatpush1.bf16.msra.mxu0 %v5191_v38  ;;  %v5241_v38 = vcombine.low %v667_v10, %v671_v11  ;;  %v5281_v10 = vcombine.low %v707_v29, %v711_v0 }
 0x27b   :  { %4108 = vmatpush1.bf16.msra.mxu1 %v5193_v45  ;;  %3937 = vmatprep.subr.bf16.mxu0 %v5200_v41  ;;  %v5248_v45 = vcombine.high %v674_v25, %v678_v33  ;;  %v5250_v41 = vcombine.high %v675_v34, %v679_v35  ;;  %v727_v25 = vld [vmem:[#allocation6 + $0x9b8] sm:$0xff] }
 0x27c   :  { %4109 = vmatprep.subr.bf16.mxu1 %v5202_v42  ;;  %v682_v42 = vld [vmem:[#allocation6 + $0x850] sm:$0xff] }
 0x27d   :  { %v5255_v55 = vcombine.low %v682_v42, %v686_v43 }
 0x27e   :  { %3938 = vmatpush1.bf16.msra.mxu0 %v5199_v49  ;;  %v5249_v49 = vcombine.low %v675_v34, %v679_v35 }
 0x27f   :  { %4110 = vmatpush1.bf16.msra.mxu1 %v5201_v50  ;;  %3939 = vmatprep.subr.bf16.mxu0 %v5208_v51  ;;  %v5256_v50 = vcombine.high %v682_v42, %v686_v43  ;;  %v690_v51 = vld [vmem:[#allocation6 + $0x890] sm:$0xff]  ;;  %v735_v42 = vld [vmem:[#allocation6 + $0x9f8] sm:$0xff] }
 0x280   :  { %4111 = vmatprep.subr.bf16.mxu1 %v5210_v52  ;;  %v694_v52 = vld [vmem:[#allocation6 + $0x8b0] sm:$0xff] }
 0x281   :  { %v5263_v22 = vcombine.low %v690_v51, %v694_v52 }
 0x282   :  { %3940 = vmatpush1.bf16.msra.mxu0 %v5207_v56  ;;  %v5257_v56 = vcombine.low %v683_v47, %v687_v48 }
 0x283   :  { %4112 = vmatpush1.bf16.msra.mxu1 %v5209_v57  ;;  %3941 = vmatprep.subr.bf16.mxu0 %v5216_v58  ;;  %v5264_v57 = vcombine.high %v690_v51, %v694_v52  ;;  %v5266_v58 = vcombine.high %v691_v54, %v695_v16  ;;  %v739_v51 = vld [vmem:[#allocation6 + $0xa18] sm:$0xff] }
 0x284   :  { %4113 = vmatprep.subr.bf16.mxu1 %v5218_v59  ;;  %v698_v59 = vld [vmem:[#allocation6 + $0x8d0] sm:$0xff]  ;;  %v743_v52 = vld [vmem:[#allocation6 + $0xa38] sm:$0xff] }
 0x286   :  { %3942 = vmatpush1.bf16.msra.mxu0 %v5215_v24  ;;  %v5272_v24 = vcombine.high %v698_v59, %v702_v60 }
 0x287   :  { %4114 = vmatpush1.bf16.msra.mxu1 %v5217_v61  ;;  %3943 = vmatprep.subr.bf16.mxu0 %v5224_v62  ;;  %v5274_v61 = vcombine.high %v699_v18, %v703_v20  ;;  %v706_v62 = vld [vmem:[#allocation6 + $0x910] sm:$0xff]  ;;  %v5313_v18 = vcombine.low %v739_v51, %v743_v52 }
 0x288   :  { %4115 = vmatprep.subr.bf16.mxu1 %v5226_v63  ;;  %v710_v63 = vld [vmem:[#allocation6 + $0x930] sm:$0xff] }
 0x289   :  { %v5280_v2 = vcombine.high %v706_v62, %v710_v63  ;;  %v5279_v9 = vcombine.low %v706_v62, %v710_v63  ;;  %v759_v62 = vld [vmem:[#allocation6 + $0xab8] sm:$0xff] }
 0x28a   :  { %3944 = vmatpush1.bf16.msra.mxu0 %v5223_v3  ;;  %v5282_v3 = vcombine.high %v707_v29, %v711_v0 }
 0x28b   :  { %4116 = vmatpush1.bf16.msra.mxu1 %v5225_v4  ;;  %3945 = vmatprep.subr.bf16.mxu0 %v5232_v6  ;;  %v714_v4 = vld [vmem:[#allocation6 + $0x950] sm:$0xff] }
 0x28c   :  { %4117 = vmatprep.subr.bf16.mxu1 %v5234_v7  ;;  %v718_v6 = vld [vmem:[#allocation6 + $0x970] sm:$0xff]  ;;  %v715_v7 = vld [vmem:[#allocation6 + $0x958] sm:$0xff] }
 0x28d   :  { %v5288_v11 = vcombine.high %v714_v4, %v718_v6  ;;  %v5287_v33 = vcombine.low %v714_v4, %v718_v6  ;;  %v5289_v34 = vcombine.low %v715_v7, %v719_v8  ;;  %v767_v4 = vld [vmem:[#allocation6 + $0xaf8] sm:$0xff] }
 0x28e   :  { %3946 = vmatpush1.bf16.msra.mxu0 %v5231_v13  ;;  %v5290_v13 = vcombine.high %v715_v7, %v719_v8 }
 0x28f   :  { %4118 = vmatpush1.bf16.msra.mxu1 %v5233_v15  ;;  %3947 = vmatprep.subr.bf16.mxu0 %v5240_v21  ;;  %v722_v15 = vld [vmem:[#allocation6 + $0x990] sm:$0xff] }
 0x290   :  { %4119 = vmatprep.subr.bf16.mxu1 %v5242_v12  ;;  %v726_v21 = vld [vmem:[#allocation6 + $0x9b0] sm:$0xff]  ;;  %v723_v12 = vld [vmem:[#allocation6 + $0x998] sm:$0xff] }
 0x291   :  { %v5296_v35 = vcombine.high %v722_v15, %v726_v21  ;;  %v5295_v43 = vcombine.low %v722_v15, %v726_v21  ;;  %v775_v15 = vld [vmem:[#allocation6 + $0xb38] sm:$0xff] }
 0x292   :  { %3948 = vmatpush1.bf16.msra.mxu0 %v5239_v37  ;;  %v5298_v37 = vcombine.high %v723_v12, %v727_v25 }
 0x293   :  { %4120 = vmatpush1.bf16.msra.mxu1 %v5241_v38  ;;  %3960 = vmatprep.subr.bf16.mxu0 %v5248_v45  ;;  %v730_v38 = vld [vmem:[#allocation6 + $0x9d0] sm:$0xff] }
 0x294   :  { %4132 = vmatprep.subr.bf16.mxu1 %v5250_v41  ;;  %v734_v45 = vld [vmem:[#allocation6 + $0x9f0] sm:$0xff]  ;;  %v731_v41 = vld [vmem:[#allocation6 + $0x9d8] sm:$0xff] }
 0x295   :  { %3950 = vmatmul.mubr.bf16.vlgmr.msra.gmra.mrb[12].mxu0 %v6125_v36  ;;  %v5304_v47 = vcombine.high %v730_v38, %v734_v45  ;;  %v5306_v48 = vcombine.high %v731_v41, %v735_v42 }
 0x296   :  { %4122 = vmatmul.mubr.bf16.vlgmr.msra.gmra.mrb[12].mxu1 %v6125_v36  ;;  %3961 = vmatpush1.bf16.msra.mxu0 %v5247_v46  ;;  %v5265_v36 = vcombine.low %v691_v54, %v695_v16  ;;  %v5297_v46 = vcombine.low %v723_v12, %v727_v25  ;;  %v5305_v54 = vcombine.low %v731_v41, %v735_v42 }
 0x297   :  { %3992 = vmatprep.mubr.bf16.mxu0 %v6143_v23  ;;  %4133 = vmatpush1.bf16.msra.mxu1 %v5249_v49  ;;  %v738_v49 = vld [vmem:[#allocation6 + $0xa10] sm:$0xff] }
 0x298   :  { %4164 = vmatprep.mubr.bf16.mxu1 %v6143_v23  ;;  %3962 = vmatprep.subr.bf16.mxu0 %v5256_v50  ;;  %v5271_v23 = vcombine.low %v698_v59, %v702_v60  ;;  %v742_v50 = vld [vmem:[#allocation6 + $0xa30] sm:$0xff]  ;;  %v751_v59 = vld [vmem:[#allocation6 + $0xa78] sm:$0xff] }
 0x299   :  { %4134 = vmatprep.subr.bf16.mxu1 %v5258_v53  ;;  %v5303_v53 = vcombine.low %v730_v38, %v734_v45  ;;  %v5312_v16 = vcombine.high %v738_v49, %v742_v50  ;;  %v5311_v60 = vcombine.low %v738_v49, %v742_v50  ;;  %v783_v38 = vld [vmem:[#allocation6 + $0xb78] sm:$0xff] }
 0x29a   :  { %3963 = vmatpush1.bf16.msra.mxu0 %v5255_v55  ;;  %v5314_v55 = vcombine.high %v739_v51, %v743_v52  ;;  %v791_v49 = vld [vmem:[#allocation6 + $0xbb8] sm:$0xff] }
 0x29b   :  { %4135 = vmatpush1.bf16.msra.mxu1 %v5257_v56  ;;  %3964 = vmatprep.subr.bf16.mxu0 %v5264_v57  ;;  %v746_v56 = vld [vmem:[#allocation6 + $0xa50] sm:$0xff] }
 0x29c   :  { %4136 = vmatprep.subr.bf16.mxu1 %v5266_v58  ;;  %v750_v57 = vld [vmem:[#allocation6 + $0xa70] sm:$0xff]  ;;  %v747_v58 = vld [vmem:[#allocation6 + $0xa58] sm:$0xff] }
 0x29d   :  { %v5320_v20 = vcombine.high %v746_v56, %v750_v57  ;;  %v5319_v63 = vcombine.low %v746_v56, %v750_v57  ;;  %v5321_v29 = vcombine.low %v747_v58, %v751_v59  ;;  %v799_v56 = vld [vmem:[#allocation6 + $0xbf8] sm:$0xff] }
 0x29e   :  { %3965 = vmatpush1.bf16.msra.mxu0 %v5263_v22  ;;  %v5322_v22 = vcombine.high %v747_v58, %v751_v59 }
 0x29f   :  { %4137 = vmatpush1.bf16.msra.mxu1 %v5265_v36  ;;  %3966 = vmatprep.subr.bf16.mxu0 %v5272_v24  ;;  %v754_v36 = vld [vmem:[#allocation6 + $0xa90] sm:$0xff] }
 0x2a0   :  { %4138 = vmatprep.subr.bf16.mxu1 %v5274_v61  ;;  %v758_v24 = vld [vmem:[#allocation6 + $0xab0] sm:$0xff]  ;;  %v755_v61 = vld [vmem:[#allocation6 + $0xa98] sm:$0xff] }
 0x2a1   :  { %v5328_v0 = vcombine.high %v754_v36, %v758_v24  ;;  %v5327_v6 = vcombine.low %v754_v36, %v758_v24  ;;  %v5329_v7 = vcombine.low %v755_v61, %v759_v62  ;;  %v807_v36 = vld [vmem:[#allocation6 + $0xc38] sm:$0xff] }
 0x2a2   :  { %3967 = vmatpush1.bf16.msra.mxu0 %v5271_v23  ;;  %v5330_v23 = vcombine.high %v755_v61, %v759_v62 }
 0x2a3   :  { %4139 = vmatpush1.bf16.msra.mxu1 %v5273_v1  ;;  %3968 = vmatprep.subr.bf16.mxu0 %v5280_v2  ;;  %v762_v1 = vld [vmem:[#allocation6 + $0xad0] sm:$0xff] }
 0x2a4   :  { %4140 = vmatprep.subr.bf16.mxu1 %v5282_v3  ;;  %v766_v2 = vld [vmem:[#allocation6 + $0xaf0] sm:$0xff]  ;;  %v763_v3 = vld [vmem:[#allocation6 + $0xad8] sm:$0xff] }
 0x2a5   :  { %v5336_v8 = vcombine.high %v762_v1, %v766_v2  ;;  %v5335_v21 = vcombine.low %v762_v1, %v766_v2  ;;  %v5337_v12 = vcombine.low %v763_v3, %v767_v4  ;;  %v811_v1 = vld [vmem:[#allocation6 + $0xc58] sm:$0xff] }
 0x2a6   :  { %3969 = vmatpush1.bf16.msra.mxu0 %v5279_v9  ;;  %v5338_v9 = vcombine.high %v763_v3, %v767_v4  ;;  %v815_v2 = vld [vmem:[#allocation6 + $0xc78] sm:$0xff] }
 0x2a7   :  { %4141 = vmatpush1.bf16.msra.mxu1 %v5281_v10  ;;  %3970 = vmatprep.subr.bf16.mxu0 %v5288_v11  ;;  %v770_v10 = vld [vmem:[#allocation6 + $0xb10] sm:$0xff] }
 0x2a8   :  { %4142 = vmatprep.subr.bf16.mxu1 %v5290_v13  ;;  %v774_v11 = vld [vmem:[#allocation6 + $0xb30] sm:$0xff]  ;;  %v771_v13 = vld [vmem:[#allocation6 + $0xb18] sm:$0xff] }
 0x2a9   :  { %v5344_v25 = vcombine.high %v770_v10, %v774_v11  ;;  %v5343_v45 = vcombine.low %v770_v10, %v774_v11  ;;  %v5345_v41 = vcombine.low %v771_v13, %v775_v15  ;;  %v823_v10 = vld [vmem:[#allocation6 + $0xcb8] sm:$0xff] }
 0x2aa   :  { %3971 = vmatpush1.bf16.msra.mxu0 %v5287_v33  ;;  %v5346_v33 = vcombine.high %v771_v13, %v775_v15  ;;  %v5385_v13 = vcombine.low %v811_v1, %v815_v2 }
 0x2ab   :  { %4143 = vmatpush1.bf16.msra.mxu1 %v5289_v34  ;;  %3972 = vmatprep.subr.bf16.mxu0 %v5296_v35  ;;  %v778_v34 = vld [vmem:[#allocation6 + $0xb50] sm:$0xff] }
 0x2ac   :  { %4144 = vmatprep.subr.bf16.mxu1 %v5298_v37  ;;  %v782_v35 = vld [vmem:[#allocation6 + $0xb70] sm:$0xff]  ;;  %v779_v37 = vld [vmem:[#allocation6 + $0xb58] sm:$0xff] }
 0x2ad   :  { %v5352_v42 = vcombine.high %v778_v34, %v782_v35  ;;  %v5351_v50 = vcombine.low %v778_v34, %v782_v35  ;;  %v5353_v51 = vcombine.low %v779_v37, %v783_v38  ;;  %v831_v34 = vld [vmem:[#allocation6 + $0xcf8] sm:$0xff] }
 0x2ae   :  { %3973 = vmatpush1.bf16.msra.mxu0 %v5295_v43  ;;  %v5354_v43 = vcombine.high %v779_v37, %v783_v38 }
 0x2af   :  { %4145 = vmatpush1.bf16.msra.mxu1 %v5297_v46  ;;  %3974 = vmatprep.subr.bf16.mxu0 %v5304_v47  ;;  %v786_v46 = vld [vmem:[#allocation6 + $0xb90] sm:$0xff] }
 0x2b0   :  { %4146 = vmatprep.subr.bf16.mxu1 %v5306_v48  ;;  %v790_v47 = vld [vmem:[#allocation6 + $0xbb0] sm:$0xff]  ;;  %v787_v48 = vld [vmem:[#allocation6 + $0xb98] sm:$0xff] }
 0x2b1   :  { %v5360_v52 = vcombine.high %v786_v46, %v790_v47  ;;  %v5359_v57 = vcombine.low %v786_v46, %v790_v47  ;;  %v5361_v58 = vcombine.low %v787_v48, %v791_v49 }
 0x2b2   :  { %3975 = vmatpush1.bf16.msra.mxu0 %v5303_v53  ;;  %v5362_v53 = vcombine.high %v787_v48, %v791_v49  ;;  %v842_v49 = vld [vmem:[#allocation6 + $0xd50] sm:$0xff] }
 0x2b3   :  { %4147 = vmatpush1.bf16.msra.mxu1 %v5305_v54  ;;  %3976 = vmatprep.subr.bf16.mxu0 %v5312_v16  ;;  %v794_v54 = vld [vmem:[#allocation6 + $0xbd0] sm:$0xff] }
 0x2b4   :  { %4148 = vmatprep.subr.bf16.mxu1 %v5314_v55  ;;  %v798_v16 = vld [vmem:[#allocation6 + $0xbf0] sm:$0xff]  ;;  %v795_v55 = vld [vmem:[#allocation6 + $0xbd8] sm:$0xff] }
 0x2b5   :  { %v5368_v59 = vcombine.high %v794_v54, %v798_v16  ;;  %v5367_v24 = vcombine.low %v794_v54, %v798_v16  ;;  %v5369_v61 = vcombine.low %v795_v55, %v799_v56  ;;  %v6181_v54 = vld [vmem:[#allocation7] sm:$0xff] }
 0x2b6   :  { %3977 = vmatpush1.bf16.msra.mxu0 %v5311_v60  ;;  %v5370_v60 = vcombine.high %v795_v55, %v799_v56 }
 0x2b7   :  { %4149 = vmatpush1.bf16.msra.mxu1 %v5313_v18  ;;  %3978 = vmatprep.subr.bf16.mxu0 %v5320_v20  ;;  %v802_v18 = vld [vmem:[#allocation6 + $0xc10] sm:$0xff] }
 0x2b8   :  { %4150 = vmatprep.subr.bf16.mxu1 %v5322_v22  ;;  %v806_v20 = vld [vmem:[#allocation6 + $0xc30] sm:$0xff]  ;;  %v803_v22 = vld [vmem:[#allocation6 + $0xc18] sm:$0xff] }
 0x2b9   :  { %v5376_v62 = vcombine.high %v802_v18, %v806_v20  ;;  %v5377_v3 = vcombine.low %v803_v22, %v807_v36 }
 0x2ba   :  { %3979 = vmatpush1.bf16.msra.mxu0 %v5319_v63  ;;  %v5378_v63 = vcombine.high %v803_v22, %v807_v36  ;;  %v937_v22 = vrot.slane %v6181_v54, %v121_v30  ;;  %v945_v36 = vrot.slane %v6181_v54, %v129_v32 }
 0x2bb   :  { %4151 = vmatpush1.bf16.msra.mxu1 %v5321_v29  ;;  %3980 = vmatprep.subr.bf16.mxu0 %v5328_v0  ;;  %v810_v29 = vld [vmem:[#allocation6 + $0xc50] sm:$0xff] }
 0x2bc   :  { %4152 = vmatprep.subr.bf16.mxu1 %v5330_v23  ;;  %v814_v0 = vld [vmem:[#allocation6 + $0xc70] sm:$0xff]  ;;  %v5375_v23 = vcombine.low %v802_v18, %v806_v20  ;;  %v851_v18 = vld [vmem:[#allocation6 + $0xd98] sm:$0xff] }
 0x2bd   :  { %v5384_v4 = vcombine.high %v810_v29, %v814_v0  ;;  %v5383_v11 = vcombine.low %v810_v29, %v814_v0  ;;  %v855_v20 = vld [vmem:[#allocation6 + $0xdb8] sm:$0xff] }
 0x2be   :  { %3981 = vmatpush1.bf16.msra.mxu0 %v5327_v6  ;;  %v818_v6 = vld [vmem:[#allocation6 + $0xc90] sm:$0xff]  ;;  %v6201_v29 = vld [vmem:[#allocation6 + $0xdf8] sm:$0xff] }
 0x2bf   :  { %4153 = vmatpush1.bf16.msra.mxu1 %v5329_v7  ;;  %3982 = vmatprep.subr.bf16.mxu0 %v5336_v8  ;;  %v822_v7 = vld [vmem:[#allocation6 + $0xcb0] sm:$0xff]  ;;  %v5386_v8 = vcombine.high %v811_v1, %v815_v2  ;;  %v5426_v1 = vcombine.high %v851_v18, %v855_v20 }
 0x2c0   :  { %4154 = vmatprep.subr.bf16.mxu1 %v5338_v9  ;;  %v819_v9 = vld [vmem:[#allocation6 + $0xc98] sm:$0xff]  ;;  %v5392_v15 = vcombine.high %v818_v6, %v822_v7  ;;  %v5391_v35 = vcombine.low %v818_v6, %v822_v7  ;;  %v5425_v6 = vcombine.low %v851_v18, %v855_v20  ;;  %v874_v18 = vld [vmem:[#allocation6 + $0xe50] sm:$0xff] }
 0x2c1   :  { %v878_v20 = vld [vmem:[#allocation6 + $0xe70] sm:$0xff] }
 0x2c2   :  { %3983 = vmatpush1.bf16.msra.mxu0 %v5335_v21  ;;  %v5394_v21 = vcombine.high %v819_v9, %v823_v10 }
 0x2c3   :  { %4155 = vmatpush1.bf16.msra.mxu1 %v5337_v12  ;;  %3984 = vmatprep.subr.bf16.mxu0 %v5344_v25  ;;  %v826_v12 = vld [vmem:[#allocation6 + $0xcd0] sm:$0xff] }
 0x2c4   :  { %4156 = vmatprep.subr.bf16.mxu1 %v5346_v33  ;;  %v830_v25 = vld [vmem:[#allocation6 + $0xcf0] sm:$0xff]  ;;  %v827_v33 = vld [vmem:[#allocation6 + $0xcd8] sm:$0xff] }
 0x2c5   :  { %v5400_v37 = vcombine.high %v826_v12, %v830_v25  ;;  %v5402_v38 = vcombine.high %v827_v33, %v831_v34  ;;  %v5401_v46 = vcombine.low %v827_v33, %v831_v34  ;;  %v871_v33 = vld [vmem:[#allocation6 + $0xe38] sm:$0xff] }
 0x2c6   :  { %3985 = vmatpush1.bf16.msra.mxu0 %v5343_v45  ;;  %v834_v45 = vld [vmem:[#allocation6 + $0xd10] sm:$0xff] }
 0x2c7   :  { %4157 = vmatpush1.bf16.msra.mxu1 %v5345_v41  ;;  %3986 = vmatprep.subr.bf16.mxu0 %v5352_v42  ;;  %v838_v41 = vld [vmem:[#allocation6 + $0xd30] sm:$0xff]  ;;  %v835_v42 = vld [vmem:[#allocation6 + $0xd18] sm:$0xff] }
 0x2c8   :  { %4158 = vmatprep.subr.bf16.mxu1 %v5354_v43  ;;  %v839_v43 = vld [vmem:[#allocation6 + $0xd38] sm:$0xff]  ;;  %v5408_v47 = vcombine.high %v834_v45, %v838_v41 }
 0x2c9   :  { %v5410_v48 = vcombine.high %v835_v42, %v839_v43  ;;  %v5409_v16 = vcombine.low %v835_v42, %v839_v43 }
 0x2ca   :  { %3987 = vmatpush1.bf16.msra.mxu0 %v5351_v50  ;;  %v846_v50 = vld [vmem:[#allocation6 + $0xd70] sm:$0xff] }
 0x2cb   :  { %4159 = vmatpush1.bf16.msra.mxu1 %v5353_v51  ;;  %3988 = vmatprep.subr.bf16.mxu0 %v5360_v52  ;;  %v843_v51 = vld [vmem:[#allocation6 + $0xd58] sm:$0xff]  ;;  %v5416_v55 = vcombine.high %v842_v49, %v846_v50 }
 0x2cc   :  { %4160 = vmatprep.subr.bf16.mxu1 %v5362_v53  ;;  %v847_v52 = vld [vmem:[#allocation6 + $0xd78] sm:$0xff]  ;;  %v5407_v53 = vcombine.low %v834_v45, %v838_v41 }
 0x2cd   :  { %v5418_v56 = vcombine.high %v843_v51, %v847_v52 }
 0x2ce   :  { %3989 = vmatpush1.bf16.msra.mxu0 %v5359_v57  ;;  %v850_v57 = vld [vmem:[#allocation6 + $0xd90] sm:$0xff] }
 0x2cf   :  { %4161 = vmatpush1.bf16.msra.mxu1 %v5361_v58  ;;  %3990 = vmatprep.subr.bf16.mxu0 %v5368_v59  ;;  %v854_v58 = vld [vmem:[#allocation6 + $0xdb0] sm:$0xff]  ;;  %v933_v59 = vrot.slane %v6181_v54, %v117_v28  ;;  %v5417_v28 = vcombine.low %v843_v51, %v847_v52 }
 0x2d0   :  { %4162 = vmatprep.subr.bf16.mxu1 %v5370_v60  ;;  %v941_v60 = vrot.slane %v6181_v54, %v125_v31  ;;  %v5424_v31 = vcombine.high %v850_v57, %v854_v58  ;;  %v5423_v30 = vcombine.low %v850_v57, %v854_v58 }
 0x2d2   :  { %3991 = vmatpush1.bf16.msra.mxu0 %v5367_v24  ;;  %v5415_v24 = vcombine.low %v842_v49, %v846_v50 }
 0x2d3   :  { %4163 = vmatpush1.bf16.msra.mxu1 %v5369_v61  ;;  %4003 = vmatprep.subr.bf16.mxu0 %v5376_v62  ;;  %v6195_v61 = vld [vmem:[#allocation6 + $0xdd0] sm:$0xff] }
 0x2d4   :  { %4175 = vmatprep.subr.bf16.mxu1 %v5378_v63  ;;  %v6197_v62 = vld [vmem:[#allocation6 + $0xdf0] sm:$0xff]  ;;  %v6199_v63 = vld [vmem:[#allocation6 + $0xdd8] sm:$0xff] }
 0x2d5   :  { %3993 = vmatmul.mubr.bf16.vlgmr.msra.gmra.mrb[12].mxu0 %v6141_v19  ;;  %v5431_v7 = vcombine.low %v6195_v61, %v6197_v62 }
 0x2d6   :  { %4165 = vmatmul.mubr.bf16.vlgmr.msra.gmra.mrb[12].mxu1 %v6141_v19  ;;  %4004 = vmatpush1.bf16.msra.mxu0 %v5375_v23  ;;  %v5393_v19 = vcombine.low %v819_v9, %v823_v10 }
 0x2d7   :  { %4035 = vmatprep.mubr.bf16.mxu0 %v6155_v14  ;;  %4176 = vmatpush1.bf16.msra.mxu1 %v5377_v3 }
 0x2d8   :  { %4207 = vmatprep.mubr.bf16.mxu1 %v6155_v14  ;;  %4005 = vmatprep.subr.bf16.mxu0 %v5384_v4  ;;  %v5399_v14 = vcombine.low %v826_v12, %v830_v25  ;;  %v870_v12 = vld [vmem:[#allocation6 + $0xe30] sm:$0xff]  ;;  %v867_v25 = vld [vmem:[#allocation6 + $0xe18] sm:$0xff] }
 0x2d9   :  { %4177 = vmatprep.subr.bf16.mxu1 %v5386_v8  ;;  %v6205_v8 = vld [vmem:[#allocation6 + $0xe10] sm:$0xff] }
 0x2da   :  { %4006 = vmatpush1.bf16.msra.mxu0 %v5383_v11  ;;  %v5440_v49 = vcombine.high %v6205_v8, %v870_v12 }
 0x2db   :  { %4178 = vmatpush1.bf16.msra.mxu1 %v5385_v13  ;;  %4007 = vmatprep.subr.bf16.mxu0 %v5392_v15  ;;  %v5432_v15 = vcombine.high %v6195_v61, %v6197_v62  ;;  %v879_v61 = vld [vmem:[#allocation6 + $0xe78] sm:$0xff]  ;;  %v5439_v62 = vcombine.low %v6205_v8, %v870_v12  ;;  %v894_v8 = vld [vmem:[#allocation6 + $0xef0] sm:$0xff] }
 0x2dc   :  { %4179 = vmatprep.subr.bf16.mxu1 %v5394_v21  ;;  %v5434_v21 = vcombine.high %v6199_v63, %v6201_v29  ;;  %v898_v12 = vld [vmem:[#allocation6 + $0xf10] sm:$0xff] }
 0x2de   :  { %4008 = vmatpush1.bf16.msra.mxu0 %v5391_v35 }
 0x2df   :  { %4180 = vmatpush1.bf16.msra.mxu1 %v5393_v19  ;;  %4009 = vmatprep.subr.bf16.mxu0 %v5400_v37 }
 0x2e0   :  { %4181 = vmatprep.subr.bf16.mxu1 %v5402_v38 }
 0x2e2   :  { %4010 = vmatpush1.bf16.msra.mxu0 %v5399_v14 }
 0x2e3   :  { %4182 = vmatpush1.bf16.msra.mxu1 %v5401_v46  ;;  %4011 = vmatprep.subr.bf16.mxu0 %v5408_v47 }
 0x2e4   :  { %4183 = vmatprep.subr.bf16.mxu1 %v5410_v48  ;;  %v5433_v48 = vcombine.low %v6199_v63, %v6201_v29  ;;  %v5441_v63 = vcombine.low %v867_v25, %v871_v33  ;;  %v5448_v29 = vcombine.high %v874_v18, %v878_v20 }
 0x2e6   :  { %4012 = vmatpush1.bf16.msra.mxu0 %v5407_v53  ;;  %v5442_v53 = vcombine.high %v867_v25, %v871_v33  ;;  %v902_v25 = vld [vmem:[#allocation6 + $0xf30] sm:$0xff]  ;;  %v899_v33 = vld [vmem:[#allocation6 + $0xf18] sm:$0xff] }
 0x2e7   :  { %4184 = vmatpush1.bf16.msra.mxu1 %v5409_v16  ;;  %4013 = vmatprep.subr.bf16.mxu0 %v5416_v55 }
 0x2e8   :  { %v3693_v0 = vpop.f32.mrb[8].mxu0  ;;  %v3865_v23 = vpop.f32.mrb[8].mxu1  ;;  %4185 = vmatprep.subr.bf16.mxu1 %v5418_v56 }
 0x2e9   :  { %v5654_v2 = vadd.f32 %v3693_v0, %v933_v59  ;;  %v5658_v32 = vadd.f32 %v3865_v23, %v941_v60  ;;  %v3695_v3 = vpop.f32.mrb[9].mxu0  ;;  %v3867_v4 = vpop.f32.mrb[9].mxu1  ;;  %v882_v23 = vld [vmem:[#allocation6 + $0xe90] sm:$0xff] }
 0x2ea   :  { %v5655_v9 = vadd.f32 %v3695_v3, %v937_v22  ;;  %v5659_v10 = vadd.f32 %v3867_v4, %v945_v36  ;;  %v3697_v11 = vpop.f32.mrb[10].mxu0  ;;  %v3869_v13 = vpop.f32.mrb[10].mxu1  ;;  %4014 = vmatpush1.bf16.msra.mxu0 %v5415_v24  ;;  %v875_v24 = vld [vmem:[#allocation6 + $0xe58] sm:$0xff] }
 0x2eb   :  { %v4218_v34 = vmul.f32 0.1, %v5654_v2  ;;  %v4220_v35 = vmul.f32 0.1, %v5658_v32  ;;  %v5656_v19 = vadd.f32 %v3697_v11, %v933_v59  ;;  %v5660_v37 = vadd.f32 %v3869_v13, %v941_v60  ;;  %4186 = vmatpush1.bf16.msra.mxu1 %v5417_v28  ;;  %v3699_v38 = vpop.f32.mrb[11].mxu0  ;;  %v3871_v45 = vpop.f32.mrb[11].mxu1  ;;  %4015 = vmatprep.subr.bf16.mxu0 %v5424_v31 }
 0x2ec   :  { %v4219_v41 = vmul.f32 0.1, %v5655_v9  ;;  %v4221_v42 = vmul.f32 0.1, %v5659_v10  ;;  %v5657_v43 = vadd.f32 %v3699_v38, %v937_v22  ;;  %v5661_v14 = vadd.f32 %v3871_v45, %v945_v36  ;;  %4187 = vmatprep.subr.bf16.mxu1 %v5426_v1  ;;  %v883_v1 = vld [vmem:[#allocation6 + $0xe98] sm:$0xff]  ;;  %v906_v45 = vld [vmem:[#allocation6 + $0xf50] sm:$0xff] }
 0x2ed   :  { %v4226_v46 = vmul.f32 0.1, %v5656_v19  ;;  %v4228_v47 = vmul.f32 0.1, %v5660_v37  ;;  %v4234_v50 = vmax.f32 %v5654_v2, %v4218_v34  ;;  %v4236_v16 = vmax.f32 %v5658_v32, %v4220_v35  ;;  %v887_v2 = vld [vmem:[#allocation6 + $0xeb8] sm:$0xff] }
 0x2ee   :  { %v4227_v51 = vmul.f32 0.1, %v5657_v43  ;;  %v4229_v52 = vmul.f32 0.1, %v5661_v14  ;;  %4016 = vmatpush1.bf16.msra.mxu0 %v5423_v30  ;;  %v4235_v57 = vmax.f32 %v5655_v9, %v4219_v41  ;;  %v4237_v58 = vmax.f32 %v5659_v10, %v4221_v42  ;;  %v886_v30 = vld [vmem:[#allocation6 + $0xeb0] sm:$0xff]  ;;  %v891_v9 = vld [vmem:[#allocation6 + $0xed8] sm:$0xff] }
 0x2ef   :  { %v4242_v55 = vmax.f32 %v5656_v19, %v4226_v46  ;;  %v4244_v56 = vmax.f32 %v5660_v37, %v4228_v47  ;;  %4188 = vmatpush1.bf16.msra.mxu1 %v5425_v6  ;;  %4017 = vmatprep.subr.bf16.mxu0 %v5432_v15  ;;  %v5450_v0 = vcombine.high %v875_v24, %v879_v61  ;;  %v895_v10 = vld [vmem:[#allocation6 + $0xef8] sm:$0xff]  ;;  %v910_v41 = vld [vmem:[#allocation6 + $0xf70] sm:$0xff] }
 0x2f0   :  { %v4243_v59 = vmax.f32 %v5657_v43, %v4227_v51  ;;  %v4245_v60 = vmax.f32 %v5661_v14, %v4229_v52  ;;  %4189 = vmatprep.subr.bf16.mxu1 %v5434_v21  ;;  %v5447_v32 = vcombine.low %v874_v18, %v878_v20  ;;  %v5449_v3 = vcombine.low %v875_v24, %v879_v61  ;;  %v903_v34 = vld [vmem:[#allocation6 + $0xf38] sm:$0xff] }
 0x2f1   :  { %v6214_v22 = vpack.c.bf16 %v4242_v55, %v4234_v50  ;;  %v6216_v36 = vpack.c.bf16 %v4244_v56, %v4236_v16  ;;  %v5456_v4 = vcombine.high %v882_v23, %v886_v30  ;;  %v5458_v6 = vcombine.high %v883_v1, %v887_v2  ;;  %v907_v42 = vld [vmem:[#allocation6 + $0xf58] sm:$0xff]  ;;  %v918_v50 = vld [vmem:[#allocation6 + $0xfb0] sm:$0xff] }
 0x2f2   :  { %4018 = vmatpush1.bf16.msra.mxu0 %v5431_v7  ;;  %v6219_v28 = vpack.c.bf16 %v4243_v59, %v4235_v57  ;;  %v6221_v31 = vpack.c.bf16 %v4245_v60, %v4237_v58  ;;  %v890_v7 = vld [vmem:[#allocation6 + $0xed0] sm:$0xff]  ;;  %v5455_v11 = vcombine.low %v882_v23, %v886_v30  ;;  %v5457_v13 = vcombine.low %v883_v1, %v887_v2  ;;  %v911_v43 = vld [vmem:[#allocation6 + $0xf78] sm:$0xff]  ;;  %v5732_v23 = vld [vmem:[#allocation9] sm:$0xff]  }
 0x2f3   :  { %4190 = vmatpush1.bf16.msra.mxu1 %v5433_v48  ;;  %4019 = vmatprep.subr.bf16.mxu0 %v5440_v49  ;;  %v5464_v15 = vcombine.high %v890_v7, %v894_v8  ;;  %v5466_v21 = vcombine.high %v891_v9, %v895_v10  ;;  %v5463_v35 = vcombine.low %v890_v7, %v894_v8  ;;  %v914_v49 = vld [vmem:[#allocation6 + $0xf90] sm:$0xff]  ;;  %v915_v51 = vld [vmem:[#allocation6 + $0xf98] sm:$0xff]  ;;  %v5733_v30 = vld [vmem:[#allocation9 + $0x80] sm:$0xff]  }
 0x2f4   :  { %4191 = vmatprep.subr.bf16.mxu1 %v5442_v53  ;;  %v5465_v19 = vcombine.low %v891_v9, %v895_v10  ;;  %v5472_v37 = vcombine.high %v898_v12, %v902_v25  ;;  %v5474_v38 = vcombine.high %v899_v33, %v903_v34  ;;  %v5471_v14 = vcombine.low %v898_v12, %v902_v25  ;;  %v919_v52 = vld [vmem:[#allocation6 + $0xfb8] sm:$0xff]  ;;  %v922_v57 = vld [vmem:[#allocation6 + $0xfd0] sm:$0xff]  ;;  %v5742_v9 = vld [vmem:[#allocation9 + $0x58] sm:$0xff]  }
 0x2f5   :  { %v5473_v46 = vcombine.low %v899_v33, %v903_v34  ;;  %v5480_v47 = vcombine.high %v906_v45, %v910_v41  ;;  %v5482_v48 = vcombine.high %v907_v42, %v911_v43  ;;  %v5479_v53 = vcombine.low %v906_v45, %v910_v41  ;;  %v926_v58 = vld [vmem:[#allocation6 + $0xff0] sm:$0xff]  ;;  %v923_v59 = vld [vmem:[#allocation6 + $0xfd8] sm:$0xff]  ;;  %v5744_v10 = vld [vmem:[#allocation9 + $0x18] sm:$0xff]  }
 0x2f6   :  { %4020 = vmatpush1.bf16.msra.mxu0 %v5439_v62  ;;  %v5481_v16 = vcombine.low %v907_v42, %v911_v43  ;;  %v5488_v55 = vcombine.high %v914_v49, %v918_v50  ;;  %v5490_v56 = vcombine.high %v915_v51, %v919_v52  ;;  %v927_v60 = vld [vmem:[#allocation6 + $0xff8] sm:$0xff]  ;;  %v5487_v18 = vcombine.low %v914_v49, %v918_v50  ;;  %v5734_v1 = vld [vmem:[#allocation9 + $0x48] sm:$0xff]   ;;  %v5759_v45 = vld [vmem:[#allocation9 + $0xf8] sm:$0xff]  }
 0x2f7   :  { %4192 = vmatpush1.bf16.msra.mxu1 %v5441_v63  ;;  %4021 = vmatprep.subr.bf16.mxu0 %v5448_v29  ;;  %v5489_v20 = vcombine.low %v915_v51, %v919_v52  ;;  %v5496_v24 = vcombine.high %v922_v57, %v926_v58  ;;  %v5498_v61 = vcombine.high %v923_v59, %v927_v60  ;;  %v5730_v29 = vld [vmem:[#allocation9 + $0x40] sm:$0xff]   ;;  %v5735_v2 = vld [vmem:[#allocation9 + $0xc8] sm:$0xff]   ;;  %v5740_v7 = vld [vmem:[#allocation9 + $0x10] sm:$0xff]  }
 0x2f8   :  { %4193 = vmatprep.subr.bf16.mxu1 %v5450_v0  ;;  %v5495_v62 = vcombine.low %v922_v57, %v926_v58  ;;  %v5497_v63 = vcombine.low %v923_v59, %v927_v60  ;;  %v5731_v0 = vld [vmem:[#allocation9 + $0xc0] sm:$0xff]   ;;  %v5741_v8 = vld [vmem:[#allocation9 + $0x90] sm:$0xff]   ;;  %v5751_v12 = vld [vmem:[#allocation9 + $0xe8] sm:$0xff]  }
 0x2f9   :  { %v5752_v25 = vld [vmem:[#allocation9 + $0x28] sm:$0xff]   ;;  %v5754_v34 = vld [vmem:[#allocation9 + $0x70] sm:$0xff]   ;;  %v5760_v41 = vld [vmem:[#allocation9 + $0x38] sm:$0xff]  }
 0x2fa   :  { %4022 = vmatpush1.bf16.msra.mxu0 %v5447_v32  ;;  %v5736_v32 = vld [vmem:[#allocation9 + $0x8] sm:$0xff]   ;;  %v5761_v42 = vld [vmem:[#allocation9 + $0xb8] sm:$0xff]   ;;  %v5762_v43 = vld [vmem:[#allocation9 + $0x140] sm:$0xff]  }
 0x2fb   :  { %4194 = vmatpush1.bf16.msra.mxu1 %v5449_v3  ;;  %4023 = vmatprep.subr.bf16.mxu0 %v5456_v4  ;;  %v5737_v3 = vld [vmem:[#allocation9 + $0x88] sm:$0xff]   ;;  %v5738_v4 = vld [vmem:[#allocation9 + $0x50] sm:$0xff]   ;;  %v5775_v57 = vld [vmem:[#allocation9 + $0x1d8] sm:$0xff]  }
 0x2fc   :  { %4195 = vmatprep.subr.bf16.mxu1 %v5458_v6  ;;  %v5739_v6 = vld [vmem:[#allocation9 + $0xd0] sm:$0xff]   ;;  %v5753_v33 = vld [vmem:[#allocation9 + $0xa8] sm:$0xff]   ;;  %v5778_v58 = vld [vmem:[#allocation9 + $0x160] sm:$0xff]  }
 0x2fd   :  { %v5767_v49 = vld [vmem:[#allocation9 + $0x1c8] sm:$0xff]   ;;  %v5770_v52 = vld [vmem:[#allocation9 + $0x150] sm:$0xff]   ;;  %v5779_v59 = vld [vmem:[#allocation9 + $0x1e0] sm:$0xff]  }
 0x2fe   :  { %4024 = vmatpush1.bf16.msra.mxu0 %v5455_v11  ;;  %v5746_v11 = vld [vmem:[#allocation9 + $0x60] sm:$0xff]   ;;  %v5768_v50 = vld [vmem:[#allocation9 + $0x108] sm:$0xff]  }
 0x2ff   :  { %4196 = vmatpush1.bf16.msra.mxu1 %v5457_v13  ;;  %4025 = vmatprep.subr.bf16.mxu0 %v5464_v15  ;;  %v5747_v13 = vld [vmem:[#allocation9 + $0xe0] sm:$0xff]   ;;  %v5769_v51 = vld [vmem:[#allocation9 + $0x188] sm:$0xff]  }
 0x300   :  { %4197 = vmatprep.subr.bf16.mxu1 %v5466_v21  ;;  %v5749_v15 = vld [vmem:[#allocation9 + $0xa0] sm:$0xff]   ;;  %v5750_v21 = vld [vmem:[#allocation9 + $0x68] sm:$0xff]  }
 0x301   :  { %v5780_v60 = vld [vmem:[#allocation9 + $0x120] sm:$0xff]  }
 0x302   :  { %4026 = vmatpush1.bf16.msra.mxu0 %v5463_v35  ;;  %v5755_v35 = vld [vmem:[#allocation9 + $0xf0] sm:$0xff]  }
 0x303   :  { %4198 = vmatpush1.bf16.msra.mxu1 %v5465_v19  ;;  %4027 = vmatprep.subr.bf16.mxu0 %v5472_v37  ;;  %v5756_v19 = vld [vmem:[#allocation9 + $0x30] sm:$0xff]  }
 0x304   :  { %4199 = vmatprep.subr.bf16.mxu1 %v5474_v38  ;;  %v5757_v37 = vld [vmem:[#allocation9 + $0xb0] sm:$0xff]   ;;  %v5758_v38 = vld [vmem:[#allocation9 + $0x78] sm:$0xff]  }
 0x306   :  { %4028 = vmatpush1.bf16.msra.mxu0 %v5471_v14  ;;  %v5763_v14 = vld [vmem:[#allocation9 + $0x1c0] sm:$0xff]  }
 0x307   :  { %4200 = vmatpush1.bf16.msra.mxu1 %v5473_v46  ;;  %4029 = vmatprep.subr.bf16.mxu0 %v5480_v47  ;;  %v5764_v46 = vld [vmem:[#allocation9 + $0x100] sm:$0xff]  }
 0x308   :  { %4201 = vmatprep.subr.bf16.mxu1 %v5482_v48  ;;  %v5765_v47 = vld [vmem:[#allocation9 + $0x180] sm:$0xff]   ;;  %v5766_v48 = vld [vmem:[#allocation9 + $0x148] sm:$0xff]  }
 0x30a   :  { %4030 = vmatpush1.bf16.msra.mxu0 %v5479_v53  ;;  %v5771_v53 = vld [vmem:[#allocation9 + $0x1d0] sm:$0xff]  }
 0x30b   :  { %4202 = vmatpush1.bf16.msra.mxu1 %v5481_v16  ;;  %4031 = vmatprep.subr.bf16.mxu0 %v5488_v55  ;;  %v5772_v16 = vld [vmem:[#allocation9 + $0x110] sm:$0xff]  }
 0x30c   :  { %4203 = vmatprep.subr.bf16.mxu1 %v5490_v56  ;;  %v5773_v55 = vld [vmem:[#allocation9 + $0x190] sm:$0xff]   ;;  %v5774_v56 = vld [vmem:[#allocation9 + $0x158] sm:$0xff]  }
 0x30e   :  { %4032 = vmatpush1.bf16.msra.mxu0 %v5487_v18  ;;  %v5781_v18 = vld [vmem:[#allocation9 + $0x1a0] sm:$0xff]  }
 0x30f   :  { %4204 = vmatpush1.bf16.msra.mxu1 %v5489_v20  ;;  %4033 = vmatprep.subr.bf16.mxu0 %v5496_v24  ;;  %v5782_v20 = vld [vmem:[#allocation9 + $0x168] sm:$0xff]  }
 0x310   :  { %4205 = vmatprep.subr.bf16.mxu1 %v5498_v61  ;;  %v5783_v24 = vld [vmem:[#allocation9 + $0x1e8] sm:$0xff]  }
 0x311   :  { %v5784_v61 = vld [vmem:[#allocation9 + $0x128] sm:$0xff]  }
 0x312   :  { %4034 = vmatpush1.bf16.msra.mxu0 %v5495_v62  ;;  %v5785_v62 = vld [vmem:[#allocation9 + $0x1a8] sm:$0xff]  }
 0x313   :  { %4206 = vmatpush1.bf16.msra.mxu1 %v5497_v63  ;;  %5566 = vmatprep.subr.bf16.mxu0 %v5730_v29  ;;  %v5786_v63 = vld [vmem:[#allocation9 + $0x170] sm:$0xff]  }
 0x314   :  { %5588 = vmatprep.subr.bf16.mxu1 %v5731_v0  ;;  %v5787_v29 = vld [vmem:[#allocation9 + $0x1f0] sm:$0xff]  }
 0x315   :  { %4036 = vmatmul.mubr.bf16.vlgmr.msra.gmra.mrb[12].mxu0 %v6153_v5  ;;  %v5788_v0 = vld [vmem:[#allocation9 + $0x130] sm:$0xff]  }
 0x316   :  { %4208 = vmatmul.mubr.bf16.vlgmr.msra.gmra.mrb[12].mxu1 %v6153_v5  ;;  %5567 = vmatpush3.bf16.msra.mxu0 %v5732_v23  ;;  %v5743_v5 = vld [vmem:[#allocation9 + $0xd8] sm:$0xff]   ;;  %v5789_v23 = vld [vmem:[#allocation9 + $0x1b0] sm:$0xff]  }
 0x317   :  { %4809 = vmatprep.mubr.bf16.mxu0 %v6219_v28  ;;  %5589 = vmatpush3.bf16.msra.mxu1 %v5733_v30  ;;  %v5745_v28 = vld [vmem:[#allocation9 + $0x98] sm:$0xff]  }
 0x318   :  { %4850 = vmatprep.mubr.bf16.mxu1 %v6221_v31  ;;  %5568 = vmatprep.subr.bf16.mxu0 %v5734_v1  ;;  %v5748_v31 = vld [vmem:[#allocation9 + $0x20] sm:$0xff]   ;;  %v5790_v30 = vld [vmem:[#allocation9 + $0x178] sm:$0xff]  }
 0x319   :  { %5590 = vmatprep.subr.bf16.mxu1 %v5735_v2  ;;  %v5791_v1 = vld [vmem:[#allocation9 + $0x1f8] sm:$0xff]  }
 0x31a   :  { %5569 = vmatpush3.bf16.msra.mxu0 %v5736_v32  ;;  %v5792_v2 = vld [vmem:[#allocation9 + $0x138] sm:$0xff]  }
 0x31b   :  { %5591 = vmatpush3.bf16.msra.mxu1 %v5737_v3  ;;  %5570 = vmatprep.subr.bf16.mxu0 %v5738_v4  ;;  %v5793_v32 = vld [vmem:[#allocation9 + $0x1b8] sm:$0xff]   ;;  %v949_v3 = vrot.slane %v6181_v54, %v133_v40  ;;  %v957_v4 = vrot.slane %v6181_v54, %v141_v17 }
 0x31c   :  { %5592 = vmatprep.subr.bf16.mxu1 %v5739_v6  ;;  %v953_v6 = vrot.slane %v6181_v54, %v137_v44 }
 0x31e   :  { %5571 = vmatpush3.bf16.msra.mxu0 %v5740_v7  ;;  %v961_v7 = vrot.slane %v6181_v54, %v145_v39 }
 0x31f   :  { %5593 = vmatpush3.bf16.msra.mxu1 %v5741_v8  ;;  %5572 = vmatprep.subr.bf16.mxu0 %v5742_v9 }
 0x320   :  { %5594 = vmatprep.subr.bf16.mxu1 %v5743_v5 }
 0x322   :  { %5573 = vmatpush3.bf16.msra.mxu0 %v5744_v10 }
 0x323   :  { %5595 = vmatpush3.bf16.msra.mxu1 %v5745_v28  ;;  %5574 = vmatprep.subr.bf16.mxu0 %v5746_v11 }
 0x324   :  { %5596 = vmatprep.subr.bf16.mxu1 %v5747_v13 }
 0x326   :  { %5575 = vmatpush3.bf16.msra.mxu0 %v5748_v31 }
 0x327   :  { %5597 = vmatpush3.bf16.msra.mxu1 %v5749_v15  ;;  %5576 = vmatprep.subr.bf16.mxu0 %v5750_v21 }
 0x328   :  { %5598 = vmatprep.subr.bf16.mxu1 %v5751_v12 }
 0x32a   :  { %5577 = vmatpush3.bf16.msra.mxu0 %v5752_v25 }
 0x32b   :  { %5599 = vmatpush3.bf16.msra.mxu1 %v5753_v33  ;;  %5578 = vmatprep.subr.bf16.mxu0 %v5754_v34 }
 0x32c   :  { %5600 = vmatprep.subr.bf16.mxu1 %v5755_v35 }
 0x32e   :  { %5579 = vmatpush3.bf16.msra.mxu0 %v5756_v19 }
 0x32f   :  { %5601 = vmatpush3.bf16.msra.mxu1 %v5757_v37  ;;  %5580 = vmatprep.subr.bf16.mxu0 %v5758_v38 }
 0x330   :  { %5602 = vmatprep.subr.bf16.mxu1 %v5759_v45 }
 0x332   :  { %5581 = vmatpush3.bf16.msra.mxu0 %v5760_v41 }
 0x333   :  { %5603 = vmatpush3.bf16.msra.mxu1 %v5761_v42  ;;  %5610 = vmatprep.subr.bf16.mxu0 %v5762_v43 }
 0x334   :  { %5632 = vmatprep.subr.bf16.mxu1 %v5763_v14 }
 0x335   :  { %4810 = vmatmul.mubr.bf16.vlgmr.msra.gmra.mrb[16].mxu0 %v6214_v22  ;;  %v5776_v22 = vld [vmem:[#allocation9 + $0x118] sm:$0xff]  }
 0x336   :  { %4851 = vmatmul.mubr.bf16.vlgmr.msra.gmra.mrb[16].mxu1 %v6216_v36  ;;  %5611 = vmatpush3.bf16.msra.mxu0 %v5764_v46  ;;  %v5777_v36 = vld [vmem:[#allocation9 + $0x198] sm:$0xff]  }
 0x337   :  { %5633 = vmatpush3.bf16.msra.mxu1 %v5765_v47  ;;  %5612 = vmatprep.subr.bf16.mxu0 %v5766_v48 }
 0x338   :  { %5634 = vmatprep.subr.bf16.mxu1 %v5767_v49 }
 0x33a   :  { %5613 = vmatpush3.bf16.msra.mxu0 %v5768_v50 }
 0x33b   :  { %5635 = vmatpush3.bf16.msra.mxu1 %v5769_v51  ;;  %5614 = vmatprep.subr.bf16.mxu0 %v5770_v52 }
 0x33c   :  { %5636 = vmatprep.subr.bf16.mxu1 %v5771_v53 }
 0x33e   :  { %5615 = vmatpush3.bf16.msra.mxu0 %v5772_v16 }
 0x33f   :  { %5637 = vmatpush3.bf16.msra.mxu1 %v5773_v55  ;;  %5616 = vmatprep.subr.bf16.mxu0 %v5774_v56  ;;  %v5499_v55 = vld [vmem:[#allocation10] ss:$0 sm:$0xff] }
 0x340   :  { %5638 = vmatprep.subr.bf16.mxu1 %v5775_v57 }
 0x342   :  { %5617 = vmatpush3.bf16.msra.mxu0 %v5776_v22 }
 0x343   :  { %5639 = vmatpush3.bf16.msra.mxu1 %v5777_v36  ;;  %5618 = vmatprep.subr.bf16.mxu0 %v5778_v58 }
 0x344   :  { %5640 = vmatprep.subr.bf16.mxu1 %v5779_v59 }
 0x346   :  { %5619 = vmatpush3.bf16.msra.mxu0 %v5780_v60 }
 0x347   :  { %5641 = vmatpush3.bf16.msra.mxu1 %v5781_v18  ;;  %5620 = vmatprep.subr.bf16.mxu0 %v5782_v20 }
 0x348   :  { %5642 = vmatprep.subr.bf16.mxu1 %v5783_v24 }
 0x34a   :  { %5621 = vmatpush3.bf16.msra.mxu0 %v5784_v61 }
 0x34b   :  { %5643 = vmatpush3.bf16.msra.mxu1 %v5785_v62  ;;  %5622 = vmatprep.subr.bf16.mxu0 %v5786_v63 }
 0x34c   :  { %5644 = vmatprep.subr.bf16.mxu1 %v5787_v29 }
 0x34e   :  { %5623 = vmatpush3.bf16.msra.mxu0 %v5788_v0 }
 0x34f   :  { %5645 = vmatpush3.bf16.msra.mxu1 %v5789_v23  ;;  %5624 = vmatprep.subr.bf16.mxu0 %v5790_v30 }
 0x350   :  { %5646 = vmatprep.subr.bf16.mxu1 %v5791_v1 }
 0x352   :  { %5625 = vmatpush3.bf16.msra.mxu0 %v5792_v2 }
 0x353   :  { %5647 = vmatpush3.bf16.msra.mxu1 %v5793_v32 }
 0x3e8   :  { %v4037_v8 = vpop.f32.mrb[12].mxu0 }
 0x3e9   :  { %v5662_v9 = vadd.f32 %v4037_v8, %v949_v3  ;;  %v4209_v5 = vpop.f32.mrb[12].mxu1  ;;  %v4039_v10 = vpop.f32.mrb[13].mxu0 }
 0x3ea   :  { %v5666_v28 = vadd.f32 %v4209_v5, %v957_v4  ;;  %v5663_v11 = vadd.f32 %v4039_v10, %v953_v6  ;;  %v4211_v13 = vpop.f32.mrb[13].mxu1  ;;  %v4041_v40 = vpop.f32.mrb[14].mxu0 }
 0x3eb   :  { %v4222_v31 = vmul.f32 0.1, %v5662_v9  ;;  %v5667_v15 = vadd.f32 %v4211_v13, %v961_v7  ;;  %v5664_v21 = vadd.f32 %v4041_v40, %v949_v3  ;;  %v4213_v17 = vpop.f32.mrb[14].mxu1  ;;  %v4043_v12 = vpop.f32.mrb[15].mxu0 }
 0x3ec   :  { %v4224_v25 = vmul.f32 0.1, %v5666_v28  ;;  %v4223_v33 = vmul.f32 0.1, %v5663_v11  ;;  %v5668_v44 = vadd.f32 %v4213_v17, %v957_v4  ;;  %v5665_v34 = vadd.f32 %v4043_v12, %v953_v6  ;;  %v4215_v27 = vpop.f32.mrb[15].mxu1 }
 0x3ed   :  { %v4225_v35 = vmul.f32 0.1, %v5667_v15  ;;  %v4230_v39 = vmul.f32 0.1, %v5664_v21  ;;  %v5669_v54 = vadd.f32 %v4215_v27, %v961_v7  ;;  %v4238_v38 = vmax.f32 %v5662_v9, %v4222_v31 }
 0x3ee   :  { %v4232_v19 = vmul.f32 0.1, %v5668_v44  ;;  %v4231_v37 = vmul.f32 0.1, %v5665_v34  ;;  %v4240_v42 = vmax.f32 %v5666_v28, %v4224_v25  ;;  %v4239_v43 = vmax.f32 %v5663_v11, %v4223_v33 }
 0x3ef   :  { %v4246_v45 = vmax.f32 %v5664_v21, %v4230_v39  ;;  %v4233_v41 = vmul.f32 0.1, %v5669_v54  ;;  %v4241_v47 = vmax.f32 %v5667_v15, %v4225_v35  ;;  %v4942_v12 = vand.u32 127, %v115_v26 }
 0x3f0   :  { %v4248_v14 = vmax.f32 %v5668_v44, %v4232_v19  ;;  %v4247_v46 = vmax.f32 %v5665_v34, %v4231_v37 }
 0x3f1   :  { %v4254_v48 = vpack.c.bf16 %v4246_v45, %v4238_v38  ;;  %v4249_v49 = vmax.f32 %v5669_v54, %v4233_v41  ;;  %vm4943_vm1 = vcmp.lt.s32.totalorder %v4942_v12, 8 }
 0x3f2   :  { %v4256_v50 = vpack.c.bf16 %v4248_v14, %v4240_v42  ;;  %v4255_v51 = vpack.c.bf16 %v4247_v46, %v4239_v43 }
 0x3f3   :  { %v4257_v52 = vpack.c.bf16 %v4249_v49, %v4241_v47 }
 0x3f4   :  { %4891 = vmatprep.mubr.bf16.mxu0 %v4255_v51 }
 0x3f5   :  { %4932 = vmatprep.mubr.bf16.mxu1 %v4257_v52  ;;  %4892 = vmatmul.mubr.bf16.vlgmr.msra.gmra.mrb[20].mxu0 %v4254_v48 }
 0x3f6   :  { %4933 = vmatmul.mubr.bf16.vlgmr.msra.gmra.mrb[20].mxu1 %v4256_v50 }
 0x408   :  { %v5582_v53 = vpop.f32.mrb[16].mxu0 }
 0x409   :  { %v5604_v16 = vpop.f32.mrb[16].mxu1  ;;  %v5583_v56 = vpop.f32.mrb[17].mxu0 }
 0x40a   :  { %v5584_v57 = vadd.f32 %v5583_v56, %v5582_v53  ;;  %v5605_v22 = vpop.f32.mrb[17].mxu1  ;;  %v5585_v36 = vpop.f32.mrb[18].mxu0 }
 0x40b   :  { %v5606_v58 = vadd.f32 %v5605_v22, %v5604_v16  ;;  %v5607_v59 = vpop.f32.mrb[18].mxu1  ;;  %v5586_v60 = vpop.f32.mrb[19].mxu0 }
 0x40c   :  { %v4812_v18 = vadd.f32 %v5584_v57, %v5499_v55  ;;  %v5587_v20 = vadd.f32 %v5586_v60, %v5585_v36  ;;  %v5608_v24 = vpop.f32.mrb[19].mxu1 }
 0x40d   :  { %v5609_v61 = vadd.f32 %v5608_v24, %v5607_v59 }
 0x40e   :  { %v4853_v62 = vadd.f32 %v5606_v58, %v4812_v18  ;;  %v4815_v63 = vadd.f32 %v5587_v20, %v5499_v55 }
 0x410   :  { %v4856_v29 = vadd.f32 %v5609_v61, %v4815_v63 }
 0x4c8   :  { %v5626_v0 = vpop.f32.mrb[20].mxu0 }
 0x4c9   :  { %v5648_v23 = vpop.f32.mrb[20].mxu1  ;;  %v5627_v30 = vpop.f32.mrb[21].mxu0 }
 0x4ca   :  { %v5628_v1 = vadd.f32 %v5627_v30, %v5626_v0  ;;  %v5649_v2 = vpop.f32.mrb[21].mxu1  ;;  %v5629_v32 = vpop.f32.mrb[22].mxu0 }
 0x4cb   :  { %v5650_v3 = vadd.f32 %v5649_v2, %v5648_v23  ;;  %v5651_v4 = vpop.f32.mrb[22].mxu1  ;;  %v5630_v6 = vpop.f32.mrb[23].mxu0 }
 0x4cc   :  { %v4894_v7 = vadd.f32 %v5628_v1, %v4853_v62  ;;  %v5631_v8 = vadd.f32 %v5630_v6, %v5629_v32  ;;  %v5652_v9 = vpop.f32.mrb[23].mxu1 }
 0x4cd   :  { %v5653_v5 = vadd.f32 %v5652_v9, %v5651_v4 }
 0x4ce   :  { %v4935_v10 = vadd.f32 %v5650_v3, %v4894_v7  ;;  %v4897_v28 = vadd.f32 %v5631_v8, %v4856_v29 }
 0x4d0   :  { %v5564_v11 = vmul.f32 -1.442695, %v4935_v10  ;;  %v4938_v13 = vadd.f32 %v5653_v5, %v4897_v28 }
 0x4d2   :  { %5794 = vpow2.f32 %v5564_v11  ;;  %v5565_v40 = vmul.f32 -1.442695, %v4938_v13 }
 0x4d4   :  { %5796 = vpow2.f32 %v5565_v40 }
 0x4d5   :  { %5798 = vtanh.f32 %v4935_v10 }
 0x4d6   :  { %5800 = vtanh.f32 %v4938_v13 }
 0x4dc   :  { %v5795_v31 = vpop.eup %5794 }
 0x4dd   :  { %v4950_v15 = vadd.f32 1.0, %v5795_v31 }
 0x4de   :  { %v5797_v21 = vpop.eup %5796 }
 0x4df   :  { %5802 = vrcp.f32 %v4950_v15  ;;  %v4951_v17 = vadd.f32 1.0, %v5797_v21  ;;  %v5799_v25 = vpop.eup %5798 }
 0x4e0   :  { %v5801_v33 = vpop.eup %5800  ;;  %v4960_v27 = vmul.f32 0.5, %v5799_v25 }
 0x4e1   :  { %5804 = vrcp.f32 %v4951_v17  ;;  %v4961_v19 = vmul.f32 0.5, %v5801_v33 }
 0x4e9   :  { %v5803_v44 = vpop.eup %5802 }
 0x4ea   :  { %v4956_v34 = vmul.f32 2.0, %v5803_v44 }
 0x4eb   :  { %v5805_v35 = vpop.eup %5804 }
 0x4ec   :  { %v4962_v39 = vsel %vm4943_vm1, %v4956_v34, %v4960_v27  ;;  %v4957_v54 = vmul.f32 2.0, %v5805_v35 }
 0x4ed   :  { %4964 = vst [vmem:[%s6255_s7] sm:$0xff] %v4962_v39 }
 0x4ee   :  { %v4963_v37 = vsel %vm4943_vm1, %v4957_v54, %v4961_v19 }
 0x4ef   :  { %4965 = vst [vmem:[%s6255_s7 + $0x8] sm:$0xff] %v4963_v37 }
 0x4f0   :  { %4970 = vsyncpa [#allocation3], 1 }
 0x4f1   :  { %4971 = vsyncpa [#allocation5], 1 }
 0x4f2   :  { %4972 = vsyncpa [#allocation8], 1 }
 0x4f3   :  { %4973 = vsyncpa [#allocation11], 1 }

// kernel: _forward_impl.1
= control target key start
LH: loop header
LB: loop body
LE: loop exit
PB: predicated region body
PF: predicated region fallthrough
CT: control target
= control target key end

     0   :  { %12 = vsyncpa [#allocation3], 0  ;;  %s6248_s0 = inlined_call_operand.vmem [shape: bf16[16,16], index: 0, kind: input, shape index: {}]   ;;  %s6249_s1 = inlined_call_operand.hbm [shape: bf16[16,1024], index: 1, kind: input, shape index: {}]   ;;  %s6250_s2 = inlined_call_operand.hbm [shape: f32[1,1024], index: 2, kind: input, shape index: {}]   ;;  %s6251_s3 = inlined_call_operand.hbm [shape: bf16[1024,1024], index: 3, kind: input, shape index: {}]   ;;  %s6252_s4 = inlined_call_operand.hbm [shape: f32[1,1024], index: 4, kind: input, shape index: {}]   ;;  %s6253_s5 = inlined_call_operand.hbm [shape: bf16[1024,128], index: 5, kind: input, shape index: {}]   ;;  %s6254_s6 = inlined_call_operand.hbm [shape: f32[1,128], index: 6, kind: input, shape index: {}]   ;;  %s6255_s7 = inlined_call_operand.vmem [shape: f32[16,128], index: 7, kind: output, shape index: {}]  }
   0x1   :  { %13 = vsyncpa [#allocation5], 0 }
   0x2   :  { %14 = vsyncpa [#allocation8], 0 }
   0x3   :  { %15 = vsyncpa [#allocation11], 0  ;;  %s5946_s24 = smov [#allocation4]   ;;  %s5947_s26 = smov [#allocation7]  }
   0x4   :  { %s36_s25 = sshll.u32 %s5946_s24, 4  ;;  %s58_s27 = sshll.u32 %s5947_s26, 4  ;;  %s37_s25 = int_to_ptr.vmem [resolvable:$true] %s36_s25  ;;  %s59_s27 = int_to_ptr.vmem [resolvable:$true] %s58_s27 }
   0x5   :  { %s5806_s30 = scalar_lea.hbm %s6250_s2, 128 }
   0x6   :  { %p5807_p0 = scmp.ne.s32.totalorder %s6250_s2, %s5806_s30  ;;  %p5810_p1 = scmp.lt.u32.totalorder %s5806_s30, %s6250_s2 }
   0x8   :  { %p5812_p2 = pnand %p5810_p1, %p5807_p0 }
   0xa   :  { %5815 = shalt.err (!%p5812_p2)
}
   0xb   :  { %s5816_s12 = scalar_lea.vmem %s37_s25, 128  ;;  %p5821_p4 = scmp.lt.s32.totalorder %s37_s25, %s37_s25 }
   0xc   :  { %p5817_p3 = scmp.ne.s32.totalorder %s37_s25, %s5816_s12  ;;  %p5822_p5 = scmp.lt.s32.totalorder %s5816_s12, %s5816_s12 }
   0xe   :  { %p5823_p6 = por %p5822_p5, %p5821_p4 }
  0x10   :  { %p5824_p7 = pnand %p5823_p6, %p5817_p3 }
  0x12   :  { %5827 = shalt.err (!%p5824_p7)
}
  0x13   :  { %39 = dma.hbm_to_vmem [thread:$0]  %s6250_s2, 128, %s37_s25, [#allocation5]  }
  0x14   :  { %s5828_s17 = scalar_lea.hbm %s6252_s4, 128 }
  0x15   :  { %p5829_p8 = scmp.ne.s32.totalorder %s6252_s4, %s5828_s17  ;;  %p5832_p9 = scmp.lt.u32.totalorder %s5828_s17, %s6252_s4 }
  0x17   :  { %p5834_p10 = pnand %p5832_p9, %p5829_p8 }
  0x19   :  { %5837 = shalt.err (!%p5834_p10)
}
  0x1a   :  { %s5838_s22 = scalar_lea.vmem %s59_s27, 128  ;;  %p5843_p12 = scmp.lt.s32.totalorder %s59_s27, %s59_s27 }
  0x1b   :  { %p5839_p11 = scmp.ne.s32.totalorder %s59_s27, %s5838_s22  ;;  %p5844_p13 = scmp.lt.s32.totalorder %s5838_s22, %s5838_s22 }
  0x1d   :  { %p5845_p0 = por %p5844_p13, %p5843_p12 }
  0x1f   :  { %p5846_p1 = pnand %p5845_p0, %p5839_p11 }
  0x21   :  { %5849 = shalt.err (!%p5846_p1)
}
  0x22   :  { %61 = dma.hbm_to_vmem [thread:$0]  %s6252_s4, 128, %s59_s27, [#allocation8]  }
  0x23   :  { %s5948_s24 = smov [#allocation2]   ;;  %s5850_s29 = scalar_lea.hbm %s6249_s1, 1024 }
  0x24   :  { %s23_s25 = sshll.u32 %s5948_s24, 4  ;;  %p5851_p2 = scmp.ne.s32.totalorder %s6249_s1, %s5850_s29  ;;  %s24_s25 = int_to_ptr.vmem [resolvable:$true] %s23_s25 }
  0x25   :  { %p5854_p3 = scmp.lt.u32.totalorder %s5850_s29, %s6249_s1 }
  0x27   :  { %p5856_p4 = pnand %p5854_p3, %p5851_p2 }
  0x29   :  { %5859 = shalt.err (!%p5856_p4)
}
  0x2a   :  { %s5860_s11 = scalar_lea.vmem %s24_s25, 1024  ;;  %p5865_p6 = scmp.lt.s32.totalorder %s24_s25, %s24_s25 }
  0x2b   :  { %p5861_p5 = scmp.ne.s32.totalorder %s24_s25, %s5860_s11  ;;  %p5866_p7 = scmp.lt.s32.totalorder %s5860_s11, %s5860_s11 }
  0x2d   :  { %p5867_p8 = por %p5866_p7, %p5865_p6 }
  0x2f   :  { %p5868_p9 = pnand %p5867_p8, %p5861_p5 }
  0x31   :  { %5871 = shalt.err (!%p5868_p9)
}
  0x32   :  { %s5949_s4 = smov 512   ;;  %s5950_s27 = smov 32  }
  0x33   :  { %29 = dma.hbm_to_vmem [thread:$0]  %s6249_s1, 1024, %s24_s25, [#allocation3], %s5949_s4, %s5949_s4, %s5950_s27  }
  0x34   :  { %s5951_s14 = smov [#allocation6]   ;;  %s5952_s16 = smov [#allocation9]  }
  0x35   :  { %s45_s15 = sshll.u32 %s5951_s14, 4  ;;  %s67_s17 = sshll.u32 %s5952_s16, 4  ;;  %s46_s15 = int_to_ptr.vmem [resolvable:$true] %s45_s15  ;;  %s68_s17 = int_to_ptr.vmem [resolvable:$true] %s67_s17 }
  0x36   :  { %s5872_s20 = scalar_lea.hbm %s6251_s3, 65536 }
  0x37   :  { %p5873_p10 = scmp.ne.s32.totalorder %s6251_s3, %s5872_s20  ;;  %p5876_p11 = scmp.lt.u32.totalorder %s5872_s20, %s6251_s3 }
  0x39   :  { %p5878_p12 = pnand %p5876_p11, %p5873_p10 }
  0x3b   :  { %5881 = shalt.err (!%p5878_p12)
}
  0x3c   :  { %s5882_s1 = scalar_lea.vmem %s46_s15, 65536  ;;  %p5887_p0 = scmp.lt.s32.totalorder %s46_s15, %s46_s15 }
  0x3d   :  { %p5883_p13 = scmp.ne.s32.totalorder %s46_s15, %s5882_s1  ;;  %p5888_p1 = scmp.lt.s32.totalorder %s5882_s1, %s5882_s1 }
  0x3f   :  { %p5889_p2 = por %p5888_p1, %p5887_p0 }
  0x41   :  { %p5890_p3 = pnand %p5889_p2, %p5883_p13 }
  0x43   :  { %5893 = shalt.err (!%p5890_p3)
}
  0x44   :  { %51 = dma.hbm_to_vmem [thread:$0]  %s6251_s3, 65536, %s46_s15, [#allocation5], %s5949_s4, %s5949_s4, %s5950_s27  }
  0x45   :  { %s5894_s29 = scalar_lea.hbm %s6253_s5, 8192 }
  0x46   :  { %p5895_p4 = scmp.ne.s32.totalorder %s6253_s5, %s5894_s29  ;;  %p5898_p5 = scmp.lt.u32.totalorder %s5894_s29, %s6253_s5 }
  0x48   :  { %p5900_p6 = pnand %p5898_p5, %p5895_p4 }
  0x4a   :  { %5903 = shalt.err (!%p5900_p6)
}
  0x4b   :  { %s5904_s11 = scalar_lea.vmem %s68_s17, 8192  ;;  %p5909_p8 = scmp.lt.s32.totalorder %s68_s17, %s68_s17 }
  0x4c   :  { %p5905_p7 = scmp.ne.s32.totalorder %s68_s17, %s5904_s11  ;;  %p5910_p9 = scmp.lt.s32.totalorder %s5904_s11, %s5904_s11 }
  0x4e   :  { %p5911_p10 = por %p5910_p9, %p5909_p8 }
  0x50   :  { %p5912_p11 = pnand %p5911_p10, %p5905_p7 }
  0x52   :  { %5915 = shalt.err (!%p5912_p11)
}
  0x53   :  { %s5953_s3 = smov 64   ;;  %s5954_s4 = smov 4  }
  0x54   :  { %73 = dma.hbm_to_vmem [thread:$0]  %s6253_s5, 8192, %s68_s17, [#allocation8], %s5953_s3, %s5953_s3, %s5954_s4  }
  0x55   :  { %s5955_s13 = smov [#allocation10]   ;;  %s5916_s18 = scalar_lea.hbm %s6254_s6, 16 }
  0x56   :  { %s80_s14 = sshll.u32 %s5955_s13, 4  ;;  %p5917_p12 = scmp.ne.s32.totalorder %s6254_s6, %s5916_s18  ;;  %s81_s14 = int_to_ptr.vmem [resolvable:$true] %s80_s14 }
  0x57   :  { %p5920_p13 = scmp.lt.u32.totalorder %s5916_s18, %s6254_s6 }
  0x59   :  { %p5922_p0 = pnand %p5920_p13, %p5917_p12 }
  0x5b   :  { %5925 = shalt.err (!%p5922_p0)
}
  0x5c   :  { %s5926_s2 = scalar_lea.vmem %s81_s14, 16  ;;  %s5930_s5 = scalar_lea.vmem %s81_s14, 32 }
  0x5d   :  { %p5927_p1 = scmp.ne.s32.totalorder %s81_s14, %s5926_s2  ;;  %p5931_p2 = scmp.lt.s32.totalorder %s81_s14, %s81_s14 }
  0x5e   :  { %p5932_p3 = scmp.lt.s32.totalorder %s5930_s5, %s5926_s2 }
  0x60   :  { %p5933_p4 = por %p5932_p3, %p5931_p2 }
  0x62   :  { %p5934_p5 = pnand %p5933_p4, %p5927_p1 }
  0x64   :  { %5937 = shalt.err (!%p5934_p5)
}
  0x65   :  { %83 = dma.hbm_to_vmem [thread:$0]  %s6254_s6, 16, %s81_s14, [#allocation11]  }
  0x66   :  { %5938 = dma.done.wait [#allocation3], 1024  }
  0x67   :  { %5939 = vsyncadd [#allocation3], 4294966272 }
  0x68   :  { %5940 = dma.done.wait [#allocation5], 65664  }
  0x69   :  { %5941 = vsyncadd [#allocation5], 4294901632 }
  0x6a   :  { %5942 = dma.done.wait [#allocation8], 8320  }
  0x6b   :  { %5943 = vsyncadd [#allocation8], 4294958976 }
  0x6c   :  { %5944 = dma.done.wait [#allocation11], 16  }
  0x6d   :  { %5945 = vsyncadd [#allocation11], 4294967280  ;;  %v5956_v0 = vmov 0   ;;  %v105_v1 = vld [vmem:[#allocation2] sm:$0xff]  ;;  %v5729_v5 = vld [vmem:[%s6248_s0] sm:$0xff]   ;;  %vm200_vm0 = vcmask 130048  }
  0x6e   :  { %236 = vmatprep.mubr.bf16.mxu0 %v5956_v0  ;;  %279 = vmatprep.mubr.bf16.mxu1 %v5956_v0  ;;  %v109_v2 = vld [vmem:[#allocation2 + $0x20] sm:$0xff]  ;;  %v106_v6 = vld [vmem:[#allocation2 + $0x8] sm:$0xff]  ;;  %v107_v8 = vld [vmem:[#allocation2 + $0x10] sm:$0xff] }
  0x6f   :  { %v4976_v3 = vcombine.high %v105_v1, %v109_v2  ;;  %v4975_v4 = vcombine.low %v105_v1, %v109_v2  ;;  %v110_v7 = vld [vmem:[#allocation2 + $0x28] sm:$0xff]  ;;  %v111_v9 = vld [vmem:[#allocation2 + $0x30] sm:$0xff]  ;;  %v108_v13 = vld [vmem:[#allocation2 + $0x18] sm:$0xff] }
  0x70   :  { %v4978_v10 = vcombine.high %v106_v6, %v110_v7  ;;  %v4977_v11 = vcombine.low %v106_v6, %v110_v7  ;;  %v4980_v12 = vcombine.high %v107_v8, %v111_v9  ;;  %v112_v14 = vld [vmem:[#allocation2 + $0x38] sm:$0xff]  ;;  %v416_v15 = vld [vmem:[#allocation6] sm:$0xff]  ;;  %v4979_v16 = vcombine.low %v107_v8, %v111_v9  ;;  %v417_v19 = vld [vmem:[#allocation6 + $0x8] sm:$0xff] }
  0x71   :  { %204 = vmatprep.subr.bf16.mxu0 %v4976_v3  ;;  %v4982_v17 = vcombine.high %v108_v13, %v112_v14  ;;  %v420_v18 = vld [vmem:[#allocation6 + $0x20] sm:$0xff]  ;;  %v421_v20 = vld [vmem:[#allocation6 + $0x28] sm:$0xff]  ;;  %v4981_v22 = vcombine.low %v108_v13, %v112_v14 }
  0x72   :  { %205 = vmatpush1.bf16.msra.mxu0 %v4975_v4  ;;  %247 = vmatprep.subr.bf16.mxu1 %v4978_v10  ;;  %v4988_v21 = vcombine.high %v416_v15, %v420_v18  ;;  %v4990_v23 = vcombine.high %v417_v19, %v421_v20  ;;  %v424_v24 = vld [vmem:[#allocation6 + $0x40] sm:$0xff]  ;;  %v4987_v26 = vcombine.low %v416_v15, %v420_v18  ;;  %v425_v27 = vld [vmem:[#allocation6 + $0x48] sm:$0xff] }
  0x73   :  { %290 = vmatprep.subr.bf16.mxu0 %v4980_v12  ;;  %248 = vmatpush1.bf16.msra.mxu1 %v4977_v11  ;;  %v428_v25 = vld [vmem:[#allocation6 + $0x60] sm:$0xff]  ;;  %v429_v28 = vld [vmem:[#allocation6 + $0x68] sm:$0xff]  ;;  %v4989_v30 = vcombine.low %v417_v19, %v421_v20 }
  0x74   :  { %333 = vmatprep.subr.bf16.mxu1 %v4982_v17  ;;  %v4996_v29 = vcombine.high %v424_v24, %v428_v25  ;;  %v432_v31 = vld [vmem:[#allocation6 + $0x80] sm:$0xff]  ;;  %v4998_v33 = vcombine.high %v425_v27, %v429_v28  ;;  %v4995_v34 = vcombine.low %v424_v24, %v428_v25  ;;  %v433_v35 = vld [vmem:[#allocation6 + $0x88] sm:$0xff]  ;;  %v4997_v38 = vcombine.low %v425_v27, %v429_v28 }
  0x75   :  { %4983 = vmatmul.mubr.msk.bf16.vlgmr.msra.gmra.mrb[0].mxu0 %vm200_vm0, %v5729_v5  ;;  %v436_v32 = vld [vmem:[#allocation6 + $0xa0] sm:$0xff]  ;;  %v437_v36 = vld [vmem:[#allocation6 + $0xa8] sm:$0xff] }
  0x76   :  { %291 = vmatpush1.bf16.msra.mxu0 %v4979_v16  ;;  %322 = vmatprep.mubr.bf16.mxu0 %v5956_v0  ;;  %v5004_v37 = vcombine.high %v432_v31, %v436_v32  ;;  %v440_v39 = vld [vmem:[#allocation6 + $0xc0] sm:$0xff]  ;;  %v5006_v41 = vcombine.high %v433_v35, %v437_v36  ;;  %v5003_v42 = vcombine.low %v432_v31, %v436_v32  ;;  %v441_v43 = vld [vmem:[#allocation6 + $0xc8] sm:$0xff] }
  0x77   :  { %4984 = vmatmul.mubr.msk.bf16.vlgmr.msra.gmra.mrb[0].mxu1 %vm200_vm0, %v5729_v5  ;;  %3530 = vmatprep.subr.bf16.mxu0 %v4988_v21  ;;  %v444_v40 = vld [vmem:[#allocation6 + $0xe0] sm:$0xff]  ;;  %v445_v44 = vld [vmem:[#allocation6 + $0xe8] sm:$0xff]  ;;  %v5005_v48 = vcombine.low %v433_v35, %v437_v36 }
  0x78   :  { %334 = vmatpush1.bf16.msra.mxu1 %v4981_v22  ;;  %365 = vmatprep.mubr.bf16.mxu1 %v5956_v0  ;;  %v448_v45 = vld [vmem:[#allocation6 + $0x100] sm:$0xff]  ;;  %v5012_v46 = vcombine.high %v440_v39, %v444_v40  ;;  %v449_v49 = vld [vmem:[#allocation6 + $0x108] sm:$0xff]  ;;  %v5014_v51 = vcombine.high %v441_v43, %v445_v44  ;;  %v5011_v52 = vcombine.low %v440_v39, %v444_v40 }
  0x79   :  { %3702 = vmatprep.subr.bf16.mxu1 %v4990_v23  ;;  %v452_v47 = vld [vmem:[#allocation6 + $0x120] sm:$0xff]  ;;  %v453_v50 = vld [vmem:[#allocation6 + $0x128] sm:$0xff]  ;;  %v5013_v56 = vcombine.low %v441_v43, %v445_v44 }
  0x7a   :  { %v456_v53 = vld [vmem:[#allocation6 + $0x140] sm:$0xff]  ;;  %v5020_v55 = vcombine.high %v448_v45, %v452_v47  ;;  %v457_v57 = vld [vmem:[#allocation6 + $0x148] sm:$0xff]  ;;  %v5022_v59 = vcombine.high %v449_v49, %v453_v50  ;;  %v5019_v60 = vcombine.low %v448_v45, %v452_v47  ;;  %v5021_v0 = vcombine.low %v449_v49, %v453_v50 }
  0x7b   :  { %v460_v54 = vld [vmem:[#allocation6 + $0x160] sm:$0xff]  ;;  %v461_v58 = vld [vmem:[#allocation6 + $0x168] sm:$0xff] }
  0x7c   :  { %v464_v61 = vld [vmem:[#allocation6 + $0x180] sm:$0xff]  ;;  %v5028_v63 = vcombine.high %v456_v53, %v460_v54  ;;  %v465_v1 = vld [vmem:[#allocation6 + $0x188] sm:$0xff]  ;;  %v5030_v3 = vcombine.high %v457_v57, %v461_v58  ;;  %v5027_v4 = vcombine.low %v456_v53, %v460_v54  ;;  %v5029_v8 = vcombine.low %v457_v57, %v461_v58 }
  0x7d   :  { %4985 = vmatmul.mubr.msk.bf16.vlgmr.msra.gmra.mrb[4].mxu0 %vm200_vm0, %v5729_v5  ;;  %v468_v62 = vld [vmem:[#allocation6 + $0x1a0] sm:$0xff]  ;;  %v469_v2 = vld [vmem:[#allocation6 + $0x1a8] sm:$0xff] }
  0x7e   :  { %3531 = vmatpush1.bf16.msra.mxu0 %v4987_v26  ;;  %v476_v6 = vld [vmem:[#allocation6 + $0x1e0] sm:$0xff]  ;;  %v5036_v7 = vcombine.high %v464_v61, %v468_v62  ;;  %v473_v9 = vld [vmem:[#allocation6 + $0x1c8] sm:$0xff]  ;;  %v5038_v11 = vcombine.high %v465_v1, %v469_v2  ;;  %v5035_v12 = vcombine.low %v464_v61, %v468_v62  ;;  %v5037_v16 = vcombine.low %v465_v1, %v469_v2 }
  0x7f   :  { %4986 = vmatmul.mubr.msk.bf16.vlgmr.msra.gmra.mrb[4].mxu1 %vm200_vm0, %v5729_v5  ;;  %3532 = vmatprep.subr.bf16.mxu0 %v4996_v29  ;;  %v472_v5 = vld [vmem:[#allocation6 + $0x1c0] sm:$0xff]  ;;  %v477_v10 = vld [vmem:[#allocation6 + $0x1e8] sm:$0xff] }
  0x80   :  { %3703 = vmatpush1.bf16.msra.mxu1 %v4989_v30  ;;  %v480_v13 = vld [vmem:[#allocation6 + $0x200] sm:$0xff]  ;;  %v5044_v15 = vcombine.high %v472_v5, %v476_v6  ;;  %v481_v17 = vld [vmem:[#allocation6 + $0x208] sm:$0xff]  ;;  %v5046_v19 = vcombine.high %v473_v9, %v477_v10  ;;  %v5043_v20 = vcombine.low %v472_v5, %v476_v6  ;;  %v5045_v24 = vcombine.low %v473_v9, %v477_v10 }
  0x81   :  { %3704 = vmatprep.subr.bf16.mxu1 %v4998_v33  ;;  %v484_v14 = vld [vmem:[#allocation6 + $0x220] sm:$0xff]  ;;  %v485_v18 = vld [vmem:[#allocation6 + $0x228] sm:$0xff] }
  0x82   :  { %3533 = vmatpush1.bf16.msra.mxu0 %v4995_v34  ;;  %v488_v21 = vld [vmem:[#allocation6 + $0x240] sm:$0xff]  ;;  %v5052_v23 = vcombine.high %v480_v13, %v484_v14  ;;  %v489_v25 = vld [vmem:[#allocation6 + $0x248] sm:$0xff]  ;;  %v5054_v27 = vcombine.high %v481_v17, %v485_v18  ;;  %v5051_v28 = vcombine.low %v480_v13, %v484_v14  ;;  %v5053_v32 = vcombine.low %v481_v17, %v485_v18 }
  0x83   :  { %3534 = vmatprep.subr.bf16.mxu0 %v5004_v37  ;;  %v492_v22 = vld [vmem:[#allocation6 + $0x260] sm:$0xff]  ;;  %v493_v26 = vld [vmem:[#allocation6 + $0x268] sm:$0xff] }
  0x84   :  { %3705 = vmatpush1.bf16.msra.mxu1 %v4997_v38  ;;  %v496_v29 = vld [vmem:[#allocation6 + $0x280] sm:$0xff]  ;;  %v5060_v31 = vcombine.high %v488_v21, %v492_v22  ;;  %v497_v33 = vld [vmem:[#allocation6 + $0x288] sm:$0xff]  ;;  %v5062_v35 = vcombine.high %v489_v25, %v493_v26  ;;  %v5059_v36 = vcombine.low %v488_v21, %v492_v22  ;;  %v5061_v40 = vcombine.low %v489_v25, %v493_v26 }
  0x85   :  { %3706 = vmatprep.subr.bf16.mxu1 %v5006_v41  ;;  %v500_v30 = vld [vmem:[#allocation6 + $0x2a0] sm:$0xff]  ;;  %v501_v34 = vld [vmem:[#allocation6 + $0x2a8] sm:$0xff]  ;;  %v115_v26 = vlaneseq }
  0x86   :  { %3535 = vmatpush1.bf16.msra.mxu0 %v5003_v42  ;;  %v504_v37 = vld [vmem:[#allocation6 + $0x2c0] sm:$0xff]  ;;  %v5068_v39 = vcombine.high %v496_v29, %v500_v30  ;;  %v505_v41 = vld [vmem:[#allocation6 + $0x2c8] sm:$0xff]  ;;  %v5070_v43 = vcombine.high %v497_v33, %v501_v34  ;;  %v5067_v44 = vcombine.low %v496_v29, %v500_v30  ;;  %v6096_v29 = vld [vmem:[#allocation4] sm:$0xff] }
  0x87   :  { %3536 = vmatprep.subr.bf16.mxu0 %v5012_v46  ;;  %v508_v38 = vld [vmem:[#allocation6 + $0x2e0] sm:$0xff]  ;;  %v509_v42 = vld [vmem:[#allocation6 + $0x2e8] sm:$0xff] }
  0x88   :  { %3707 = vmatpush1.bf16.msra.mxu1 %v5005_v48  ;;  %v512_v45 = vld [vmem:[#allocation6 + $0x300] sm:$0xff]  ;;  %v5076_v47 = vcombine.high %v504_v37, %v508_v38  ;;  %v5069_v48 = vcombine.low %v497_v33, %v501_v34  ;;  %v513_v49 = vld [vmem:[#allocation6 + $0x308] sm:$0xff]  ;;  %v5077_v54 = vcombine.low %v505_v41, %v509_v42 }
  0x89   :  { %3708 = vmatprep.subr.bf16.mxu1 %v5014_v51  ;;  %v516_v46 = vld [vmem:[#allocation6 + $0x320] sm:$0xff]  ;;  %v517_v50 = vld [vmem:[#allocation6 + $0x328] sm:$0xff]  ;;  %v5078_v51 = vcombine.high %v505_v41, %v509_v42 }
  0x8a   :  { %3537 = vmatpush1.bf16.msra.mxu0 %v5011_v52  ;;  %v5075_v52 = vcombine.low %v504_v37, %v508_v38  ;;  %v5084_v53 = vcombine.high %v512_v45, %v516_v46  ;;  %v5085_v57 = vcombine.low %v513_v49, %v517_v50  ;;  %v520_v58 = vld [vmem:[#allocation6 + $0x340] sm:$0xff]  ;;  %v525_v62 = vld [vmem:[#allocation6 + $0x368] sm:$0xff] }
  0x8b   :  { %3538 = vmatprep.subr.bf16.mxu0 %v5020_v55  ;;  %v5086_v55 = vcombine.high %v513_v49, %v517_v50  ;;  %v528_v2 = vld [vmem:[#allocation6 + $0x380] sm:$0xff]  ;;  %v533_v6 = vld [vmem:[#allocation6 + $0x3a8] sm:$0xff] }
  0x8c   :  { %3709 = vmatpush1.bf16.msra.mxu1 %v5013_v56  ;;  %v5083_v56 = vcombine.low %v512_v45, %v516_v46  ;;  %v536_v10 = vld [vmem:[#allocation6 + $0x3c0] sm:$0xff]  ;;  %v541_v14 = vld [vmem:[#allocation6 + $0x3e8] sm:$0xff] }
  0x8d   :  { %3710 = vmatprep.subr.bf16.mxu1 %v5022_v59  ;;  %v524_v59 = vld [vmem:[#allocation6 + $0x360] sm:$0xff]  ;;  %v6084_v22 = vld [vmem:[#allocation6 + $0x428] sm:$0xff] }
  0x8e   :  { %3539 = vmatpush1.bf16.msra.mxu0 %v5019_v60  ;;  %v521_v60 = vld [vmem:[#allocation6 + $0x348] sm:$0xff]  ;;  %v5092_v61 = vcombine.high %v520_v58, %v524_v59  ;;  %v6076_v18 = vld [vmem:[#allocation6 + $0x400] sm:$0xff] }
  0x8f   :  { %3540 = vmatprep.subr.bf16.mxu0 %v5028_v63  ;;  %v5091_v63 = vcombine.low %v520_v58, %v524_v59  ;;  %v5094_v1 = vcombine.high %v521_v60, %v525_v62 }
  0x90   :  { %3711 = vmatpush1.bf16.msra.mxu1 %v5021_v0  ;;  %v5093_v0 = vcombine.low %v521_v60, %v525_v62 }
  0x91   :  { %3712 = vmatprep.subr.bf16.mxu1 %v5030_v3  ;;  %v532_v3 = vld [vmem:[#allocation6 + $0x3a0] sm:$0xff] }
  0x92   :  { %3541 = vmatpush1.bf16.msra.mxu0 %v5027_v4  ;;  %v529_v4 = vld [vmem:[#allocation6 + $0x388] sm:$0xff]  ;;  %v5100_v5 = vcombine.high %v528_v2, %v532_v3 }
  0x93   :  { %3542 = vmatprep.subr.bf16.mxu0 %v5036_v7  ;;  %v5099_v7 = vcombine.low %v528_v2, %v532_v3  ;;  %v5102_v9 = vcombine.high %v529_v4, %v533_v6  ;;  %v556_v2 = vld [vmem:[#allocation6 + $0x460] sm:$0xff] }
  0x94   :  { %3713 = vmatpush1.bf16.msra.mxu1 %v5029_v8  ;;  %v5101_v8 = vcombine.low %v529_v4, %v533_v6 }
  0x95   :  { %3714 = vmatprep.subr.bf16.mxu1 %v5038_v11  ;;  %v540_v11 = vld [vmem:[#allocation6 + $0x3e0] sm:$0xff] }
  0x96   :  { %3543 = vmatpush1.bf16.msra.mxu0 %v5035_v12  ;;  %v537_v12 = vld [vmem:[#allocation6 + $0x3c8] sm:$0xff]  ;;  %v5108_v13 = vcombine.high %v536_v10, %v540_v11 }
  0x97   :  { %3544 = vmatprep.subr.bf16.mxu0 %v5044_v15  ;;  %v5107_v15 = vcombine.low %v536_v10, %v540_v11  ;;  %v5110_v17 = vcombine.high %v537_v12, %v541_v14 }
  0x98   :  { %3715 = vmatpush1.bf16.msra.mxu1 %v5037_v16  ;;  %v5109_v16 = vcombine.low %v537_v12, %v541_v14 }
  0x99   :  { %3716 = vmatprep.subr.bf16.mxu1 %v5046_v19  ;;  %v6078_v19 = vld [vmem:[#allocation6 + $0x420] sm:$0xff] }
  0x9a   :  { %3545 = vmatpush1.bf16.msra.mxu0 %v5043_v20  ;;  %v6080_v20 = vld [vmem:[#allocation6 + $0x408] sm:$0xff]  ;;  %v5116_v21 = vcombine.high %v6076_v18, %v6078_v19 }
  0x9b   :  { %3546 = vmatprep.subr.bf16.mxu0 %v5052_v23  ;;  %v5115_v23 = vcombine.low %v6076_v18, %v6078_v19  ;;  %v5118_v25 = vcombine.high %v6080_v20, %v6084_v22 }
  0x9c   :  { %3717 = vmatpush1.bf16.msra.mxu1 %v5045_v24  ;;  %v5117_v24 = vcombine.low %v6080_v20, %v6084_v22 }
  0x9d   :  { %3718 = vmatprep.subr.bf16.mxu1 %v5054_v27  ;;  %v6093_v27 = vshrl.u32 %v115_v26, 7 }
  0x9e   :  { %3547 = vmatpush1.bf16.msra.mxu0 %v5051_v28 }
  0x9f   :  { %3548 = vmatprep.subr.bf16.mxu0 %v5060_v31  ;;  %v117_v28 = vsub.s32 0, %v6093_v27  ;;  %v121_v30 = vsub.s32 1, %v6093_v27  ;;  %v125_v31 = vsub.s32 2, %v6093_v27 }
  0xa0   :  { %3719 = vmatpush1.bf16.msra.mxu1 %v5053_v32  ;;  %v129_v32 = vsub.s32 3, %v6093_v27 }
  0xa1   :  { %3720 = vmatprep.subr.bf16.mxu1 %v5062_v35  ;;  %v118_v33 = vrot.slane %v6096_v29, %v117_v28  ;;  %v122_v34 = vrot.slane %v6096_v29, %v121_v30  ;;  %v126_v35 = vrot.slane %v6096_v29, %v125_v31 }
  0xa2   :  { %3549 = vmatpush1.bf16.msra.mxu0 %v5059_v36  ;;  %v130_v37 = vrot.slane %v6096_v29, %v129_v32 }
  0xa3   :  { %3550 = vmatprep.subr.bf16.mxu0 %v5068_v39 }
  0xa4   :  { %3721 = vmatpush1.bf16.msra.mxu1 %v5061_v40  ;;  %v133_v40 = vsub.s32 4, %v6093_v27 }
  0xa5   :  { %3722 = vmatprep.subr.bf16.mxu1 %v5070_v43 }
  0xa6   :  { %3551 = vmatpush1.bf16.msra.mxu0 %v5067_v44  ;;  %v137_v44 = vsub.s32 5, %v6093_v27  ;;  %v134_v58 = vrot.slane %v6096_v29, %v133_v40 }
  0xa7   :  { %3552 = vmatprep.subr.bf16.mxu0 %v5076_v47 }
  0xa8   :  { %3723 = vmatpush1.bf16.msra.mxu1 %v5069_v48  ;;  %v138_v62 = vrot.slane %v6096_v29, %v137_v44 }
  0xa9   :  { %3724 = vmatprep.subr.bf16.mxu1 %v5078_v51 }
  0xaa   :  { %3553 = vmatpush1.bf16.msra.mxu0 %v5075_v52 }
  0xab   :  { %3554 = vmatprep.subr.bf16.mxu0 %v5084_v53 }
  0xac   :  { %3725 = vmatpush1.bf16.msra.mxu1 %v5077_v54 }
  0xad   :  { %3726 = vmatprep.subr.bf16.mxu1 %v5086_v55 }
  0xae   :  { %3555 = vmatpush1.bf16.msra.mxu0 %v5083_v56 }
  0xaf   :  { %3556 = vmatprep.subr.bf16.mxu0 %v5092_v61 }
  0xb0   :  { %3727 = vmatpush1.bf16.msra.mxu1 %v5085_v57 }
  0xb1   :  { %3728 = vmatprep.subr.bf16.mxu1 %v5094_v1  ;;  %v552_v1 = vld [vmem:[#allocation6 + $0x440] sm:$0xff] }
  0xb2   :  { %3557 = vmatpush1.bf16.msra.mxu0 %v5091_v63 }
  0xb3   :  { %3558 = vmatprep.subr.bf16.mxu0 %v5100_v5 }
  0xb4   :  { %3729 = vmatpush1.bf16.msra.mxu1 %v5093_v0 }
  0xb5   :  { %3730 = vmatprep.subr.bf16.mxu1 %v5102_v9 }
  0xb6   :  { %3559 = vmatpush1.bf16.msra.mxu0 %v5099_v7  ;;  %v553_v7 = vld [vmem:[#allocation6 + $0x448] sm:$0xff] }
  0xb7   :  { %3560 = vmatprep.subr.bf16.mxu0 %v5108_v13 }
  0xb8   :  { %3731 = vmatpush1.bf16.msra.mxu1 %v5101_v8  ;;  %v557_v8 = vld [vmem:[#allocation6 + $0x468] sm:$0xff] }
  0xb9   :  { %3732 = vmatprep.subr.bf16.mxu1 %v5110_v17  ;;  %v5124_v17 = vcombine.high %v552_v1, %v556_v2 }
  0xba   :  { %3561 = vmatpush1.bf16.msra.mxu0 %v5107_v15 }
  0xbb   :  { %3573 = vmatprep.subr.bf16.mxu0 %v5116_v21 }
  0xbc   :  { %3733 = vmatpush1.bf16.msra.mxu1 %v5109_v16 }
  0xbd   :  { %3745 = vmatprep.subr.bf16.mxu1 %v5118_v25 }
 0x148   :  { %v238_v36 = vpop.f32.mrb[0].mxu0 }
 0x149   :  { %v239_v38 = vadd.f32 %v238_v36, %v118_v33  ;;  %v240_v39 = vpop.f32.mrb[1].mxu0 }
 0x14a   :  { %v241_v41 = vadd.f32 %v240_v39, %v122_v34  ;;  %v242_v42 = vpop.f32.mrb[2].mxu0  ;;  %v281_v43 = vpop.f32.mrb[0].mxu1 }
 0x14b   :  { %v376_v45 = vmul.f32 0.1, %v239_v38  ;;  %v243_v46 = vadd.f32 %v242_v42, %v118_v33  ;;  %v244_v47 = vpop.f32.mrb[3].mxu0  ;;  %v282_v48 = vadd.f32 %v281_v43, %v126_v35  ;;  %v283_v49 = vpop.f32.mrb[1].mxu1  ;;  %v561_v42 = vld [vmem:[#allocation6 + $0x488] sm:$0xff] }
 0x14c   :  { %v377_v50 = vmul.f32 0.1, %v241_v41  ;;  %v245_v51 = vadd.f32 %v244_v47, %v122_v34  ;;  %v284_v52 = vadd.f32 %v283_v49, %v130_v37  ;;  %v285_v53 = vpop.f32.mrb[2].mxu1  ;;  %v5126_v34 = vcombine.high %v553_v7, %v557_v8  ;;  %v565_v43 = vld [vmem:[#allocation6 + $0x4a8] sm:$0xff] }
 0x14d   :  { %v384_v54 = vmul.f32 0.1, %v243_v46  ;;  %v378_v55 = vmul.f32 0.1, %v282_v48  ;;  %v286_v56 = vadd.f32 %v285_v53, %v126_v35  ;;  %v287_v57 = vpop.f32.mrb[3].mxu1  ;;  %v392_v63 = vmax.f32 %v239_v38, %v376_v45  ;;  %v560_v35 = vld [vmem:[#allocation6 + $0x480] sm:$0xff] }
 0x14e   :  { %v385_v59 = vmul.f32 0.1, %v245_v51  ;;  %v379_v60 = vmul.f32 0.1, %v284_v52  ;;  %v288_v61 = vadd.f32 %v287_v57, %v130_v37  ;;  %v393_v5 = vmax.f32 %v241_v41, %v377_v50  ;;  %v564_v41 = vld [vmem:[#allocation6 + $0x4a0] sm:$0xff] }
 0x14f   :  { %v400_v0 = vmax.f32 %v243_v46, %v384_v54  ;;  %v394_v3 = vmax.f32 %v282_v48, %v378_v55  ;;  %v386_v4 = vmul.f32 0.1, %v286_v56  ;;  %v5123_v50 = vcombine.low %v552_v1, %v556_v2  ;;  %v581_v1 = vld [vmem:[#allocation6 + $0x528] sm:$0xff] }
 0x150   :  { %v401_v6 = vmax.f32 %v245_v51, %v385_v59  ;;  %v395_v9 = vmax.f32 %v284_v52, %v379_v60  ;;  %v387_v10 = vmul.f32 0.1, %v288_v61  ;;  %v324_v11 = vpop.f32.mrb[4].mxu0  ;;  %v5125_v51 = vcombine.low %v553_v7, %v557_v8  ;;  %v569_v59 = vld [vmem:[#allocation6 + $0x4c8] sm:$0xff]  ;;  %v588_v7 = vld [vmem:[#allocation6 + $0x560] sm:$0xff] }
 0x151   :  { %v6121_v12 = vpack.c.bf16 %v400_v0, %v392_v63  ;;  %v402_v13 = vmax.f32 %v286_v56, %v386_v4  ;;  %v325_v14 = vadd.f32 %v324_v11, %v134_v58  ;;  %v326_v15 = vpop.f32.mrb[5].mxu0  ;;  %v5132_v54 = vcombine.high %v560_v35, %v564_v41  ;;  %v568_v56 = vld [vmem:[#allocation6 + $0x4c0] sm:$0xff]  ;;  %v573_v60 = vld [vmem:[#allocation6 + $0x4e8] sm:$0xff] }
 0x152   :  { %v6123_v16 = vpack.c.bf16 %v401_v6, %v393_v5  ;;  %v403_v21 = vmax.f32 %v288_v61, %v387_v10  ;;  %v327_v25 = vadd.f32 %v326_v15, %v138_v62  ;;  %v328_v33 = vpop.f32.mrb[6].mxu0  ;;  %v5134_v55 = vcombine.high %v561_v42, %v565_v43  ;;  %v580_v63 = vld [vmem:[#allocation6 + $0x520] sm:$0xff]  ;;  %v577_v0 = vld [vmem:[#allocation6 + $0x508] sm:$0xff] }
 0x153   :  { %v6125_v36 = vpack.c.bf16 %v402_v13, %v394_v3  ;;  %v380_v37 = vmul.f32 0.1, %v325_v14  ;;  %v329_v38 = vadd.f32 %v328_v33, %v134_v58  ;;  %v330_v39 = vpop.f32.mrb[7].mxu0  ;;  %v572_v58 = vld [vmem:[#allocation6 + $0x4e0] sm:$0xff]  ;;  %v5131_v20 = vcombine.low %v560_v35, %v564_v41  ;;  %v585_v8 = vld [vmem:[#allocation6 + $0x548] sm:$0xff] }
 0x154   :  { %3562 = vmatprep.mubr.bf16.mxu0 %v6123_v16  ;;  %3734 = vmatprep.mubr.bf16.mxu1 %v6123_v16  ;;  %v6129_v45 = vpack.c.bf16 %v403_v21, %v395_v9  ;;  %v381_v46 = vmul.f32 0.1, %v327_v25  ;;  %v331_v47 = vadd.f32 %v330_v39, %v138_v62  ;;  %v5133_v22 = vcombine.low %v561_v42, %v565_v43  ;;  %v576_v62 = vld [vmem:[#allocation6 + $0x500] sm:$0xff]  ;;  %v589_v9 = vld [vmem:[#allocation6 + $0x568] sm:$0xff]  ;;  %v367_v21 = vpop.f32.mrb[4].mxu1 }
 0x155   :  { %3563 = vmatmul.mubr.bf16.vlgmr.msra.gmra.mrb[8].mxu0 %v6121_v12  ;;  %3735 = vmatmul.mubr.bf16.vlgmr.msra.gmra.mrb[8].mxu1 %v6121_v12  ;;  %v396_v48 = vmax.f32 %v325_v14, %v380_v37  ;;  %v388_v49 = vmul.f32 0.1, %v329_v38  ;;  %v5142_v61 = vcombine.high %v569_v59, %v573_v60  ;;  %v5139_v2 = vcombine.low %v568_v56, %v572_v58  ;;  %v584_v6 = vld [vmem:[#allocation6 + $0x540] sm:$0xff]  ;;  %v593_v33 = vld [vmem:[#allocation6 + $0x588] sm:$0xff]  ;;  %v369_v41 = vpop.f32.mrb[5].mxu1 }
 0x156   :  { %3574 = vmatpush1.bf16.msra.mxu0 %v5115_v23  ;;  %3746 = vmatpush1.bf16.msra.mxu1 %v5117_v24  ;;  %v397_v52 = vmax.f32 %v327_v25, %v381_v46  ;;  %v389_v53 = vmul.f32 0.1, %v331_v47  ;;  %v5140_v24 = vcombine.high %v568_v56, %v572_v58  ;;  %v5141_v3 = vcombine.low %v569_v59, %v573_v60  ;;  %v592_v15 = vld [vmem:[#allocation6 + $0x580] sm:$0xff] }
 0x157   :  { %3575 = vmatprep.subr.bf16.mxu0 %v5124_v17  ;;  %3747 = vmatprep.subr.bf16.mxu1 %v5126_v34  ;;  %v404_v57 = vmax.f32 %v329_v38, %v388_v49  ;;  %v5148_v4 = vcombine.high %v576_v62, %v580_v63  ;;  %v5150_v5 = vcombine.high %v577_v0, %v581_v1  ;;  %v141_v17 = vsub.s32 6, %v6093_v27  ;;  %v596_v25 = vld [vmem:[#allocation6 + $0x5a0] sm:$0xff]  ;;  %v597_v34 = vld [vmem:[#allocation6 + $0x5a8] sm:$0xff] }
 0x158   :  { %3605 = vmatprep.mubr.bf16.mxu0 %v6129_v45  ;;  %3777 = vmatprep.mubr.bf16.mxu1 %v6129_v45  ;;  %v405_v18 = vmax.f32 %v331_v47, %v389_v53  ;;  %v5147_v10 = vcombine.low %v576_v62, %v580_v63  ;;  %v5149_v11 = vcombine.low %v577_v0, %v581_v1  ;;  %v145_v39 = vsub.s32 7, %v6093_v27  ;;  %v600_v46 = vld [vmem:[#allocation6 + $0x5c0] sm:$0xff]  ;;  %v609_v62 = vld [vmem:[#allocation6 + $0x608] sm:$0xff] }
 0x159   :  { %v6141_v19 = vpack.c.bf16 %v404_v57, %v396_v48  ;;  %v5156_v13 = vcombine.high %v584_v6, %v588_v7  ;;  %v5158_v14 = vcombine.high %v585_v8, %v589_v9  ;;  %v142_v35 = vrot.slane %v6096_v29, %v141_v17  ;;  %v371_v48 = vpop.f32.mrb[6].mxu1  ;;  %v604_v49 = vld [vmem:[#allocation6 + $0x5e0] sm:$0xff]  ;;  %v613_v63 = vld [vmem:[#allocation6 + $0x628] sm:$0xff] }
 0x15a   :  { %3576 = vmatpush1.bf16.msra.mxu0 %v5123_v50  ;;  %3748 = vmatpush1.bf16.msra.mxu1 %v5125_v51  ;;  %v6143_v23 = vpack.c.bf16 %v405_v18, %v397_v52  ;;  %v5155_v37 = vcombine.low %v584_v6, %v588_v7  ;;  %v5157_v38 = vcombine.low %v585_v8, %v589_v9  ;;  %v601_v50 = vld [vmem:[#allocation6 + $0x5c8] sm:$0xff]  ;;  %v616_v9 = vld [vmem:[#allocation6 + $0x640] sm:$0xff] }
 0x15b   :  { %3577 = vmatprep.subr.bf16.mxu0 %v5132_v54  ;;  %3749 = vmatprep.subr.bf16.mxu1 %v5134_v55  ;;  %v5164_v42 = vcombine.high %v592_v15, %v596_v25  ;;  %v5166_v43 = vcombine.high %v593_v33, %v597_v34  ;;  %v368_v47 = vadd.f32 %v367_v21, %v142_v35  ;;  %v605_v51 = vld [vmem:[#allocation6 + $0x5e8] sm:$0xff]  ;;  %v373_v54 = vpop.f32.mrb[7].mxu1 }
 0x15c   :  { %v146_v52 = vrot.slane %v6096_v29, %v145_v39  ;;  %v372_v53 = vadd.f32 %v371_v48, %v142_v35  ;;  %v5163_v55 = vcombine.low %v592_v15, %v596_v25  ;;  %v5165_v57 = vcombine.low %v593_v33, %v597_v34  ;;  %v624_v34 = vld [vmem:[#allocation6 + $0x680] sm:$0xff] }
 0x15d   :  { %v382_v56 = vmul.f32 0.1, %v368_v47  ;;  %v5172_v18 = vcombine.high %v600_v46, %v604_v49  ;;  %v5182_v8 = vcombine.high %v609_v62, %v613_v63  ;;  %v5181_v21 = vcombine.low %v609_v62, %v613_v63  ;;  %v628_v35 = vld [vmem:[#allocation6 + $0x6a0] sm:$0xff]  ;;  %v653_v62 = vld [vmem:[#allocation6 + $0x768] sm:$0xff] }
 0x15e   :  { %3578 = vmatpush1.bf16.msra.mxu0 %v5131_v20  ;;  %3750 = vmatpush1.bf16.msra.mxu1 %v5133_v22  ;;  %v370_v58 = vadd.f32 %v369_v41, %v146_v52  ;;  %v390_v59 = vmul.f32 0.1, %v372_v53  ;;  %v374_v60 = vadd.f32 %v373_v54, %v146_v52  ;;  %v5174_v20 = vcombine.high %v601_v50, %v605_v51  ;;  %v608_v22 = vld [vmem:[#allocation6 + $0x600] sm:$0xff] }
 0x15f   :  { %3579 = vmatprep.subr.bf16.mxu0 %v5140_v24  ;;  %3751 = vmatprep.subr.bf16.mxu1 %v5142_v61  ;;  %v612_v24 = vld [vmem:[#allocation6 + $0x620] sm:$0xff]  ;;  %v398_v61 = vmax.f32 %v368_v47, %v382_v56 }
 0x160   :  { %v383_v29 = vmul.f32 0.1, %v370_v58  ;;  %v406_v0 = vmax.f32 %v372_v53, %v390_v59  ;;  %v391_v1 = vmul.f32 0.1, %v374_v60  ;;  %v5180_v7 = vcombine.high %v608_v22, %v612_v24  ;;  %v632_v47 = vld [vmem:[#allocation6 + $0x6c0] sm:$0xff] }
 0x161   :  { %v5179_v15 = vcombine.low %v608_v22, %v612_v24  ;;  %v636_v48 = vld [vmem:[#allocation6 + $0x6e0] sm:$0xff] }
 0x162   :  { %3580 = vmatpush1.bf16.msra.mxu0 %v5139_v2  ;;  %3752 = vmatpush1.bf16.msra.mxu1 %v5141_v3  ;;  %v5171_v2 = vcombine.low %v600_v46, %v604_v49  ;;  %v5173_v3 = vcombine.low %v601_v50, %v605_v51  ;;  %v407_v6 = vmax.f32 %v374_v60, %v391_v1  ;;  %v633_v49 = vld [vmem:[#allocation6 + $0x6c8] sm:$0xff]  ;;  %v644_v56 = vld [vmem:[#allocation6 + $0x720] sm:$0xff] }
 0x163   :  { %3581 = vmatprep.subr.bf16.mxu0 %v5148_v4  ;;  %3753 = vmatprep.subr.bf16.mxu1 %v5150_v5  ;;  %v399_v4 = vmax.f32 %v370_v58, %v383_v29  ;;  %v6153_v5 = vpack.c.bf16 %v406_v0, %v398_v61  ;;  %v637_v50 = vld [vmem:[#allocation6 + $0x6e8] sm:$0xff]  ;;  %v5195_v51 = vcombine.low %v624_v34, %v628_v35  ;;  %v648_v22 = vld [vmem:[#allocation6 + $0x740] sm:$0xff] }
 0x164   :  { %v5204_v53 = vcombine.high %v632_v47, %v636_v48  ;;  %v5206_v54 = vcombine.high %v633_v49, %v637_v50  ;;  %v645_v58 = vld [vmem:[#allocation6 + $0x728] sm:$0xff]  ;;  %v5203_v59 = vcombine.low %v632_v47, %v636_v48  ;;  %v5205_v60 = vcombine.low %v633_v49, %v637_v50  ;;  %v652_v24 = vld [vmem:[#allocation6 + $0x760] sm:$0xff] }
 0x165   :  { %v649_v61 = vld [vmem:[#allocation6 + $0x748] sm:$0xff]  ;;  %v5220_v0 = vcombine.high %v648_v22, %v652_v24  ;;  %v680_v49 = vld [vmem:[#allocation6 + $0x840] sm:$0xff] }
 0x166   :  { %3582 = vmatpush1.bf16.msra.mxu0 %v5147_v10  ;;  %3754 = vmatpush1.bf16.msra.mxu1 %v5149_v11  ;;  %v620_v10 = vld [vmem:[#allocation6 + $0x660] sm:$0xff]  ;;  %v617_v11 = vld [vmem:[#allocation6 + $0x648] sm:$0xff]  ;;  %v5222_v1 = vcombine.high %v649_v61, %v653_v62 }
 0x167   :  { %3583 = vmatprep.subr.bf16.mxu0 %v5156_v13  ;;  %3755 = vmatprep.subr.bf16.mxu1 %v5158_v14  ;;  %v621_v13 = vld [vmem:[#allocation6 + $0x668] sm:$0xff]  ;;  %v6155_v14 = vpack.c.bf16 %v407_v6, %v399_v4  ;;  %v5188_v25 = vcombine.high %v616_v9, %v620_v10  ;;  %v5187_v41 = vcombine.low %v616_v9, %v620_v10  ;;  %v684_v50 = vld [vmem:[#allocation6 + $0x860] sm:$0xff] }
 0x168   :  { %v5190_v33 = vcombine.high %v617_v11, %v621_v13  ;;  %v657_v4 = vld [vmem:[#allocation6 + $0x788] sm:$0xff] }
 0x169   :  { %v661_v6 = vld [vmem:[#allocation6 + $0x7a8] sm:$0xff] }
 0x16a   :  { %3584 = vmatpush1.bf16.msra.mxu0 %v5155_v37  ;;  %3756 = vmatpush1.bf16.msra.mxu1 %v5157_v38  ;;  %v625_v37 = vld [vmem:[#allocation6 + $0x688] sm:$0xff]  ;;  %v5230_v10 = vcombine.high %v657_v4, %v661_v6 }
 0x16b   :  { %3585 = vmatprep.subr.bf16.mxu0 %v5164_v42  ;;  %3757 = vmatprep.subr.bf16.mxu1 %v5166_v43  ;;  %v629_v38 = vld [vmem:[#allocation6 + $0x6a8] sm:$0xff]  ;;  %v5189_v42 = vcombine.low %v617_v11, %v621_v13  ;;  %v5196_v43 = vcombine.high %v624_v34, %v628_v35  ;;  %v664_v11 = vld [vmem:[#allocation6 + $0x7c0] sm:$0xff] }
 0x16c   :  { %v5198_v46 = vcombine.high %v625_v37, %v629_v38  ;;  %v5197_v52 = vcombine.low %v625_v37, %v629_v38  ;;  %v668_v13 = vld [vmem:[#allocation6 + $0x7e0] sm:$0xff] }
 0x16d   :  { %v5236_v34 = vcombine.high %v664_v11, %v668_v13  ;;  %v672_v37 = vld [vmem:[#allocation6 + $0x800] sm:$0xff] }
 0x16e   :  { %3586 = vmatpush1.bf16.msra.mxu0 %v5163_v55  ;;  %3758 = vmatpush1.bf16.msra.mxu1 %v5165_v57  ;;  %v640_v55 = vld [vmem:[#allocation6 + $0x700] sm:$0xff]  ;;  %v641_v57 = vld [vmem:[#allocation6 + $0x708] sm:$0xff] }
 0x16f   :  { %3587 = vmatprep.subr.bf16.mxu0 %v5172_v18  ;;  %3759 = vmatprep.subr.bf16.mxu1 %v5174_v20  ;;  %v5212_v18 = vcombine.high %v640_v55, %v644_v56  ;;  %v5214_v20 = vcombine.high %v641_v57, %v645_v58  ;;  %v5211_v63 = vcombine.low %v640_v55, %v644_v56  ;;  %v676_v38 = vld [vmem:[#allocation6 + $0x820] sm:$0xff] }
 0x170   :  { %v5213_v29 = vcombine.low %v641_v57, %v645_v58  ;;  %v5244_v47 = vcombine.high %v672_v37, %v676_v38  ;;  %v5252_v55 = vcombine.high %v680_v49, %v684_v50  ;;  %v688_v57 = vld [vmem:[#allocation6 + $0x880] sm:$0xff] }
 0x171   :  { %v692_v58 = vld [vmem:[#allocation6 + $0x8a0] sm:$0xff] }
 0x172   :  { %3588 = vmatpush1.bf16.msra.mxu0 %v5171_v2  ;;  %3760 = vmatpush1.bf16.msra.mxu1 %v5173_v3  ;;  %v656_v2 = vld [vmem:[#allocation6 + $0x780] sm:$0xff] }
 0x173   :  { %3589 = vmatprep.subr.bf16.mxu0 %v5180_v7  ;;  %3761 = vmatprep.subr.bf16.mxu1 %v5182_v8  ;;  %v660_v3 = vld [vmem:[#allocation6 + $0x7a0] sm:$0xff]  ;;  %v5219_v7 = vcombine.low %v648_v22, %v652_v24  ;;  %v5221_v8 = vcombine.low %v649_v61, %v653_v62  ;;  %v5260_v22 = vcombine.high %v688_v57, %v692_v58 }
 0x174   :  { %v5228_v9 = vcombine.high %v656_v2, %v660_v3  ;;  %v696_v61 = vld [vmem:[#allocation6 + $0x8c0] sm:$0xff] }
 0x175   :  { %v700_v62 = vld [vmem:[#allocation6 + $0x8e0] sm:$0xff] }
 0x176   :  { %3590 = vmatpush1.bf16.msra.mxu0 %v5179_v15  ;;  %3762 = vmatpush1.bf16.msra.mxu1 %v5181_v21  ;;  %v665_v15 = vld [vmem:[#allocation6 + $0x7c8] sm:$0xff] }
 0x177   :  { %3591 = vmatprep.subr.bf16.mxu0 %v5188_v25  ;;  %3763 = vmatprep.subr.bf16.mxu1 %v5190_v33  ;;  %v669_v21 = vld [vmem:[#allocation6 + $0x7e8] sm:$0xff]  ;;  %v5227_v25 = vcombine.low %v656_v2, %v660_v3  ;;  %v5229_v33 = vcombine.low %v657_v4, %v661_v6  ;;  %v5268_v2 = vcombine.high %v696_v61, %v700_v62  ;;  %v704_v4 = vld [vmem:[#allocation6 + $0x900] sm:$0xff] }
 0x178   :  { %v5238_v35 = vcombine.high %v665_v15, %v669_v21  ;;  %v708_v6 = vld [vmem:[#allocation6 + $0x920] sm:$0xff] }
 0x17a   :  { %3592 = vmatpush1.bf16.msra.mxu0 %v5187_v41  ;;  %3764 = vmatpush1.bf16.msra.mxu1 %v5189_v42  ;;  %v673_v41 = vld [vmem:[#allocation6 + $0x808] sm:$0xff] }
 0x17b   :  { %3593 = vmatprep.subr.bf16.mxu0 %v5196_v43  ;;  %3765 = vmatprep.subr.bf16.mxu1 %v5198_v46  ;;  %v677_v42 = vld [vmem:[#allocation6 + $0x828] sm:$0xff]  ;;  %v5235_v43 = vcombine.low %v664_v11, %v668_v13  ;;  %v5237_v46 = vcombine.low %v665_v15, %v669_v21  ;;  %v5276_v11 = vcombine.high %v704_v4, %v708_v6  ;;  %v712_v15 = vld [vmem:[#allocation6 + $0x940] sm:$0xff] }
 0x17c   :  { %v5246_v48 = vcombine.high %v673_v41, %v677_v42  ;;  %v716_v21 = vld [vmem:[#allocation6 + $0x960] sm:$0xff] }
 0x17e   :  { %3594 = vmatpush1.bf16.msra.mxu0 %v5195_v51  ;;  %3766 = vmatpush1.bf16.msra.mxu1 %v5197_v52  ;;  %v681_v51 = vld [vmem:[#allocation6 + $0x848] sm:$0xff] }
 0x17f   :  { %3595 = vmatprep.subr.bf16.mxu0 %v5204_v53  ;;  %3767 = vmatprep.subr.bf16.mxu1 %v5206_v54  ;;  %v685_v52 = vld [vmem:[#allocation6 + $0x868] sm:$0xff]  ;;  %v5243_v53 = vcombine.low %v672_v37, %v676_v38  ;;  %v5245_v54 = vcombine.low %v673_v41, %v677_v42  ;;  %v5284_v37 = vcombine.high %v712_v15, %v716_v21  ;;  %v720_v41 = vld [vmem:[#allocation6 + $0x980] sm:$0xff] }
 0x180   :  { %v5254_v56 = vcombine.high %v681_v51, %v685_v52  ;;  %v724_v42 = vld [vmem:[#allocation6 + $0x9a0] sm:$0xff] }
 0x182   :  { %3596 = vmatpush1.bf16.msra.mxu0 %v5203_v59  ;;  %3768 = vmatpush1.bf16.msra.mxu1 %v5205_v60  ;;  %v689_v59 = vld [vmem:[#allocation6 + $0x888] sm:$0xff] }
 0x183   :  { %3597 = vmatprep.subr.bf16.mxu0 %v5212_v18  ;;  %3769 = vmatprep.subr.bf16.mxu1 %v5214_v20  ;;  %v693_v60 = vld [vmem:[#allocation6 + $0x8a8] sm:$0xff]  ;;  %v5251_v18 = vcombine.low %v680_v49, %v684_v50  ;;  %v5253_v20 = vcombine.low %v681_v51, %v685_v52  ;;  %v5292_v49 = vcombine.high %v720_v41, %v724_v42  ;;  %v728_v51 = vld [vmem:[#allocation6 + $0x9c0] sm:$0xff] }
 0x184   :  { %v5262_v24 = vcombine.high %v689_v59, %v693_v60  ;;  %v732_v52 = vld [vmem:[#allocation6 + $0x9e0] sm:$0xff] }
 0x186   :  { %3598 = vmatpush1.bf16.msra.mxu0 %v5211_v63  ;;  %3770 = vmatpush1.bf16.msra.mxu1 %v5213_v29  ;;  %v697_v63 = vld [vmem:[#allocation6 + $0x8c8] sm:$0xff] }
 0x187   :  { %3599 = vmatprep.subr.bf16.mxu0 %v5220_v0  ;;  %3771 = vmatprep.subr.bf16.mxu1 %v5222_v1  ;;  %v701_v29 = vld [vmem:[#allocation6 + $0x8e8] sm:$0xff]  ;;  %v5259_v0 = vcombine.low %v688_v57, %v692_v58  ;;  %v5261_v1 = vcombine.low %v689_v59, %v693_v60  ;;  %v5300_v57 = vcombine.high %v728_v51, %v732_v52  ;;  %v736_v59 = vld [vmem:[#allocation6 + $0xa00] sm:$0xff] }
 0x188   :  { %v5270_v3 = vcombine.high %v697_v63, %v701_v29  ;;  %v740_v60 = vld [vmem:[#allocation6 + $0xa20] sm:$0xff] }
 0x18a   :  { %3600 = vmatpush1.bf16.msra.mxu0 %v5219_v7  ;;  %3772 = vmatpush1.bf16.msra.mxu1 %v5221_v8  ;;  %v705_v7 = vld [vmem:[#allocation6 + $0x908] sm:$0xff] }
 0x18b   :  { %3601 = vmatprep.subr.bf16.mxu0 %v5228_v9  ;;  %3773 = vmatprep.subr.bf16.mxu1 %v5230_v10  ;;  %v709_v8 = vld [vmem:[#allocation6 + $0x928] sm:$0xff]  ;;  %v5267_v9 = vcombine.low %v696_v61, %v700_v62  ;;  %v5269_v10 = vcombine.low %v697_v63, %v701_v29  ;;  %v5308_v61 = vcombine.high %v736_v59, %v740_v60  ;;  %v744_v63 = vld [vmem:[#allocation6 + $0xa40] sm:$0xff] }
 0x18c   :  { %v5278_v13 = vcombine.high %v705_v7, %v709_v8  ;;  %v748_v29 = vld [vmem:[#allocation6 + $0xa60] sm:$0xff] }
 0x18e   :  { %3602 = vmatpush1.bf16.msra.mxu0 %v5227_v25  ;;  %3774 = vmatpush1.bf16.msra.mxu1 %v5229_v33  ;;  %v713_v25 = vld [vmem:[#allocation6 + $0x948] sm:$0xff] }
 0x18f   :  { %3603 = vmatprep.subr.bf16.mxu0 %v5236_v34  ;;  %3775 = vmatprep.subr.bf16.mxu1 %v5238_v35  ;;  %v717_v33 = vld [vmem:[#allocation6 + $0x968] sm:$0xff]  ;;  %v5275_v34 = vcombine.low %v704_v4, %v708_v6  ;;  %v5277_v35 = vcombine.low %v705_v7, %v709_v8  ;;  %v5316_v4 = vcombine.high %v744_v63, %v748_v29  ;;  %v752_v7 = vld [vmem:[#allocation6 + $0xa80] sm:$0xff] }
 0x190   :  { %v5286_v38 = vcombine.high %v713_v25, %v717_v33  ;;  %v756_v8 = vld [vmem:[#allocation6 + $0xaa0] sm:$0xff] }
 0x192   :  { %3604 = vmatpush1.bf16.msra.mxu0 %v5235_v43  ;;  %3776 = vmatpush1.bf16.msra.mxu1 %v5237_v46  ;;  %v721_v43 = vld [vmem:[#allocation6 + $0x988] sm:$0xff] }
 0x193   :  { %3616 = vmatprep.subr.bf16.mxu0 %v5244_v47  ;;  %3788 = vmatprep.subr.bf16.mxu1 %v5246_v48  ;;  %v725_v46 = vld [vmem:[#allocation6 + $0x9a8] sm:$0xff]  ;;  %v5283_v47 = vcombine.low %v712_v15, %v716_v21  ;;  %v5285_v48 = vcombine.low %v713_v25, %v717_v33  ;;  %v5324_v15 = vcombine.high %v752_v7, %v756_v8  ;;  %v760_v25 = vld [vmem:[#allocation6 + $0xac0] sm:$0xff] }
 0x194   :  { %v5294_v50 = vcombine.high %v721_v43, %v725_v46  ;;  %v764_v33 = vld [vmem:[#allocation6 + $0xae0] sm:$0xff] }
 0x195   :  { %3606 = vmatmul.mubr.bf16.vlgmr.msra.gmra.mrb[8].mxu0 %v6125_v36  ;;  %3778 = vmatmul.mubr.bf16.vlgmr.msra.gmra.mrb[8].mxu1 %v6125_v36 }
 0x196   :  { %3617 = vmatpush1.bf16.msra.mxu0 %v5243_v53  ;;  %3789 = vmatpush1.bf16.msra.mxu1 %v5245_v54  ;;  %v729_v53 = vld [vmem:[#allocation6 + $0x9c8] sm:$0xff] }
 0x197   :  { %3618 = vmatprep.subr.bf16.mxu0 %v5252_v55  ;;  %3790 = vmatprep.subr.bf16.mxu1 %v5254_v56  ;;  %v733_v54 = vld [vmem:[#allocation6 + $0x9e8] sm:$0xff]  ;;  %v5291_v55 = vcombine.low %v720_v41, %v724_v42  ;;  %v5293_v56 = vcombine.low %v721_v43, %v725_v46  ;;  %v5332_v41 = vcombine.high %v760_v25, %v764_v33  ;;  %v768_v43 = vld [vmem:[#allocation6 + $0xb00] sm:$0xff] }
 0x198   :  { %3648 = vmatprep.mubr.bf16.mxu0 %v6143_v23  ;;  %3820 = vmatprep.mubr.bf16.mxu1 %v6143_v23  ;;  %v5302_v58 = vcombine.high %v729_v53, %v733_v54  ;;  %v772_v46 = vld [vmem:[#allocation6 + $0xb20] sm:$0xff] }
 0x19a   :  { %3619 = vmatpush1.bf16.msra.mxu0 %v5251_v18  ;;  %3791 = vmatpush1.bf16.msra.mxu1 %v5253_v20  ;;  %v737_v18 = vld [vmem:[#allocation6 + $0xa08] sm:$0xff] }
 0x19b   :  { %3620 = vmatprep.subr.bf16.mxu0 %v5260_v22  ;;  %3792 = vmatprep.subr.bf16.mxu1 %v5262_v24  ;;  %v741_v20 = vld [vmem:[#allocation6 + $0xa28] sm:$0xff]  ;;  %v5299_v22 = vcombine.low %v728_v51, %v732_v52  ;;  %v5301_v24 = vcombine.low %v729_v53, %v733_v54  ;;  %v5340_v51 = vcombine.high %v768_v43, %v772_v46  ;;  %v776_v53 = vld [vmem:[#allocation6 + $0xb40] sm:$0xff] }
 0x19c   :  { %v5310_v62 = vcombine.high %v737_v18, %v741_v20  ;;  %v780_v54 = vld [vmem:[#allocation6 + $0xb60] sm:$0xff] }
 0x19e   :  { %3621 = vmatpush1.bf16.msra.mxu0 %v5259_v0  ;;  %3793 = vmatpush1.bf16.msra.mxu1 %v5261_v1  ;;  %v745_v0 = vld [vmem:[#allocation6 + $0xa48] sm:$0xff] }
 0x19f   :  { %3622 = vmatprep.subr.bf16.mxu0 %v5268_v2  ;;  %3794 = vmatprep.subr.bf16.mxu1 %v5270_v3  ;;  %v749_v1 = vld [vmem:[#allocation6 + $0xa68] sm:$0xff]  ;;  %v5307_v2 = vcombine.low %v736_v59, %v740_v60  ;;  %v5309_v3 = vcombine.low %v737_v18, %v741_v20  ;;  %v5348_v59 = vcombine.high %v776_v53, %v780_v54  ;;  %v784_v18 = vld [vmem:[#allocation6 + $0xb80] sm:$0xff] }
 0x1a0   :  { %v5318_v6 = vcombine.high %v745_v0, %v749_v1  ;;  %v788_v20 = vld [vmem:[#allocation6 + $0xba0] sm:$0xff] }
 0x1a2   :  { %3623 = vmatpush1.bf16.msra.mxu0 %v5267_v9  ;;  %3795 = vmatpush1.bf16.msra.mxu1 %v5269_v10  ;;  %v753_v9 = vld [vmem:[#allocation6 + $0xa88] sm:$0xff] }
 0x1a3   :  { %3624 = vmatprep.subr.bf16.mxu0 %v5276_v11  ;;  %3796 = vmatprep.subr.bf16.mxu1 %v5278_v13  ;;  %v757_v10 = vld [vmem:[#allocation6 + $0xaa8] sm:$0xff]  ;;  %v5315_v11 = vcombine.low %v744_v63, %v748_v29  ;;  %v5317_v13 = vcombine.low %v745_v0, %v749_v1  ;;  %v5356_v63 = vcombine.high %v784_v18, %v788_v20  ;;  %v792_v0 = vld [vmem:[#allocation6 + $0xbc0] sm:$0xff] }
 0x1a4   :  { %v5326_v21 = vcombine.high %v753_v9, %v757_v10  ;;  %v796_v1 = vld [vmem:[#allocation6 + $0xbe0] sm:$0xff] }
 0x1a6   :  { %3625 = vmatpush1.bf16.msra.mxu0 %v5275_v34  ;;  %3797 = vmatpush1.bf16.msra.mxu1 %v5277_v35  ;;  %v761_v34 = vld [vmem:[#allocation6 + $0xac8] sm:$0xff] }
 0x1a7   :  { %3626 = vmatprep.subr.bf16.mxu0 %v5284_v37  ;;  %3798 = vmatprep.subr.bf16.mxu1 %v5286_v38  ;;  %v765_v35 = vld [vmem:[#allocation6 + $0xae8] sm:$0xff]  ;;  %v5323_v37 = vcombine.low %v752_v7, %v756_v8  ;;  %v5325_v38 = vcombine.low %v753_v9, %v757_v10  ;;  %v5364_v7 = vcombine.high %v792_v0, %v796_v1  ;;  %v800_v9 = vld [vmem:[#allocation6 + $0xc00] sm:$0xff] }
 0x1a8   :  { %v5334_v42 = vcombine.high %v761_v34, %v765_v35  ;;  %v804_v10 = vld [vmem:[#allocation6 + $0xc20] sm:$0xff] }
 0x1aa   :  { %3627 = vmatpush1.bf16.msra.mxu0 %v5283_v47  ;;  %3799 = vmatpush1.bf16.msra.mxu1 %v5285_v48  ;;  %v769_v47 = vld [vmem:[#allocation6 + $0xb08] sm:$0xff] }
 0x1ab   :  { %3628 = vmatprep.subr.bf16.mxu0 %v5292_v49  ;;  %3800 = vmatprep.subr.bf16.mxu1 %v5294_v50  ;;  %v773_v48 = vld [vmem:[#allocation6 + $0xb28] sm:$0xff]  ;;  %v5331_v49 = vcombine.low %v760_v25, %v764_v33  ;;  %v5333_v50 = vcombine.low %v761_v34, %v765_v35  ;;  %v5372_v25 = vcombine.high %v800_v9, %v804_v10  ;;  %v808_v34 = vld [vmem:[#allocation6 + $0xc40] sm:$0xff] }
 0x1ac   :  { %v5342_v52 = vcombine.high %v769_v47, %v773_v48  ;;  %v812_v35 = vld [vmem:[#allocation6 + $0xc60] sm:$0xff] }
 0x1ae   :  { %3629 = vmatpush1.bf16.msra.mxu0 %v5291_v55  ;;  %3801 = vmatpush1.bf16.msra.mxu1 %v5293_v56  ;;  %v777_v55 = vld [vmem:[#allocation6 + $0xb48] sm:$0xff] }
 0x1af   :  { %3630 = vmatprep.subr.bf16.mxu0 %v5300_v57  ;;  %3802 = vmatprep.subr.bf16.mxu1 %v5302_v58  ;;  %v781_v56 = vld [vmem:[#allocation6 + $0xb68] sm:$0xff]  ;;  %v5339_v57 = vcombine.low %v768_v43, %v772_v46  ;;  %v5341_v58 = vcombine.low %v769_v47, %v773_v48  ;;  %v5380_v43 = vcombine.high %v808_v34, %v812_v35  ;;  %v816_v47 = vld [vmem:[#allocation6 + $0xc80] sm:$0xff] }
 0x1b0   :  { %v5350_v60 = vcombine.high %v777_v55, %v781_v56  ;;  %v820_v48 = vld [vmem:[#allocation6 + $0xca0] sm:$0xff] }
 0x1b2   :  { %3631 = vmatpush1.bf16.msra.mxu0 %v5299_v22  ;;  %3803 = vmatpush1.bf16.msra.mxu1 %v5301_v24  ;;  %v785_v22 = vld [vmem:[#allocation6 + $0xb88] sm:$0xff] }
 0x1b3   :  { %3632 = vmatprep.subr.bf16.mxu0 %v5308_v61  ;;  %3804 = vmatprep.subr.bf16.mxu1 %v5310_v62  ;;  %v789_v24 = vld [vmem:[#allocation6 + $0xba8] sm:$0xff]  ;;  %v5347_v61 = vcombine.low %v776_v53, %v780_v54  ;;  %v5349_v62 = vcombine.low %v777_v55, %v781_v56  ;;  %v5388_v53 = vcombine.high %v816_v47, %v820_v48  ;;  %v824_v55 = vld [vmem:[#allocation6 + $0xcc0] sm:$0xff] }
 0x1b4   :  { %v5358_v29 = vcombine.high %v785_v22, %v789_v24  ;;  %v828_v56 = vld [vmem:[#allocation6 + $0xce0] sm:$0xff] }
 0x1b6   :  { %3633 = vmatpush1.bf16.msra.mxu0 %v5307_v2  ;;  %3805 = vmatpush1.bf16.msra.mxu1 %v5309_v3  ;;  %v793_v2 = vld [vmem:[#allocation6 + $0xbc8] sm:$0xff] }
 0x1b7   :  { %3634 = vmatprep.subr.bf16.mxu0 %v5316_v4  ;;  %3806 = vmatprep.subr.bf16.mxu1 %v5318_v6  ;;  %v797_v3 = vld [vmem:[#allocation6 + $0xbe8] sm:$0xff]  ;;  %v5355_v4 = vcombine.low %v784_v18, %v788_v20  ;;  %v5357_v6 = vcombine.low %v785_v22, %v789_v24  ;;  %v5396_v18 = vcombine.high %v824_v55, %v828_v56  ;;  %v832_v22 = vld [vmem:[#allocation6 + $0xd00] sm:$0xff] }
 0x1b8   :  { %v5366_v8 = vcombine.high %v793_v2, %v797_v3  ;;  %v836_v24 = vld [vmem:[#allocation6 + $0xd20] sm:$0xff] }
 0x1ba   :  { %3635 = vmatpush1.bf16.msra.mxu0 %v5315_v11  ;;  %3807 = vmatpush1.bf16.msra.mxu1 %v5317_v13  ;;  %v801_v11 = vld [vmem:[#allocation6 + $0xc08] sm:$0xff] }
 0x1bb   :  { %3636 = vmatprep.subr.bf16.mxu0 %v5324_v15  ;;  %3808 = vmatprep.subr.bf16.mxu1 %v5326_v21  ;;  %v805_v13 = vld [vmem:[#allocation6 + $0xc28] sm:$0xff]  ;;  %v5363_v15 = vcombine.low %v792_v0, %v796_v1  ;;  %v5365_v21 = vcombine.low %v793_v2, %v797_v3  ;;  %v5404_v0 = vcombine.high %v832_v22, %v836_v24  ;;  %v840_v2 = vld [vmem:[#allocation6 + $0xd40] sm:$0xff] }
 0x1bc   :  { %v5374_v33 = vcombine.high %v801_v11, %v805_v13  ;;  %v844_v3 = vld [vmem:[#allocation6 + $0xd60] sm:$0xff] }
 0x1be   :  { %3637 = vmatpush1.bf16.msra.mxu0 %v5323_v37  ;;  %3809 = vmatpush1.bf16.msra.mxu1 %v5325_v38  ;;  %v809_v37 = vld [vmem:[#allocation6 + $0xc48] sm:$0xff] }
 0x1bf   :  { %3638 = vmatprep.subr.bf16.mxu0 %v5332_v41  ;;  %3810 = vmatprep.subr.bf16.mxu1 %v5334_v42  ;;  %v813_v38 = vld [vmem:[#allocation6 + $0xc68] sm:$0xff]  ;;  %v5371_v41 = vcombine.low %v800_v9, %v804_v10  ;;  %v5373_v42 = vcombine.low %v801_v11, %v805_v13  ;;  %v5412_v9 = vcombine.high %v840_v2, %v844_v3  ;;  %v848_v11 = vld [vmem:[#allocation6 + $0xd80] sm:$0xff] }
 0x1c0   :  { %v5382_v46 = vcombine.high %v809_v37, %v813_v38  ;;  %v852_v13 = vld [vmem:[#allocation6 + $0xda0] sm:$0xff] }
 0x1c2   :  { %3639 = vmatpush1.bf16.msra.mxu0 %v5331_v49  ;;  %3811 = vmatpush1.bf16.msra.mxu1 %v5333_v50  ;;  %v817_v49 = vld [vmem:[#allocation6 + $0xc88] sm:$0xff] }
 0x1c3   :  { %3640 = vmatprep.subr.bf16.mxu0 %v5340_v51  ;;  %3812 = vmatprep.subr.bf16.mxu1 %v5342_v52  ;;  %v821_v50 = vld [vmem:[#allocation6 + $0xca8] sm:$0xff]  ;;  %v5379_v51 = vcombine.low %v808_v34, %v812_v35  ;;  %v5381_v52 = vcombine.low %v809_v37, %v813_v38  ;;  %v5420_v34 = vcombine.high %v848_v11, %v852_v13  ;;  %v856_v37 = vld [vmem:[#allocation6 + $0xdc0] sm:$0xff] }
 0x1c4   :  { %v5390_v54 = vcombine.high %v817_v49, %v821_v50  ;;  %v860_v38 = vld [vmem:[#allocation6 + $0xde0] sm:$0xff] }
 0x1c6   :  { %3641 = vmatpush1.bf16.msra.mxu0 %v5339_v57  ;;  %3813 = vmatpush1.bf16.msra.mxu1 %v5341_v58  ;;  %v825_v57 = vld [vmem:[#allocation6 + $0xcc8] sm:$0xff] }
 0x1c7   :  { %3642 = vmatprep.subr.bf16.mxu0 %v5348_v59  ;;  %3814 = vmatprep.subr.bf16.mxu1 %v5350_v60  ;;  %v829_v58 = vld [vmem:[#allocation6 + $0xce8] sm:$0xff]  ;;  %v5387_v59 = vcombine.low %v816_v47, %v820_v48  ;;  %v5389_v60 = vcombine.low %v817_v49, %v821_v50  ;;  %v5428_v47 = vcombine.high %v856_v37, %v860_v38  ;;  %v864_v49 = vld [vmem:[#allocation6 + $0xe00] sm:$0xff] }
 0x1c8   :  { %v5398_v20 = vcombine.high %v825_v57, %v829_v58  ;;  %v868_v50 = vld [vmem:[#allocation6 + $0xe20] sm:$0xff] }
 0x1ca   :  { %3643 = vmatpush1.bf16.msra.mxu0 %v5347_v61  ;;  %3815 = vmatpush1.bf16.msra.mxu1 %v5349_v62  ;;  %v833_v61 = vld [vmem:[#allocation6 + $0xd08] sm:$0xff] }
 0x1cb   :  { %3644 = vmatprep.subr.bf16.mxu0 %v5356_v63  ;;  %3816 = vmatprep.subr.bf16.mxu1 %v5358_v29  ;;  %v837_v62 = vld [vmem:[#allocation6 + $0xd28] sm:$0xff]  ;;  %v5395_v63 = vcombine.low %v824_v55, %v828_v56  ;;  %v5397_v29 = vcombine.low %v825_v57, %v829_v58  ;;  %v5436_v55 = vcombine.high %v864_v49, %v868_v50  ;;  %v872_v57 = vld [vmem:[#allocation6 + $0xe40] sm:$0xff] }
 0x1cc   :  { %v5406_v1 = vcombine.high %v833_v61, %v837_v62  ;;  %v876_v58 = vld [vmem:[#allocation6 + $0xe60] sm:$0xff] }
 0x1ce   :  { %3645 = vmatpush1.bf16.msra.mxu0 %v5355_v4  ;;  %3817 = vmatpush1.bf16.msra.mxu1 %v5357_v6  ;;  %v841_v4 = vld [vmem:[#allocation6 + $0xd48] sm:$0xff] }
 0x1cf   :  { %3646 = vmatprep.subr.bf16.mxu0 %v5364_v7  ;;  %3818 = vmatprep.subr.bf16.mxu1 %v5366_v8  ;;  %v845_v6 = vld [vmem:[#allocation6 + $0xd68] sm:$0xff]  ;;  %v5403_v7 = vcombine.low %v832_v22, %v836_v24  ;;  %v5405_v8 = vcombine.low %v833_v61, %v837_v62  ;;  %v5444_v22 = vcombine.high %v872_v57, %v876_v58  ;;  %v880_v61 = vld [vmem:[#allocation6 + $0xe80] sm:$0xff] }
 0x1d0   :  { %v5414_v10 = vcombine.high %v841_v4, %v845_v6  ;;  %v884_v62 = vld [vmem:[#allocation6 + $0xea0] sm:$0xff] }
 0x1d2   :  { %3647 = vmatpush1.bf16.msra.mxu0 %v5363_v15  ;;  %3819 = vmatpush1.bf16.msra.mxu1 %v5365_v21  ;;  %v849_v15 = vld [vmem:[#allocation6 + $0xd88] sm:$0xff] }
 0x1d3   :  { %3659 = vmatprep.subr.bf16.mxu0 %v5372_v25  ;;  %3831 = vmatprep.subr.bf16.mxu1 %v5374_v33  ;;  %v853_v21 = vld [vmem:[#allocation6 + $0xda8] sm:$0xff]  ;;  %v5411_v25 = vcombine.low %v840_v2, %v844_v3  ;;  %v5413_v33 = vcombine.low %v841_v4, %v845_v6  ;;  %v5452_v2 = vcombine.high %v880_v61, %v884_v62  ;;  %v888_v4 = vld [vmem:[#allocation6 + $0xec0] sm:$0xff] }
 0x1d4   :  { %v5422_v35 = vcombine.high %v849_v15, %v853_v21  ;;  %v892_v6 = vld [vmem:[#allocation6 + $0xee0] sm:$0xff] }
 0x1d5   :  { %3649 = vmatmul.mubr.bf16.vlgmr.msra.gmra.mrb[8].mxu0 %v6141_v19  ;;  %3821 = vmatmul.mubr.bf16.vlgmr.msra.gmra.mrb[8].mxu1 %v6141_v19 }
 0x1d6   :  { %3660 = vmatpush1.bf16.msra.mxu0 %v5371_v41  ;;  %3832 = vmatpush1.bf16.msra.mxu1 %v5373_v42  ;;  %v857_v41 = vld [vmem:[#allocation6 + $0xdc8] sm:$0xff] }
 0x1d7   :  { %3661 = vmatprep.subr.bf16.mxu0 %v5380_v43  ;;  %3833 = vmatprep.subr.bf16.mxu1 %v5382_v46  ;;  %v861_v42 = vld [vmem:[#allocation6 + $0xde8] sm:$0xff]  ;;  %v5419_v43 = vcombine.low %v848_v11, %v852_v13  ;;  %v5421_v46 = vcombine.low %v849_v15, %v853_v21  ;;  %v5460_v11 = vcombine.high %v888_v4, %v892_v6  ;;  %v896_v15 = vld [vmem:[#allocation6 + $0xf00] sm:$0xff] }
 0x1d8   :  { %3691 = vmatprep.mubr.bf16.mxu0 %v6155_v14  ;;  %3863 = vmatprep.mubr.bf16.mxu1 %v6155_v14  ;;  %v5430_v48 = vcombine.high %v857_v41, %v861_v42  ;;  %v900_v21 = vld [vmem:[#allocation6 + $0xf20] sm:$0xff] }
 0x1da   :  { %3662 = vmatpush1.bf16.msra.mxu0 %v5379_v51  ;;  %3834 = vmatpush1.bf16.msra.mxu1 %v5381_v52  ;;  %v865_v51 = vld [vmem:[#allocation6 + $0xe08] sm:$0xff] }
 0x1db   :  { %3663 = vmatprep.subr.bf16.mxu0 %v5388_v53  ;;  %3835 = vmatprep.subr.bf16.mxu1 %v5390_v54  ;;  %v869_v52 = vld [vmem:[#allocation6 + $0xe28] sm:$0xff]  ;;  %v5427_v53 = vcombine.low %v856_v37, %v860_v38  ;;  %v5429_v54 = vcombine.low %v857_v41, %v861_v42  ;;  %v5468_v37 = vcombine.high %v896_v15, %v900_v21  ;;  %v904_v41 = vld [vmem:[#allocation6 + $0xf40] sm:$0xff] }
 0x1dc   :  { %v5438_v56 = vcombine.high %v865_v51, %v869_v52  ;;  %v908_v42 = vld [vmem:[#allocation6 + $0xf60] sm:$0xff] }
 0x1de   :  { %3664 = vmatpush1.bf16.msra.mxu0 %v5387_v59  ;;  %3836 = vmatpush1.bf16.msra.mxu1 %v5389_v60  ;;  %v873_v59 = vld [vmem:[#allocation6 + $0xe48] sm:$0xff] }
 0x1df   :  { %3665 = vmatprep.subr.bf16.mxu0 %v5396_v18  ;;  %3837 = vmatprep.subr.bf16.mxu1 %v5398_v20  ;;  %v877_v60 = vld [vmem:[#allocation6 + $0xe68] sm:$0xff]  ;;  %v5435_v18 = vcombine.low %v864_v49, %v868_v50  ;;  %v5437_v20 = vcombine.low %v865_v51, %v869_v52  ;;  %v5476_v49 = vcombine.high %v904_v41, %v908_v42  ;;  %v912_v51 = vld [vmem:[#allocation6 + $0xf80] sm:$0xff] }
 0x1e0   :  { %v5446_v24 = vcombine.high %v873_v59, %v877_v60  ;;  %v916_v52 = vld [vmem:[#allocation6 + $0xfa0] sm:$0xff] }
 0x1e2   :  { %3666 = vmatpush1.bf16.msra.mxu0 %v5395_v63  ;;  %3838 = vmatpush1.bf16.msra.mxu1 %v5397_v29  ;;  %v881_v63 = vld [vmem:[#allocation6 + $0xe88] sm:$0xff] }
 0x1e3   :  { %3667 = vmatprep.subr.bf16.mxu0 %v5404_v0  ;;  %3839 = vmatprep.subr.bf16.mxu1 %v5406_v1  ;;  %v885_v29 = vld [vmem:[#allocation6 + $0xea8] sm:$0xff]  ;;  %v5443_v0 = vcombine.low %v872_v57, %v876_v58  ;;  %v5445_v1 = vcombine.low %v873_v59, %v877_v60  ;;  %v5484_v57 = vcombine.high %v912_v51, %v916_v52  ;;  %v920_v59 = vld [vmem:[#allocation6 + $0xfc0] sm:$0xff] }
 0x1e4   :  { %v5454_v3 = vcombine.high %v881_v63, %v885_v29  ;;  %v924_v60 = vld [vmem:[#allocation6 + $0xfe0] sm:$0xff] }
 0x1e6   :  { %3668 = vmatpush1.bf16.msra.mxu0 %v5403_v7  ;;  %3840 = vmatpush1.bf16.msra.mxu1 %v5405_v8  ;;  %v889_v7 = vld [vmem:[#allocation6 + $0xec8] sm:$0xff] }
 0x1e7   :  { %3669 = vmatprep.subr.bf16.mxu0 %v5412_v9  ;;  %3841 = vmatprep.subr.bf16.mxu1 %v5414_v10  ;;  %v893_v8 = vld [vmem:[#allocation6 + $0xee8] sm:$0xff]  ;;  %v5451_v9 = vcombine.low %v880_v61, %v884_v62  ;;  %v5453_v10 = vcombine.low %v881_v63, %v885_v29  ;;  %v5492_v61 = vcombine.high %v920_v59, %v924_v60  ;;  %v418_v63 = vld [vmem:[#allocation6 + $0x10] sm:$0xff] }
 0x1e8   :  { %v5462_v13 = vcombine.high %v889_v7, %v893_v8  ;;  %v422_v29 = vld [vmem:[#allocation6 + $0x30] sm:$0xff] }
 0x1ea   :  { %3670 = vmatpush1.bf16.msra.mxu0 %v5411_v25  ;;  %3842 = vmatpush1.bf16.msra.mxu1 %v5413_v33  ;;  %v897_v25 = vld [vmem:[#allocation6 + $0xf08] sm:$0xff] }
 0x1eb   :  { %3671 = vmatprep.subr.bf16.mxu0 %v5420_v34  ;;  %3843 = vmatprep.subr.bf16.mxu1 %v5422_v35  ;;  %v901_v33 = vld [vmem:[#allocation6 + $0xf28] sm:$0xff]  ;;  %v5459_v34 = vcombine.low %v888_v4, %v892_v6  ;;  %v5461_v35 = vcombine.low %v889_v7, %v893_v8  ;;  %v4992_v4 = vcombine.high %v418_v63, %v422_v29  ;;  %v426_v7 = vld [vmem:[#allocation6 + $0x50] sm:$0xff] }
 0x1ec   :  { %v5470_v38 = vcombine.high %v897_v25, %v901_v33  ;;  %v430_v8 = vld [vmem:[#allocation6 + $0x70] sm:$0xff] }
 0x1ee   :  { %3672 = vmatpush1.bf16.msra.mxu0 %v5419_v43  ;;  %3844 = vmatpush1.bf16.msra.mxu1 %v5421_v46  ;;  %v905_v43 = vld [vmem:[#allocation6 + $0xf48] sm:$0xff] }
 0x1ef   :  { %3673 = vmatprep.subr.bf16.mxu0 %v5428_v47  ;;  %3845 = vmatprep.subr.bf16.mxu1 %v5430_v48  ;;  %v909_v46 = vld [vmem:[#allocation6 + $0xf68] sm:$0xff]  ;;  %v5467_v47 = vcombine.low %v896_v15, %v900_v21  ;;  %v5469_v48 = vcombine.low %v897_v25, %v901_v33  ;;  %v5000_v15 = vcombine.high %v426_v7, %v430_v8  ;;  %v434_v25 = vld [vmem:[#allocation6 + $0x90] sm:$0xff] }
 0x1f0   :  { %v5478_v50 = vcombine.high %v905_v43, %v909_v46  ;;  %v438_v33 = vld [vmem:[#allocation6 + $0xb0] sm:$0xff] }
 0x1f2   :  { %3674 = vmatpush1.bf16.msra.mxu0 %v5427_v53  ;;  %3846 = vmatpush1.bf16.msra.mxu1 %v5429_v54  ;;  %v913_v53 = vld [vmem:[#allocation6 + $0xf88] sm:$0xff] }
 0x1f3   :  { %3675 = vmatprep.subr.bf16.mxu0 %v5436_v55  ;;  %3847 = vmatprep.subr.bf16.mxu1 %v5438_v56  ;;  %v917_v54 = vld [vmem:[#allocation6 + $0xfa8] sm:$0xff]  ;;  %v5475_v55 = vcombine.low %v904_v41, %v908_v42  ;;  %v5477_v56 = vcombine.low %v905_v43, %v909_v46  ;;  %v5008_v41 = vcombine.high %v434_v25, %v438_v33  ;;  %v442_v43 = vld [vmem:[#allocation6 + $0xd0] sm:$0xff] }
 0x1f4   :  { %v5486_v58 = vcombine.high %v913_v53, %v917_v54  ;;  %v446_v46 = vld [vmem:[#allocation6 + $0xf0] sm:$0xff] }
 0x1f6   :  { %3676 = vmatpush1.bf16.msra.mxu0 %v5435_v18  ;;  %3848 = vmatpush1.bf16.msra.mxu1 %v5437_v20  ;;  %v921_v18 = vld [vmem:[#allocation6 + $0xfc8] sm:$0xff] }
 0x1f7   :  { %3677 = vmatprep.subr.bf16.mxu0 %v5444_v22  ;;  %3849 = vmatprep.subr.bf16.mxu1 %v5446_v24  ;;  %v925_v20 = vld [vmem:[#allocation6 + $0xfe8] sm:$0xff]  ;;  %v5483_v22 = vcombine.low %v912_v51, %v916_v52  ;;  %v5485_v24 = vcombine.low %v913_v53, %v917_v54  ;;  %v5016_v51 = vcombine.high %v442_v43, %v446_v46  ;;  %v450_v53 = vld [vmem:[#allocation6 + $0x110] sm:$0xff] }
 0x1f8   :  { %v5494_v62 = vcombine.high %v921_v18, %v925_v20  ;;  %v454_v54 = vld [vmem:[#allocation6 + $0x130] sm:$0xff] }
 0x1fa   :  { %3678 = vmatpush1.bf16.msra.mxu0 %v5443_v0  ;;  %3850 = vmatpush1.bf16.msra.mxu1 %v5445_v1  ;;  %v419_v0 = vld [vmem:[#allocation6 + $0x18] sm:$0xff] }
 0x1fb   :  { %3679 = vmatprep.subr.bf16.mxu0 %v5452_v2  ;;  %3851 = vmatprep.subr.bf16.mxu1 %v5454_v3  ;;  %v423_v1 = vld [vmem:[#allocation6 + $0x38] sm:$0xff]  ;;  %v5491_v2 = vcombine.low %v920_v59, %v924_v60  ;;  %v5493_v3 = vcombine.low %v921_v18, %v925_v20  ;;  %v458_v60 = vld [vmem:[#allocation6 + $0x150] sm:$0xff] }
 0x1fc   :  { %v4994_v6 = vcombine.high %v419_v0, %v423_v1  ;;  %v462_v18 = vld [vmem:[#allocation6 + $0x170] sm:$0xff]  ;;  %v459_v20 = vld [vmem:[#allocation6 + $0x158] sm:$0xff] }
 0x1fe   :  { %3680 = vmatpush1.bf16.msra.mxu0 %v5451_v9  ;;  %3852 = vmatpush1.bf16.msra.mxu1 %v5453_v10  ;;  %v427_v9 = vld [vmem:[#allocation6 + $0x58] sm:$0xff] }
 0x1ff   :  { %3681 = vmatprep.subr.bf16.mxu0 %v5460_v11  ;;  %3853 = vmatprep.subr.bf16.mxu1 %v5462_v13  ;;  %v431_v10 = vld [vmem:[#allocation6 + $0x78] sm:$0xff]  ;;  %v4991_v11 = vcombine.low %v418_v63, %v422_v29  ;;  %v4993_v13 = vcombine.low %v419_v0, %v423_v1  ;;  %v466_v29 = vld [vmem:[#allocation6 + $0x190] sm:$0xff] }
 0x200   :  { %v5002_v21 = vcombine.high %v427_v9, %v431_v10  ;;  %v470_v0 = vld [vmem:[#allocation6 + $0x1b0] sm:$0xff]  ;;  %v467_v1 = vld [vmem:[#allocation6 + $0x198] sm:$0xff] }
 0x202   :  { %3682 = vmatpush1.bf16.msra.mxu0 %v5459_v34  ;;  %3854 = vmatpush1.bf16.msra.mxu1 %v5461_v35  ;;  %v435_v34 = vld [vmem:[#allocation6 + $0x98] sm:$0xff] }
 0x203   :  { %3683 = vmatprep.subr.bf16.mxu0 %v5468_v37  ;;  %3855 = vmatprep.subr.bf16.mxu1 %v5470_v38  ;;  %v439_v35 = vld [vmem:[#allocation6 + $0xb8] sm:$0xff]  ;;  %v4999_v37 = vcombine.low %v426_v7, %v430_v8  ;;  %v5001_v38 = vcombine.low %v427_v9, %v431_v10  ;;  %v474_v8 = vld [vmem:[#allocation6 + $0x1d0] sm:$0xff] }
 0x204   :  { %v5010_v42 = vcombine.high %v435_v34, %v439_v35  ;;  %v478_v9 = vld [vmem:[#allocation6 + $0x1f0] sm:$0xff]  ;;  %v475_v10 = vld [vmem:[#allocation6 + $0x1d8] sm:$0xff] }
 0x206   :  { %3684 = vmatpush1.bf16.msra.mxu0 %v5467_v47  ;;  %3856 = vmatpush1.bf16.msra.mxu1 %v5469_v48  ;;  %v443_v47 = vld [vmem:[#allocation6 + $0xd8] sm:$0xff] }
 0x207   :  { %3685 = vmatprep.subr.bf16.mxu0 %v5476_v49  ;;  %3857 = vmatprep.subr.bf16.mxu1 %v5478_v50  ;;  %v447_v48 = vld [vmem:[#allocation6 + $0xf8] sm:$0xff]  ;;  %v5007_v49 = vcombine.low %v434_v25, %v438_v33  ;;  %v5009_v50 = vcombine.low %v435_v34, %v439_v35  ;;  %v482_v33 = vld [vmem:[#allocation6 + $0x210] sm:$0xff] }
 0x208   :  { %v5018_v52 = vcombine.high %v443_v47, %v447_v48  ;;  %v486_v34 = vld [vmem:[#allocation6 + $0x230] sm:$0xff]  ;;  %v483_v35 = vld [vmem:[#allocation6 + $0x218] sm:$0xff] }
 0x20a   :  { %3686 = vmatpush1.bf16.msra.mxu0 %v5475_v55  ;;  %3858 = vmatpush1.bf16.msra.mxu1 %v5477_v56  ;;  %v455_v55 = vld [vmem:[#allocation6 + $0x138] sm:$0xff]  ;;  %v5015_v56 = vcombine.low %v442_v43, %v446_v46  ;;  %v490_v46 = vld [vmem:[#allocation6 + $0x250] sm:$0xff] }
 0x20b   :  { %3687 = vmatprep.subr.bf16.mxu0 %v5484_v57  ;;  %3859 = vmatprep.subr.bf16.mxu1 %v5486_v58  ;;  %v5017_v57 = vcombine.low %v443_v47, %v447_v48  ;;  %v5024_v58 = vcombine.high %v450_v53, %v454_v54  ;;  %v494_v47 = vld [vmem:[#allocation6 + $0x270] sm:$0xff]  ;;  %v491_v48 = vld [vmem:[#allocation6 + $0x258] sm:$0xff] }
 0x20e   :  { %3688 = vmatpush1.bf16.msra.mxu0 %v5483_v22  ;;  %3860 = vmatpush1.bf16.msra.mxu1 %v5485_v24  ;;  %v463_v22 = vld [vmem:[#allocation6 + $0x178] sm:$0xff]  ;;  %v5023_v24 = vcombine.low %v450_v53, %v454_v54  ;;  %v498_v54 = vld [vmem:[#allocation6 + $0x290] sm:$0xff] }
 0x20f   :  { %3689 = vmatprep.subr.bf16.mxu0 %v5492_v61  ;;  %3861 = vmatprep.subr.bf16.mxu1 %v5494_v62  ;;  %v5032_v62 = vcombine.high %v458_v60, %v462_v18  ;;  %v5034_v63 = vcombine.high %v459_v20, %v463_v22 }
 0x212   :  { %3690 = vmatpush1.bf16.msra.mxu0 %v5491_v2  ;;  %3862 = vmatpush1.bf16.msra.mxu1 %v5493_v3  ;;  %v471_v2 = vld [vmem:[#allocation6 + $0x1b8] sm:$0xff]  ;;  %v5031_v3 = vcombine.low %v458_v60, %v462_v18  ;;  %v506_v18 = vld [vmem:[#allocation6 + $0x2d0] sm:$0xff] }
 0x213   :  { %3874 = vmatprep.subr.bf16.mxu0 %v4992_v4  ;;  %4046 = vmatprep.subr.bf16.mxu1 %v4994_v6  ;;  %v5033_v4 = vcombine.low %v459_v20, %v463_v22  ;;  %v5040_v6 = vcombine.high %v466_v29, %v470_v0  ;;  %v5042_v7 = vcombine.high %v467_v1, %v471_v2  ;;  %v510_v20 = vld [vmem:[#allocation6 + $0x2f0] sm:$0xff]  ;;  %v507_v22 = vld [vmem:[#allocation6 + $0x2d8] sm:$0xff] }
 0x215   :  { %3692 = vmatmul.mubr.bf16.vlgmr.msra.gmra.mrb[8].mxu0 %v6153_v5  ;;  %3864 = vmatmul.mubr.bf16.vlgmr.msra.gmra.mrb[8].mxu1 %v6153_v5 }
 0x216   :  { %3875 = vmatpush1.bf16.msra.mxu0 %v4991_v11  ;;  %3906 = vmatprep.mubr.bf16.mxu0 %v6123_v16  ;;  %v479_v11 = vld [vmem:[#allocation6 + $0x1f8] sm:$0xff] }
 0x217   :  { %4047 = vmatpush1.bf16.msra.mxu1 %v4993_v13  ;;  %4078 = vmatprep.mubr.bf16.mxu1 %v6123_v16  ;;  %v451_v16 = vld [vmem:[#allocation6 + $0x118] sm:$0xff]  ;;  %v5039_v13 = vcombine.low %v466_v29, %v470_v0  ;;  %v5050_v25 = vcombine.high %v475_v10, %v479_v11  ;;  %v514_v0 = vld [vmem:[#allocation6 + $0x310] sm:$0xff] }
 0x218   :  { %3876 = vmatprep.subr.bf16.mxu0 %v5000_v15  ;;  %4048 = vmatprep.subr.bf16.mxu1 %v5002_v21  ;;  %v5026_v59 = vcombine.high %v451_v16, %v455_v55  ;;  %v5025_v61 = vcombine.low %v451_v16, %v455_v55  ;;  %v5041_v15 = vcombine.low %v467_v1, %v471_v2  ;;  %v502_v16 = vld [vmem:[#allocation6 + $0x2b0] sm:$0xff]  ;;  %v499_v55 = vld [vmem:[#allocation6 + $0x298] sm:$0xff] }
 0x219   :  { %v5048_v21 = vcombine.high %v474_v8, %v478_v9  ;;  %v518_v1 = vld [vmem:[#allocation6 + $0x330] sm:$0xff]  ;;  %v515_v2 = vld [vmem:[#allocation6 + $0x318] sm:$0xff] }
 0x21a   :  { %3877 = vmatpush1.bf16.msra.mxu0 %v4999_v37  ;;  %v487_v37 = vld [vmem:[#allocation6 + $0x238] sm:$0xff] }
 0x21b   :  { %4049 = vmatpush1.bf16.msra.mxu1 %v5001_v38  ;;  %3878 = vmatprep.subr.bf16.mxu0 %v5008_v41  ;;  %v5047_v38 = vcombine.low %v474_v8, %v478_v9  ;;  %v5049_v41 = vcombine.low %v475_v10, %v479_v11  ;;  %v5058_v43 = vcombine.high %v483_v35, %v487_v37  ;;  %v522_v9 = vld [vmem:[#allocation6 + $0x350] sm:$0xff]  ;;  %v523_v11 = vld [vmem:[#allocation6 + $0x358] sm:$0xff] }
 0x21c   :  { %4050 = vmatprep.subr.bf16.mxu1 %v5010_v42  ;;  %v5056_v42 = vcombine.high %v482_v33, %v486_v34  ;;  %v526_v10 = vld [vmem:[#allocation6 + $0x370] sm:$0xff] }
 0x21e   :  { %3879 = vmatpush1.bf16.msra.mxu0 %v5007_v49  ;;  %v495_v49 = vld [vmem:[#allocation6 + $0x278] sm:$0xff] }
 0x21f   :  { %4051 = vmatpush1.bf16.msra.mxu1 %v5009_v50  ;;  %3880 = vmatprep.subr.bf16.mxu0 %v5016_v51  ;;  %v5055_v50 = vcombine.low %v482_v33, %v486_v34  ;;  %v5057_v51 = vcombine.low %v483_v35, %v487_v37  ;;  %v5066_v53 = vcombine.high %v491_v48, %v495_v49  ;;  %v530_v34 = vld [vmem:[#allocation6 + $0x390] sm:$0xff]  ;;  %v531_v37 = vld [vmem:[#allocation6 + $0x398] sm:$0xff] }
 0x220   :  { %4052 = vmatprep.subr.bf16.mxu1 %v5018_v52  ;;  %v5064_v52 = vcombine.high %v490_v46, %v494_v47  ;;  %v534_v35 = vld [vmem:[#allocation6 + $0x3b0] sm:$0xff] }
 0x222   :  { %3881 = vmatpush1.bf16.msra.mxu0 %v5015_v56  ;;  %v503_v56 = vld [vmem:[#allocation6 + $0x2b8] sm:$0xff] }
 0x223   :  { %4053 = vmatpush1.bf16.msra.mxu1 %v5017_v57  ;;  %3882 = vmatprep.subr.bf16.mxu0 %v5024_v58  ;;  %v5063_v57 = vcombine.low %v490_v46, %v494_v47  ;;  %v5065_v58 = vcombine.low %v491_v48, %v495_v49  ;;  %v5074_v60 = vcombine.high %v499_v55, %v503_v56  ;;  %v538_v47 = vld [vmem:[#allocation6 + $0x3d0] sm:$0xff]  ;;  %v539_v49 = vld [vmem:[#allocation6 + $0x3d8] sm:$0xff] }
 0x224   :  { %4054 = vmatprep.subr.bf16.mxu1 %v5026_v59  ;;  %v5072_v59 = vcombine.high %v498_v54, %v502_v16  ;;  %v542_v48 = vld [vmem:[#allocation6 + $0x3f0] sm:$0xff] }
 0x226   :  { %3883 = vmatpush1.bf16.msra.mxu0 %v5023_v24  ;;  %v511_v24 = vld [vmem:[#allocation6 + $0x2f8] sm:$0xff] }
 0x227   :  { %4055 = vmatpush1.bf16.msra.mxu1 %v5025_v61  ;;  %3884 = vmatprep.subr.bf16.mxu0 %v5032_v62  ;;  %v5071_v61 = vcombine.low %v498_v54, %v502_v16  ;;  %v5073_v62 = vcombine.low %v499_v55, %v503_v56  ;;  %v5082_v29 = vcombine.high %v507_v22, %v511_v24  ;;  %v546_v16 = vld [vmem:[#allocation6 + $0x410] sm:$0xff]  ;;  %v547_v56 = vld [vmem:[#allocation6 + $0x418] sm:$0xff] }
 0x228   :  { %4056 = vmatprep.subr.bf16.mxu1 %v5034_v63  ;;  %v5080_v63 = vcombine.high %v506_v18, %v510_v20  ;;  %v550_v55 = vld [vmem:[#allocation6 + $0x430] sm:$0xff] }
 0x22a   :  { %3885 = vmatpush1.bf16.msra.mxu0 %v5031_v3  ;;  %v519_v3 = vld [vmem:[#allocation6 + $0x338] sm:$0xff] }
 0x22b   :  { %4057 = vmatpush1.bf16.msra.mxu1 %v5033_v4  ;;  %3886 = vmatprep.subr.bf16.mxu0 %v5040_v6  ;;  %v5079_v4 = vcombine.low %v506_v18, %v510_v20  ;;  %v5081_v6 = vcombine.low %v507_v22, %v511_v24  ;;  %v5090_v8 = vcombine.high %v515_v2, %v519_v3  ;;  %v554_v20 = vld [vmem:[#allocation6 + $0x450] sm:$0xff] }
 0x22c   :  { %4058 = vmatprep.subr.bf16.mxu1 %v5042_v7  ;;  %v5088_v7 = vcombine.high %v514_v0, %v518_v1  ;;  %v558_v22 = vld [vmem:[#allocation6 + $0x470] sm:$0xff]  ;;  %v5119_v24 = vcombine.low %v546_v16, %v550_v55 }
 0x22e   :  { %3887 = vmatpush1.bf16.msra.mxu0 %v5039_v13  ;;  %v527_v13 = vld [vmem:[#allocation6 + $0x378] sm:$0xff] }
 0x22f   :  { %4059 = vmatpush1.bf16.msra.mxu1 %v5041_v15  ;;  %3888 = vmatprep.subr.bf16.mxu0 %v5048_v21  ;;  %v5087_v15 = vcombine.low %v514_v0, %v518_v1  ;;  %v5089_v21 = vcombine.low %v515_v2, %v519_v3  ;;  %v5098_v33 = vcombine.high %v523_v11, %v527_v13  ;;  %v562_v0 = vld [vmem:[#allocation6 + $0x490] sm:$0xff]  ;;  %v563_v3 = vld [vmem:[#allocation6 + $0x498] sm:$0xff] }
 0x230   :  { %4060 = vmatprep.subr.bf16.mxu1 %v5050_v25  ;;  %v5096_v25 = vcombine.high %v522_v9, %v526_v10  ;;  %v566_v1 = vld [vmem:[#allocation6 + $0x4b0] sm:$0xff] }
 0x232   :  { %3889 = vmatpush1.bf16.msra.mxu0 %v5047_v38  ;;  %v535_v38 = vld [vmem:[#allocation6 + $0x3b8] sm:$0xff] }
 0x233   :  { %4061 = vmatpush1.bf16.msra.mxu1 %v5049_v41  ;;  %3890 = vmatprep.subr.bf16.mxu0 %v5056_v42  ;;  %v5095_v41 = vcombine.low %v522_v9, %v526_v10  ;;  %v5097_v42 = vcombine.low %v523_v11, %v527_v13  ;;  %v5106_v46 = vcombine.high %v531_v37, %v535_v38  ;;  %v570_v10 = vld [vmem:[#allocation6 + $0x4d0] sm:$0xff]  ;;  %v571_v13 = vld [vmem:[#allocation6 + $0x4d8] sm:$0xff] }
 0x234   :  { %4062 = vmatprep.subr.bf16.mxu1 %v5058_v43  ;;  %v5104_v43 = vcombine.high %v530_v34, %v534_v35  ;;  %v574_v11 = vld [vmem:[#allocation6 + $0x4f0] sm:$0xff] }
 0x236   :  { %3891 = vmatpush1.bf16.msra.mxu0 %v5055_v50  ;;  %v543_v50 = vld [vmem:[#allocation6 + $0x3f8] sm:$0xff] }
 0x237   :  { %4063 = vmatpush1.bf16.msra.mxu1 %v5057_v51  ;;  %3892 = vmatprep.subr.bf16.mxu0 %v5064_v52  ;;  %v5103_v51 = vcombine.low %v530_v34, %v534_v35  ;;  %v5105_v52 = vcombine.low %v531_v37, %v535_v38  ;;  %v5114_v54 = vcombine.high %v539_v49, %v543_v50  ;;  %v578_v34 = vld [vmem:[#allocation6 + $0x510] sm:$0xff]  ;;  %v579_v37 = vld [vmem:[#allocation6 + $0x518] sm:$0xff] }
 0x238   :  { %4064 = vmatprep.subr.bf16.mxu1 %v5066_v53  ;;  %v5112_v53 = vcombine.high %v538_v47, %v542_v48  ;;  %v582_v35 = vld [vmem:[#allocation6 + $0x530] sm:$0xff]  ;;  %v583_v38 = vld [vmem:[#allocation6 + $0x538] sm:$0xff] }
 0x23a   :  { %3893 = vmatpush1.bf16.msra.mxu0 %v5063_v57  ;;  %v551_v57 = vld [vmem:[#allocation6 + $0x438] sm:$0xff] }
 0x23b   :  { %4065 = vmatpush1.bf16.msra.mxu1 %v5065_v58  ;;  %3894 = vmatprep.subr.bf16.mxu0 %v5072_v59  ;;  %v5111_v58 = vcombine.low %v538_v47, %v542_v48  ;;  %v5113_v59 = vcombine.low %v539_v49, %v543_v50  ;;  %v5122_v18 = vcombine.high %v547_v56, %v551_v57  ;;  %v590_v47 = vld [vmem:[#allocation6 + $0x570] sm:$0xff]  ;;  %v587_v48 = vld [vmem:[#allocation6 + $0x558] sm:$0xff] }
 0x23c   :  { %4066 = vmatprep.subr.bf16.mxu1 %v5074_v60  ;;  %v5120_v60 = vcombine.high %v546_v16, %v550_v55  ;;  %v591_v49 = vld [vmem:[#allocation6 + $0x578] sm:$0xff]  ;;  %v5151_v50 = vcombine.low %v578_v34, %v582_v35  ;;  %v598_v16 = vld [vmem:[#allocation6 + $0x5b0] sm:$0xff] }
 0x23d   :  { %v595_v55 = vld [vmem:[#allocation6 + $0x598] sm:$0xff] }
 0x23e   :  { %3895 = vmatpush1.bf16.msra.mxu0 %v5071_v61  ;;  %v555_v61 = vld [vmem:[#allocation6 + $0x458] sm:$0xff] }
 0x23f   :  { %4067 = vmatpush1.bf16.msra.mxu1 %v5073_v62  ;;  %3896 = vmatprep.subr.bf16.mxu0 %v5080_v63  ;;  %v559_v62 = vld [vmem:[#allocation6 + $0x478] sm:$0xff]  ;;  %v5121_v63 = vcombine.low %v547_v56, %v551_v57 }
 0x240   :  { %4068 = vmatprep.subr.bf16.mxu1 %v5082_v29  ;;  %v5128_v29 = vcombine.high %v554_v20, %v558_v22  ;;  %v5130_v2 = vcombine.high %v555_v61, %v559_v62  ;;  %v599_v56 = vld [vmem:[#allocation6 + $0x5b8] sm:$0xff] }
 0x242   :  { %3897 = vmatpush1.bf16.msra.mxu0 %v5079_v4  ;;  %v567_v4 = vld [vmem:[#allocation6 + $0x4b8] sm:$0xff] }
 0x243   :  { %4069 = vmatpush1.bf16.msra.mxu1 %v5081_v6  ;;  %3898 = vmatprep.subr.bf16.mxu0 %v5088_v7  ;;  %v5127_v6 = vcombine.low %v554_v20, %v558_v22  ;;  %v5129_v7 = vcombine.low %v555_v61, %v559_v62  ;;  %v5138_v9 = vcombine.high %v563_v3, %v567_v4  ;;  %v606_v20 = vld [vmem:[#allocation6 + $0x5f0] sm:$0xff]  ;;  %v603_v22 = vld [vmem:[#allocation6 + $0x5d8] sm:$0xff] }
 0x244   :  { %4070 = vmatprep.subr.bf16.mxu1 %v5090_v8  ;;  %v5136_v8 = vcombine.high %v562_v0, %v566_v1  ;;  %v5169_v62 = vcombine.low %v595_v55, %v599_v56 }
 0x246   :  { %3899 = vmatpush1.bf16.msra.mxu0 %v5087_v15  ;;  %v575_v15 = vld [vmem:[#allocation6 + $0x4f8] sm:$0xff] }
 0x247   :  { %4071 = vmatpush1.bf16.msra.mxu1 %v5089_v21  ;;  %3900 = vmatprep.subr.bf16.mxu0 %v5096_v25  ;;  %v5135_v21 = vcombine.low %v562_v0, %v566_v1  ;;  %v5144_v25 = vcombine.high %v570_v10, %v574_v11  ;;  %v610_v0 = vld [vmem:[#allocation6 + $0x610] sm:$0xff] }
 0x248   :  { %4072 = vmatprep.subr.bf16.mxu1 %v5098_v33  ;;  %v5146_v33 = vcombine.high %v571_v13, %v575_v15  ;;  %v614_v1 = vld [vmem:[#allocation6 + $0x630] sm:$0xff] }
 0x24a   :  { %3901 = vmatpush1.bf16.msra.mxu0 %v5095_v41  ;;  %v5145_v41 = vcombine.low %v571_v13, %v575_v15  ;;  %v623_v13 = vld [vmem:[#allocation6 + $0x678] sm:$0xff]  ;;  %v5183_v15 = vcombine.low %v610_v0, %v614_v1 }
 0x24b   :  { %4073 = vmatpush1.bf16.msra.mxu1 %v5097_v42  ;;  %3902 = vmatprep.subr.bf16.mxu0 %v5104_v43  ;;  %v5152_v42 = vcombine.high %v578_v34, %v582_v35  ;;  %v5154_v43 = vcombine.high %v579_v37, %v583_v38  ;;  %v630_v34 = vld [vmem:[#allocation6 + $0x6b0] sm:$0xff]  ;;  %v627_v35 = vld [vmem:[#allocation6 + $0x698] sm:$0xff] }
 0x24c   :  { %4074 = vmatprep.subr.bf16.mxu1 %v5106_v46  ;;  %v586_v46 = vld [vmem:[#allocation6 + $0x550] sm:$0xff] }
 0x24d   :  { %v5159_v57 = vcombine.low %v586_v46, %v590_v47 }
 0x24e   :  { %3903 = vmatpush1.bf16.msra.mxu0 %v5103_v51  ;;  %v5153_v51 = vcombine.low %v579_v37, %v583_v38  ;;  %v631_v37 = vld [vmem:[#allocation6 + $0x6b8] sm:$0xff] }
 0x24f   :  { %4075 = vmatpush1.bf16.msra.mxu1 %v5105_v52  ;;  %3904 = vmatprep.subr.bf16.mxu0 %v5112_v53  ;;  %v5160_v52 = vcombine.high %v586_v46, %v590_v47  ;;  %v5162_v53 = vcombine.high %v587_v48, %v591_v49  ;;  %v638_v46 = vld [vmem:[#allocation6 + $0x6f0] sm:$0xff]  ;;  %v635_v47 = vld [vmem:[#allocation6 + $0x6d8] sm:$0xff] }
 0x250   :  { %4076 = vmatprep.subr.bf16.mxu1 %v5114_v54  ;;  %v594_v54 = vld [vmem:[#allocation6 + $0x590] sm:$0xff] }
 0x251   :  { %v5167_v61 = vcombine.low %v594_v54, %v598_v16 }
 0x252   :  { %3905 = vmatpush1.bf16.msra.mxu0 %v5111_v58  ;;  %v5161_v58 = vcombine.low %v587_v48, %v591_v49  ;;  %v639_v48 = vld [vmem:[#allocation6 + $0x6f8] sm:$0xff] }
 0x253   :  { %4077 = vmatpush1.bf16.msra.mxu1 %v5113_v59  ;;  %3917 = vmatprep.subr.bf16.mxu0 %v5120_v60  ;;  %v5168_v59 = vcombine.high %v594_v54, %v598_v16  ;;  %v5170_v60 = vcombine.high %v595_v55, %v599_v56  ;;  %v646_v54 = vld [vmem:[#allocation6 + $0x730] sm:$0xff]  ;;  %v643_v16 = vld [vmem:[#allocation6 + $0x718] sm:$0xff] }
 0x254   :  { %4089 = vmatprep.subr.bf16.mxu1 %v5122_v18  ;;  %v602_v18 = vld [vmem:[#allocation6 + $0x5d0] sm:$0xff]  ;;  %v647_v55 = vld [vmem:[#allocation6 + $0x738] sm:$0xff] }
 0x255   :  { %3907 = vmatmul.mubr.bf16.vlgmr.msra.gmra.mrb[12].mxu0 %v6121_v12 }
 0x256   :  { %4079 = vmatmul.mubr.bf16.vlgmr.msra.gmra.mrb[12].mxu1 %v6121_v12  ;;  %3918 = vmatpush1.bf16.msra.mxu0 %v5119_v24  ;;  %v5137_v12 = vcombine.low %v563_v3, %v567_v4  ;;  %v607_v24 = vld [vmem:[#allocation6 + $0x5f8] sm:$0xff]  ;;  %v5175_v4 = vcombine.low %v602_v18, %v606_v20 }
 0x257   :  { %3949 = vmatprep.mubr.bf16.mxu0 %v6129_v45  ;;  %4090 = vmatpush1.bf16.msra.mxu1 %v5121_v63  ;;  %v5176_v63 = vcombine.high %v602_v18, %v606_v20  ;;  %v615_v3 = vld [vmem:[#allocation6 + $0x638] sm:$0xff]  ;;  %v654_v18 = vld [vmem:[#allocation6 + $0x770] sm:$0xff] }
 0x258   :  { %4121 = vmatprep.mubr.bf16.mxu1 %v6129_v45  ;;  %3919 = vmatprep.subr.bf16.mxu0 %v5128_v29  ;;  %v5143_v45 = vcombine.low %v570_v10, %v574_v11  ;;  %v5178_v29 = vcombine.high %v603_v22, %v607_v24  ;;  %v622_v10 = vld [vmem:[#allocation6 + $0x670] sm:$0xff]  ;;  %v619_v11 = vld [vmem:[#allocation6 + $0x658] sm:$0xff] }
 0x259   :  { %4091 = vmatprep.subr.bf16.mxu1 %v5130_v2  ;;  %v611_v2 = vld [vmem:[#allocation6 + $0x618] sm:$0xff] }
 0x25a   :  { %3920 = vmatpush1.bf16.msra.mxu0 %v5127_v6  ;;  %v5177_v6 = vcombine.low %v603_v22, %v607_v24  ;;  %v651_v20 = vld [vmem:[#allocation6 + $0x758] sm:$0xff] }
 0x25b   :  { %4092 = vmatpush1.bf16.msra.mxu1 %v5129_v7  ;;  %3921 = vmatprep.subr.bf16.mxu0 %v5136_v8  ;;  %v5184_v7 = vcombine.high %v610_v0, %v614_v1  ;;  %v5186_v8 = vcombine.high %v611_v2, %v615_v3  ;;  %v655_v22 = vld [vmem:[#allocation6 + $0x778] sm:$0xff]  ;;  %v662_v0 = vld [vmem:[#allocation6 + $0x7b0] sm:$0xff] }
 0x25c   :  { %4093 = vmatprep.subr.bf16.mxu1 %v5138_v9  ;;  %v618_v9 = vld [vmem:[#allocation6 + $0x650] sm:$0xff]  ;;  %v659_v1 = vld [vmem:[#allocation6 + $0x798] sm:$0xff] }
 0x25d   :  { %v5191_v38 = vcombine.low %v618_v9, %v622_v10 }
 0x25e   :  { %3922 = vmatpush1.bf16.msra.mxu0 %v5135_v21  ;;  %v5185_v21 = vcombine.low %v611_v2, %v615_v3  ;;  %v663_v2 = vld [vmem:[#allocation6 + $0x7b8] sm:$0xff] }
 0x25f   :  { %4094 = vmatpush1.bf16.msra.mxu1 %v5137_v12  ;;  %3923 = vmatprep.subr.bf16.mxu0 %v5144_v25  ;;  %v5192_v12 = vcombine.high %v618_v9, %v622_v10  ;;  %v5194_v25 = vcombine.high %v619_v11, %v623_v13  ;;  %v670_v9 = vld [vmem:[#allocation6 + $0x7f0] sm:$0xff]  ;;  %v667_v10 = vld [vmem:[#allocation6 + $0x7d8] sm:$0xff] }
 0x260   :  { %4095 = vmatprep.subr.bf16.mxu1 %v5146_v33  ;;  %v626_v33 = vld [vmem:[#allocation6 + $0x690] sm:$0xff] }
 0x261   :  { %v5199_v49 = vcombine.low %v626_v33, %v630_v34 }
 0x262   :  { %3924 = vmatpush1.bf16.msra.mxu0 %v5143_v45  ;;  %v5193_v45 = vcombine.low %v619_v11, %v623_v13  ;;  %v671_v11 = vld [vmem:[#allocation6 + $0x7f8] sm:$0xff] }
 0x263   :  { %4096 = vmatpush1.bf16.msra.mxu1 %v5145_v41  ;;  %3925 = vmatprep.subr.bf16.mxu0 %v5152_v42  ;;  %v5200_v41 = vcombine.high %v626_v33, %v630_v34  ;;  %v5202_v42 = vcombine.high %v627_v35, %v631_v37  ;;  %v678_v33 = vld [vmem:[#allocation6 + $0x830] sm:$0xff]  ;;  %v675_v34 = vld [vmem:[#allocation6 + $0x818] sm:$0xff] }
 0x264   :  { %4097 = vmatprep.subr.bf16.mxu1 %v5154_v43  ;;  %v634_v43 = vld [vmem:[#allocation6 + $0x6d0] sm:$0xff] }
 0x265   :  { %v5207_v56 = vcombine.low %v634_v43, %v638_v46 }
 0x266   :  { %3926 = vmatpush1.bf16.msra.mxu0 %v5151_v50  ;;  %v5201_v50 = vcombine.low %v627_v35, %v631_v37  ;;  %v679_v35 = vld [vmem:[#allocation6 + $0x838] sm:$0xff] }
 0x267   :  { %4098 = vmatpush1.bf16.msra.mxu1 %v5153_v51  ;;  %3927 = vmatprep.subr.bf16.mxu0 %v5160_v52  ;;  %v5208_v51 = vcombine.high %v634_v43, %v638_v46  ;;  %v5210_v52 = vcombine.high %v635_v47, %v639_v48  ;;  %v686_v43 = vld [vmem:[#allocation6 + $0x870] sm:$0xff] }
 0x268   :  { %4099 = vmatprep.subr.bf16.mxu1 %v5162_v53  ;;  %v642_v53 = vld [vmem:[#allocation6 + $0x710] sm:$0xff] }
 0x269   :  { %v5215_v24 = vcombine.low %v642_v53, %v646_v54 }
 0x26a   :  { %3928 = vmatpush1.bf16.msra.mxu0 %v5159_v57  ;;  %v5209_v57 = vcombine.low %v635_v47, %v639_v48  ;;  %v683_v47 = vld [vmem:[#allocation6 + $0x858] sm:$0xff] }
 0x26b   :  { %4100 = vmatpush1.bf16.msra.mxu1 %v5161_v58  ;;  %3929 = vmatprep.subr.bf16.mxu0 %v5168_v59  ;;  %v5216_v58 = vcombine.high %v642_v53, %v646_v54  ;;  %v5218_v59 = vcombine.high %v643_v16, %v647_v55  ;;  %v687_v48 = vld [vmem:[#allocation6 + $0x878] sm:$0xff] }
 0x26c   :  { %4101 = vmatprep.subr.bf16.mxu1 %v5170_v60  ;;  %v650_v60 = vld [vmem:[#allocation6 + $0x750] sm:$0xff]  ;;  %v5258_v53 = vcombine.high %v683_v47, %v687_v48  ;;  %v691_v54 = vld [vmem:[#allocation6 + $0x898] sm:$0xff] }
 0x26d   :  { %v5223_v3 = vcombine.low %v650_v60, %v654_v18 }
 0x26e   :  { %3930 = vmatpush1.bf16.msra.mxu0 %v5167_v61  ;;  %v5217_v61 = vcombine.low %v643_v16, %v647_v55  ;;  %v695_v16 = vld [vmem:[#allocation6 + $0x8b8] sm:$0xff] }
 0x26f   :  { %4102 = vmatpush1.bf16.msra.mxu1 %v5169_v62  ;;  %3931 = vmatprep.subr.bf16.mxu0 %v5176_v63  ;;  %v5224_v62 = vcombine.high %v650_v60, %v654_v18  ;;  %v5226_v63 = vcombine.high %v651_v20, %v655_v22  ;;  %v702_v60 = vld [vmem:[#allocation6 + $0x8f0] sm:$0xff]  ;;  %v699_v18 = vld [vmem:[#allocation6 + $0x8d8] sm:$0xff] }
 0x270   :  { %4103 = vmatprep.subr.bf16.mxu1 %v5178_v29  ;;  %v658_v29 = vld [vmem:[#allocation6 + $0x790] sm:$0xff] }
 0x271   :  { %v5231_v13 = vcombine.low %v658_v29, %v662_v0 }
 0x272   :  { %3932 = vmatpush1.bf16.msra.mxu0 %v5175_v4  ;;  %v5225_v4 = vcombine.low %v651_v20, %v655_v22  ;;  %v703_v20 = vld [vmem:[#allocation6 + $0x8f8] sm:$0xff] }
 0x273   :  { %4104 = vmatpush1.bf16.msra.mxu1 %v5177_v6  ;;  %3933 = vmatprep.subr.bf16.mxu0 %v5184_v7  ;;  %v5232_v6 = vcombine.high %v658_v29, %v662_v0  ;;  %v5234_v7 = vcombine.high %v659_v1, %v663_v2  ;;  %v707_v29 = vld [vmem:[#allocation6 + $0x918] sm:$0xff] }
 0x274   :  { %4105 = vmatprep.subr.bf16.mxu1 %v5186_v8  ;;  %v666_v8 = vld [vmem:[#allocation6 + $0x7d0] sm:$0xff]  ;;  %v711_v0 = vld [vmem:[#allocation6 + $0x938] sm:$0xff] }
 0x275   :  { %v5239_v37 = vcombine.low %v666_v8, %v670_v9 }
 0x276   :  { %3934 = vmatpush1.bf16.msra.mxu0 %v5183_v15  ;;  %v5233_v15 = vcombine.low %v659_v1, %v663_v2  ;;  %v5273_v1 = vcombine.low %v699_v18, %v703_v20 }
 0x277   :  { %4106 = vmatpush1.bf16.msra.mxu1 %v5185_v21  ;;  %3935 = vmatprep.subr.bf16.mxu0 %v5192_v12  ;;  %v5240_v21 = vcombine.high %v666_v8, %v670_v9  ;;  %v5242_v12 = vcombine.high %v667_v10, %v671_v11  ;;  %v719_v8 = vld [vmem:[#allocation6 + $0x978] sm:$0xff] }
 0x278   :  { %4107 = vmatprep.subr.bf16.mxu1 %v5194_v25  ;;  %v674_v25 = vld [vmem:[#allocation6 + $0x810] sm:$0xff] }
 0x279   :  { %v5247_v46 = vcombine.low %v674_v25, %v678_v33 }
 0x27a   :  { %3936 = vmatpush1.bf16.msra.mxu0 %v5191_v38  ;;  %v5241_v38 = vcombine.low %v667_v10, %v671_v11  ;;  %v5281_v10 = vcombine.low %v707_v29, %v711_v0 }
 0x27b   :  { %4108 = vmatpush1.bf16.msra.mxu1 %v5193_v45  ;;  %3937 = vmatprep.subr.bf16.mxu0 %v5200_v41  ;;  %v5248_v45 = vcombine.high %v674_v25, %v678_v33  ;;  %v5250_v41 = vcombine.high %v675_v34, %v679_v35  ;;  %v727_v25 = vld [vmem:[#allocation6 + $0x9b8] sm:$0xff] }
 0x27c   :  { %4109 = vmatprep.subr.bf16.mxu1 %v5202_v42  ;;  %v682_v42 = vld [vmem:[#allocation6 + $0x850] sm:$0xff] }
 0x27d   :  { %v5255_v55 = vcombine.low %v682_v42, %v686_v43 }
 0x27e   :  { %3938 = vmatpush1.bf16.msra.mxu0 %v5199_v49  ;;  %v5249_v49 = vcombine.low %v675_v34, %v679_v35 }
 0x27f   :  { %4110 = vmatpush1.bf16.msra.mxu1 %v5201_v50  ;;  %3939 = vmatprep.subr.bf16.mxu0 %v5208_v51  ;;  %v5256_v50 = vcombine.high %v682_v42, %v686_v43  ;;  %v690_v51 = vld [vmem:[#allocation6 + $0x890] sm:$0xff]  ;;  %v735_v42 = vld [vmem:[#allocation6 + $0x9f8] sm:$0xff] }
 0x280   :  { %4111 = vmatprep.subr.bf16.mxu1 %v5210_v52  ;;  %v694_v52 = vld [vmem:[#allocation6 + $0x8b0] sm:$0xff] }
 0x281   :  { %v5263_v22 = vcombine.low %v690_v51, %v694_v52 }
 0x282   :  { %3940 = vmatpush1.bf16.msra.mxu0 %v5207_v56  ;;  %v5257_v56 = vcombine.low %v683_v47, %v687_v48 }
 0x283   :  { %4112 = vmatpush1.bf16.msra.mxu1 %v5209_v57  ;;  %3941 = vmatprep.subr.bf16.mxu0 %v5216_v58  ;;  %v5264_v57 = vcombine.high %v690_v51, %v694_v52  ;;  %v5266_v58 = vcombine.high %v691_v54, %v695_v16  ;;  %v739_v51 = vld [vmem:[#allocation6 + $0xa18] sm:$0xff] }
 0x284   :  { %4113 = vmatprep.subr.bf16.mxu1 %v5218_v59  ;;  %v698_v59 = vld [vmem:[#allocation6 + $0x8d0] sm:$0xff]  ;;  %v743_v52 = vld [vmem:[#allocation6 + $0xa38] sm:$0xff] }
 0x286   :  { %3942 = vmatpush1.bf16.msra.mxu0 %v5215_v24  ;;  %v5272_v24 = vcombine.high %v698_v59, %v702_v60 }
 0x287   :  { %4114 = vmatpush1.bf16.msra.mxu1 %v5217_v61  ;;  %3943 = vmatprep.subr.bf16.mxu0 %v5224_v62  ;;  %v5274_v61 = vcombine.high %v699_v18, %v703_v20  ;;  %v706_v62 = vld [vmem:[#allocation6 + $0x910] sm:$0xff]  ;;  %v5313_v18 = vcombine.low %v739_v51, %v743_v52 }
 0x288   :  { %4115 = vmatprep.subr.bf16.mxu1 %v5226_v63  ;;  %v710_v63 = vld [vmem:[#allocation6 + $0x930] sm:$0xff] }
 0x289   :  { %v5280_v2 = vcombine.high %v706_v62, %v710_v63  ;;  %v5279_v9 = vcombine.low %v706_v62, %v710_v63  ;;  %v759_v62 = vld [vmem:[#allocation6 + $0xab8] sm:$0xff] }
 0x28a   :  { %3944 = vmatpush1.bf16.msra.mxu0 %v5223_v3  ;;  %v5282_v3 = vcombine.high %v707_v29, %v711_v0 }
 0x28b   :  { %4116 = vmatpush1.bf16.msra.mxu1 %v5225_v4  ;;  %3945 = vmatprep.subr.bf16.mxu0 %v5232_v6  ;;  %v714_v4 = vld [vmem:[#allocation6 + $0x950] sm:$0xff] }
 0x28c   :  { %4117 = vmatprep.subr.bf16.mxu1 %v5234_v7  ;;  %v718_v6 = vld [vmem:[#allocation6 + $0x970] sm:$0xff]  ;;  %v715_v7 = vld [vmem:[#allocation6 + $0x958] sm:$0xff] }
 0x28d   :  { %v5288_v11 = vcombine.high %v714_v4, %v718_v6  ;;  %v5287_v33 = vcombine.low %v714_v4, %v718_v6  ;;  %v5289_v34 = vcombine.low %v715_v7, %v719_v8  ;;  %v767_v4 = vld [vmem:[#allocation6 + $0xaf8] sm:$0xff] }
 0x28e   :  { %3946 = vmatpush1.bf16.msra.mxu0 %v5231_v13  ;;  %v5290_v13 = vcombine.high %v715_v7, %v719_v8 }
 0x28f   :  { %4118 = vmatpush1.bf16.msra.mxu1 %v5233_v15  ;;  %3947 = vmatprep.subr.bf16.mxu0 %v5240_v21  ;;  %v722_v15 = vld [vmem:[#allocation6 + $0x990] sm:$0xff] }
 0x290   :  { %4119 = vmatprep.subr.bf16.mxu1 %v5242_v12  ;;  %v726_v21 = vld [vmem:[#allocation6 + $0x9b0] sm:$0xff]  ;;  %v723_v12 = vld [vmem:[#allocation6 + $0x998] sm:$0xff] }
 0x291   :  { %v5296_v35 = vcombine.high %v722_v15, %v726_v21  ;;  %v5295_v43 = vcombine.low %v722_v15, %v726_v21  ;;  %v775_v15 = vld [vmem:[#allocation6 + $0xb38] sm:$0xff] }
 0x292   :  { %3948 = vmatpush1.bf16.msra.mxu0 %v5239_v37  ;;  %v5298_v37 = vcombine.high %v723_v12, %v727_v25 }
 0x293   :  { %4120 = vmatpush1.bf16.msra.mxu1 %v5241_v38  ;;  %3960 = vmatprep.subr.bf16.mxu0 %v5248_v45  ;;  %v730_v38 = vld [vmem:[#allocation6 + $0x9d0] sm:$0xff] }
 0x294   :  { %4132 = vmatprep.subr.bf16.mxu1 %v5250_v41  ;;  %v734_v45 = vld [vmem:[#allocation6 + $0x9f0] sm:$0xff]  ;;  %v731_v41 = vld [vmem:[#allocation6 + $0x9d8] sm:$0xff] }
 0x295   :  { %3950 = vmatmul.mubr.bf16.vlgmr.msra.gmra.mrb[12].mxu0 %v6125_v36  ;;  %v5304_v47 = vcombine.high %v730_v38, %v734_v45  ;;  %v5306_v48 = vcombine.high %v731_v41, %v735_v42 }
 0x296   :  { %4122 = vmatmul.mubr.bf16.vlgmr.msra.gmra.mrb[12].mxu1 %v6125_v36  ;;  %3961 = vmatpush1.bf16.msra.mxu0 %v5247_v46  ;;  %v5265_v36 = vcombine.low %v691_v54, %v695_v16  ;;  %v5297_v46 = vcombine.low %v723_v12, %v727_v25  ;;  %v5305_v54 = vcombine.low %v731_v41, %v735_v42 }
 0x297   :  { %3992 = vmatprep.mubr.bf16.mxu0 %v6143_v23  ;;  %4133 = vmatpush1.bf16.msra.mxu1 %v5249_v49  ;;  %v738_v49 = vld [vmem:[#allocation6 + $0xa10] sm:$0xff] }
 0x298   :  { %4164 = vmatprep.mubr.bf16.mxu1 %v6143_v23  ;;  %3962 = vmatprep.subr.bf16.mxu0 %v5256_v50  ;;  %v5271_v23 = vcombine.low %v698_v59, %v702_v60  ;;  %v742_v50 = vld [vmem:[#allocation6 + $0xa30] sm:$0xff]  ;;  %v751_v59 = vld [vmem:[#allocation6 + $0xa78] sm:$0xff] }
 0x299   :  { %4134 = vmatprep.subr.bf16.mxu1 %v5258_v53  ;;  %v5303_v53 = vcombine.low %v730_v38, %v734_v45  ;;  %v5312_v16 = vcombine.high %v738_v49, %v742_v50  ;;  %v5311_v60 = vcombine.low %v738_v49, %v742_v50  ;;  %v783_v38 = vld [vmem:[#allocation6 + $0xb78] sm:$0xff] }
 0x29a   :  { %3963 = vmatpush1.bf16.msra.mxu0 %v5255_v55  ;;  %v5314_v55 = vcombine.high %v739_v51, %v743_v52  ;;  %v791_v49 = vld [vmem:[#allocation6 + $0xbb8] sm:$0xff] }
 0x29b   :  { %4135 = vmatpush1.bf16.msra.mxu1 %v5257_v56  ;;  %3964 = vmatprep.subr.bf16.mxu0 %v5264_v57  ;;  %v746_v56 = vld [vmem:[#allocation6 + $0xa50] sm:$0xff] }
 0x29c   :  { %4136 = vmatprep.subr.bf16.mxu1 %v5266_v58  ;;  %v750_v57 = vld [vmem:[#allocation6 + $0xa70] sm:$0xff]  ;;  %v747_v58 = vld [vmem:[#allocation6 + $0xa58] sm:$0xff] }
 0x29d   :  { %v5320_v20 = vcombine.high %v746_v56, %v750_v57  ;;  %v5319_v63 = vcombine.low %v746_v56, %v750_v57  ;;  %v5321_v29 = vcombine.low %v747_v58, %v751_v59  ;;  %v799_v56 = vld [vmem:[#allocation6 + $0xbf8] sm:$0xff] }
 0x29e   :  { %3965 = vmatpush1.bf16.msra.mxu0 %v5263_v22  ;;  %v5322_v22 = vcombine.high %v747_v58, %v751_v59 }
 0x29f   :  { %4137 = vmatpush1.bf16.msra.mxu1 %v5265_v36  ;;  %3966 = vmatprep.subr.bf16.mxu0 %v5272_v24  ;;  %v754_v36 = vld [vmem:[#allocation6 + $0xa90] sm:$0xff] }
 0x2a0   :  { %4138 = vmatprep.subr.bf16.mxu1 %v5274_v61  ;;  %v758_v24 = vld [vmem:[#allocation6 + $0xab0] sm:$0xff]  ;;  %v755_v61 = vld [vmem:[#allocation6 + $0xa98] sm:$0xff] }
 0x2a1   :  { %v5328_v0 = vcombine.high %v754_v36, %v758_v24  ;;  %v5327_v6 = vcombine.low %v754_v36, %v758_v24  ;;  %v5329_v7 = vcombine.low %v755_v61, %v759_v62  ;;  %v807_v36 = vld [vmem:[#allocation6 + $0xc38] sm:$0xff] }
 0x2a2   :  { %3967 = vmatpush1.bf16.msra.mxu0 %v5271_v23  ;;  %v5330_v23 = vcombine.high %v755_v61, %v759_v62 }
 0x2a3   :  { %4139 = vmatpush1.bf16.msra.mxu1 %v5273_v1  ;;  %3968 = vmatprep.subr.bf16.mxu0 %v5280_v2  ;;  %v762_v1 = vld [vmem:[#allocation6 + $0xad0] sm:$0xff] }
 0x2a4   :  { %4140 = vmatprep.subr.bf16.mxu1 %v5282_v3  ;;  %v766_v2 = vld [vmem:[#allocation6 + $0xaf0] sm:$0xff]  ;;  %v763_v3 = vld [vmem:[#allocation6 + $0xad8] sm:$0xff] }
 0x2a5   :  { %v5336_v8 = vcombine.high %v762_v1, %v766_v2  ;;  %v5335_v21 = vcombine.low %v762_v1, %v766_v2  ;;  %v5337_v12 = vcombine.low %v763_v3, %v767_v4  ;;  %v811_v1 = vld [vmem:[#allocation6 + $0xc58] sm:$0xff] }
 0x2a6   :  { %3969 = vmatpush1.bf16.msra.mxu0 %v5279_v9  ;;  %v5338_v9 = vcombine.high %v763_v3, %v767_v4  ;;  %v815_v2 = vld [vmem:[#allocation6 + $0xc78] sm:$0xff] }
 0x2a7   :  { %4141 = vmatpush1.bf16.msra.mxu1 %v5281_v10  ;;  %3970 = vmatprep.subr.bf16.mxu0 %v5288_v11  ;;  %v770_v10 = vld [vmem:[#allocation6 + $0xb10] sm:$0xff] }
 0x2a8   :  { %4142 = vmatprep.subr.bf16.mxu1 %v5290_v13  ;;  %v774_v11 = vld [vmem:[#allocation6 + $0xb30] sm:$0xff]  ;;  %v771_v13 = vld [vmem:[#allocation6 + $0xb18] sm:$0xff] }
 0x2a9   :  { %v5344_v25 = vcombine.high %v770_v10, %v774_v11  ;;  %v5343_v45 = vcombine.low %v770_v10, %v774_v11  ;;  %v5345_v41 = vcombine.low %v771_v13, %v775_v15  ;;  %v823_v10 = vld [vmem:[#allocation6 + $0xcb8] sm:$0xff] }
 0x2aa   :  { %3971 = vmatpush1.bf16.msra.mxu0 %v5287_v33  ;;  %v5346_v33 = vcombine.high %v771_v13, %v775_v15  ;;  %v5385_v13 = vcombine.low %v811_v1, %v815_v2 }
 0x2ab   :  { %4143 = vmatpush1.bf16.msra.mxu1 %v5289_v34  ;;  %3972 = vmatprep.subr.bf16.mxu0 %v5296_v35  ;;  %v778_v34 = vld [vmem:[#allocation6 + $0xb50] sm:$0xff] }
 0x2ac   :  { %4144 = vmatprep.subr.bf16.mxu1 %v5298_v37  ;;  %v782_v35 = vld [vmem:[#allocation6 + $0xb70] sm:$0xff]  ;;  %v779_v37 = vld [vmem:[#allocation6 + $0xb58] sm:$0xff] }
 0x2ad   :  { %v5352_v42 = vcombine.high %v778_v34, %v782_v35  ;;  %v5351_v50 = vcombine.low %v778_v34, %v782_v35  ;;  %v5353_v51 = vcombine.low %v779_v37, %v783_v38  ;;  %v831_v34 = vld [vmem:[#allocation6 + $0xcf8] sm:$0xff] }
 0x2ae   :  { %3973 = vmatpush1.bf16.msra.mxu0 %v5295_v43  ;;  %v5354_v43 = vcombine.high %v779_v37, %v783_v38 }
 0x2af   :  { %4145 = vmatpush1.bf16.msra.mxu1 %v5297_v46  ;;  %3974 = vmatprep.subr.bf16.mxu0 %v5304_v47  ;;  %v786_v46 = vld [vmem:[#allocation6 + $0xb90] sm:$0xff] }
 0x2b0   :  { %4146 = vmatprep.subr.bf16.mxu1 %v5306_v48  ;;  %v790_v47 = vld [vmem:[#allocation6 + $0xbb0] sm:$0xff]  ;;  %v787_v48 = vld [vmem:[#allocation6 + $0xb98] sm:$0xff] }
 0x2b1   :  { %v5360_v52 = vcombine.high %v786_v46, %v790_v47  ;;  %v5359_v57 = vcombine.low %v786_v46, %v790_v47  ;;  %v5361_v58 = vcombine.low %v787_v48, %v791_v49 }
 0x2b2   :  { %3975 = vmatpush1.bf16.msra.mxu0 %v5303_v53  ;;  %v5362_v53 = vcombine.high %v787_v48, %v791_v49  ;;  %v842_v49 = vld [vmem:[#allocation6 + $0xd50] sm:$0xff] }
 0x2b3   :  { %4147 = vmatpush1.bf16.msra.mxu1 %v5305_v54  ;;  %3976 = vmatprep.subr.bf16.mxu0 %v5312_v16  ;;  %v794_v54 = vld [vmem:[#allocation6 + $0xbd0] sm:$0xff] }
 0x2b4   :  { %4148 = vmatprep.subr.bf16.mxu1 %v5314_v55  ;;  %v798_v16 = vld [vmem:[#allocation6 + $0xbf0] sm:$0xff]  ;;  %v795_v55 = vld [vmem:[#allocation6 + $0xbd8] sm:$0xff] }
 0x2b5   :  { %v5368_v59 = vcombine.high %v794_v54, %v798_v16  ;;  %v5367_v24 = vcombine.low %v794_v54, %v798_v16  ;;  %v5369_v61 = vcombine.low %v795_v55, %v799_v56  ;;  %v6181_v54 = vld [vmem:[#allocation7] sm:$0xff] }
 0x2b6   :  { %3977 = vmatpush1.bf16.msra.mxu0 %v5311_v60  ;;  %v5370_v60 = vcombine.high %v795_v55, %v799_v56 }
 0x2b7   :  { %4149 = vmatpush1.bf16.msra.mxu1 %v5313_v18  ;;  %3978 = vmatprep.subr.bf16.mxu0 %v5320_v20  ;;  %v802_v18 = vld [vmem:[#allocation6 + $0xc10] sm:$0xff] }
 0x2b8   :  { %4150 = vmatprep.subr.bf16.mxu1 %v5322_v22  ;;  %v806_v20 = vld [vmem:[#allocation6 + $0xc30] sm:$0xff]  ;;  %v803_v22 = vld [vmem:[#allocation6 + $0xc18] sm:$0xff] }
 0x2b9   :  { %v5376_v62 = vcombine.high %v802_v18, %v806_v20  ;;  %v5377_v3 = vcombine.low %v803_v22, %v807_v36 }
 0x2ba   :  { %3979 = vmatpush1.bf16.msra.mxu0 %v5319_v63  ;;  %v5378_v63 = vcombine.high %v803_v22, %v807_v36  ;;  %v937_v22 = vrot.slane %v6181_v54, %v121_v30  ;;  %v945_v36 = vrot.slane %v6181_v54, %v129_v32 }
 0x2bb   :  { %4151 = vmatpush1.bf16.msra.mxu1 %v5321_v29  ;;  %3980 = vmatprep.subr.bf16.mxu0 %v5328_v0  ;;  %v810_v29 = vld [vmem:[#allocation6 + $0xc50] sm:$0xff] }
 0x2bc   :  { %4152 = vmatprep.subr.bf16.mxu1 %v5330_v23  ;;  %v814_v0 = vld [vmem:[#allocation6 + $0xc70] sm:$0xff]  ;;  %v5375_v23 = vcombine.low %v802_v18, %v806_v20  ;;  %v851_v18 = vld [vmem:[#allocation6 + $0xd98] sm:$0xff] }
 0x2bd   :  { %v5384_v4 = vcombine.high %v810_v29, %v814_v0  ;;  %v5383_v11 = vcombine.low %v810_v29, %v814_v0  ;;  %v855_v20 = vld [vmem:[#allocation6 + $0xdb8] sm:$0xff] }
 0x2be   :  { %3981 = vmatpush1.bf16.msra.mxu0 %v5327_v6  ;;  %v818_v6 = vld [vmem:[#allocation6 + $0xc90] sm:$0xff]  ;;  %v6201_v29 = vld [vmem:[#allocation6 + $0xdf8] sm:$0xff] }
 0x2bf   :  { %4153 = vmatpush1.bf16.msra.mxu1 %v5329_v7  ;;  %3982 = vmatprep.subr.bf16.mxu0 %v5336_v8  ;;  %v822_v7 = vld [vmem:[#allocation6 + $0xcb0] sm:$0xff]  ;;  %v5386_v8 = vcombine.high %v811_v1, %v815_v2  ;;  %v5426_v1 = vcombine.high %v851_v18, %v855_v20 }
 0x2c0   :  { %4154 = vmatprep.subr.bf16.mxu1 %v5338_v9  ;;  %v819_v9 = vld [vmem:[#allocation6 + $0xc98] sm:$0xff]  ;;  %v5392_v15 = vcombine.high %v818_v6, %v822_v7  ;;  %v5391_v35 = vcombine.low %v818_v6, %v822_v7  ;;  %v5425_v6 = vcombine.low %v851_v18, %v855_v20  ;;  %v874_v18 = vld [vmem:[#allocation6 + $0xe50] sm:$0xff] }
 0x2c1   :  { %v878_v20 = vld [vmem:[#allocation6 + $0xe70] sm:$0xff] }
 0x2c2   :  { %3983 = vmatpush1.bf16.msra.mxu0 %v5335_v21  ;;  %v5394_v21 = vcombine.high %v819_v9, %v823_v10 }
 0x2c3   :  { %4155 = vmatpush1.bf16.msra.mxu1 %v5337_v12  ;;  %3984 = vmatprep.subr.bf16.mxu0 %v5344_v25  ;;  %v826_v12 = vld [vmem:[#allocation6 + $0xcd0] sm:$0xff] }
 0x2c4   :  { %4156 = vmatprep.subr.bf16.mxu1 %v5346_v33  ;;  %v830_v25 = vld [vmem:[#allocation6 + $0xcf0] sm:$0xff]  ;;  %v827_v33 = vld [vmem:[#allocation6 + $0xcd8] sm:$0xff] }
 0x2c5   :  { %v5400_v37 = vcombine.high %v826_v12, %v830_v25  ;;  %v5402_v38 = vcombine.high %v827_v33, %v831_v34  ;;  %v5401_v46 = vcombine.low %v827_v33, %v831_v34  ;;  %v871_v33 = vld [vmem:[#allocation6 + $0xe38] sm:$0xff] }
 0x2c6   :  { %3985 = vmatpush1.bf16.msra.mxu0 %v5343_v45  ;;  %v834_v45 = vld [vmem:[#allocation6 + $0xd10] sm:$0xff] }
 0x2c7   :  { %4157 = vmatpush1.bf16.msra.mxu1 %v5345_v41  ;;  %3986 = vmatprep.subr.bf16.mxu0 %v5352_v42  ;;  %v838_v41 = vld [vmem:[#allocation6 + $0xd30] sm:$0xff]  ;;  %v835_v42 = vld [vmem:[#allocation6 + $0xd18] sm:$0xff] }
 0x2c8   :  { %4158 = vmatprep.subr.bf16.mxu1 %v5354_v43  ;;  %v839_v43 = vld [vmem:[#allocation6 + $0xd38] sm:$0xff]  ;;  %v5408_v47 = vcombine.high %v834_v45, %v838_v41 }
 0x2c9   :  { %v5410_v48 = vcombine.high %v835_v42, %v839_v43  ;;  %v5409_v16 = vcombine.low %v835_v42, %v839_v43 }
 0x2ca   :  { %3987 = vmatpush1.bf16.msra.mxu0 %v5351_v50  ;;  %v846_v50 = vld [vmem:[#allocation6 + $0xd70] sm:$0xff] }
 0x2cb   :  { %4159 = vmatpush1.bf16.msra.mxu1 %v5353_v51  ;;  %3988 = vmatprep.subr.bf16.mxu0 %v5360_v52  ;;  %v843_v51 = vld [vmem:[#allocation6 + $0xd58] sm:$0xff]  ;;  %v5416_v55 = vcombine.high %v842_v49, %v846_v50 }
 0x2cc   :  { %4160 = vmatprep.subr.bf16.mxu1 %v5362_v53  ;;  %v847_v52 = vld [vmem:[#allocation6 + $0xd78] sm:$0xff]  ;;  %v5407_v53 = vcombine.low %v834_v45, %v838_v41 }
 0x2cd   :  { %v5418_v56 = vcombine.high %v843_v51, %v847_v52 }
 0x2ce   :  { %3989 = vmatpush1.bf16.msra.mxu0 %v5359_v57  ;;  %v850_v57 = vld [vmem:[#allocation6 + $0xd90] sm:$0xff] }
 0x2cf   :  { %4161 = vmatpush1.bf16.msra.mxu1 %v5361_v58  ;;  %3990 = vmatprep.subr.bf16.mxu0 %v5368_v59  ;;  %v854_v58 = vld [vmem:[#allocation6 + $0xdb0] sm:$0xff]  ;;  %v933_v59 = vrot.slane %v6181_v54, %v117_v28  ;;  %v5417_v28 = vcombine.low %v843_v51, %v847_v52 }
 0x2d0   :  { %4162 = vmatprep.subr.bf16.mxu1 %v5370_v60  ;;  %v941_v60 = vrot.slane %v6181_v54, %v125_v31  ;;  %v5424_v31 = vcombine.high %v850_v57, %v854_v58  ;;  %v5423_v30 = vcombine.low %v850_v57, %v854_v58 }
 0x2d2   :  { %3991 = vmatpush1.bf16.msra.mxu0 %v5367_v24  ;;  %v5415_v24 = vcombine.low %v842_v49, %v846_v50 }
 0x2d3   :  { %4163 = vmatpush1.bf16.msra.mxu1 %v5369_v61  ;;  %4003 = vmatprep.subr.bf16.mxu0 %v5376_v62  ;;  %v6195_v61 = vld [vmem:[#allocation6 + $0xdd0] sm:$0xff] }
 0x2d4   :  { %4175 = vmatprep.subr.bf16.mxu1 %v5378_v63  ;;  %v6197_v62 = vld [vmem:[#allocation6 + $0xdf0] sm:$0xff]  ;;  %v6199_v63 = vld [vmem:[#allocation6 + $0xdd8] sm:$0xff] }
 0x2d5   :  { %3993 = vmatmul.mubr.bf16.vlgmr.msra.gmra.mrb[12].mxu0 %v6141_v19  ;;  %v5431_v7 = vcombine.low %v6195_v61, %v6197_v62 }
 0x2d6   :  { %4165 = vmatmul.mubr.bf16.vlgmr.msra.gmra.mrb[12].mxu1 %v6141_v19  ;;  %4004 = vmatpush1.bf16.msra.mxu0 %v5375_v23  ;;  %v5393_v19 = vcombine.low %v819_v9, %v823_v10 }
 0x2d7   :  { %4035 = vmatprep.mubr.bf16.mxu0 %v6155_v14  ;;  %4176 = vmatpush1.bf16.msra.mxu1 %v5377_v3 }
 0x2d8   :  { %4207 = vmatprep.mubr.bf16.mxu1 %v6155_v14  ;;  %4005 = vmatprep.subr.bf16.mxu0 %v5384_v4  ;;  %v5399_v14 = vcombine.low %v826_v12, %v830_v25  ;;  %v870_v12 = vld [vmem:[#allocation6 + $0xe30] sm:$0xff]  ;;  %v867_v25 = vld [vmem:[#allocation6 + $0xe18] sm:$0xff] }
 0x2d9   :  { %4177 = vmatprep.subr.bf16.mxu1 %v5386_v8  ;;  %v6205_v8 = vld [vmem:[#allocation6 + $0xe10] sm:$0xff] }
 0x2da   :  { %4006 = vmatpush1.bf16.msra.mxu0 %v5383_v11  ;;  %v5440_v49 = vcombine.high %v6205_v8, %v870_v12 }
 0x2db   :  { %4178 = vmatpush1.bf16.msra.mxu1 %v5385_v13  ;;  %4007 = vmatprep.subr.bf16.mxu0 %v5392_v15  ;;  %v5432_v15 = vcombine.high %v6195_v61, %v6197_v62  ;;  %v879_v61 = vld [vmem:[#allocation6 + $0xe78] sm:$0xff]  ;;  %v5439_v62 = vcombine.low %v6205_v8, %v870_v12  ;;  %v894_v8 = vld [vmem:[#allocation6 + $0xef0] sm:$0xff] }
 0x2dc   :  { %4179 = vmatprep.subr.bf16.mxu1 %v5394_v21  ;;  %v5434_v21 = vcombine.high %v6199_v63, %v6201_v29  ;;  %v898_v12 = vld [vmem:[#allocation6 + $0xf10] sm:$0xff] }
 0x2de   :  { %4008 = vmatpush1.bf16.msra.mxu0 %v5391_v35 }
 0x2df   :  { %4180 = vmatpush1.bf16.msra.mxu1 %v5393_v19  ;;  %4009 = vmatprep.subr.bf16.mxu0 %v5400_v37 }
 0x2e0   :  { %4181 = vmatprep.subr.bf16.mxu1 %v5402_v38 }
 0x2e2   :  { %4010 = vmatpush1.bf16.msra.mxu0 %v5399_v14 }
 0x2e3   :  { %4182 = vmatpush1.bf16.msra.mxu1 %v5401_v46  ;;  %4011 = vmatprep.subr.bf16.mxu0 %v5408_v47 }
 0x2e4   :  { %4183 = vmatprep.subr.bf16.mxu1 %v5410_v48  ;;  %v5433_v48 = vcombine.low %v6199_v63, %v6201_v29  ;;  %v5441_v63 = vcombine.low %v867_v25, %v871_v33  ;;  %v5448_v29 = vcombine.high %v874_v18, %v878_v20 }
 0x2e6   :  { %4012 = vmatpush1.bf16.msra.mxu0 %v5407_v53  ;;  %v5442_v53 = vcombine.high %v867_v25, %v871_v33  ;;  %v902_v25 = vld [vmem:[#allocation6 + $0xf30] sm:$0xff]  ;;  %v899_v33 = vld [vmem:[#allocation6 + $0xf18] sm:$0xff] }
 0x2e7   :  { %4184 = vmatpush1.bf16.msra.mxu1 %v5409_v16  ;;  %4013 = vmatprep.subr.bf16.mxu0 %v5416_v55 }
 0x2e8   :  { %v3693_v0 = vpop.f32.mrb[8].mxu0  ;;  %v3865_v23 = vpop.f32.mrb[8].mxu1  ;;  %4185 = vmatprep.subr.bf16.mxu1 %v5418_v56 }
 0x2e9   :  { %v5654_v2 = vadd.f32 %v3693_v0, %v933_v59  ;;  %v5658_v32 = vadd.f32 %v3865_v23, %v941_v60  ;;  %v3695_v3 = vpop.f32.mrb[9].mxu0  ;;  %v3867_v4 = vpop.f32.mrb[9].mxu1  ;;  %v882_v23 = vld [vmem:[#allocation6 + $0xe90] sm:$0xff] }
 0x2ea   :  { %v5655_v9 = vadd.f32 %v3695_v3, %v937_v22  ;;  %v5659_v10 = vadd.f32 %v3867_v4, %v945_v36  ;;  %v3697_v11 = vpop.f32.mrb[10].mxu0  ;;  %v3869_v13 = vpop.f32.mrb[10].mxu1  ;;  %4014 = vmatpush1.bf16.msra.mxu0 %v5415_v24  ;;  %v875_v24 = vld [vmem:[#allocation6 + $0xe58] sm:$0xff] }
 0x2eb   :  { %v4218_v34 = vmul.f32 0.1, %v5654_v2  ;;  %v4220_v35 = vmul.f32 0.1, %v5658_v32  ;;  %v5656_v19 = vadd.f32 %v3697_v11, %v933_v59  ;;  %v5660_v37 = vadd.f32 %v3869_v13, %v941_v60  ;;  %4186 = vmatpush1.bf16.msra.mxu1 %v5417_v28  ;;  %v3699_v38 = vpop.f32.mrb[11].mxu0  ;;  %v3871_v45 = vpop.f32.mrb[11].mxu1  ;;  %4015 = vmatprep.subr.bf16.mxu0 %v5424_v31 }
 0x2ec   :  { %v4219_v41 = vmul.f32 0.1, %v5655_v9  ;;  %v4221_v42 = vmul.f32 0.1, %v5659_v10  ;;  %v5657_v43 = vadd.f32 %v3699_v38, %v937_v22  ;;  %v5661_v14 = vadd.f32 %v3871_v45, %v945_v36  ;;  %4187 = vmatprep.subr.bf16.mxu1 %v5426_v1  ;;  %v883_v1 = vld [vmem:[#allocation6 + $0xe98] sm:$0xff]  ;;  %v906_v45 = vld [vmem:[#allocation6 + $0xf50] sm:$0xff] }
 0x2ed   :  { %v4226_v46 = vmul.f32 0.1, %v5656_v19  ;;  %v4228_v47 = vmul.f32 0.1, %v5660_v37  ;;  %v4234_v50 = vmax.f32 %v5654_v2, %v4218_v34  ;;  %v4236_v16 = vmax.f32 %v5658_v32, %v4220_v35  ;;  %v887_v2 = vld [vmem:[#allocation6 + $0xeb8] sm:$0xff] }
 0x2ee   :  { %v4227_v51 = vmul.f32 0.1, %v5657_v43  ;;  %v4229_v52 = vmul.f32 0.1, %v5661_v14  ;;  %4016 = vmatpush1.bf16.msra.mxu0 %v5423_v30  ;;  %v4235_v57 = vmax.f32 %v5655_v9, %v4219_v41  ;;  %v4237_v58 = vmax.f32 %v5659_v10, %v4221_v42  ;;  %v886_v30 = vld [vmem:[#allocation6 + $0xeb0] sm:$0xff]  ;;  %v891_v9 = vld [vmem:[#allocation6 + $0xed8] sm:$0xff] }
 0x2ef   :  { %v4242_v55 = vmax.f32 %v5656_v19, %v4226_v46  ;;  %v4244_v56 = vmax.f32 %v5660_v37, %v4228_v47  ;;  %4188 = vmatpush1.bf16.msra.mxu1 %v5425_v6  ;;  %4017 = vmatprep.subr.bf16.mxu0 %v5432_v15  ;;  %v5450_v0 = vcombine.high %v875_v24, %v879_v61  ;;  %v895_v10 = vld [vmem:[#allocation6 + $0xef8] sm:$0xff]  ;;  %v910_v41 = vld [vmem:[#allocation6 + $0xf70] sm:$0xff] }
 0x2f0   :  { %v4243_v59 = vmax.f32 %v5657_v43, %v4227_v51  ;;  %v4245_v60 = vmax.f32 %v5661_v14, %v4229_v52  ;;  %4189 = vmatprep.subr.bf16.mxu1 %v5434_v21  ;;  %v5447_v32 = vcombine.low %v874_v18, %v878_v20  ;;  %v5449_v3 = vcombine.low %v875_v24, %v879_v61  ;;  %v903_v34 = vld [vmem:[#allocation6 + $0xf38] sm:$0xff] }
 0x2f1   :  { %v6214_v22 = vpack.c.bf16 %v4242_v55, %v4234_v50  ;;  %v6216_v36 = vpack.c.bf16 %v4244_v56, %v4236_v16  ;;  %v5456_v4 = vcombine.high %v882_v23, %v886_v30  ;;  %v5458_v6 = vcombine.high %v883_v1, %v887_v2  ;;  %v907_v42 = vld [vmem:[#allocation6 + $0xf58] sm:$0xff]  ;;  %v918_v50 = vld [vmem:[#allocation6 + $0xfb0] sm:$0xff] }
 0x2f2   :  { %4018 = vmatpush1.bf16.msra.mxu0 %v5431_v7  ;;  %v6219_v28 = vpack.c.bf16 %v4243_v59, %v4235_v57  ;;  %v6221_v31 = vpack.c.bf16 %v4245_v60, %v4237_v58  ;;  %v890_v7 = vld [vmem:[#allocation6 + $0xed0] sm:$0xff]  ;;  %v5455_v11 = vcombine.low %v882_v23, %v886_v30  ;;  %v5457_v13 = vcombine.low %v883_v1, %v887_v2  ;;  %v911_v43 = vld [vmem:[#allocation6 + $0xf78] sm:$0xff]  ;;  %v5732_v23 = vld [vmem:[#allocation9] sm:$0xff]  }
 0x2f3   :  { %4190 = vmatpush1.bf16.msra.mxu1 %v5433_v48  ;;  %4019 = vmatprep.subr.bf16.mxu0 %v5440_v49  ;;  %v5464_v15 = vcombine.high %v890_v7, %v894_v8  ;;  %v5466_v21 = vcombine.high %v891_v9, %v895_v10  ;;  %v5463_v35 = vcombine.low %v890_v7, %v894_v8  ;;  %v914_v49 = vld [vmem:[#allocation6 + $0xf90] sm:$0xff]  ;;  %v915_v51 = vld [vmem:[#allocation6 + $0xf98] sm:$0xff]  ;;  %v5733_v30 = vld [vmem:[#allocation9 + $0x80] sm:$0xff]  }
 0x2f4   :  { %4191 = vmatprep.subr.bf16.mxu1 %v5442_v53  ;;  %v5465_v19 = vcombine.low %v891_v9, %v895_v10  ;;  %v5472_v37 = vcombine.high %v898_v12, %v902_v25  ;;  %v5474_v38 = vcombine.high %v899_v33, %v903_v34  ;;  %v5471_v14 = vcombine.low %v898_v12, %v902_v25  ;;  %v919_v52 = vld [vmem:[#allocation6 + $0xfb8] sm:$0xff]  ;;  %v922_v57 = vld [vmem:[#allocation6 + $0xfd0] sm:$0xff]  ;;  %v5742_v9 = vld [vmem:[#allocation9 + $0x58] sm:$0xff]  }
 0x2f5   :  { %v5473_v46 = vcombine.low %v899_v33, %v903_v34  ;;  %v5480_v47 = vcombine.high %v906_v45, %v910_v41  ;;  %v5482_v48 = vcombine.high %v907_v42, %v911_v43  ;;  %v5479_v53 = vcombine.low %v906_v45, %v910_v41  ;;  %v926_v58 = vld [vmem:[#allocation6 + $0xff0] sm:$0xff]  ;;  %v923_v59 = vld [vmem:[#allocation6 + $0xfd8] sm:$0xff]  ;;  %v5744_v10 = vld [vmem:[#allocation9 + $0x18] sm:$0xff]  }
 0x2f6   :  { %4020 = vmatpush1.bf16.msra.mxu0 %v5439_v62  ;;  %v5481_v16 = vcombine.low %v907_v42, %v911_v43  ;;  %v5488_v55 = vcombine.high %v914_v49, %v918_v50  ;;  %v5490_v56 = vcombine.high %v915_v51, %v919_v52  ;;  %v927_v60 = vld [vmem:[#allocation6 + $0xff8] sm:$0xff]  ;;  %v5487_v18 = vcombine.low %v914_v49, %v918_v50  ;;  %v5734_v1 = vld [vmem:[#allocation9 + $0x48] sm:$0xff]   ;;  %v5759_v45 = vld [vmem:[#allocation9 + $0xf8] sm:$0xff]  }
 0x2f7   :  { %4192 = vmatpush1.bf16.msra.mxu1 %v5441_v63  ;;  %4021 = vmatprep.subr.bf16.mxu0 %v5448_v29  ;;  %v5489_v20 = vcombine.low %v915_v51, %v919_v52  ;;  %v5496_v24 = vcombine.high %v922_v57, %v926_v58  ;;  %v5498_v61 = vcombine.high %v923_v59, %v927_v60  ;;  %v5730_v29 = vld [vmem:[#allocation9 + $0x40] sm:$0xff]   ;;  %v5735_v2 = vld [vmem:[#allocation9 + $0xc8] sm:$0xff]   ;;  %v5740_v7 = vld [vmem:[#allocation9 + $0x10] sm:$0xff]  }
 0x2f8   :  { %4193 = vmatprep.subr.bf16.mxu1 %v5450_v0  ;;  %v5495_v62 = vcombine.low %v922_v57, %v926_v58  ;;  %v5497_v63 = vcombine.low %v923_v59, %v927_v60  ;;  %v5731_v0 = vld [vmem:[#allocation9 + $0xc0] sm:$0xff]   ;;  %v5741_v8 = vld [vmem:[#allocation9 + $0x90] sm:$0xff]   ;;  %v5751_v12 = vld [vmem:[#allocation9 + $0xe8] sm:$0xff]  }
 0x2f9   :  { %v5752_v25 = vld [vmem:[#allocation9 + $0x28] sm:$0xff]   ;;  %v5754_v34 = vld [vmem:[#allocation9 + $0x70] sm:$0xff]   ;;  %v5760_v41 = vld [vmem:[#allocation9 + $0x38] sm:$0xff]  }
 0x2fa   :  { %4022 = vmatpush1.bf16.msra.mxu0 %v5447_v32  ;;  %v5736_v32 = vld [vmem:[#allocation9 + $0x8] sm:$0xff]   ;;  %v5761_v42 = vld [vmem:[#allocation9 + $0xb8] sm:$0xff]   ;;  %v5762_v43 = vld [vmem:[#allocation9 + $0x140] sm:$0xff]  }
 0x2fb   :  { %4194 = vmatpush1.bf16.msra.mxu1 %v5449_v3  ;;  %4023 = vmatprep.subr.bf16.mxu0 %v5456_v4  ;;  %v5737_v3 = vld [vmem:[#allocation9 + $0x88] sm:$0xff]   ;;  %v5738_v4 = vld [vmem:[#allocation9 + $0x50] sm:$0xff]   ;;  %v5775_v57 = vld [vmem:[#allocation9 + $0x1d8] sm:$0xff]  }
 0x2fc   :  { %4195 = vmatprep.subr.bf16.mxu1 %v5458_v6  ;;  %v5739_v6 = vld [vmem:[#allocation9 + $0xd0] sm:$0xff]   ;;  %v5753_v33 = vld [vmem:[#allocation9 + $0xa8] sm:$0xff]   ;;  %v5778_v58 = vld [vmem:[#allocation9 + $0x160] sm:$0xff]  }
 0x2fd   :  { %v5767_v49 = vld [vmem:[#allocation9 + $0x1c8] sm:$0xff]   ;;  %v5770_v52 = vld [vmem:[#allocation9 + $0x150] sm:$0xff]   ;;  %v5779_v59 = vld [vmem:[#allocation9 + $0x1e0] sm:$0xff]  }
 0x2fe   :  { %4024 = vmatpush1.bf16.msra.mxu0 %v5455_v11  ;;  %v5746_v11 = vld [vmem:[#allocation9 + $0x60] sm:$0xff]   ;;  %v5768_v50 = vld [vmem:[#allocation9 + $0x108] sm:$0xff]  }
 0x2ff   :  { %4196 = vmatpush1.bf16.msra.mxu1 %v5457_v13  ;;  %4025 = vmatprep.subr.bf16.mxu0 %v5464_v15  ;;  %v5747_v13 = vld [vmem:[#allocation9 + $0xe0] sm:$0xff]   ;;  %v5769_v51 = vld [vmem:[#allocation9 + $0x188] sm:$0xff]  }
 0x300   :  { %4197 = vmatprep.subr.bf16.mxu1 %v5466_v21  ;;  %v5749_v15 = vld [vmem:[#allocation9 + $0xa0] sm:$0xff]   ;;  %v5750_v21 = vld [vmem:[#allocation9 + $0x68] sm:$0xff]  }
 0x301   :  { %v5780_v60 = vld [vmem:[#allocation9 + $0x120] sm:$0xff]  }
 0x302   :  { %4026 = vmatpush1.bf16.msra.mxu0 %v5463_v35  ;;  %v5755_v35 = vld [vmem:[#allocation9 + $0xf0] sm:$0xff]  }
 0x303   :  { %4198 = vmatpush1.bf16.msra.mxu1 %v5465_v19  ;;  %4027 = vmatprep.subr.bf16.mxu0 %v5472_v37  ;;  %v5756_v19 = vld [vmem:[#allocation9 + $0x30] sm:$0xff]  }
 0x304   :  { %4199 = vmatprep.subr.bf16.mxu1 %v5474_v38  ;;  %v5757_v37 = vld [vmem:[#allocation9 + $0xb0] sm:$0xff]   ;;  %v5758_v38 = vld [vmem:[#allocation9 + $0x78] sm:$0xff]  }
 0x306   :  { %4028 = vmatpush1.bf16.msra.mxu0 %v5471_v14  ;;  %v5763_v14 = vld [vmem:[#allocation9 + $0x1c0] sm:$0xff]  }
 0x307   :  { %4200 = vmatpush1.bf16.msra.mxu1 %v5473_v46  ;;  %4029 = vmatprep.subr.bf16.mxu0 %v5480_v47  ;;  %v5764_v46 = vld [vmem:[#allocation9 + $0x100] sm:$0xff]  }
 0x308   :  { %4201 = vmatprep.subr.bf16.mxu1 %v5482_v48  ;;  %v5765_v47 = vld [vmem:[#allocation9 + $0x180] sm:$0xff]   ;;  %v5766_v48 = vld [vmem:[#allocation9 + $0x148] sm:$0xff]  }
 0x30a   :  { %4030 = vmatpush1.bf16.msra.mxu0 %v5479_v53  ;;  %v5771_v53 = vld [vmem:[#allocation9 + $0x1d0] sm:$0xff]  }
 0x30b   :  { %4202 = vmatpush1.bf16.msra.mxu1 %v5481_v16  ;;  %4031 = vmatprep.subr.bf16.mxu0 %v5488_v55  ;;  %v5772_v16 = vld [vmem:[#allocation9 + $0x110] sm:$0xff]  }
 0x30c   :  { %4203 = vmatprep.subr.bf16.mxu1 %v5490_v56  ;;  %v5773_v55 = vld [vmem:[#allocation9 + $0x190] sm:$0xff]   ;;  %v5774_v56 = vld [vmem:[#allocation9 + $0x158] sm:$0xff]  }
 0x30e   :  { %4032 = vmatpush1.bf16.msra.mxu0 %v5487_v18  ;;  %v5781_v18 = vld [vmem:[#allocation9 + $0x1a0] sm:$0xff]  }
 0x30f   :  { %4204 = vmatpush1.bf16.msra.mxu1 %v5489_v20  ;;  %4033 = vmatprep.subr.bf16.mxu0 %v5496_v24  ;;  %v5782_v20 = vld [vmem:[#allocation9 + $0x168] sm:$0xff]  }
 0x310   :  { %4205 = vmatprep.subr.bf16.mxu1 %v5498_v61  ;;  %v5783_v24 = vld [vmem:[#allocation9 + $0x1e8] sm:$0xff]  }
 0x311   :  { %v5784_v61 = vld [vmem:[#allocation9 + $0x128] sm:$0xff]  }
 0x312   :  { %4034 = vmatpush1.bf16.msra.mxu0 %v5495_v62  ;;  %v5785_v62 = vld [vmem:[#allocation9 + $0x1a8] sm:$0xff]  }
 0x313   :  { %4206 = vmatpush1.bf16.msra.mxu1 %v5497_v63  ;;  %5566 = vmatprep.subr.bf16.mxu0 %v5730_v29  ;;  %v5786_v63 = vld [vmem:[#allocation9 + $0x170] sm:$0xff]  }
 0x314   :  { %5588 = vmatprep.subr.bf16.mxu1 %v5731_v0  ;;  %v5787_v29 = vld [vmem:[#allocation9 + $0x1f0] sm:$0xff]  }
 0x315   :  { %4036 = vmatmul.mubr.bf16.vlgmr.msra.gmra.mrb[12].mxu0 %v6153_v5  ;;  %v5788_v0 = vld [vmem:[#allocation9 + $0x130] sm:$0xff]  }
 0x316   :  { %4208 = vmatmul.mubr.bf16.vlgmr.msra.gmra.mrb[12].mxu1 %v6153_v5  ;;  %5567 = vmatpush3.bf16.msra.mxu0 %v5732_v23  ;;  %v5743_v5 = vld [vmem:[#allocation9 + $0xd8] sm:$0xff]   ;;  %v5789_v23 = vld [vmem:[#allocation9 + $0x1b0] sm:$0xff]  }
 0x317   :  { %4809 = vmatprep.mubr.bf16.mxu0 %v6219_v28  ;;  %5589 = vmatpush3.bf16.msra.mxu1 %v5733_v30  ;;  %v5745_v28 = vld [vmem:[#allocation9 + $0x98] sm:$0xff]  }
 0x318   :  { %4850 = vmatprep.mubr.bf16.mxu1 %v6221_v31  ;;  %5568 = vmatprep.subr.bf16.mxu0 %v5734_v1  ;;  %v5748_v31 = vld [vmem:[#allocation9 + $0x20] sm:$0xff]   ;;  %v5790_v30 = vld [vmem:[#allocation9 + $0x178] sm:$0xff]  }
 0x319   :  { %5590 = vmatprep.subr.bf16.mxu1 %v5735_v2  ;;  %v5791_v1 = vld [vmem:[#allocation9 + $0x1f8] sm:$0xff]  }
 0x31a   :  { %5569 = vmatpush3.bf16.msra.mxu0 %v5736_v32  ;;  %v5792_v2 = vld [vmem:[#allocation9 + $0x138] sm:$0xff]  }
 0x31b   :  { %5591 = vmatpush3.bf16.msra.mxu1 %v5737_v3  ;;  %5570 = vmatprep.subr.bf16.mxu0 %v5738_v4  ;;  %v5793_v32 = vld [vmem:[#allocation9 + $0x1b8] sm:$0xff]   ;;  %v949_v3 = vrot.slane %v6181_v54, %v133_v40  ;;  %v957_v4 = vrot.slane %v6181_v54, %v141_v17 }
 0x31c   :  { %5592 = vmatprep.subr.bf16.mxu1 %v5739_v6  ;;  %v953_v6 = vrot.slane %v6181_v54, %v137_v44 }
 0x31e   :  { %5571 = vmatpush3.bf16.msra.mxu0 %v5740_v7  ;;  %v961_v7 = vrot.slane %v6181_v54, %v145_v39 }
 0x31f   :  { %5593 = vmatpush3.bf16.msra.mxu1 %v5741_v8  ;;  %5572 = vmatprep.subr.bf16.mxu0 %v5742_v9 }
 0x320   :  { %5594 = vmatprep.subr.bf16.mxu1 %v5743_v5 }
 0x322   :  { %5573 = vmatpush3.bf16.msra.mxu0 %v5744_v10 }
 0x323   :  { %5595 = vmatpush3.bf16.msra.mxu1 %v5745_v28  ;;  %5574 = vmatprep.subr.bf16.mxu0 %v5746_v11 }
 0x324   :  { %5596 = vmatprep.subr.bf16.mxu1 %v5747_v13 }
 0x326   :  { %5575 = vmatpush3.bf16.msra.mxu0 %v5748_v31 }
 0x327   :  { %5597 = vmatpush3.bf16.msra.mxu1 %v5749_v15  ;;  %5576 = vmatprep.subr.bf16.mxu0 %v5750_v21 }
 0x328   :  { %5598 = vmatprep.subr.bf16.mxu1 %v5751_v12 }
 0x32a   :  { %5577 = vmatpush3.bf16.msra.mxu0 %v5752_v25 }
 0x32b   :  { %5599 = vmatpush3.bf16.msra.mxu1 %v5753_v33  ;;  %5578 = vmatprep.subr.bf16.mxu0 %v5754_v34 }
 0x32c   :  { %5600 = vmatprep.subr.bf16.mxu1 %v5755_v35 }
 0x32e   :  { %5579 = vmatpush3.bf16.msra.mxu0 %v5756_v19 }
 0x32f   :  { %5601 = vmatpush3.bf16.msra.mxu1 %v5757_v37  ;;  %5580 = vmatprep.subr.bf16.mxu0 %v5758_v38 }
 0x330   :  { %5602 = vmatprep.subr.bf16.mxu1 %v5759_v45 }
 0x332   :  { %5581 = vmatpush3.bf16.msra.mxu0 %v5760_v41 }
 0x333   :  { %5603 = vmatpush3.bf16.msra.mxu1 %v5761_v42  ;;  %5610 = vmatprep.subr.bf16.mxu0 %v5762_v43 }
 0x334   :  { %5632 = vmatprep.subr.bf16.mxu1 %v5763_v14 }
 0x335   :  { %4810 = vmatmul.mubr.bf16.vlgmr.msra.gmra.mrb[16].mxu0 %v6214_v22  ;;  %v5776_v22 = vld [vmem:[#allocation9 + $0x118] sm:$0xff]  }
 0x336   :  { %4851 = vmatmul.mubr.bf16.vlgmr.msra.gmra.mrb[16].mxu1 %v6216_v36  ;;  %5611 = vmatpush3.bf16.msra.mxu0 %v5764_v46  ;;  %v5777_v36 = vld [vmem:[#allocation9 + $0x198] sm:$0xff]  }
 0x337   :  { %5633 = vmatpush3.bf16.msra.mxu1 %v5765_v47  ;;  %5612 = vmatprep.subr.bf16.mxu0 %v5766_v48 }
 0x338   :  { %5634 = vmatprep.subr.bf16.mxu1 %v5767_v49 }
 0x33a   :  { %5613 = vmatpush3.bf16.msra.mxu0 %v5768_v50 }
 0x33b   :  { %5635 = vmatpush3.bf16.msra.mxu1 %v5769_v51  ;;  %5614 = vmatprep.subr.bf16.mxu0 %v5770_v52 }
 0x33c   :  { %5636 = vmatprep.subr.bf16.mxu1 %v5771_v53 }
 0x33e   :  { %5615 = vmatpush3.bf16.msra.mxu0 %v5772_v16 }
 0x33f   :  { %5637 = vmatpush3.bf16.msra.mxu1 %v5773_v55  ;;  %5616 = vmatprep.subr.bf16.mxu0 %v5774_v56  ;;  %v5499_v55 = vld [vmem:[#allocation10] ss:$0 sm:$0xff] }
 0x340   :  { %5638 = vmatprep.subr.bf16.mxu1 %v5775_v57 }
 0x342   :  { %5617 = vmatpush3.bf16.msra.mxu0 %v5776_v22 }
 0x343   :  { %5639 = vmatpush3.bf16.msra.mxu1 %v5777_v36  ;;  %5618 = vmatprep.subr.bf16.mxu0 %v5778_v58 }
 0x344   :  { %5640 = vmatprep.subr.bf16.mxu1 %v5779_v59 }
 0x346   :  { %5619 = vmatpush3.bf16.msra.mxu0 %v5780_v60 }
 0x347   :  { %5641 = vmatpush3.bf16.msra.mxu1 %v5781_v18  ;;  %5620 = vmatprep.subr.bf16.mxu0 %v5782_v20 }
 0x348   :  { %5642 = vmatprep.subr.bf16.mxu1 %v5783_v24 }
 0x34a   :  { %5621 = vmatpush3.bf16.msra.mxu0 %v5784_v61 }
 0x34b   :  { %5643 = vmatpush3.bf16.msra.mxu1 %v5785_v62  ;;  %5622 = vmatprep.subr.bf16.mxu0 %v5786_v63 }
 0x34c   :  { %5644 = vmatprep.subr.bf16.mxu1 %v5787_v29 }
 0x34e   :  { %5623 = vmatpush3.bf16.msra.mxu0 %v5788_v0 }
 0x34f   :  { %5645 = vmatpush3.bf16.msra.mxu1 %v5789_v23  ;;  %5624 = vmatprep.subr.bf16.mxu0 %v5790_v30 }
 0x350   :  { %5646 = vmatprep.subr.bf16.mxu1 %v5791_v1 }
 0x352   :  { %5625 = vmatpush3.bf16.msra.mxu0 %v5792_v2 }
 0x353   :  { %5647 = vmatpush3.bf16.msra.mxu1 %v5793_v32 }
 0x3e8   :  { %v4037_v8 = vpop.f32.mrb[12].mxu0 }
 0x3e9   :  { %v5662_v9 = vadd.f32 %v4037_v8, %v949_v3  ;;  %v4209_v5 = vpop.f32.mrb[12].mxu1  ;;  %v4039_v10 = vpop.f32.mrb[13].mxu0 }
 0x3ea   :  { %v5666_v28 = vadd.f32 %v4209_v5, %v957_v4  ;;  %v5663_v11 = vadd.f32 %v4039_v10, %v953_v6  ;;  %v4211_v13 = vpop.f32.mrb[13].mxu1  ;;  %v4041_v40 = vpop.f32.mrb[14].mxu0 }
 0x3eb   :  { %v4222_v31 = vmul.f32 0.1, %v5662_v9  ;;  %v5667_v15 = vadd.f32 %v4211_v13, %v961_v7  ;;  %v5664_v21 = vadd.f32 %v4041_v40, %v949_v3  ;;  %v4213_v17 = vpop.f32.mrb[14].mxu1  ;;  %v4043_v12 = vpop.f32.mrb[15].mxu0 }
 0x3ec   :  { %v4224_v25 = vmul.f32 0.1, %v5666_v28  ;;  %v4223_v33 = vmul.f32 0.1, %v5663_v11  ;;  %v5668_v44 = vadd.f32 %v4213_v17, %v957_v4  ;;  %v5665_v34 = vadd.f32 %v4043_v12, %v953_v6  ;;  %v4215_v27 = vpop.f32.mrb[15].mxu1 }
 0x3ed   :  { %v4225_v35 = vmul.f32 0.1, %v5667_v15  ;;  %v4230_v39 = vmul.f32 0.1, %v5664_v21  ;;  %v5669_v54 = vadd.f32 %v4215_v27, %v961_v7  ;;  %v4238_v38 = vmax.f32 %v5662_v9, %v4222_v31 }
 0x3ee   :  { %v4232_v19 = vmul.f32 0.1, %v5668_v44  ;;  %v4231_v37 = vmul.f32 0.1, %v5665_v34  ;;  %v4240_v42 = vmax.f32 %v5666_v28, %v4224_v25  ;;  %v4239_v43 = vmax.f32 %v5663_v11, %v4223_v33 }
 0x3ef   :  { %v4246_v45 = vmax.f32 %v5664_v21, %v4230_v39  ;;  %v4233_v41 = vmul.f32 0.1, %v5669_v54  ;;  %v4241_v47 = vmax.f32 %v5667_v15, %v4225_v35  ;;  %v4942_v12 = vand.u32 127, %v115_v26 }
 0x3f0   :  { %v4248_v14 = vmax.f32 %v5668_v44, %v4232_v19  ;;  %v4247_v46 = vmax.f32 %v5665_v34, %v4231_v37 }
 0x3f1   :  { %v4254_v48 = vpack.c.bf16 %v4246_v45, %v4238_v38  ;;  %v4249_v49 = vmax.f32 %v5669_v54, %v4233_v41  ;;  %vm4943_vm1 = vcmp.lt.s32.totalorder %v4942_v12, 8 }
 0x3f2   :  { %v4256_v50 = vpack.c.bf16 %v4248_v14, %v4240_v42  ;;  %v4255_v51 = vpack.c.bf16 %v4247_v46, %v4239_v43 }
 0x3f3   :  { %v4257_v52 = vpack.c.bf16 %v4249_v49, %v4241_v47 }
 0x3f4   :  { %4891 = vmatprep.mubr.bf16.mxu0 %v4255_v51 }
 0x3f5   :  { %4932 = vmatprep.mubr.bf16.mxu1 %v4257_v52  ;;  %4892 = vmatmul.mubr.bf16.vlgmr.msra.gmra.mrb[20].mxu0 %v4254_v48 }
 0x3f6   :  { %4933 = vmatmul.mubr.bf16.vlgmr.msra.gmra.mrb[20].mxu1 %v4256_v50 }
 0x408   :  { %v5582_v53 = vpop.f32.mrb[16].mxu0 }
 0x409   :  { %v5604_v16 = vpop.f32.mrb[16].mxu1  ;;  %v5583_v56 = vpop.f32.mrb[17].mxu0 }
 0x40a   :  { %v5584_v57 = vadd.f32 %v5583_v56, %v5582_v53  ;;  %v5605_v22 = vpop.f32.mrb[17].mxu1  ;;  %v5585_v36 = vpop.f32.mrb[18].mxu0 }
 0x40b   :  { %v5606_v58 = vadd.f32 %v5605_v22, %v5604_v16  ;;  %v5607_v59 = vpop.f32.mrb[18].mxu1  ;;  %v5586_v60 = vpop.f32.mrb[19].mxu0 }
 0x40c   :  { %v4812_v18 = vadd.f32 %v5584_v57, %v5499_v55  ;;  %v5587_v20 = vadd.f32 %v5586_v60, %v5585_v36  ;;  %v5608_v24 = vpop.f32.mrb[19].mxu1 }
 0x40d   :  { %v5609_v61 = vadd.f32 %v5608_v24, %v5607_v59 }
 0x40e   :  { %v4853_v62 = vadd.f32 %v5606_v58, %v4812_v18  ;;  %v4815_v63 = vadd.f32 %v5587_v20, %v5499_v55 }
 0x410   :  { %v4856_v29 = vadd.f32 %v5609_v61, %v4815_v63 }
 0x4c8   :  { %v5626_v0 = vpop.f32.mrb[20].mxu0 }
 0x4c9   :  { %v5648_v23 = vpop.f32.mrb[20].mxu1  ;;  %v5627_v30 = vpop.f32.mrb[21].mxu0 }
 0x4ca   :  { %v5628_v1 = vadd.f32 %v5627_v30, %v5626_v0  ;;  %v5649_v2 = vpop.f32.mrb[21].mxu1  ;;  %v5629_v32 = vpop.f32.mrb[22].mxu0 }
 0x4cb   :  { %v5650_v3 = vadd.f32 %v5649_v2, %v5648_v23  ;;  %v5651_v4 = vpop.f32.mrb[22].mxu1  ;;  %v5630_v6 = vpop.f32.mrb[23].mxu0 }
 0x4cc   :  { %v4894_v7 = vadd.f32 %v5628_v1, %v4853_v62  ;;  %v5631_v8 = vadd.f32 %v5630_v6, %v5629_v32  ;;  %v5652_v9 = vpop.f32.mrb[23].mxu1 }
 0x4cd   :  { %v5653_v5 = vadd.f32 %v5652_v9, %v5651_v4 }
 0x4ce   :  { %v4935_v10 = vadd.f32 %v5650_v3, %v4894_v7  ;;  %v4897_v28 = vadd.f32 %v5631_v8, %v4856_v29 }
 0x4d0   :  { %v5564_v11 = vmul.f32 -1.442695, %v4935_v10  ;;  %v4938_v13 = vadd.f32 %v5653_v5, %v4897_v28 }
 0x4d2   :  { %5794 = vpow2.f32 %v5564_v11  ;;  %v5565_v40 = vmul.f32 -1.442695, %v4938_v13 }
 0x4d4   :  { %5796 = vpow2.f32 %v5565_v40 }
 0x4d5   :  { %5798 = vtanh.f32 %v4935_v10 }
 0x4d6   :  { %5800 = vtanh.f32 %v4938_v13 }
 0x4dc   :  { %v5795_v31 = vpop.eup %5794 }
 0x4dd   :  { %v4950_v15 = vadd.f32 1.0, %v5795_v31 }
 0x4de   :  { %v5797_v21 = vpop.eup %5796 }
 0x4df   :  { %5802 = vrcp.f32 %v4950_v15  ;;  %v4951_v17 = vadd.f32 1.0, %v5797_v21  ;;  %v5799_v25 = vpop.eup %5798 }
 0x4e0   :  { %v5801_v33 = vpop.eup %5800  ;;  %v4960_v27 = vmul.f32 0.5, %v5799_v25 }
 0x4e1   :  { %5804 = vrcp.f32 %v4951_v17  ;;  %v4961_v19 = vmul.f32 0.5, %v5801_v33 }
 0x4e9   :  { %v5803_v44 = vpop.eup %5802 }
 0x4ea   :  { %v4956_v34 = vmul.f32 2.0, %v5803_v44 }
 0x4eb   :  { %v5805_v35 = vpop.eup %5804 }
 0x4ec   :  { %v4962_v39 = vsel %vm4943_vm1, %v4956_v34, %v4960_v27  ;;  %v4957_v54 = vmul.f32 2.0, %v5805_v35 }
 0x4ed   :  { %4964 = vst [vmem:[%s6255_s7] sm:$0xff] %v4962_v39 }
 0x4ee   :  { %v4963_v37 = vsel %vm4943_vm1, %v4957_v54, %v4961_v19 }
 0x4ef   :  { %4965 = vst [vmem:[%s6255_s7 + $0x8] sm:$0xff] %v4963_v37 }
 0x4f0   :  { %4970 = vsyncpa [#allocation3], 1 }
 0x4f1   :  { %4971 = vsyncpa [#allocation5], 1 }
 0x4f2   :  { %4972 = vsyncpa [#allocation8], 1 }
 0x4f3   :  { %4973 = vsyncpa [#allocation11], 1 }

</bundles_post_ra>
